<compile_context>
chip_gen: v6e
topology: v6e:2x2x1
jax: 0.10.0
libtpu: 0.0.40
codegen_flags: <defaults>
</compile_context>

<pallas_src>
import functools

import jax
import jax.numpy as jnp
from jax.experimental import pallas as pl
from jax.experimental.pallas import tpu as pltpu


# ----------------------------------------------------------------------------
# Layout helper: per-stage polyphase geometry.
#   hh = phase grid side  = H/2 + 2   (conv halo row/col + one zero slack)
#   L  = per-image lane stride (>= hh*hh, multiple of 32 so bt*L % 128 == 0)
# Valid pooled outputs live at per-image flat index i*hh + j, i,j < H/2.
# ----------------------------------------------------------------------------
def _stage_layout(H):
    hh = (H + 4) // 2
    L = -(-(hh * hh) // 32) * 32
    return hh, L


# ----------------------------------------------------------------------------
# Fused conv3x3 + bias + ReLU + 2x2 max-pool kernel (one batch tile / step)
# ----------------------------------------------------------------------------
def _conv_pool_kernel(ph_ref, w_ref, b_ref, o_ref, *, row_stride, n_dot, tail):
    """ph_ref: (4, Cin, bt*L) bf16 -- the 4 polyphase components (index 2a+b)
    of the zero-padded input, flattened per image with lane stride L and row
    stride `row_stride`.  Because the output uses the same per-image stride,
    every tap is one contiguous lane window.  Per pooling parity we build one
    (9*Cin, n_dot) im2col operand (K-concat of the 9 taps) and do a single MXU
    dot; the four parities are max-reduced (== 2x2 max-pool), bias + ReLU, and
    stored as one full-width lane-dense block (zero tail)."""
    slabs = [ph_ref[k] for k in range(4)]              # 4 x (Cin, bt*L)

    # 16 distinct taps, hoisted (was 36 slices).
    taps = {}
    for a in range(2):
        for b in range(2):
            slab = slabs[2 * a + b]
            for dr in range(2):
                for dc in range(2):
                    off = dr * row_stride + dc
                    taps[(a, b, dr, dc)] = slab[:, off:off + n_dot]

    w = w_ref[...]                                      # (Cout, 9*Cin)

    def parity(r, p):
        pieces = []
        for ky in range(3):
            a, dr = (r + ky) % 2, (r + ky) // 2
            for kx in range(3):
                bb, dc = (p + kx) % 2, (p + kx) // 2
                pieces.append(taps[(a, bb, dr, dc)])
        patch = jnp.concatenate(pieces, axis=0)         # (9*Cin, n_dot)
        return jnp.dot(w, patch, preferred_element_type=jnp.float32)

    m = parity(0, 0)
    m = jnp.maximum(m, parity(0, 1))
    m = jnp.maximum(m, parity(1, 0))
    m = jnp.maximum(m, parity(1, 1))                    # fused 2x2 max-pool
    y = jnp.maximum(m + b_ref[...], 0.0)                # bias + ReLU
    y = y.astype(o_ref.dtype)
    zeros = jnp.zeros((y.shape[0], tail), o_ref.dtype)
    o_ref[...] = jnp.concatenate([y, zeros], axis=1)    # one lane-dense store


def conv_stage(phases, w2d, bias, *, bt, L, row_stride, cout):
    """phases: (4, Cin, B*L) bf16 -> pooled activation (Cout, B*L) bf16."""
    four, cin, total = phases.shape
    assert four == 4 and total % L == 0
    B = total // L
    assert B % bt == 0 and (bt * L) % 128 == 0
    assert w2d.shape == (cout, 9 * cin)
    hh = row_stride
    tail = 32
    assert tail >= hh + 2                              # max tap offset fits
    assert L - tail >= (hh - 3) * hh + (hh - 2)        # last valid pos covered
    n_dot = bt * L - tail

    kern = functools.partial(_conv_pool_kernel, row_stride=row_stride,
                             n_dot=n_dot, tail=tail)
    return pl.pallas_call(
        kern,
        out_shape=jax.ShapeDtypeStruct((cout, B * L), jnp.bfloat16),
        grid=(B // bt,),
        in_specs=[pl.BlockSpec((4, cin, bt * L), lambda i: (0, 0, i)),
                  pl.BlockSpec((cout, 9 * cin), lambda i: (0, 0)),
                  pl.BlockSpec((cout, 1), lambda i: (0, 0))],
        out_specs=pl.BlockSpec((cout, bt * L), lambda i: (0, i)),
        compiler_params=pltpu.CompilerParams(
            dimension_semantics=("parallel",),
            vmem_limit_bytes=32 * 1024 * 1024),
    )(phases, w2d, bias)


# ----------------------------------------------------------------------------
# Wrapper-side glue (cheap XLA, fused): phase build + valid-window extraction
# ----------------------------------------------------------------------------
def build_phases(x_cbhw, L, cin_pad=None):
    """(C, B, H, W) activation -> (4, Cp, B*L) bf16 polyphase layout of the
    zero-padded input (single fused reshape/transpose pass for all 4 phases)."""
    C, B, H, W = x_cbhw.shape
    assert H == W
    if cin_pad is not None and cin_pad > C:
        x_cbhw = jnp.pad(x_cbhw, ((0, cin_pad - C), (0, 0), (0, 0), (0, 0)))
        C = cin_pad
    hh = (H + 4) // 2
    xp = jnp.pad(x_cbhw.astype(jnp.bfloat16), ((0, 0), (0, 0), (1, 3), (1, 3)))
    ph = xp.reshape(C, B, hh, 2, hh, 2).transpose(3, 5, 0, 1, 2, 4)
    ph = ph.reshape(2, 2, C, B, hh * hh)
    ph = jnp.pad(ph, ((0, 0), (0, 0), (0, 0), (0, 0), (0, L - hh * hh)))
    return ph.reshape(4, C, B * L)


def extract_valid(y_flat, B, L, hh, valid):
    """(C, B*L) stage output -> (C, B, valid, valid) activation."""
    C = y_flat.shape[0]
    y = y_flat.reshape(C, B, L)[:, :, :hh * hh].reshape(C, B, hh, hh)
    return y[:, :, :valid, :valid]


# ----------------------------------------------------------------------------
# Fused fc1 (+ReLU) + fc2 kernel
# ----------------------------------------------------------------------------
def _fc_kernel(x_ref, w1_ref, b1_ref, w2_ref, b2_ref, o_ref):
    h = jnp.dot(x_ref[...], w1_ref[...], preferred_element_type=jnp.float32)
    h = jnp.maximum(h + b1_ref[...], 0.0)                       # fc1 + ReLU
    o = jnp.dot(h.astype(jnp.bfloat16), w2_ref[...],
                preferred_element_type=jnp.float32)
    o_ref[...] = o + b2_ref[...]                                 # fc2


def fc_stage(flat, w1, b1, w2, b2):
    B, K = flat.shape
    n1, n2 = w1.shape[1], w2.shape[1]
    tm = 8 if B <= 8 else 8 * max(1, B // 16)
    bp = pl.cdiv(B, tm) * tm
    if bp != B:
        flat = jnp.pad(flat, ((0, bp - B), (0, 0)))
    out = pl.pallas_call(
        _fc_kernel,
        out_shape=jax.ShapeDtypeStruct((bp, n2), jnp.float32),
        grid=(bp // tm,),
        in_specs=[pl.BlockSpec((tm, K), lambda i: (i, 0)),
                  pl.BlockSpec((K, n1), lambda i: (0, 0)),
                  pl.BlockSpec((1, n1), lambda i: (0, 0)),
                  pl.BlockSpec((n1, n2), lambda i: (0, 0)),
                  pl.BlockSpec((1, n2), lambda i: (0, 0))],
        out_specs=pl.BlockSpec((tm, n2), lambda i: (i, 0)),
        compiler_params=pltpu.CompilerParams(
            dimension_semantics=("parallel",),
            vmem_limit_bytes=32 * 1024 * 1024),
    )(flat.astype(jnp.bfloat16), w1, b1, w2, b2)
    return out[:B]


# ----------------------------------------------------------------------------
# Parameter preparation (runs once, OUTSIDE jit): all transposes / re-layouts.
# ----------------------------------------------------------------------------
def prepare_params(params):
    def prep_conv(w, cin_pad):
        cout, cin = w.shape[0], w.shape[1]
        if cin_pad > cin:
            w = jnp.pad(w, ((0, 0), (0, cin_pad - cin), (0, 0), (0, 0)))
        # (Cout, Cin, ky, kx) -> (Cout, ky, kx, Cin) -> (Cout, 9*Cin):
        # matches the kernel's K-concat order (ky, kx, ci).
        return (jnp.transpose(w, (0, 2, 3, 1))
                .reshape(cout, 9 * cin_pad).astype(jnp.bfloat16))

    # fc1 weight zero-expanded to consume the conv2 padded output layout
    # directly (per image 128 lanes, valid at q = i*10 + j, i,j < 8).
    hh2, L2 = _stage_layout(16)                      # 10, 128
    rows = -(-L2 // hh2)                             # 13
    w1 = params["fc1_w"].T.reshape(64, 8, 8, 128)                # [c, i, j, h]
    w1 = jnp.pad(w1, ((0, 0), (0, rows - 8), (0, hh2 - 8), (0, 0)))
    w1 = w1.reshape(64, rows * hh2, 128)[:, :L2, :]
    w1p = w1.reshape(64 * L2, 128).astype(jnp.bfloat16)          # (8192, 128)

    n_pad2 = 128 - params["fc2_w"].shape[0]          # pad fc2 N: 10 -> 128
    w2p = jnp.pad(params["fc2_w"], ((0, n_pad2), (0, 0))).T.astype(jnp.bfloat16)
    b2p = jnp.pad(params["fc2_b"], (0, n_pad2)).astype(jnp.float32).reshape(1, -1)

    return {
        "conv1_w": prep_conv(params["conv1_w"], 8),              # (32, 72)
        "conv1_b": params["conv1_b"].astype(jnp.float32).reshape(-1, 1),
        "conv2_w": prep_conv(params["conv2_w"], 32),             # (64, 288)
        "conv2_b": params["conv2_b"].astype(jnp.float32).reshape(-1, 1),
        "fc1_w": w1p,
        "fc1_b": params["fc1_b"].astype(jnp.float32).reshape(1, -1),
        "fc2_w": w2p,                                            # (128, 128)
        "fc2_b": b2p,
    }


# ----------------------------------------------------------------------------
# Full forward pass (NCHW in, logits out)
# ----------------------------------------------------------------------------
def cnn_forward(x_nchw, prep, *, bt=4):
    assert bt % 4 == 0
    B0 = x_nchw.shape[0]
    step = 2 * bt                                    # conv grids get >= 2 steps
    Bp = -(-B0 // step) * step
    if Bp != B0:
        x_nchw = jnp.pad(x_nchw, ((0, Bp - B0), (0, 0), (0, 0), (0, 0)))
    x = jnp.transpose(x_nchw, (1, 0, 2, 3))          # (C, B, H, W)

    hh1, L1 = _stage_layout(32)                      # 18, 352
    hh2, L2 = _stage_layout(16)                      # 10, 128

    # conv1 + bias + ReLU + 2x2 max-pool
    ph1 = build_phases(x, L1, cin_pad=8)
    y1 = conv_stage(ph1, prep["conv1_w"], prep["conv1_b"],
                    bt=bt, L=L1, row_stride=hh1, cout=32)        # (32, Bp*352)
    p1 = extract_valid(y1, Bp, L1, hh1, 16)                      # (32, Bp, 16, 16)

    # conv2 + bias + ReLU + 2x2 max-pool
    ph2 = build_phases(p1, L2)
    y2 = conv_stage(ph2, prep["conv2_w"], prep["conv2_b"],
                    bt=bt, L=L2, row_stride=hh2, cout=64)        # (64, Bp*128)

    # fc1(+ReLU) + fc2: zero-expanded fc1 rows consume the padded layout
    # directly -- only a transpose/reshape (no slicing) between the stages.
    flat = y2.reshape(64, Bp, L2).transpose(1, 0, 2).reshape(Bp, 64 * L2)
    logits = fc_stage(flat, prep["fc1_w"], prep["fc1_b"],
                      prep["fc2_w"], prep["fc2_b"])
    return logits[:B0, :10]


# ----------------------------------------------------------------------------
# Init + pure-JAX reference (for the correctness check)
# ----------------------------------------------------------------------------
def init_params(key):
    ks = jax.random.split(key, 8)

    def u(k, shape, fan_in):
        bound = 1.0 / jnp.sqrt(fan_in)
        return jax.random.uniform(k, shape, jnp.float32, -bound, bound)

    return {
        "conv1_w": u(ks[0], (32, 3, 3, 3), 3 * 9),
        "conv1_b": u(ks[1], (32,), 3 * 9),
        "conv2_w": u(ks[2], (64, 32, 3, 3), 32 * 9),
        "conv2_b": u(ks[3], (64,), 32 * 9),
        "fc1_w":   u(ks[4], (128, 64 * 8 * 8), 64 * 8 * 8),
        "fc1_b":   u(ks[5], (128,), 64 * 8 * 8),
        "fc2_w":   u(ks[6], (10, 128), 128),
        "fc2_b":   u(ks[7], (10,), 128),
    }


def _reference_forward(x, params):
    def conv(x, w, b):
        y = jax.lax.conv_general_dilated(
            x, w, window_strides=(1, 1), padding=((1, 1), (1, 1)),
            dimension_numbers=("NCHW", "OIHW", "NCHW"))
        return jax.nn.relu(y + b.reshape(1, -1, 1, 1))

    def pool(x):
        return jax.lax.reduce_window(x, -jnp.inf, jax.lax.max,
                                     (1, 1, 2, 2), (1, 1, 2, 2), "VALID")

    y = pool(conv(x, params["conv1_w"], params["conv1_b"]))
    y = pool(conv(y, params["conv2_w"], params["conv2_b"]))
    flat = y.reshape(y.shape[0], -1)
    h = jax.nn.relu(flat @ params["fc1_w"].T + params["fc1_b"])
    return h @ params["fc2_w"].T + params["fc2_b"]


if __name__ == "__main__":
    key = jax.random.PRNGKey(0)
    pkey, xkey = jax.random.split(key)
    params = init_params(pkey)
    prep = prepare_params(params)          # weight re-layouts hoisted out of jit
    # CIFAR-10 style input; 32x32 / 3 channels required by fc1 (64*8*8).
    # Batch 8 -> two parallel batch-tile grid steps per conv stage.
    x = jax.random.normal(xkey, (8, 3, 32, 32), jnp.float32)

    logits = jax.block_until_ready(jax.jit(cnn_forward)(x, prep))
    assert logits.shape == (8, 10), logits.shape

    ref = jax.block_until_ready(_reference_forward(x, params))
    err = float(jnp.max(jnp.abs(logits - ref)))
    assert err < 0.1, f"max abs error vs reference: {err}"   # bf16 tolerance
    print("KERNEL_OK")
</pallas_src>

<mosaic_0001>
module attributes {stable_mosaic.version = 11 : i64} {
  func.func @_conv_pool_kernel(%arg0: i32, %arg1: memref<4x8x1408xbf16, #tpu.memory_space<vmem>>, %arg2: memref<32x72xbf16, #tpu.memory_space<vmem>>, %arg3: memref<32x1xf32, #tpu.memory_space<vmem>>, %arg4: memref<32x1408xbf16, #tpu.memory_space<vmem>>) attributes {dimension_semantics = [#tpu.dimension_semantics<parallel>], iteration_bounds = array<i64: 2>, scalar_prefetch = 0 : i64, scratch_operands = 0 : i64, tpu.core_type = #tpu.core_type<tc>, window_params = [{transform_indices = @transform_0, window_bounds = array<i64: 4, 8, 1408>}, {pipeline_mode = #tpu.pipeline_mode<synchronous>, transform_indices = @transform_1, window_bounds = array<i64: 32, 72>}, {pipeline_mode = #tpu.pipeline_mode<synchronous>, transform_indices = @transform_2, window_bounds = array<i64: 32, 1>}, {transform_indices = @transform_3, window_bounds = array<i64: 32, 1408>}]} {
    %c0 = arith.constant 0 : index
    %c0_0 = arith.constant 0 : index
    %c0_1 = arith.constant 0 : index
    %0 = vector.load %arg1[%c0, %c0_0, %c0_1] : memref<4x8x1408xbf16, #tpu.memory_space<vmem>>, vector<1x8x1408xbf16>
    %1 = vector.shape_cast %0 : vector<1x8x1408xbf16> to vector<8x1408xbf16>
    %c1 = arith.constant 1 : index
    %c0_2 = arith.constant 0 : index
    %c0_3 = arith.constant 0 : index
    %2 = vector.load %arg1[%c1, %c0_2, %c0_3] : memref<4x8x1408xbf16, #tpu.memory_space<vmem>>, vector<1x8x1408xbf16>
    %3 = vector.shape_cast %2 : vector<1x8x1408xbf16> to vector<8x1408xbf16>
    %c2 = arith.constant 2 : index
    %c0_4 = arith.constant 0 : index
    %c0_5 = arith.constant 0 : index
    %4 = vector.load %arg1[%c2, %c0_4, %c0_5] : memref<4x8x1408xbf16, #tpu.memory_space<vmem>>, vector<1x8x1408xbf16>
    %5 = vector.shape_cast %4 : vector<1x8x1408xbf16> to vector<8x1408xbf16>
    %c3 = arith.constant 3 : index
    %c0_6 = arith.constant 0 : index
    %c0_7 = arith.constant 0 : index
    %6 = vector.load %arg1[%c3, %c0_6, %c0_7] : memref<4x8x1408xbf16, #tpu.memory_space<vmem>>, vector<1x8x1408xbf16>
    %7 = vector.shape_cast %6 : vector<1x8x1408xbf16> to vector<8x1408xbf16>
    %8 = vector.extract_strided_slice %1 {offsets = [0, 0], sizes = [8, 1376], strides = [1, 1]} : vector<8x1408xbf16> to vector<8x1376xbf16>
    %9 = vector.extract_strided_slice %1 {offsets = [0, 1], sizes = [8, 1376], strides = [1, 1]} : vector<8x1408xbf16> to vector<8x1376xbf16>
    %10 = vector.extract_strided_slice %1 {offsets = [0, 18], sizes = [8, 1376], strides = [1, 1]} : vector<8x1408xbf16> to vector<8x1376xbf16>
    %11 = vector.extract_strided_slice %1 {offsets = [0, 19], sizes = [8, 1376], strides = [1, 1]} : vector<8x1408xbf16> to vector<8x1376xbf16>
    %12 = vector.extract_strided_slice %3 {offsets = [0, 0], sizes = [8, 1376], strides = [1, 1]} : vector<8x1408xbf16> to vector<8x1376xbf16>
    %13 = vector.extract_strided_slice %3 {offsets = [0, 1], sizes = [8, 1376], strides = [1, 1]} : vector<8x1408xbf16> to vector<8x1376xbf16>
    %14 = vector.extract_strided_slice %3 {offsets = [0, 18], sizes = [8, 1376], strides = [1, 1]} : vector<8x1408xbf16> to vector<8x1376xbf16>
    %15 = vector.extract_strided_slice %3 {offsets = [0, 19], sizes = [8, 1376], strides = [1, 1]} : vector<8x1408xbf16> to vector<8x1376xbf16>
    %16 = vector.extract_strided_slice %5 {offsets = [0, 0], sizes = [8, 1376], strides = [1, 1]} : vector<8x1408xbf16> to vector<8x1376xbf16>
    %17 = vector.extract_strided_slice %5 {offsets = [0, 1], sizes = [8, 1376], strides = [1, 1]} : vector<8x1408xbf16> to vector<8x1376xbf16>
    %18 = vector.extract_strided_slice %5 {offsets = [0, 18], sizes = [8, 1376], strides = [1, 1]} : vector<8x1408xbf16> to vector<8x1376xbf16>
    %19 = vector.extract_strided_slice %5 {offsets = [0, 19], sizes = [8, 1376], strides = [1, 1]} : vector<8x1408xbf16> to vector<8x1376xbf16>
    %20 = vector.extract_strided_slice %7 {offsets = [0, 0], sizes = [8, 1376], strides = [1, 1]} : vector<8x1408xbf16> to vector<8x1376xbf16>
    %21 = vector.extract_strided_slice %7 {offsets = [0, 1], sizes = [8, 1376], strides = [1, 1]} : vector<8x1408xbf16> to vector<8x1376xbf16>
    %22 = vector.extract_strided_slice %7 {offsets = [0, 18], sizes = [8, 1376], strides = [1, 1]} : vector<8x1408xbf16> to vector<8x1376xbf16>
    %23 = vector.extract_strided_slice %7 {offsets = [0, 19], sizes = [8, 1376], strides = [1, 1]} : vector<8x1408xbf16> to vector<8x1376xbf16>
    %c0_8 = arith.constant 0 : index
    %c0_9 = arith.constant 0 : index
    %24 = vector.load %arg2[%c0_8, %c0_9] : memref<32x72xbf16, #tpu.memory_space<vmem>>, vector<32x72xbf16>
    %25 = tpu.concatenate %8, %12, %9, %16, %20, %17, %10, %14, %11 in 0 : vector<8x1376xbf16>, vector<8x1376xbf16>, vector<8x1376xbf16>, vector<8x1376xbf16>, vector<8x1376xbf16>, vector<8x1376xbf16>, vector<8x1376xbf16>, vector<8x1376xbf16>, vector<8x1376xbf16> -> vector<72x1376xbf16>
    %cst = arith.constant dense<0.000000e+00> : vector<32x1376xf32>
    %26 = tpu.matmul %24, %25, %cst {dimension_numbers = #tpu.dot_dimension_numbers<[1], [0], [0], [1], [0, 0, 1, 1], [], []>} : vector<32x72xbf16>, vector<72x1376xbf16>, vector<32x1376xf32> -> vector<32x1376xf32>
    %27 = tpu.concatenate %12, %9, %13, %20, %17, %21, %14, %11, %15 in 0 : vector<8x1376xbf16>, vector<8x1376xbf16>, vector<8x1376xbf16>, vector<8x1376xbf16>, vector<8x1376xbf16>, vector<8x1376xbf16>, vector<8x1376xbf16>, vector<8x1376xbf16>, vector<8x1376xbf16> -> vector<72x1376xbf16>
    %cst_10 = arith.constant dense<0.000000e+00> : vector<32x1376xf32>
    %28 = tpu.matmul %24, %27, %cst_10 {dimension_numbers = #tpu.dot_dimension_numbers<[1], [0], [0], [1], [0, 0, 1, 1], [], []>} : vector<32x72xbf16>, vector<72x1376xbf16>, vector<32x1376xf32> -> vector<32x1376xf32>
    %29 = arith.maximumf %26, %28 : vector<32x1376xf32>
    %30 = tpu.concatenate %16, %20, %17, %10, %14, %11, %18, %22, %19 in 0 : vector<8x1376xbf16>, vector<8x1376xbf16>, vector<8x1376xbf16>, vector<8x1376xbf16>, vector<8x1376xbf16>, vector<8x1376xbf16>, vector<8x1376xbf16>, vector<8x1376xbf16>, vector<8x1376xbf16> -> vector<72x1376xbf16>
    %cst_11 = arith.constant dense<0.000000e+00> : vector<32x1376xf32>
    %31 = tpu.matmul %24, %30, %cst_11 {dimension_numbers = #tpu.dot_dimension_numbers<[1], [0], [0], [1], [0, 0, 1, 1], [], []>} : vector<32x72xbf16>, vector<72x1376xbf16>, vector<32x1376xf32> -> vector<32x1376xf32>
    %32 = arith.maximumf %29, %31 : vector<32x1376xf32>
    %33 = tpu.concatenate %20, %17, %21, %14, %11, %15, %22, %19, %23 in 0 : vector<8x1376xbf16>, vector<8x1376xbf16>, vector<8x1376xbf16>, vector<8x1376xbf16>, vector<8x1376xbf16>, vector<8x1376xbf16>, vector<8x1376xbf16>, vector<8x1376xbf16>, vector<8x1376xbf16> -> vector<72x1376xbf16>
    %cst_12 = arith.constant dense<0.000000e+00> : vector<32x1376xf32>
    %34 = tpu.matmul %24, %33, %cst_12 {dimension_numbers = #tpu.dot_dimension_numbers<[1], [0], [0], [1], [0, 0, 1, 1], [], []>} : vector<32x72xbf16>, vector<72x1376xbf16>, vector<32x1376xf32> -> vector<32x1376xf32>
    %35 = arith.maximumf %32, %34 : vector<32x1376xf32>
    %c0_13 = arith.constant 0 : index
    %c0_14 = arith.constant 0 : index
    %36 = vector.load %arg3[%c0_13, %c0_14] : memref<32x1xf32, #tpu.memory_space<vmem>>, vector<32x1xf32>
    %37 = vector.broadcast %36 : vector<32x1xf32> to vector<32x1376xf32>
    %38 = arith.addf %35, %37 : vector<32x1376xf32>
    %cst_15 = arith.constant 0.000000e+00 : f32
    %39 = vector.broadcast %cst_15 : f32 to vector<32x1376xf32>
    %40 = arith.maximumf %38, %39 : vector<32x1376xf32>
    %41 = arith.truncf %40 : vector<32x1376xf32> to vector<32x1376xbf16>
    %cst_16 = arith.constant 0.000000e+00 : bf16
    %42 = vector.broadcast %cst_16 : bf16 to vector<32x32xbf16>
    %43 = tpu.concatenate %41, %42 in 1 : vector<32x1376xbf16>, vector<32x32xbf16> -> vector<32x1408xbf16>
    %c0_17 = arith.constant 0 : index
    %c0_18 = arith.constant 0 : index
    %44 = vector.load %arg4[%c0_17, %c0_18] : memref<32x1408xbf16, #tpu.memory_space<vmem>>, vector<32x1408xbf16>
    tpu.vector_store %arg4[%c0_17, %c0_18], %43 {strides = array<i32>} : memref<32x1408xbf16, #tpu.memory_space<vmem>>, vector<32x1408xbf16>,
    return
  }
  func.func @transform_0(%arg0: i32) -> (i32, i32, i32) {
    %c0_i32 = arith.constant 0 : i32
    %c0_i32_0 = arith.constant 0 : i32
    %c0_i32_1 = arith.constant 0 : i32
    return %c0_i32, %c0_i32_0, %arg0 : i32, i32, i32
  }
  func.func @transform_1(%arg0: i32) -> (i32, i32) {
    %c0_i32 = arith.constant 0 : i32
    %c0_i32_0 = arith.constant 0 : i32
    %c0_i32_1 = arith.constant 0 : i32
    return %c0_i32, %c0_i32_0 : i32, i32
  }
  func.func @transform_2(%arg0: i32) -> (i32, i32) {
    %c0_i32 = arith.constant 0 : i32
    %c0_i32_0 = arith.constant 0 : i32
    %c0_i32_1 = arith.constant 0 : i32
    return %c0_i32, %c0_i32_0 : i32, i32
  }
  func.func @transform_3(%arg0: i32) -> (i32, i32) {
    %c0_i32 = arith.constant 0 : i32
    %c0_i32_0 = arith.constant 0 : i32
    return %c0_i32, %arg0 : i32, i32
  }
}

module attributes {stable_mosaic.version = 11 : i64} {
  func.func @_conv_pool_kernel(%arg0: i32, %arg1: memref<4x32x512xbf16, #tpu.memory_space<vmem>>, %arg2: memref<64x288xbf16, #tpu.memory_space<vmem>>, %arg3: memref<64x1xf32, #tpu.memory_space<vmem>>, %arg4: memref<64x512xbf16, #tpu.memory_space<vmem>>) attributes {dimension_semantics = [#tpu.dimension_semantics<parallel>], iteration_bounds = array<i64: 2>, scalar_prefetch = 0 : i64, scratch_operands = 0 : i64, tpu.core_type = #tpu.core_type<tc>, window_params = [{transform_indices = @transform_0, window_bounds = array<i64: 4, 32, 512>}, {pipeline_mode = #tpu.pipeline_mode<synchronous>, transform_indices = @transform_1, window_bounds = array<i64: 64, 288>}, {pipeline_mode = #tpu.pipeline_mode<synchronous>, transform_indices = @transform_2, window_bounds = array<i64: 64, 1>}, {transform_indices = @transform_3, window_bounds = array<i64: 64, 512>}]} {
    %c0 = arith.constant 0 : index
    %c0_0 = arith.constant 0 : index
    %c0_1 = arith.constant 0 : index
    %0 = vector.load %arg1[%c0, %c0_0, %c0_1] : memref<4x32x512xbf16, #tpu.memory_space<vmem>>, vector<1x32x512xbf16>
    %1 = vector.shape_cast %0 : vector<1x32x512xbf16> to vector<32x512xbf16>
    %c1 = arith.constant 1 : index
    %c0_2 = arith.constant 0 : index
    %c0_3 = arith.constant 0 : index
    %2 = vector.load %arg1[%c1, %c0_2, %c0_3] : memref<4x32x512xbf16, #tpu.memory_space<vmem>>, vector<1x32x512xbf16>
    %3 = vector.shape_cast %2 : vector<1x32x512xbf16> to vector<32x512xbf16>
    %c2 = arith.constant 2 : index
    %c0_4 = arith.constant 0 : index
    %c0_5 = arith.constant 0 : index
    %4 = vector.load %arg1[%c2, %c0_4, %c0_5] : memref<4x32x512xbf16, #tpu.memory_space<vmem>>, vector<1x32x512xbf16>
    %5 = vector.shape_cast %4 : vector<1x32x512xbf16> to vector<32x512xbf16>
    %c3 = arith.constant 3 : index
    %c0_6 = arith.constant 0 : index
    %c0_7 = arith.constant 0 : index
    %6 = vector.load %arg1[%c3, %c0_6, %c0_7] : memref<4x32x512xbf16, #tpu.memory_space<vmem>>, vector<1x32x512xbf16>
    %7 = vector.shape_cast %6 : vector<1x32x512xbf16> to vector<32x512xbf16>
    %8 = vector.extract_strided_slice %1 {offsets = [0, 0], sizes = [32, 480], strides = [1, 1]} : vector<32x512xbf16> to vector<32x480xbf16>
    %9 = vector.extract_strided_slice %1 {offsets = [0, 1], sizes = [32, 480], strides = [1, 1]} : vector<32x512xbf16> to vector<32x480xbf16>
    %10 = vector.extract_strided_slice %1 {offsets = [0, 10], sizes = [32, 480], strides = [1, 1]} : vector<32x512xbf16> to vector<32x480xbf16>
    %11 = vector.extract_strided_slice %1 {offsets = [0, 11], sizes = [32, 480], strides = [1, 1]} : vector<32x512xbf16> to vector<32x480xbf16>
    %12 = vector.extract_strided_slice %3 {offsets = [0, 0], sizes = [32, 480], strides = [1, 1]} : vector<32x512xbf16> to vector<32x480xbf16>
    %13 = vector.extract_strided_slice %3 {offsets = [0, 1], sizes = [32, 480], strides = [1, 1]} : vector<32x512xbf16> to vector<32x480xbf16>
    %14 = vector.extract_strided_slice %3 {offsets = [0, 10], sizes = [32, 480], strides = [1, 1]} : vector<32x512xbf16> to vector<32x480xbf16>
    %15 = vector.extract_strided_slice %3 {offsets = [0, 11], sizes = [32, 480], strides = [1, 1]} : vector<32x512xbf16> to vector<32x480xbf16>
    %16 = vector.extract_strided_slice %5 {offsets = [0, 0], sizes = [32, 480], strides = [1, 1]} : vector<32x512xbf16> to vector<32x480xbf16>
    %17 = vector.extract_strided_slice %5 {offsets = [0, 1], sizes = [32, 480], strides = [1, 1]} : vector<32x512xbf16> to vector<32x480xbf16>
    %18 = vector.extract_strided_slice %5 {offsets = [0, 10], sizes = [32, 480], strides = [1, 1]} : vector<32x512xbf16> to vector<32x480xbf16>
    %19 = vector.extract_strided_slice %5 {offsets = [0, 11], sizes = [32, 480], strides = [1, 1]} : vector<32x512xbf16> to vector<32x480xbf16>
    %20 = vector.extract_strided_slice %7 {offsets = [0, 0], sizes = [32, 480], strides = [1, 1]} : vector<32x512xbf16> to vector<32x480xbf16>
    %21 = vector.extract_strided_slice %7 {offsets = [0, 1], sizes = [32, 480], strides = [1, 1]} : vector<32x512xbf16> to vector<32x480xbf16>
    %22 = vector.extract_strided_slice %7 {offsets = [0, 10], sizes = [32, 480], strides = [1, 1]} : vector<32x512xbf16> to vector<32x480xbf16>
    %23 = vector.extract_strided_slice %7 {offsets = [0, 11], sizes = [32, 480], strides = [1, 1]} : vector<32x512xbf16> to vector<32x480xbf16>
    %c0_8 = arith.constant 0 : index
    %c0_9 = arith.constant 0 : index
    %24 = vector.load %arg2[%c0_8, %c0_9] : memref<64x288xbf16, #tpu.memory_space<vmem>>, vector<64x288xbf16>
    %25 = tpu.concatenate %8, %12, %9, %16, %20, %17, %10, %14, %11 in 0 : vector<32x480xbf16>, vector<32x480xbf16>, vector<32x480xbf16>, vector<32x480xbf16>, vector<32x480xbf16>, vector<32x480xbf16>, vector<32x480xbf16>, vector<32x480xbf16>, vector<32x480xbf16> -> vector<288x480xbf16>
    %cst = arith.constant dense<0.000000e+00> : vector<64x480xf32>
    %26 = tpu.matmul %24, %25, %cst {dimension_numbers = #tpu.dot_dimension_numbers<[1], [0], [0], [1], [0, 0, 1, 1], [], []>} : vector<64x288xbf16>, vector<288x480xbf16>, vector<64x480xf32> -> vector<64x480xf32>
    %27 = tpu.concatenate %12, %9, %13, %20, %17, %21, %14, %11, %15 in 0 : vector<32x480xbf16>, vector<32x480xbf16>, vector<32x480xbf16>, vector<32x480xbf16>, vector<32x480xbf16>, vector<32x480xbf16>, vector<32x480xbf16>, vector<32x480xbf16>, vector<32x480xbf16> -> vector<288x480xbf16>
    %cst_10 = arith.constant dense<0.000000e+00> : vector<64x480xf32>
    %28 = tpu.matmul %24, %27, %cst_10 {dimension_numbers = #tpu.dot_dimension_numbers<[1], [0], [0], [1], [0, 0, 1, 1], [], []>} : vector<64x288xbf16>, vector<288x480xbf16>, vector<64x480xf32> -> vector<64x480xf32>
    %29 = arith.maximumf %26, %28 : vector<64x480xf32>
    %30 = tpu.concatenate %16, %20, %17, %10, %14, %11, %18, %22, %19 in 0 : vector<32x480xbf16>, vector<32x480xbf16>, vector<32x480xbf16>, vector<32x480xbf16>, vector<32x480xbf16>, vector<32x480xbf16>, vector<32x480xbf16>, vector<32x480xbf16>, vector<32x480xbf16> -> vector<288x480xbf16>
    %cst_11 = arith.constant dense<0.000000e+00> : vector<64x480xf32>
    %31 = tpu.matmul %24, %30, %cst_11 {dimension_numbers = #tpu.dot_dimension_numbers<[1], [0], [0], [1], [0, 0, 1, 1], [], []>} : vector<64x288xbf16>, vector<288x480xbf16>, vector<64x480xf32> -> vector<64x480xf32>
    %32 = arith.maximumf %29, %31 : vector<64x480xf32>
    %33 = tpu.concatenate %20, %17, %21, %14, %11, %15, %22, %19, %23 in 0 : vector<32x480xbf16>, vector<32x480xbf16>, vector<32x480xbf16>, vector<32x480xbf16>, vector<32x480xbf16>, vector<32x480xbf16>, vector<32x480xbf16>, vector<32x480xbf16>, vector<32x480xbf16> -> vector<288x480xbf16>
    %cst_12 = arith.constant dense<0.000000e+00> : vector<64x480xf32>
    %34 = tpu.matmul %24, %33, %cst_12 {dimension_numbers = #tpu.dot_dimension_numbers<[1], [0], [0], [1], [0, 0, 1, 1], [], []>} : vector<64x288xbf16>, vector<288x480xbf16>, vector<64x480xf32> -> vector<64x480xf32>
    %35 = arith.maximumf %32, %34 : vector<64x480xf32>
    %c0_13 = arith.constant 0 : index
    %c0_14 = arith.constant 0 : index
    %36 = vector.load %arg3[%c0_13, %c0_14] : memref<64x1xf32, #tpu.memory_space<vmem>>, vector<64x1xf32>
    %37 = vector.broadcast %36 : vector<64x1xf32> to vector<64x480xf32>
    %38 = arith.addf %35, %37 : vector<64x480xf32>
    %cst_15 = arith.constant 0.000000e+00 : f32
    %39 = vector.broadcast %cst_15 : f32 to vector<64x480xf32>
    %40 = arith.maximumf %38, %39 : vector<64x480xf32>
    %41 = arith.truncf %40 : vector<64x480xf32> to vector<64x480xbf16>
    %cst_16 = arith.constant 0.000000e+00 : bf16
    %42 = vector.broadcast %cst_16 : bf16 to vector<64x32xbf16>
    %43 = tpu.concatenate %41, %42 in 1 : vector<64x480xbf16>, vector<64x32xbf16> -> vector<64x512xbf16>
    %c0_17 = arith.constant 0 : index
    %c0_18 = arith.constant 0 : index
    %44 = vector.load %arg4[%c0_17, %c0_18] : memref<64x512xbf16, #tpu.memory_space<vmem>>, vector<64x512xbf16>
    tpu.vector_store %arg4[%c0_17, %c0_18], %43 {strides = array<i32>} : memref<64x512xbf16, #tpu.memory_space<vmem>>, vector<64x512xbf16>,
    return
  }
  func.func @transform_0(%arg0: i32) -> (i32, i32, i32) {
    %c0_i32 = arith.constant 0 : i32
    %c0_i32_0 = arith.constant 0 : i32
    %c0_i32_1 = arith.constant 0 : i32
    return %c0_i32, %c0_i32_0, %arg0 : i32, i32, i32
  }
  func.func @transform_1(%arg0: i32) -> (i32, i32) {
    %c0_i32 = arith.constant 0 : i32
    %c0_i32_0 = arith.constant 0 : i32
    %c0_i32_1 = arith.constant 0 : i32
    return %c0_i32, %c0_i32_0 : i32, i32
  }
  func.func @transform_2(%arg0: i32) -> (i32, i32) {
    %c0_i32 = arith.constant 0 : i32
    %c0_i32_0 = arith.constant 0 : i32
    %c0_i32_1 = arith.constant 0 : i32
    return %c0_i32, %c0_i32_0 : i32, i32
  }
  func.func @transform_3(%arg0: i32) -> (i32, i32) {
    %c0_i32 = arith.constant 0 : i32
    %c0_i32_0 = arith.constant 0 : i32
    return %c0_i32, %arg0 : i32, i32
  }
}

module attributes {stable_mosaic.version = 11 : i64} {
  func.func @_fc_kernel(%arg0: i32, %arg1: memref<8x8192xbf16, #tpu.memory_space<vmem>>, %arg2: memref<8192x128xbf16, #tpu.memory_space<vmem>>, %arg3: memref<1x128xf32, #tpu.memory_space<vmem>>, %arg4: memref<128x128xbf16, #tpu.memory_space<vmem>>, %arg5: memref<1x128xf32, #tpu.memory_space<vmem>>, %arg6: memref<8x128xf32, #tpu.memory_space<vmem>>) attributes {dimension_semantics = [#tpu.dimension_semantics<parallel>], iteration_bounds = array<i64: 1>, scalar_prefetch = 0 : i64, scratch_operands = 0 : i64, tpu.core_type = #tpu.core_type<tc>, window_params = [{transform_indices = @transform_0, window_bounds = array<i64: 8, 8192>}, {pipeline_mode = #tpu.pipeline_mode<synchronous>, transform_indices = @transform_1, window_bounds = array<i64: 8192, 128>}, {pipeline_mode = #tpu.pipeline_mode<synchronous>, transform_indices = @transform_2, window_bounds = array<i64: 1, 128>}, {pipeline_mode = #tpu.pipeline_mode<synchronous>, transform_indices = @transform_3, window_bounds = array<i64: 128, 128>}, {pipeline_mode = #tpu.pipeline_mode<synchronous>, transform_indices = @transform_4, window_bounds = array<i64: 1, 128>}, {transform_indices = @transform_5, window_bounds = array<i64: 8, 128>}]} {
    %c0 = arith.constant 0 : index
    %c0_0 = arith.constant 0 : index
    %0 = vector.load %arg1[%c0, %c0_0] : memref<8x8192xbf16, #tpu.memory_space<vmem>>, vector<8x8192xbf16>
    %c0_1 = arith.constant 0 : index
    %c0_2 = arith.constant 0 : index
    %1 = vector.load %arg2[%c0_1, %c0_2] : memref<8192x128xbf16, #tpu.memory_space<vmem>>, vector<8192x128xbf16>
    %cst = arith.constant dense<0.000000e+00> : vector<8x128xf32>
    %2 = tpu.matmul %0, %1, %cst {dimension_numbers = #tpu.dot_dimension_numbers<[1], [0], [0], [1], [0, 0, 1, 1], [], []>} : vector<8x8192xbf16>, vector<8192x128xbf16>, vector<8x128xf32> -> vector<8x128xf32>
    %c0_3 = arith.constant 0 : index
    %c0_4 = arith.constant 0 : index
    %3 = vector.load %arg3[%c0_3, %c0_4] : memref<1x128xf32, #tpu.memory_space<vmem>>, vector<1x128xf32>
    %4 = vector.broadcast %3 : vector<1x128xf32> to vector<8x128xf32>
    %5 = arith.addf %2, %4 : vector<8x128xf32>
    %cst_5 = arith.constant 0.000000e+00 : f32
    %6 = vector.broadcast %cst_5 : f32 to vector<8x128xf32>
    %7 = arith.maximumf %5, %6 : vector<8x128xf32>
    %8 = arith.truncf %7 : vector<8x128xf32> to vector<8x128xbf16>
    %c0_6 = arith.constant 0 : index
    %c0_7 = arith.constant 0 : index
    %9 = vector.load %arg4[%c0_6, %c0_7] : memref<128x128xbf16, #tpu.memory_space<vmem>>, vector<128x128xbf16>
    %cst_8 = arith.constant dense<0.000000e+00> : vector<8x128xf32>
    %10 = tpu.matmul %8, %9, %cst_8 {dimension_numbers = #tpu.dot_dimension_numbers<[1], [0], [0], [1], [0, 0, 1, 1], [], []>} : vector<8x128xbf16>, vector<128x128xbf16>, vector<8x128xf32> -> vector<8x128xf32>
    %c0_9 = arith.constant 0 : index
    %c0_10 = arith.constant 0 : index
    %11 = vector.load %arg5[%c0_9, %c0_10] : memref<1x128xf32, #tpu.memory_space<vmem>>, vector<1x128xf32>
    %12 = vector.broadcast %11 : vector<1x128xf32> to vector<8x128xf32>
    %13 = arith.addf %10, %12 : vector<8x128xf32>
    %c0_11 = arith.constant 0 : index
    %c0_12 = arith.constant 0 : index
    %14 = vector.load %arg6[%c0_11, %c0_12] : memref<8x128xf32, #tpu.memory_space<vmem>>, vector<8x128xf32>
    tpu.vector_store %arg6[%c0_11, %c0_12], %13 {strides = array<i32>} : memref<8x128xf32, #tpu.memory_space<vmem>>, vector<8x128xf32>,
    return
  }
  func.func @transform_0(%arg0: i32) -> (i32, i32) {
    %c0_i32 = arith.constant 0 : i32
    %c0_i32_0 = arith.constant 0 : i32
    return %arg0, %c0_i32 : i32, i32
  }
  func.func @transform_1(%arg0: i32) -> (i32, i32) {
    %c0_i32 = arith.constant 0 : i32
    %c0_i32_0 = arith.constant 0 : i32
    %c0_i32_1 = arith.constant 0 : i32
    return %c0_i32, %c0_i32_0 : i32, i32
  }
  func.func @transform_2(%arg0: i32) -> (i32, i32) {
    %c0_i32 = arith.constant 0 : i32
    %c0_i32_0 = arith.constant 0 : i32
    %c0_i32_1 = arith.constant 0 : i32
    return %c0_i32, %c0_i32_0 : i32, i32
  }
  func.func @transform_3(%arg0: i32) -> (i32, i32) {
    %c0_i32 = arith.constant 0 : i32
    %c0_i32_0 = arith.constant 0 : i32
    %c0_i32_1 = arith.constant 0 : i32
    return %c0_i32, %c0_i32_0 : i32, i32
  }
  func.func @transform_4(%arg0: i32) -> (i32, i32) {
    %c0_i32 = arith.constant 0 : i32
    %c0_i32_0 = arith.constant 0 : i32
    %c0_i32_1 = arith.constant 0 : i32
    return %c0_i32, %c0_i32_0 : i32, i32
  }
  func.func @transform_5(%arg0: i32) -> (i32, i32) {
    %c0_i32 = arith.constant 0 : i32
    %c0_i32_0 = arith.constant 0 : i32
    return %arg0, %c0_i32 : i32, i32
  }
}

</mosaic_0001>

<bundles_post_ra>
// kernel: cnn_forward.3
= control target key start
LH: loop header
LB: loop body
LE: loop exit
PB: predicated region body
PF: predicated region fallthrough
CT: control target
= control target key end

     0   :  { %s3599_s12 = smov 0   ;;  %s3601_s13 = smov 0   ;;  %s5808_s0 = inlined_call_operand.vmem [shape: bf16[4,8,2816], index: 0, kind: input, shape index: {}]   ;;  %s5809_s1 = inlined_call_operand.vmem [shape: bf16[32,72], index: 1, kind: input, shape index: {}]   ;;  %s5810_s2 = inlined_call_operand.vmem [shape: f32[32,1], index: 2, kind: input, shape index: {}]   ;;  %s5811_s3 = inlined_call_operand.vmem [shape: bf16[32,2816], index: 3, kind: output, shape index: {}]  }
   0x1   :  { %s3603_s14 = smov 0  }
   0x2 LB: > { %s3177_s15 = sadd.s32 4294967295, %s3573_s14   ;;  %s3616_s16 = sadd.s32 1, %s3573_s14   ;;  %s3573_s14 = sphi %s3603_s14, %s6254_s14   ;;  %s3569_s13 = sphi %s3601_s13, %s6253_s13   ;;  %s3565_s12 = sphi %s3599_s12, %s6252_s12  }
   0x3   : > { %s17_s17 = ssub.s32 %s3573_s14, %s3616_s16  ;;  %s20_s18 = sadd.s32 1, %s3569_s13 }
   0x4   : > { %p18_p0 = scmp.eq.s32.totalorder %s17_s17, 0  ;;  %p27_p1 = scmp.ne.s32.totalorder %s3569_s13, %s3565_s12 }
   0x5   : > { %p28_p2 = scmp.eq.s32.totalorder %s3573_s14, 0  ;;  %p99_p3 = scmp.eq.s32.totalorder %s3177_s15, 1 }
   0x6   : > { %s3627_s19 = scalar_select %p18_p0, %s3569_s13, %s20_s18  }
   0x7   : > { %p29_p4 = por %p28_p2, %p27_p1  ;;  %p3629_p5 = por %p99_p3, %p27_p1 }
   0x8   : > { %p3180_p6 = scmp.ge.s32.totalorder %s3573_s14, 2 }
   0xa   : > { %127 = sbr.rel (%p3180_p6) target bundleno = 32 (0x20), region = 24 }
   0xf   : > { %130 = sbr.rel (!%p29_p4) target bundleno = 32 (0x20), region = 28  ;;  %s132_s21 = sand.u32 (%p29_p4), 1, %s3569_s13  }
  0x10   : > { %s3358_s22 = smul.u32 (%p29_p4), 44, %s3573_s14 }
  0x11   : > { %s3468_s23 = smul.u32 (%p29_p4), 176, %s132_s21 }
  0x12   : > { %s3639_s26 = scalar_lea.vmem (%p29_p4), %s5808_s0, %s3358_s22 }
  0x13   : > { %v152_v0 = vld [vmem:[%s3639_s26] sm:$0xff] (%p29_p4)  ;;  %v154_v1 = vld [vmem:[%s3639_s26 + $0x8] sm:$0xff] (%p29_p4)  ;;  %v156_v2 = vld [vmem:[%s3639_s26 + $0x10] sm:$0xff] (%p29_p4)  ;;  %s3644_s27 = scalar_lea.vmem (%p29_p4), [#allocation2], %s3468_s23 }
  0x14   : > { %153 = vst [vmem:[%s3644_s27] sm:$0xff] %v152_v0  ;;  %155 = vst [vmem:[%s3644_s27 + $0x8] sm:$0xff] %v154_v1  ;;  %v158_v3 = vld [vmem:[%s3639_s26 + $0x18] sm:$0xff]  ;;  %v160_v4 = vld [vmem:[%s3639_s26 + $0x20] sm:$0xff] }
  0x15   : > { %157 = vst [vmem:[%s3644_s27 + $0x10] sm:$0xff] %v156_v2  ;;  %v162_v5 = vld [vmem:[%s3639_s26 + $0x58] sm:$0xff]  ;;  %159 = vst [vmem:[%s3644_s27 + $0x18] sm:$0xff] %v158_v3  ;;  %v164_v6 = vld [vmem:[%s3639_s26 + $0x60] sm:$0xff] }
  0x16   : > { %161 = vst [vmem:[%s3644_s27 + $0x20] sm:$0xff] %v160_v4  ;;  %163 = vst [vmem:[%s3644_s27 + $0x2c] sm:$0xff] %v162_v5  ;;  %v166_v7 = vld [vmem:[%s3639_s26 + $0x68] sm:$0xff]  ;;  %v168_v8 = vld [vmem:[%s3639_s26 + $0x70] sm:$0xff] }
  0x17   : > { %165 = vst [vmem:[%s3644_s27 + $0x34] sm:$0xff] %v164_v6  ;;  %167 = vst [vmem:[%s3644_s27 + $0x3c] sm:$0xff] %v166_v7  ;;  %v170_v9 = vld [vmem:[%s3639_s26 + $0x78] sm:$0xff]  ;;  %v172_v10 = vld [vmem:[%s3639_s26 + $0xb0] sm:$0xff] }
  0x18   : > { %169 = vst [vmem:[%s3644_s27 + $0x44] sm:$0xff] %v168_v8  ;;  %v174_v11 = vld [vmem:[%s3639_s26 + $0xb8] sm:$0xff]  ;;  %171 = vst [vmem:[%s3644_s27 + $0x4c] sm:$0xff] %v170_v9  ;;  %v176_v12 = vld [vmem:[%s3639_s26 + $0xc0] sm:$0xff] }
  0x19   : > { %173 = vst [vmem:[%s3644_s27 + $0x58] sm:$0xff] %v172_v10  ;;  %175 = vst [vmem:[%s3644_s27 + $0x60] sm:$0xff] %v174_v11  ;;  %v178_v13 = vld [vmem:[%s3639_s26 + $0xc8] sm:$0xff]  ;;  %v180_v14 = vld [vmem:[%s3639_s26 + $0xd0] sm:$0xff] }
  0x1a   : > { %177 = vst [vmem:[%s3644_s27 + $0x68] sm:$0xff] %v176_v12  ;;  %179 = vst [vmem:[%s3644_s27 + $0x70] sm:$0xff] %v178_v13  ;;  %v182_v15 = vld [vmem:[%s3639_s26 + $0x108] sm:$0xff]  ;;  %v184_v16 = vld [vmem:[%s3639_s26 + $0x110] sm:$0xff] }
  0x1b   : > { %181 = vst [vmem:[%s3644_s27 + $0x78] sm:$0xff] %v180_v14  ;;  %v186_v17 = vld [vmem:[%s3639_s26 + $0x118] sm:$0xff]  ;;  %183 = vst [vmem:[%s3644_s27 + $0x84] sm:$0xff] %v182_v15  ;;  %v188_v18 = vld [vmem:[%s3639_s26 + $0x120] sm:$0xff] }
  0x1c   : > { %185 = vst [vmem:[%s3644_s27 + $0x8c] sm:$0xff] %v184_v16  ;;  %187 = vst [vmem:[%s3644_s27 + $0x94] sm:$0xff] %v186_v17  ;;  %v190_v19 = vld [vmem:[%s3639_s26 + $0x128] sm:$0xff]  ;;  %v3184_v21 = vld [vmem:[%s3639_s26 + $0x80] sm:$0xf] }
  0x1d   : > { %v3182_v20 = vld [vmem:[%s3639_s26 + $0x28] sm:$0xf]  ;;  %189 = vst [vmem:[%s3644_s27 + $0x9c] sm:$0xff] %v188_v18  ;;  %191 = vst [vmem:[%s3644_s27 + $0xa4] sm:$0xff] %v190_v19  ;;  %v3186_v22 = vld [vmem:[%s3639_s26 + $0xd8] sm:$0xf] }
  0x1e   : > { %3183 = vst [vmem:[%s3644_s27 + $0x28] sm:$0xf] %v3182_v20  ;;  %v3188_v23 = vld [vmem:[%s3639_s26 + $0x130] sm:$0xf]  ;;  %3185 = vst [vmem:[%s3644_s27 + $0x54] sm:$0xf] %v3184_v21 }
  0x1f   : > { %3187 = vst [vmem:[%s3644_s27 + $0x80] sm:$0xf] %v3186_v22  ;;  %3189 = vst [vmem:[%s3644_s27 + $0xac] sm:$0xf] %v3188_v23 }
  0x20 PF: > { %p3190_p7 = scmp.ge.s32.totalorder %s3573_s14, 1  ;;  %p212_p8 = scmp.lt.s32.totalorder %s3573_s14, 3 }
  0x22   : > { %p213_p9 = pnand %p3190_p7, %p212_p8 }
  0x24   : > { %216 = sbr.rel (%p213_p9) target bundleno = 711 (0x2c7), region = 54 }
  0x29   : > { %s219_s28 = sand.u32 1, %s3565_s12   ;;  %s3575_s4 = smov 109   ;;  %v5812_v48 = vmov 0   ;;  %vm539_vm0 = vcmask 891904   ;;  %vm550_vm1 = vcmask 1043456   ;;  %vm474_vm2 = vcmask 900096  }
  0x2a   : > { %s3694_s29 = smul.u32 176, %s219_s28  ;;  %s3576_s5 = smov 110   ;;  %809 = vmatprep.mubr.bf16.mxu0 %v5812_v48  ;;  %862 = vmatprep.mubr.bf16.mxu1 %v5812_v48  ;;  %vm353_vm3 = vcmask 1039360   ;;  %vm737_vm4 = vcmask 588800   ;;  %vm2886_vm5 = vcmask 785408  }
  0x2b   : > { %s3577_s6 = smov 127   ;;  %3498 = vset.pattern.permute.xlu0 %v5812_v48  ;;  %3499 = vset.pattern.permute.xlu1 %v5812_v48 }
  0x2c   : > { %s3697_s30 = scalar_lea.vmem [#allocation2], %s3694_s29 }
  0x2d   : > { %v245_v24 = vld [vmem:[%s3697_s30 + $0x8] sm:$0xff]  ;;  %v244_v25 = vld [vmem:[%s3697_s30] sm:$0xff]  ;;  %v3192_v31 = vld [vmem:[%s3697_s30 + $0x34] sm:$0xff] }
  0x2e   : > { %v3701_v26 = vcombine.low %v245_v24, %v245_v24  ;;  %v3703_v27 = vcombine.low %v244_v25, %v244_v25  ;;  %v3709_v28 = vcombine.high %v244_v25, %v244_v25  ;;  %v3191_v29 = vld [vmem:[%s3697_s30 + $0x2c] sm:$0xff]  ;;  %v3723_v32 = vcombine.low %v3192_v31, %v3192_v31  ;;  %v3197_v35 = vld [vmem:[%s3697_s30 + $0x58] sm:$0xff]  ;;  %v3198_v39 = vld [vmem:[%s3697_s30 + $0x60] sm:$0xff] }
  0x2f   : > { %v3716_v30 = vcombine.high %v3191_v29, %v3191_v29  ;;  %v3729_v33 = vcombine.high %v245_v24, %v245_v24  ;;  %v3731_v34 = vcombine.low %v3191_v29, %v3191_v29  ;;  %v246_v36 = vld [vmem:[%s3697_s30 + $0x10] sm:$0xff]  ;;  %v3739_v37 = vcombine.high %v3197_v35, %v3197_v35  ;;  %v3193_v42 = vld [vmem:[%s3697_s30 + $0x3c] sm:$0xff]  ;;  %v3199_v46 = vld [vmem:[%s3697_s30 + $0x68] sm:$0xff] }
  0x30   : > { %521 = vrot.lane.b32.xlu1 %v3701_v26, %s3575_s4  ;;  %517 = vrot.lane.b32.xlu0 %v3703_v27, %s3575_s4  ;;  %5931 = vst [vmem:[#allocation5_spill] sm:$0xff] %v3723_v32  ;;  %v3741_v38 = vcombine.low %v246_v36, %v246_v36  ;;  %v3748_v40 = vcombine.low %v3197_v35, %v3197_v35  ;;  %v247_v50 = vld [vmem:[%s3697_s30 + $0x18] sm:$0xff]  ;;  %v3194_v53 = vld [vmem:[%s3697_s30 + $0x44] sm:$0xff] }
  0x31   : > { %5930 = vst [vmem:[#allocation4_spill] sm:$0xff] %v3716_v30  ;;  %5932 = vst [vmem:[#allocation6_spill] sm:$0xff] %v3731_v34  ;;  %v3750_v41 = vcombine.low %v3198_v39, %v3198_v39  ;;  %v3761_v43 = vcombine.low %v3193_v42, %v3193_v42  ;;  %v3763_v44 = vcombine.high %v3192_v31, %v3192_v31  ;;  %v248_v56 = vld [vmem:[%s3697_s30 + $0x20] sm:$0xff]  ;;  %v3200_v59 = vld [vmem:[%s3697_s30 + $0x70] sm:$0xff] }
  0x32   : > { %5933 = vst [vmem:[#allocation7_spill] sm:$0xff] %v3739_v37  ;;  %5934 = vst [vmem:[#allocation8_spill] sm:$0xff] %v3748_v40  ;;  %v3773_v45 = vcombine.high %v3198_v39, %v3198_v39  ;;  %v3780_v47 = vcombine.low %v3199_v46, %v3199_v46  ;;  %v3790_v49 = vcombine.high %v246_v36, %v246_v36  ;;  %v3195_v62 = vld [vmem:[%s3697_s30 + $0x4c] sm:$0xff]  ;;  %v3201_v1 = vld [vmem:[%s3697_s30 + $0x78] sm:$0xff] }
  0x33   : > { %5935 = vst [vmem:[#allocation9_spill] sm:$0xff] %v3750_v41  ;;  %v3797_v51 = vcombine.low %v247_v50, %v247_v50  ;;  %v3803_v52 = vcombine.high %v3193_v42, %v3193_v42  ;;  %v3810_v54 = vcombine.high %v247_v50, %v247_v50  ;;  %v3812_v55 = vcombine.low %v3194_v53, %v3194_v53  ;;  %v3867_v4 = vld [vmem:[%s3697_s30 + $0x28] ss:$0 sps:$4 sm:$0xff]   ;;  %v3882_v7 = vld [vmem:[%s3697_s30 + $0x54] ss:$0 sps:$4 sm:$0xff]   ;;  %v3204_v9 = vld [vmem:[%s3697_s30 + $0x8c] sm:$0xff] }
  0x34   : > { %454 = vrot.lane.b32.xlu1 %v3709_v28, %s3576_s5  ;;  %519 = vrot.lane.b32.xlu0 %v3709_v28, %s3575_s4  ;;  %5936 = vst [vmem:[#allocation10_spill] sm:$0xff] %v3773_v45  ;;  %5937 = vst [vmem:[#allocation11_spill] sm:$0xff] %v3780_v47  ;;  %v3819_v57 = vcombine.high %v3199_v46, %v3199_v46  ;;  %v3821_v58 = vcombine.low %v248_v56, %v248_v56  ;;  %v3889_v8 = vld [vmem:[%s3697_s30 + $0x80] ss:$0 sps:$4 sm:$0xff]   ;;  %v3203_v10 = vld [vmem:[%s3697_s30 + $0x84] sm:$0xff] }
  0x35   : > { %v3828_v60 = vcombine.low %v3200_v59, %v3200_v59  ;;  %v3834_v61 = vcombine.high %v3194_v53, %v3194_v53  ;;  %v3841_v63 = vcombine.low %v3195_v62, %v3195_v62  ;;  %v3847_v0 = vcombine.high %v3200_v59, %v3200_v59  ;;  %v3205_v23 = vld [vmem:[%s3697_s30 + $0x94] sm:$0xff] }
  0x36   : > { %5938 = vst [vmem:[#allocation12_spill] sm:$0xff] %v3819_v57  ;;  %v3854_v2 = vcombine.low %v3201_v1, %v3201_v1  ;;  %v3860_v3 = vcombine.high %v248_v56, %v248_v56  ;;  %v3873_v5 = vcombine.high %v3195_v62, %v3195_v62  ;;  %v3879_v6 = vcombine.high %v3201_v1, %v3201_v1 }
  0x37   : > { %5939 = vst [vmem:[#allocation13_spill] sm:$0xff] %v3828_v60  ;;  %5940 = vst [vmem:[#allocation14_spill] sm:$0xff] %v3847_v0  ;;  %v3909_v13 = vcombine.low %v3204_v9, %v3204_v9  ;;  %v3911_v14 = vcombine.high %v3203_v10, %v3203_v10  ;;  %v3925_v20 = vcombine.low %v3203_v10, %v3203_v10 }
  0x38   : > { %487 = vrot.lane.b32.xlu1 %v3716_v30, %s3576_s5  ;;  %456 = vrot.lane.b32.xlu0 %v3701_v26, %s3576_s5  ;;  %v3947_v36 = vcombine.low %v3205_v23, %v3205_v23  ;;  %v3949_v39 = vcombine.high %v3204_v9, %v3204_v9 }
  0x3c   : > { %452 = vrot.lane.b32.xlu1 %v3703_v27, %s3576_s5  ;;  %489 = vrot.lane.b32.xlu0 %v3723_v32, %s3576_s5 }
  0x40   : > { %523 = vrot.lane.b32.xlu1 %v3729_v33, %s3575_s4  ;;  %485 = vrot.lane.b32.xlu0 %v3731_v34, %s3576_s5 }
  0x44   : > { %422 = vrot.lane.b32.xlu1 %v3739_v37, %s3577_s6  ;;  %525 = vrot.lane.b32.xlu0 %v3741_v38, %s3575_s4 }
  0x48   : > { %420 = vrot.lane.b32.xlu1 %v3748_v40, %s3577_s6  ;;  %424 = vrot.lane.b32.xlu0 %v3750_v41, %s3577_s6 }
  0x4c   : > { %460 = vrot.lane.b32.xlu1 %v3741_v38, %s3576_s5  ;;  %458 = vrot.lane.b32.xlu0 %v3729_v33, %s3576_s5 }
  0x50   : > { %493 = vrot.lane.b32.xlu1 %v3761_v43, %s3576_s5  ;;  %491 = vrot.lane.b32.xlu0 %v3763_v44, %s3576_s5 }
  0x54   : > { %335 = vrot.lane.b32.xlu1 %v3701_v26, %s3577_s6  ;;  %333 = vrot.lane.b32.xlu0 %v3709_v28, %s3577_s6 }
  0x58   : > { %426 = vrot.lane.b32.xlu1 %v3773_v45, %s3577_s6  ;;  %331 = vrot.lane.b32.xlu0 %v3703_v27, %s3577_s6 }
  0x5c   : > { %337 = vrot.lane.b32.xlu1 %v3729_v33, %s3577_s6  ;;  %428 = vrot.lane.b32.xlu0 %v3780_v47, %s3577_s6 }
  0x60   : > { %527 = vrot.lane.b32.xlu1 %v3790_v49, %s3575_s4  ;;  %339 = vrot.lane.b32.xlu0 %v3741_v38, %s3577_s6 }
  0x64   : > { %462 = vrot.lane.b32.xlu1 %v3790_v49, %s3576_s5  ;;  %529 = vrot.lane.b32.xlu0 %v3797_v51, %s3575_s4 }
  0x68   : > { %495 = vrot.lane.b32.xlu1 %v3803_v52, %s3576_s5  ;;  %464 = vrot.lane.b32.xlu0 %v3797_v51, %s3576_s5 }
  0x6c   : > { %531 = vrot.lane.b32.xlu1 %v3810_v54, %s3575_s4  ;;  %497 = vrot.lane.b32.xlu0 %v3812_v55, %s3576_s5 }
  0x70   : > { %430 = vrot.lane.b32.xlu1 %v3819_v57, %s3577_s6  ;;  %533 = vrot.lane.b32.xlu0 %v3821_v58, %s3575_s4 }
  0x74   : > { %466 = vrot.lane.b32.xlu1 %v3810_v54, %s3576_s5  ;;  %432 = vrot.lane.b32.xlu0 %v3828_v60, %s3577_s6 }
  0x78   : > { %499 = vrot.lane.b32.xlu1 %v3834_v61, %s3576_s5  ;;  %468 = vrot.lane.b32.xlu0 %v3821_v58, %s3576_s5 }
  0x7c   : > { %341 = vrot.lane.b32.xlu1 %v3790_v49, %s3577_s6  ;;  %501 = vrot.lane.b32.xlu0 %v3841_v63, %s3576_s5 }
  0x80   : > { %434 = vrot.lane.b32.xlu1 %v3847_v0, %s3577_s6  ;;  %343 = vrot.lane.b32.xlu0 %v3797_v51, %s3577_s6 }
  0x84   : > { %345 = vrot.lane.b32.xlu1 %v3810_v54, %s3577_s6  ;;  %436 = vrot.lane.b32.xlu0 %v3854_v2, %s3577_s6 }
  0x88   : > { %535 = vrot.lane.b32.xlu1 %v3860_v3, %s3575_s4  ;;  %347 = vrot.lane.b32.xlu0 %v3821_v58, %s3577_s6 }
  0x8c   : > { %470 = vrot.lane.b32.xlu1 %v3860_v3, %s3576_s5  ;;  %537 = vrot.lane.b32.xlu0 %v3867_v4, %s3575_s4 }
  0x90   : > { %503 = vrot.lane.b32.xlu1 %v3873_v5, %s3576_s5  ;;  %472 = vrot.lane.b32.xlu0 %v3867_v4, %s3576_s5 }
  0x94   : > { %438 = vrot.lane.b32.xlu1 %v3879_v6, %s3577_s6  ;;  %505 = vrot.lane.b32.xlu0 %v3882_v7, %s3576_s5 }
  0x98   : > { %349 = vrot.lane.b32.xlu1 %v3860_v3, %s3577_s6  ;;  %440 = vrot.lane.b32.xlu0 %v3889_v8, %s3577_s6 }
  0x9c   : > { %1155 = vrot.lane.b32.xlu1 %v3731_v34, %s3575_s4  ;;  %351 = vrot.lane.b32.xlu0 %v3867_v4, %s3577_s6 }
  0xa0   : > { %1159 = vrot.lane.b32.xlu1 %v3723_v32, %s3575_s4  ;;  %1157 = vrot.lane.b32.xlu0 %v3716_v30, %s3575_s4 }
  0xa2   : > { %v522_v11 = vpop.permute.xlu1 %521  ;;  %v518_v12 = vpop.permute.xlu0 %517 }
  0xa4   : > { %1163 = vrot.lane.b32.xlu1 %v3761_v43, %s3575_s4  ;;  %1161 = vrot.lane.b32.xlu0 %v3763_v44, %s3575_s4 }
  0xa6   : > { %v455_v15 = vpop.permute.xlu1 %454  ;;  %v520_v16 = vpop.permute.xlu0 %519 }
  0xa7   : > { %v3914_v17 = vsel %vm539_vm0, %v520_v16, %v522_v11  ;;  %v3917_v18 = vsel %vm539_vm0, %v518_v12, %v520_v16 }
  0xa8   : > { %5941 = vst [vmem:[#allocation15_spill] sm:$0xff] %v3914_v17  ;;  %5942 = vst [vmem:[#allocation16_spill] sm:$0xff] %v3917_v18  ;;  %1127 = vrot.lane.b32.xlu1 %v3909_v13, %s3577_s6  ;;  %1125 = vrot.lane.b32.xlu0 %v3911_v14, %s3577_s6  ;;  %v745_v19 = vsel %vm550_vm1, %v3917_v18, 0 }
  0xa9   : > { %3255 = vmatprep.subr.msk.bf16.mxu0 %vm550_vm1, %v3914_v17 }
  0xaa   : > { %784 = vmatpush1.bf16.msra.mxu0 %v745_v19  ;;  %v488_v21 = vpop.permute.xlu1 %487  ;;  %v457_v22 = vpop.permute.xlu0 %456 }
  0xab   : > { %v3935_v29 = vsel %vm474_vm2, %v455_v15, %v457_v22 }
  0xac   : > { %1093 = vrot.lane.b32.xlu1 %v3716_v30, %s3577_s6  ;;  %1123 = vrot.lane.b32.xlu0 %v3925_v20, %s3577_s6  ;;  %5943 = vst [vmem:[#allocation17_spill] sm:$0xff] %v3935_v29 }
  0xae   : > { %v453_v24 = vpop.permute.xlu1 %452  ;;  %v490_v25 = vpop.permute.xlu0 %489 }
  0xaf   : > { %v3938_v31 = vsel %vm474_vm2, %v488_v21, %v490_v25  ;;  %v3952_v50 = vsel %vm474_vm2, %v453_v24, %v455_v15  ;;  %v3206_v24 = vld [vmem:[%s3697_s30 + $0x9c] sm:$0xff] }
  0xb0   : > { %5944 = vst [vmem:[#allocation18_spill] sm:$0xff] %v3938_v31  ;;  %1091 = vrot.lane.b32.xlu1 %v3731_v34, %s3577_s6  ;;  %1095 = vrot.lane.b32.xlu0 %v3723_v32, %s3577_s6  ;;  %v689_v35 = vsel %vm550_vm1, %v3935_v29, %v3938_v31  ;;  %5945 = vst [vmem:[#allocation19_spill] sm:$0xff] %v3952_v50 }
  0xb1   : > { %785 = vmatprep.subr.bf16.mxu0 %v689_v35 }
  0xb2   : > { %v524_v42 = vpop.permute.xlu1 %523  ;;  %v486_v46 = vpop.permute.xlu0 %485 }
  0xb3   : > { %v3955_v53 = vsel %vm474_vm2, %v486_v46, %v488_v21  ;;  %v3967_v1 = vsel %vm539_vm0, %v522_v11, %v524_v42  ;;  %v4010_v46 = vcombine.low %v3206_v24, %v3206_v24 }
  0xb4   : > { %5946 = vst [vmem:[#allocation20_spill] sm:$0xff] %v3955_v53  ;;  %1131 = vrot.lane.b32.xlu1 %v3947_v36, %s3577_s6  ;;  %1129 = vrot.lane.b32.xlu0 %v3949_v39, %s3577_s6  ;;  %v685_v56 = vsel %vm550_vm1, %v3952_v50, %v3955_v53  ;;  %5947 = vst [vmem:[#allocation21_spill] sm:$0xff] %v3967_v1  ;;  %v751_v10 = vsel %vm550_vm1, %v3967_v1, 0 }
  0xb5   : > { %786 = vmatpush1.bf16.msra.mxu0 %v685_v56  ;;  %v4012_v56 = vcombine.high %v3205_v23, %v3205_v23 }
  0xb6   : > { %v423_v59 = vpop.permute.xlu1 %422  ;;  %v3964_v62 = vpop.permute.xlu0 %525 }
  0xb7   : > { %v3971_v9 = vsel %vm539_vm0, %v524_v42, %v3964_v62 }
  0xb8   : > { %5948 = vst [vmem:[#allocation22_spill] sm:$0xff] %v3971_v9  ;;  %1099 = vrot.lane.b32.xlu1 %v3761_v43, %s3577_s6  ;;  %1097 = vrot.lane.b32.xlu0 %v3763_v44, %s3577_s6 }
  0xb9   : > { %3258 = vmatprep.subr.msk.bf16.mxu1 %vm550_vm1, %v3971_v9 }
  0xba   : > { %837 = vmatpush1.bf16.msra.mxu1 %v751_v10  ;;  %v421_v11 = vpop.permute.xlu1 %420  ;;  %v425_v12 = vpop.permute.xlu0 %424 }
  0xbb   : > { %v3982_v15 = vsel %vm353_vm3, %v421_v11, %v423_v59  ;;  %v3985_v16 = vsel %vm353_vm3, %v423_v59, %v425_v12 }
  0xbc   : > { %5949 = vst [vmem:[#allocation23_spill] sm:$0xff] %v3982_v15  ;;  %5950 = vst [vmem:[#allocation24_spill] sm:$0xff] %v3985_v16  ;;  %1167 = vrot.lane.b32.xlu1 %v3812_v55, %s3575_s4  ;;  %1165 = vrot.lane.b32.xlu0 %v3803_v52, %s3575_s4  ;;  %v3994_v19 = vsel %vm550_vm1, %v3911_v14, %v3985_v16  ;;  %v3999_v21 = vsel %vm550_vm1, %v3925_v20, %v3982_v15 }
  0xbd   : > { %5951 = vst [vmem:[#allocation25_spill] sm:$0xff] %v3994_v19  ;;  %5952 = vst [vmem:[#allocation26_spill] sm:$0xff] %v3999_v21  ;;  %787 = vmatprep.subr.bf16.mxu0 %v3994_v19  ;;  %v557_v16 = vsel %vm550_vm1, %v3709_v28, %v3716_v30  ;;  %v553_v28 = vsel %vm550_vm1, %v3703_v27, %v3731_v34 }
  0xbe   : > { %v4003_v35 = vpop.permute.xlu1 %460  ;;  %788 = vmatpush1.bf16.msra.mxu0 %v3999_v21  ;;  %v459_v42 = vpop.permute.xlu0 %458 }
  0xbf   : > { %v4017_v11 = vsel %vm474_vm2, %v457_v22, %v459_v42  ;;  %v4021_v48 = vsel %vm474_vm2, %v459_v42, %v4003_v35 }
  0xc0   : > { %1171 = vrot.lane.b32.xlu1 %v3841_v63, %s3575_s4  ;;  %1169 = vrot.lane.b32.xlu0 %v3834_v61, %s3575_s4  ;;  %5953 = vst [vmem:[#allocation27_spill] sm:$0xff] %v4017_v11  ;;  %5954 = vst [vmem:[#allocation28_spill] sm:$0xff] %v4021_v48 }
  0xc2   : > { %v4014_v59 = vpop.permute.xlu1 %493  ;;  %v492_v10 = vpop.permute.xlu0 %491 }
  0xc3   : > { %v4024_v21 = vsel %vm474_vm2, %v490_v25, %v492_v10  ;;  %v4028_v19 = vsel %vm474_vm2, %v492_v10, %v4014_v59  ;;  %v3207_v25 = vld [vmem:[%s3697_s30 + $0xa4] sm:$0xff] }
  0xc4   : > { %5955 = vst [vmem:[#allocation29_spill] sm:$0xff] %v4024_v21  ;;  %5956 = vst [vmem:[#allocation30_spill] sm:$0xff] %v4028_v19  ;;  %1135 = vrot.lane.b32.xlu1 %v4010_v46, %s3577_s6  ;;  %1133 = vrot.lane.b32.xlu0 %v4012_v56, %s3577_s6  ;;  %v697_v22 = vsel %vm550_vm1, %v4021_v48, %v4028_v19  ;;  %v693_v23 = vsel %vm550_vm1, %v4017_v11, %v4024_v21 }
  0xc5   : > { %838 = vmatprep.subr.bf16.mxu1 %v697_v22  ;;  %v4051_v29 = vcombine.low %v3207_v25, %v3207_v25  ;;  %v4053_v22 = vcombine.high %v3206_v24, %v3206_v24 }
  0xc6   : > { %v336_v42 = vpop.permute.xlu1 %335  ;;  %839 = vmatpush1.bf16.msra.mxu1 %v693_v23  ;;  %v334_v10 = vpop.permute.xlu0 %333 }
  0xc7   : > { %v4042_v50 = vsel %vm353_vm3, %v334_v10, %v336_v42 }
  0xc8   : > { %5957 = vst [vmem:[#allocation31_spill] sm:$0xff] %v4042_v50  ;;  %1103 = vrot.lane.b32.xlu1 %v3812_v55, %s3577_s6  ;;  %1101 = vrot.lane.b32.xlu0 %v3803_v52, %s3577_s6  ;;  %v601_v48 = vsel %vm550_vm1, %v4042_v50, %v3739_v37 }
  0xc9   : > { %789 = vmatprep.subr.bf16.mxu0 %v601_v48 }
  0xca   : > { %v427_v23 = vpop.permute.xlu1 %426  ;;  %v332_v11 = vpop.permute.xlu0 %331 }
  0xcb   : > { %v4056_v15 = vsel %vm353_vm3, %v332_v11, %v334_v10  ;;  %v4069_v48 = vsel %vm353_vm3, %v425_v12, %v427_v23 }
  0xcc   : > { %5958 = vst [vmem:[#allocation32_spill] sm:$0xff] %v4056_v15  ;;  %1139 = vrot.lane.b32.xlu1 %v4051_v29, %s3577_s6  ;;  %1137 = vrot.lane.b32.xlu0 %v4053_v22, %s3577_s6  ;;  %v597_v24 = vsel %vm550_vm1, %v4056_v15, %v3748_v40  ;;  %5959 = vst [vmem:[#allocation33_spill] sm:$0xff] %v4069_v48  ;;  %v4093_v27 = vsel %vm550_vm1, %v3909_v13, %v4069_v48 }
  0xcd   : > { %790 = vmatpush1.bf16.msra.mxu0 %v597_v24  ;;  %5962 = vst [vmem:[#allocation36_spill] sm:$0xff] %v4093_v27  ;;  %v565_v15 = vsel %vm550_vm1, %v3729_v33, %v3763_v44  ;;  %v561_v33 = vsel %vm550_vm1, %v3701_v26, %v3723_v32 }
  0xce   : > { %v338_v11 = vpop.permute.xlu1 %337  ;;  %v4071_v10 = vpop.permute.xlu0 %428  ;;  %791 = vmatprep.subr.bf16.mxu0 %v557_v16  ;;  %v4098_v16 = vld [vmem:[%s5809_s1] sm:$0xff]  }
  0xcf   : > { %v4078_v30 = vsel %vm353_vm3, %v427_v23, %v4071_v10  ;;  %v4101_v23 = vsel %vm353_vm3, %v336_v42, %v338_v11 }
  0xd0   : > { %5960 = vst [vmem:[#allocation34_spill] sm:$0xff] %v4078_v30  ;;  %1107 = vrot.lane.b32.xlu1 %v3841_v63, %s3577_s6  ;;  %1105 = vrot.lane.b32.xlu0 %v3834_v61, %s3577_s6  ;;  %v4087_v12 = vsel %vm550_vm1, %v3949_v39, %v4078_v30  ;;  %5963 = vst [vmem:[#allocation37_spill] sm:$0xff] %v4101_v23  ;;  %v5966_v30 = vmov 0  }
  0xd1   : > { %5961 = vst [vmem:[#allocation35_spill] sm:$0xff] %v4087_v12  ;;  %840 = vmatprep.subr.bf16.mxu1 %v4087_v12  ;;  %792 = vmatpush1.bf16.msra.mxu0 %v553_v28  ;;  %v4118_v28 = vld [vmem:[%s3697_s30 + $0xac] ss:$0 sps:$4 sm:$0xff]  }
  0xd2   : > { %v528_v24 = vpop.permute.xlu1 %527  ;;  %841 = vmatpush1.bf16.msra.mxu1 %v4093_v27  ;;  %v4104_v34 = vpop.permute.xlu0 %339  ;;  %v4120_v27 = vcombine.high %v3207_v25, %v3207_v25 }
  0xd3   : > { %v4108_v12 = vsel %vm353_vm3, %v338_v11, %v4104_v34  ;;  %v605_v11 = vsel %vm550_vm1, %v4101_v23, %v3750_v41  ;;  %v4132_v48 = vsel %vm539_vm0, %v3964_v62, %v528_v24 }
  0xd4   : > { %5964 = vst [vmem:[#allocation38_spill] sm:$0xff] %v4108_v12  ;;  %1175 = vrot.lane.b32.xlu1 %v3882_v7, %s3575_s4  ;;  %1173 = vrot.lane.b32.xlu0 %v3873_v5, %s3575_s4  ;;  %v609_v42 = vsel %vm550_vm1, %v4108_v12, %v3773_v45  ;;  %5965 = vst [vmem:[#allocation39_spill] sm:$0xff] %v4132_v48  ;;  %v757_v62 = vsel %vm550_vm1, %v4132_v48, 0 }
  0xd5   : > { %842 = vmatprep.subr.bf16.mxu1 %v609_v42  ;;  %3256 = vmatmul.mubr.msk.bf16.vlgmr.msra.gmra.mxu0 %vm737_vm4, %v4098_v16 }
  0xd6   : > { %v463_v12 = vpop.permute.xlu1 %462  ;;  %843 = vmatpush1.bf16.msra.mxu1 %v605_v11  ;;  %v530_v25 = vpop.permute.xlu0 %529  ;;  %819 = vmatprep.mubr.bf16.mxu0 %v5966_v30 }
  0xd7   : > { %v4136_v50 = vsel %vm539_vm0, %v528_v24, %v530_v25  ;;  %844 = vmatprep.subr.bf16.mxu1 %v565_v15  ;;  %v4152_v15 = vld [vmem:[%s5809_s1 + $0x8] sm:$0xff]  }
  0xd8   : > { %5967 = vst [vmem:[#allocation40_spill] sm:$0xff] %v4136_v50  ;;  %1143 = vrot.lane.b32.xlu1 %v4118_v28, %s3577_s6  ;;  %1141 = vrot.lane.b32.xlu0 %v4120_v27, %s3577_s6 }
  0xd9   : > { %3261 = vmatprep.subr.msk.bf16.mxu0 %vm550_vm1, %v4136_v50  ;;  %v4176_v50 = vsel %vm474_vm2, %v4003_v35, %v463_v12 }
  0xda   : > { %890 = vmatpush1.bf16.msra.mxu0 %v757_v62  ;;  %v496_v24 = vpop.permute.xlu1 %495  ;;  %v465_v26 = vpop.permute.xlu0 %464  ;;  %845 = vmatpush1.bf16.msra.mxu1 %v561_v33  ;;  %5971 = vst [vmem:[#allocation44_spill] sm:$0xff] %v4176_v50 }
  0xdb   : > { %v4164_v42 = vsel %vm474_vm2, %v4014_v59, %v496_v24  ;;  %v4169_v33 = vsel %vm474_vm2, %v463_v12, %v465_v26 }
  0xdc   : > { %1111 = vrot.lane.b32.xlu1 %v3882_v7, %s3577_s6  ;;  %1109 = vrot.lane.b32.xlu0 %v3873_v5, %s3577_s6  ;;  %5968 = vst [vmem:[#allocation41_spill] sm:$0xff] %v4164_v42  ;;  %5969 = vst [vmem:[#allocation42_spill] sm:$0xff] %v4169_v33 }
  0xdd   : > { %3259 = vmatmul.mubr.msk.bf16.vlgmr.msra.gmra.mxu1 %vm737_vm4, %v4098_v16  ;;  %3257 = vmatmul.mubr.msk.bf16.gmra.mxu0 %vm737_vm4, %v4152_v15 }
  0xde   : > { %v532_v11 = vpop.permute.xlu1 %531  ;;  %v498_v62 = vpop.permute.xlu0 %497  ;;  %872 = vmatprep.mubr.bf16.mxu1 %v5966_v30  ;;  %915 = vmatprep.mubr.bf16.mxu0 %v5966_v30 }
  0xdf   : > { %v4172_v48 = vsel %vm474_vm2, %v496_v24, %v498_v62  ;;  %v701_v24 = vsel %vm550_vm1, %v4176_v50, %v4164_v42  ;;  %v4189_v32 = vsel %vm539_vm0, %v530_v25, %v532_v11 }
  0xe0   : > { %5970 = vst [vmem:[#allocation43_spill] sm:$0xff] %v4172_v48  ;;  %1754 = vrot.lane.b32.xlu1 %v3739_v37, %s3575_s4  ;;  %1752 = vrot.lane.b32.xlu0 %v3748_v40, %s3575_s4  ;;  %v705_v59 = vsel %vm550_vm1, %v4169_v33, %v4172_v48  ;;  %5972 = vst [vmem:[#allocation45_spill] sm:$0xff] %v4189_v32  ;;  %v763_v25 = vsel %vm550_vm1, %v4189_v32, 0 }
  0xe1   : > { %891 = vmatprep.subr.bf16.mxu0 %v705_v59 }
  0xe2   : > { %v431_v35 = vpop.permute.xlu1 %430  ;;  %v4191_v12 = vpop.permute.xlu0 %533  ;;  %892 = vmatpush1.bf16.msra.mxu0 %v701_v24 }
  0xe3   : > { %v4195_v23 = vsel %vm539_vm0, %v532_v11, %v4191_v12  ;;  %v4209_v59 = vsel %vm353_vm3, %v4071_v10, %v431_v35 }
  0xe4   : > { %5973 = vst [vmem:[#allocation46_spill] sm:$0xff] %v4195_v23  ;;  %1690 = vrot.lane.b32.xlu1 %v3739_v37, %s3576_s5  ;;  %1756 = vrot.lane.b32.xlu0 %v3750_v41, %s3575_s4  ;;  %5974 = vst [vmem:[#allocation47_spill] sm:$0xff] %v4209_v59  ;;  %v4228_v10 = vsel %vm550_vm1, %v3947_v36, %v4209_v59 }
  0xe5   : > { %3264 = vmatprep.subr.msk.bf16.mxu1 %vm550_vm1, %v4195_v23  ;;  %3260 = vmatmul.mubr.msk.bf16.gmra.mxu1 %vm737_vm4, %v4152_v15  ;;  %5977 = vst [vmem:[#allocation50_spill] sm:$0xff] %v4228_v10 }
  0xe6   : > { %943 = vmatpush1.bf16.msra.mxu1 %v763_v25  ;;  %v467_v11 = vpop.permute.xlu1 %466  ;;  %v433_v24 = vpop.permute.xlu0 %432  ;;  %968 = vmatprep.mubr.bf16.mxu1 %v5966_v30 }
  0xe7   : > { %v4213_v50 = vsel %vm353_vm3, %v431_v35, %v433_v24 }
  0xe8   : > { %5975 = vst [vmem:[#allocation48_spill] sm:$0xff] %v4213_v50  ;;  %1722 = vrot.lane.b32.xlu1 %v3911_v14, %s3576_s5  ;;  %1692 = vrot.lane.b32.xlu0 %v3750_v41, %s3576_s5  ;;  %v4222_v33 = vsel %vm550_vm1, %v4012_v56, %v4213_v50 }
  0xe9   : > { %5976 = vst [vmem:[#allocation49_spill] sm:$0xff] %v4222_v33  ;;  %893 = vmatprep.subr.bf16.mxu0 %v4222_v33 }
  0xea   : > { %v500_v35 = vpop.permute.xlu1 %499  ;;  %v4230_v25 = vpop.permute.xlu0 %468  ;;  %894 = vmatpush1.bf16.msra.mxu0 %v4228_v10  ;;  %v4251_v10 = vsel %vm474_vm2, %v465_v26, %v467_v11 }
  0xeb   : > { %v4238_v41 = vsel %vm474_vm2, %v498_v62, %v500_v35  ;;  %v4244_v32 = vsel %vm474_vm2, %v467_v11, %v4230_v25  ;;  %5981 = vst [vmem:[#allocation54_spill] sm:$0xff] %v4251_v10 }
  0xec   : > { %1688 = vrot.lane.b32.xlu1 %v3748_v40, %s3576_s5  ;;  %1724 = vrot.lane.b32.xlu0 %v3909_v13, %s3576_s5  ;;  %5978 = vst [vmem:[#allocation51_spill] sm:$0xff] %v4238_v41  ;;  %5979 = vst [vmem:[#allocation52_spill] sm:$0xff] %v4244_v32  ;;  %v709_v40 = vsel %vm550_vm1, %v4251_v10, %v4238_v41 }
  0xee   : > { %v342_v33 = vpop.permute.xlu1 %341  ;;  %v4240_v37 = vpop.permute.xlu0 %501 }
  0xef   : > { %v4248_v59 = vsel %vm474_vm2, %v500_v35, %v4240_v37  ;;  %v4265_v35 = vsel %vm353_vm3, %v4104_v34, %v342_v33  ;;  %v573_v34 = vsel %vm550_vm1, %v3790_v49, %v3803_v52 }
  0xf0   : > { %5980 = vst [vmem:[#allocation53_spill] sm:$0xff] %v4248_v59  ;;  %1758 = vrot.lane.b32.xlu1 %v3773_v45, %s3575_s4  ;;  %1720 = vrot.lane.b32.xlu0 %v3925_v20, %s3576_s5  ;;  %v713_v62 = vsel %vm550_vm1, %v4244_v32, %v4248_v59 }
  0xf1   : > { %944 = vmatprep.subr.bf16.mxu1 %v713_v62 }
  0xf2   : > { %v435_v26 = vpop.permute.xlu1 %434  ;;  %945 = vmatpush1.bf16.msra.mxu1 %v709_v40  ;;  %v344_v11 = vpop.permute.xlu0 %343  ;;  %v613_v40 = vsel %vm550_vm1, %v4265_v35, %v3780_v47 }
  0xf3   : > { %v4268_v50 = vsel %vm353_vm3, %v342_v33, %v344_v11  ;;  %v4284_v33 = vsel %vm353_vm3, %v433_v24, %v435_v26 }
  0xf4   : > { %5982 = vst [vmem:[#allocation55_spill] sm:$0xff] %v4268_v50  ;;  %1694 = vrot.lane.b32.xlu1 %v3773_v45, %s3576_s5  ;;  %1760 = vrot.lane.b32.xlu0 %v3780_v47, %s3575_s4  ;;  %v617_v62 = vsel %vm550_vm1, %v4268_v50, %v3819_v57  ;;  %v569_v50 = vsel %vm550_vm1, %v3741_v38, %v3761_v43 }
  0xf5   : > { %895 = vmatprep.subr.bf16.mxu0 %v617_v62  ;;  %v4305_v24 = vsel %vm550_vm1, %v4010_v46, %v4284_v33 }
  0xf6   : > { %v346_v10 = vpop.permute.xlu1 %345  ;;  %v437_v32 = vpop.permute.xlu0 %436  ;;  %896 = vmatpush1.bf16.msra.mxu0 %v613_v40  ;;  %5984 = vst [vmem:[#allocation57_spill] sm:$0xff] %v4305_v24  ;;  %v581_v40 = vsel %vm550_vm1, %v3810_v54, %v3834_v61 }
  0xf7   : > { %v4287_v45 = vsel %vm353_vm3, %v435_v26, %v437_v32  ;;  %897 = vmatprep.subr.bf16.mxu0 %v573_v34  ;;  %v4308_v38 = vsel %vm353_vm3, %v344_v11, %v346_v10 }
  0xf8   : > { %1726 = vrot.lane.b32.xlu1 %v3949_v39, %s3576_s5  ;;  %1696 = vrot.lane.b32.xlu0 %v3780_v47, %s3576_s5  ;;  %v4299_v49 = vsel %vm550_vm1, %v4053_v22, %v4287_v45 }
  0xf9   : > { %5983 = vst [vmem:[#allocation56_spill] sm:$0xff] %v4299_v49  ;;  %946 = vmatprep.subr.bf16.mxu1 %v4299_v49 }
  0xfa   : > { %v536_v26 = vpop.permute.xlu1 %535  ;;  %947 = vmatpush1.bf16.msra.mxu1 %v4305_v24  ;;  %v4311_v62 = vpop.permute.xlu0 %347  ;;  %898 = vmatpush1.bf16.msra.mxu0 %v569_v50  ;;  %v621_v50 = vsel %vm550_vm1, %v4308_v38, %v3828_v60 }
  0xfb   : > { %v4315_v34 = vsel %vm353_vm3, %v346_v10, %v4311_v62  ;;  %v4334_v10 = vsel %vm539_vm0, %v4191_v12, %v536_v26 }
  0xfc   : > { %1762 = vrot.lane.b32.xlu1 %v3819_v57, %s3575_s4  ;;  %1728 = vrot.lane.b32.xlu0 %v3947_v36, %s3576_s5  ;;  %v625_v11 = vsel %vm550_vm1, %v4315_v34, %v3847_v0  ;;  %v769_v12 = vsel %vm550_vm1, %v4334_v10, 0 }
  0xfd   : > { %948 = vmatprep.subr.bf16.mxu1 %v625_v11  ;;  %3262 = vmatmul.mubr.msk.bf16.vlgmr.msra.gmra.mxu0 %vm737_vm4, %v4098_v16  ;;  %v577_v11 = vsel %vm550_vm1, %v3797_v51, %v3812_v55 }
  0xfe   : > { %v471_v24 = vpop.permute.xlu1 %470  ;;  %949 = vmatpush1.bf16.msra.mxu1 %v621_v50  ;;  %v4336_v49 = vpop.permute.xlu0 %537  ;;  %925 = vmatprep.mubr.bf16.mxu0 %v5966_v30 }
  0xff   : > { %5985 = vst [vmem:[#allocation58_spill] sm:$0xff] %v4336_v49  ;;  %v4341_v54 = vsel %vm539_vm0, %v536_v26, %v4336_v49  ;;  %950 = vmatprep.subr.bf16.mxu1 %v581_v40  ;;  %v775_v51 = vsel %vm550_vm1, %v4336_v49, 0 }
 0x100   : > { %1698 = vrot.lane.b32.xlu1 %v3819_v57, %s3576_s5  ;;  %1764 = vrot.lane.b32.xlu0 %v3828_v60, %s3575_s4 }
 0x101   : > { %3267 = vmatprep.subr.msk.bf16.mxu0 %vm550_vm1, %v4341_v54 }
 0x102   : > { %996 = vmatpush1.bf16.msra.mxu0 %v769_v12  ;;  %v504_v26 = vpop.permute.xlu1 %503  ;;  %951 = vmatpush1.bf16.msra.mxu1 %v577_v11  ;;  %v473_v40 = vpop.permute.xlu0 %472 }
 0x103   : > { %3464 = vmatprep.subr.msk.bf16.mxu1 %vm550_vm1, %v4336_v49  ;;  %v4368_v50 = vsel %vm474_vm2, %v4240_v37, %v504_v26  ;;  %v4383_v37 = vsel %vm474_vm2, %v4230_v25, %v471_v24 }
 0x104   : > { %1730 = vrot.lane.b32.xlu1 %v4012_v56, %s3576_s5  ;;  %1700 = vrot.lane.b32.xlu0 %v3828_v60, %s3576_s5  ;;  %v484_v60 = vsel %vm474_vm2, %v471_v24, %v473_v40  ;;  %5987 = vst [vmem:[#allocation60_spill] sm:$0xff] %v4383_v37 }
 0x105   : > { %3265 = vmatmul.mubr.msk.bf16.vlgmr.msra.gmra.mxu1 %vm737_vm4, %v4098_v16  ;;  %3263 = vmatmul.mubr.msk.bf16.gmra.mxu0 %vm737_vm4, %v4152_v15 }
 0x106   : > { %v439_v11 = vpop.permute.xlu1 %438  ;;  %3409 = vmatpush3.bf16.msra.mxu1 %v775_v51  ;;  %v4370_v12 = vpop.permute.xlu0 %505  ;;  %978 = vmatprep.mubr.bf16.mxu1 %v5966_v30 }
 0x107   : > { %5986 = vst [vmem:[#allocation59_spill] sm:$0xff] %v4370_v12  ;;  %v725_v47 = vsel %vm550_vm1, %v473_v40, %v4370_v12  ;;  %v4378_v57 = vsel %vm474_vm2, %v504_v26, %v4370_v12  ;;  %1021 = vmatprep.mubr.bf16.mxu0 %v5966_v30  ;;  %v717_v26 = vsel %vm550_vm1, %v4383_v37, %v4368_v50 }
 0x108   : > { %1766 = vrot.lane.b32.xlu1 %v3847_v0, %s3575_s4  ;;  %1732 = vrot.lane.b32.xlu0 %v4010_v46, %s3576_s5  ;;  %v721_v51 = vsel %vm550_vm1, %v484_v60, %v4378_v57  ;;  %v4395_v12 = vsel %vm353_vm3, %v437_v32, %v439_v11 }
 0x109   : > { %3410 = vmatprep.subr.bf16.mxu1 %v725_v47  ;;  %997 = vmatprep.subr.bf16.mxu0 %v721_v51 }
 0x10a   : > { %v350_v25 = vpop.permute.xlu1 %349  ;;  %3411 = vmatpush3.bf16.msra.mxu1 %v725_v47  ;;  %v4397_v24 = vpop.permute.xlu0 %440  ;;  %998 = vmatpush1.bf16.msra.mxu0 %v717_v26  ;;  %v4426_v47 = vsel %vm550_vm1, %v4051_v29, %v4395_v12 }
 0x10b   : > { %v4402_v49 = vsel %vm550_vm1, %v4118_v28, %v4397_v24  ;;  %v4406_v51 = vsel %vm353_vm3, %v439_v11, %v4397_v24  ;;  %v4410_v37 = vsel %vm550_vm1, %v4397_v24, %v473_v40  ;;  %5991 = vst [vmem:[#allocation64_spill] sm:$0xff] %v4426_v47  ;;  %v4434_v11 = vsel %vm353_vm3, %v4311_v62, %v350_v25 }
 0x10c   : > { %5988 = vst [vmem:[#allocation61_spill] sm:$0xff] %v4402_v49  ;;  %5989 = vst [vmem:[#allocation62_spill] sm:$0xff] %v4410_v37  ;;  %1702 = vrot.lane.b32.xlu1 %v3847_v0, %s3576_s5  ;;  %1768 = vrot.lane.b32.xlu0 %v3854_v2, %s3575_s4  ;;  %v4419_v32 = vsel %vm550_vm1, %v4120_v27, %v4406_v51  ;;  %v4430_v40 = vsel %vm550_vm1, %v4406_v51, %v484_v60 }
 0x10d   : > { %5990 = vst [vmem:[#allocation63_spill] sm:$0xff] %v4419_v32  ;;  %3412 = vmatprep.subr.bf16.mxu1 %v4402_v49  ;;  %999 = vmatprep.subr.bf16.mxu0 %v4419_v32  ;;  %5992 = vst [vmem:[#allocation65_spill] sm:$0xff] %v4430_v40 }
 0x10e   : > { %v1156_v26 = vpop.permute.xlu1 %1155  ;;  %3413 = vmatpush3.bf16.msra.mxu1 %v4402_v49  ;;  %v4437_v37 = vpop.permute.xlu0 %351  ;;  %1000 = vmatpush1.bf16.msra.mxu0 %v4426_v47  ;;  %v593_v49 = vsel %vm550_vm1, %v3867_v4, %v3882_v7  ;;  %v629_v47 = vsel %vm550_vm1, %v4434_v11, %v3854_v2 }
 0x10f   : > { %v4442_v32 = vsel %vm353_vm3, %v350_v25, %v4437_v37  ;;  %v637_v60 = vsel %vm550_vm1, %v4437_v37, %v3889_v8  ;;  %3266 = vmatmul.mubr.msk.bf16.gmra.mxu1 %vm737_vm4, %v4152_v15  ;;  %v589_v25 = vsel %vm550_vm1, %v3860_v3, %v3873_v5  ;;  %v585_v3 = vsel %vm550_vm1, %v3821_v58, %v3841_v63 }
 0x110   : > { %1734 = vrot.lane.b32.xlu1 %v4053_v22, %s3576_s5  ;;  %1704 = vrot.lane.b32.xlu0 %v3854_v2, %s3576_s5  ;;  %v633_v62 = vsel %vm550_vm1, %v4442_v32, %v3879_v6 }
 0x111   : > { %3414 = vmatprep.subr.bf16.mxu1 %v637_v60  ;;  %1001 = vmatprep.subr.bf16.mxu0 %v633_v62 }
 0x112   : > { %v1160_v40 = vpop.permute.xlu1 %1159  ;;  %3415 = vmatpush3.bf16.msra.mxu1 %v637_v60  ;;  %v1158_v0 = vpop.permute.xlu0 %1157  ;;  %1002 = vmatpush1.bf16.msra.mxu0 %v629_v47 }
 0x113   : > { %1003 = vmatprep.subr.bf16.mxu0 %v589_v25  ;;  %3416 = vmatprep.subr.bf16.mxu1 %v593_v49  ;;  %v4475_v4 = vsel %vm539_vm0, %v1158_v0, %v1160_v40  ;;  %v4480_v60 = vsel %vm539_vm0, %v1156_v26, %v1158_v0  ;;  %v4508_v26 = vsel %vm550_vm1, %v4028_v19, %v3971_v9  ;;  %v6000_v9 = vld [vmem:[#allocation23_spill] sm:$0xff] }
 0x114   : > { %1770 = vrot.lane.b32.xlu1 %v3879_v6, %s3575_s4  ;;  %1736 = vrot.lane.b32.xlu0 %v4051_v29, %s3576_s5  ;;  %5993 = vst [vmem:[#allocation66_spill] sm:$0xff] %v4475_v4  ;;  %5994 = vst [vmem:[#allocation67_spill] sm:$0xff] %v4480_v60  ;;  %v1298_v0 = vsel %vm550_vm1, %v4480_v60, 0  ;;  %v6005_v60 = vld [vmem:[#allocation34_spill] sm:$0xff] }
 0x115   : > { %3418 = vmatprep.mubr.msk.bf16.mxu1 %vm737_vm4, %v4098_v16 }
 0x116   : > { %v4477_v7 = vpop.permute.xlu1 %1163  ;;  %3417 = vmatpush3.bf16.msra.mxu1 %v593_v49  ;;  %v1162_v47 = vpop.permute.xlu0 %1161  ;;  %1004 = vmatpush1.bf16.msra.mxu0 %v585_v3  ;;  %v4513_v3 = vsel %vm550_vm1, %v3938_v31, %v3914_v17  ;;  %v6006_v17 = vld [vmem:[#allocation33_spill] sm:$0xff] }
 0x117   : > { %v4483_v58 = vsel %vm539_vm0, %v1160_v40, %v1162_v47  ;;  %v4487_v62 = vsel %vm539_vm0, %v1162_v47, %v4477_v7  ;;  %3272 = vmatprep.subr.msk.bf16.mxu0 %vm550_vm1, %v4475_v4 }
 0x118   : > { %5995 = vst [vmem:[#allocation68_spill] sm:$0xff] %v4483_v58  ;;  %5996 = vst [vmem:[#allocation69_spill] sm:$0xff] %v4487_v62  ;;  %v1304_v25 = vsel %vm550_vm1, %v4483_v58, 0  ;;  %1706 = vrot.lane.b32.xlu1 %v3879_v6, %s3576_s5  ;;  %1772 = vrot.lane.b32.xlu0 %v3889_v8, %s3575_s4  ;;  %v4534_v58 = vsel %vm550_vm1, %v3955_v53, %v3917_v18  ;;  %v6004_v18 = vld [vmem:[#allocation4_spill] sm:$0xff] }
 0x119   : > { %3275 = vmatprep.subr.msk.bf16.mxu1 %vm550_vm1, %v4487_v62  ;;  %3419 = vmatmul.mubr.msk.bf16.vlgmr.msra.gmra.mxu1 %vm737_vm4, %v4152_v15 }
 0x11a   : > { %v1128_v49 = vpop.permute.xlu1 %1127  ;;  %1390 = vmatpush1.bf16.msra.mxu1 %v1304_v25  ;;  %v1126_v40 = vpop.permute.xlu0 %1125  ;;  %3268 = vmatmul.mubr.msk.bf16.vlgmr.msra.gmra.mxu0 %vm737_vm4, %v4098_v16  ;;  %v4527_v25 = vsel %vm550_vm1, %v4024_v21, %v3967_v1  ;;  %v5999_v21 = vld [vmem:[#allocation24_spill] sm:$0xff] }
 0x11b   : > { %1337 = vmatpush1.bf16.msra.mxu0 %v1298_v0  ;;  %1391 = vmatprep.subr.bf16.mxu1 %v4508_v26  ;;  %v4517_v47 = vsel %vm353_vm3, %v1126_v40, %v1128_v49 }
 0x11c   : > { %5997 = vst [vmem:[#allocation70_spill] sm:$0xff] %v4517_v47  ;;  %1338 = vmatprep.subr.bf16.mxu0 %v4513_v3  ;;  %1738 = vrot.lane.b32.xlu1 %v4120_v27, %s3576_s5  ;;  %v1246_v1 = vsel %vm550_vm1, %v5999_v21, %v4517_v47 }
 0x11d   : > { %1708 = vrot.lane.b32.xlu0 %v3889_v8, %s3576_s5  ;;  %1031 = vmatprep.mubr.bf16.mxu0 %v5966_v30 }
 0x11e   : > { %v1094_v0 = vpop.permute.xlu1 %1093  ;;  %1392 = vmatpush1.bf16.msra.mxu1 %v4527_v25  ;;  %v1124_v19 = vpop.permute.xlu0 %1123  ;;  %1415 = vmatprep.mubr.bf16.mxu1 %v5966_v30 }
 0x11f   : > { %v4538_v8 = vsel %vm353_vm3, %v1124_v19, %v1126_v40  ;;  %1339 = vmatpush1.bf16.msra.mxu0 %v4534_v58 }
 0x120   : > { %5998 = vst [vmem:[#allocation71_spill] sm:$0xff] %v4538_v8  ;;  %1340 = vmatprep.subr.bf16.mxu0 %v1246_v1  ;;  %v1243_v62 = vsel %vm550_vm1, %v6000_v9, %v4538_v8  ;;  %2263 = vrot.lane.b32.xlu1 %v3925_v20, %s3575_s4 }
 0x121   : > { %1740 = vrot.lane.b32.xlu0 %v4118_v28, %s3576_s5 }
 0x122   : > { %v1092_v53 = vpop.permute.xlu1 %1091  ;;  %v1096_v19 = vpop.permute.xlu0 %1095  ;;  %3269 = vmatmul.mubr.msk.bf16.gmra.mxu0 %vm737_vm4, %v4152_v15 }
 0x123   : > { %v1113_v40 = vsel %vm353_vm3, %v1092_v53, %v1094_v0  ;;  %v1114_v47 = vsel %vm353_vm3, %v1094_v0, %v1096_v19  ;;  %1341 = vmatpush1.bf16.msra.mxu0 %v1243_v62  ;;  %1362 = vmatprep.mubr.bf16.mxu0 %v5966_v30 }
 0x124   : > { %v1213_v1 = vsel %vm550_vm1, %v1114_v47, %v3911_v14  ;;  %v1210_v8 = vsel %vm550_vm1, %v1113_v40, %v3925_v20  ;;  %2267 = vrot.lane.b32.xlu1 %v3909_v13, %s3575_s4  ;;  %v6003_v47 = vld [vmem:[#allocation31_spill] sm:$0xff] }
 0x125   : > { %1342 = vmatprep.subr.bf16.mxu0 %v1213_v1  ;;  %2265 = vrot.lane.b32.xlu0 %v3911_v14, %s3575_s4  ;;  %v1189_v40 = vsel %vm550_vm1, %v6004_v18, %v6003_v47  ;;  %v6007_v18 = vld [vmem:[#allocation32_spill] sm:$0xff] }
 0x126   : > { %v1132_v31 = vpop.permute.xlu1 %1131  ;;  %v1130_v53 = vpop.permute.xlu0 %1129 }
 0x127   : > { %v4565_v0 = vsel %vm353_vm3, %v1128_v49, %v1130_v53  ;;  %v4568_v62 = vsel %vm353_vm3, %v1130_v53, %v1132_v31  ;;  %1343 = vmatpush1.bf16.msra.mxu0 %v1210_v8  ;;  %v6008_v53 = vld [vmem:[#allocation6_spill] sm:$0xff] }
 0x128   : > { %6001 = vst [vmem:[#allocation24_spill] sm:$0xff] %v4565_v0  ;;  %6002 = vst [vmem:[#allocation23_spill] sm:$0xff] %v4568_v62  ;;  %1344 = vmatprep.subr.bf16.mxu0 %v1189_v40  ;;  %v1252_v1 = vsel %vm550_vm1, %v6005_v60, %v4568_v62  ;;  %v1249_v4 = vsel %vm550_vm1, %v6006_v17, %v4565_v0  ;;  %2271 = vrot.lane.b32.xlu1 %v3947_v36, %s3575_s4 }
 0x129   : > { %1393 = vmatprep.subr.bf16.mxu1 %v1252_v1  ;;  %2269 = vrot.lane.b32.xlu0 %v3949_v39, %s3575_s4  ;;  %v1187_v47 = vsel %vm550_vm1, %v6008_v53, %v6007_v18 }
 0x12a   : > { %v1100_v49 = vpop.permute.xlu1 %1099  ;;  %1394 = vmatpush1.bf16.msra.mxu1 %v1249_v4  ;;  %v1098_v8 = vpop.permute.xlu0 %1097 }
 0x12b   : > { %v1115_v40 = vsel %vm353_vm3, %v1096_v19, %v1098_v8  ;;  %v1116_v62 = vsel %vm353_vm3, %v1098_v8, %v1100_v49  ;;  %1345 = vmatpush1.bf16.msra.mxu0 %v1187_v47  ;;  %v6009_v8 = vld [vmem:[#allocation38_spill] sm:$0xff]  ;;  %v6013_v47 = vld [vmem:[#allocation5_spill] sm:$0xff] }
 0x12c   : > { %v1219_v0 = vsel %vm550_vm1, %v1116_v62, %v3949_v39  ;;  %v1216_v1 = vsel %vm550_vm1, %v1115_v40, %v3909_v13  ;;  %2275 = vrot.lane.b32.xlu1 %v4010_v46, %s3575_s4  ;;  %v1193_v62 = vsel %vm550_vm1, %v3763_v44, %v6009_v8  ;;  %v6012_v44 = vld [vmem:[#allocation37_spill] sm:$0xff]  ;;  %v6014_v40 = vld [vmem:[#allocation40_spill] sm:$0xff] }
 0x12d   : > { %1395 = vmatprep.subr.bf16.mxu1 %v1219_v0  ;;  %2273 = vrot.lane.b32.xlu0 %v4012_v56, %s3575_s4 }
 0x12e   : > { %3273 = vmatmul.mubr.msk.bf16.vlgmr.msra.gmra.mxu0 %vm737_vm4, %v4098_v16  ;;  %v1168_v4 = vpop.permute.xlu1 %1167  ;;  %1396 = vmatpush1.bf16.msra.mxu1 %v1216_v1  ;;  %v1166_v19 = vpop.permute.xlu0 %1165  ;;  %v4621_v1 = vsel %vm550_vm1, %v4172_v48, %v6014_v40  ;;  %v6020_v48 = vld [vmem:[#allocation48_spill] sm:$0xff] }
 0x12f   : > { %v4603_v18 = vsel %vm539_vm0, %v4477_v7, %v1166_v19  ;;  %v4606_v53 = vsel %vm539_vm0, %v1166_v19, %v1168_v4  ;;  %1397 = vmatprep.subr.bf16.mxu1 %v1193_v62  ;;  %1372 = vmatprep.mubr.bf16.mxu0 %v5966_v30  ;;  %v1191_v7 = vsel %vm550_vm1, %v6013_v47, %v6012_v44  ;;  %v6017_v47 = vld [vmem:[#allocation39_spill] sm:$0xff] }
 0x130   : > { %6010 = vst [vmem:[#allocation31_spill] sm:$0xff] %v4603_v18  ;;  %6011 = vst [vmem:[#allocation4_spill] sm:$0xff] %v4606_v53  ;;  %v1310_v0 = vsel %vm550_vm1, %v4603_v18, 0  ;;  %3278 = vmatprep.subr.msk.bf16.mxu0 %vm550_vm1, %v4606_v53  ;;  %2279 = vrot.lane.b32.xlu1 %v4051_v29, %s3575_s4  ;;  %v6023_v53 = vld [vmem:[#allocation55_spill] sm:$0xff] }
 0x131   : > { %1443 = vmatpush1.bf16.msra.mxu0 %v1310_v0  ;;  %2277 = vrot.lane.b32.xlu0 %v4053_v22, %s3575_s4 }
 0x132   : > { %v4625_v19 = vpop.permute.xlu1 %1171  ;;  %1398 = vmatpush1.bf16.msra.mxu1 %v1191_v7  ;;  %v1170_v8 = vpop.permute.xlu0 %1169  ;;  %1444 = vmatprep.subr.bf16.mxu0 %v4621_v1  ;;  %v4642_v7 = vsel %vm550_vm1, %v4164_v42, %v6017_v47  ;;  %v6021_v47 = vld [vmem:[#allocation47_spill] sm:$0xff] }
 0x133   : > { %v4629_v62 = vsel %vm539_vm0, %v1168_v4, %v1170_v8  ;;  %v4633_v0 = vsel %vm539_vm0, %v1170_v8, %v4625_v19 }
 0x134   : > { %6015 = vst [vmem:[#allocation34_spill] sm:$0xff] %v4629_v62  ;;  %6016 = vst [vmem:[#allocation33_spill] sm:$0xff] %v4633_v0  ;;  %v1316_v44 = vsel %vm550_vm1, %v4629_v62, 0  ;;  %3281 = vmatprep.subr.msk.bf16.mxu1 %vm550_vm1, %v4633_v0  ;;  %2283 = vrot.lane.b32.xlu1 %v4118_v28, %s3575_s4  ;;  %v4654_v62 = vsel %vm550_vm1, %v4248_v59, %v4195_v23 }
 0x135   : > { %3276 = vmatmul.mubr.msk.bf16.vlgmr.msra.gmra.mxu1 %vm737_vm4, %v4098_v16  ;;  %1445 = vmatpush1.bf16.msra.mxu0 %v4642_v7 }
 0x136   : > { %3274 = vmatmul.mubr.msk.bf16.gmra.mxu0 %vm737_vm4, %v4152_v15  ;;  %v1136_v4 = vpop.permute.xlu1 %1135  ;;  %1496 = vmatpush1.bf16.msra.mxu1 %v1316_v44  ;;  %v1134_v8 = vpop.permute.xlu0 %1133 }
 0x137   : > { %v4657_v0 = vsel %vm353_vm3, %v1132_v31, %v1134_v8  ;;  %v4660_v42 = vsel %vm353_vm3, %v1134_v8, %v1136_v4  ;;  %1497 = vmatprep.subr.bf16.mxu1 %v4654_v62  ;;  %1425 = vmatprep.mubr.bf16.mxu1 %v5966_v30  ;;  %v6022_v31 = vld [vmem:[#allocation45_spill] sm:$0xff] }
 0x138   : > { %6018 = vst [vmem:[#allocation32_spill] sm:$0xff] %v4657_v0  ;;  %6019 = vst [vmem:[#allocation6_spill] sm:$0xff] %v4660_v42  ;;  %v1258_v44 = vsel %vm550_vm1, %v6020_v48, %v4660_v42  ;;  %v1255_v18 = vsel %vm550_vm1, %v6021_v47, %v4657_v0  ;;  %1468 = vmatprep.mubr.bf16.mxu0 %v5966_v30  ;;  %2281 = vrot.lane.b32.xlu0 %v4120_v27, %s3575_s4 }
 0x139   : > { %1446 = vmatprep.subr.bf16.mxu0 %v1258_v44  ;;  %v4676_v8 = vsel %vm550_vm1, %v4238_v41, %v6022_v31 }
 0x13a   : > { %v1104_v59 = vpop.permute.xlu1 %1103  ;;  %1498 = vmatpush1.bf16.msra.mxu1 %v4676_v8  ;;  %v1102_v23 = vpop.permute.xlu0 %1101  ;;  %1447 = vmatpush1.bf16.msra.mxu0 %v1255_v18  ;;  %v1197_v18 = vsel %vm550_vm1, %v3803_v52, %v6023_v53  ;;  %v1195_v52 = vsel %vm550_vm1, %v3761_v43, %v4265_v35 }
 0x13b   : > { %v1117_v42 = vsel %vm353_vm3, %v1100_v49, %v1102_v23  ;;  %v1118_v0 = vsel %vm353_vm3, %v1102_v23, %v1104_v59 }
 0x13c   : > { %v1225_v40 = vsel %vm550_vm1, %v1118_v0, %v4012_v56  ;;  %v1222_v44 = vsel %vm550_vm1, %v1117_v42, %v3947_v36 }
 0x13d   : > { %3277 = vmatmul.mubr.msk.bf16.gmra.mxu1 %vm737_vm4, %v4152_v15  ;;  %1448 = vmatprep.subr.bf16.mxu0 %v1225_v40 }
 0x13e   : > { %v1140_v41 = vpop.permute.xlu1 %1139  ;;  %v1138_v31 = vpop.permute.xlu0 %1137  ;;  %1449 = vmatpush1.bf16.msra.mxu0 %v1222_v44  ;;  %1521 = vmatprep.mubr.bf16.mxu1 %v5966_v30 }
 0x13f   : > { %v4692_v23 = vsel %vm353_vm3, %v1136_v4, %v1138_v31  ;;  %v4695_v49 = vsel %vm353_vm3, %v1138_v31, %v1140_v41  ;;  %1450 = vmatprep.subr.bf16.mxu0 %v1197_v18 }
 0x140   : > { %v1264_v42 = vsel %vm550_vm1, %v4287_v45, %v4695_v49  ;;  %v1261_v40 = vsel %vm550_vm1, %v4284_v33, %v4692_v23 }
 0x141   : > { %1499 = vmatprep.subr.bf16.mxu1 %v1264_v42 }
 0x142   : > { %v1108_v53 = vpop.permute.xlu1 %1107  ;;  %1500 = vmatpush1.bf16.msra.mxu1 %v1261_v40  ;;  %v1106_v0 = vpop.permute.xlu0 %1105  ;;  %1451 = vmatpush1.bf16.msra.mxu0 %v1195_v52 }
 0x143   : > { %v1119_v4 = vsel %vm353_vm3, %v1104_v59, %v1106_v0  ;;  %v1120_v31 = vsel %vm353_vm3, %v1106_v0, %v1108_v53  ;;  %v1201_v59 = vsel %vm550_vm1, %v3834_v61, %v4315_v34  ;;  %v1199_v61 = vsel %vm550_vm1, %v3812_v55, %v4308_v38 }
 0x144   : > { %v1231_v44 = vsel %vm550_vm1, %v1120_v31, %v4053_v22  ;;  %v1228_v18 = vsel %vm550_vm1, %v1119_v4, %v4010_v46  ;;  %v4738_v34 = vsel %vm550_vm1, %v4378_v57, %v4341_v54  ;;  %v4759_v38 = vsel %vm550_vm1, %v4368_v50, %v4334_v10 }
 0x145   : > { %3279 = vmatmul.mubr.msk.bf16.vlgmr.msra.gmra.mxu0 %vm737_vm4, %v4098_v16  ;;  %1501 = vmatprep.subr.bf16.mxu1 %v1231_v44 }
 0x146   : > { %v4714_v42 = vpop.permute.xlu1 %1175  ;;  %1502 = vmatpush1.bf16.msra.mxu1 %v1228_v18  ;;  %v1174_v43 = vpop.permute.xlu0 %1173  ;;  %1478 = vmatprep.mubr.bf16.mxu0 %v5966_v30 }
 0x147   : > { %6024 = vst [vmem:[#allocation38_spill] sm:$0xff] %v4714_v42  ;;  %v4722_v35 = vsel %vm539_vm0, %v4625_v19, %v1174_v43  ;;  %v4726_v40 = vsel %vm539_vm0, %v1174_v43, %v4714_v42  ;;  %1503 = vmatprep.subr.bf16.mxu1 %v1201_v59  ;;  %v1328_v31 = vsel %vm550_vm1, %v4714_v42, 0  ;;  %v6026_v43 = vld [vmem:[#allocation58_spill] sm:$0xff]  ;;  %v6027_v59 = vld [vmem:[#allocation59_spill] sm:$0xff] }
 0x148   : > { %v1322_v52 = vsel %vm550_vm1, %v4722_v35, 0  ;;  %3284 = vmatprep.subr.msk.bf16.mxu0 %vm550_vm1, %v4726_v40 }
 0x149   : > { %1549 = vmatpush1.bf16.msra.mxu0 %v1322_v52  ;;  %v4770_v52 = vsel %vm550_vm1, %v6027_v59, %v6026_v43 }
 0x14a   : > { %v4740_v19 = vpop.permute.xlu1 %1143  ;;  %1504 = vmatpush1.bf16.msra.mxu1 %v1199_v61  ;;  %v1142_v0 = vpop.permute.xlu0 %1141  ;;  %1550 = vmatprep.subr.bf16.mxu0 %v4738_v34 }
 0x14b   : > { %6025 = vst [vmem:[#allocation37_spill] sm:$0xff] %v4740_v19  ;;  %v4745_v4 = vsel %vm353_vm3, %v1142_v0, %v4740_v19  ;;  %3465 = vmatprep.subr.msk.bf16.mxu1 %vm550_vm1, %v4714_v42  ;;  %v4764_v44 = vsel %vm353_vm3, %v1140_v41, %v1142_v0  ;;  %v1273_v59 = vsel %vm550_vm1, %v4397_v24, %v4740_v19 }
 0x14c   : > { %v1270_v55 = vsel %vm550_vm1, %v4406_v51, %v4745_v4  ;;  %v1267_v41 = vsel %vm550_vm1, %v4395_v12, %v4764_v44 }
 0x14d   : > { %3280 = vmatmul.mubr.msk.bf16.gmra.mxu0 %vm737_vm4, %v4152_v15  ;;  %3282 = vmatmul.mubr.msk.bf16.vlgmr.msra.gmra.mxu1 %vm737_vm4, %v4098_v16 }
 0x14e   : > { %1551 = vmatpush1.bf16.msra.mxu0 %v4759_v38  ;;  %v1112_v51 = vpop.permute.xlu1 %1111  ;;  %3423 = vmatpush3.bf16.msra.mxu1 %v1328_v31  ;;  %v1110_v18 = vpop.permute.xlu0 %1109 }
 0x14f   : > { %v1122_v61 = vsel %vm353_vm3, %v1110_v18, %v1112_v51  ;;  %1552 = vmatprep.subr.bf16.mxu0 %v1270_v55  ;;  %3424 = vmatprep.subr.bf16.mxu1 %v4770_v52  ;;  %v1121_v0 = vsel %vm353_vm3, %v1108_v53, %v1110_v18  ;;  %v1240_v24 = vsel %vm550_vm1, %v1112_v51, %v4118_v28 }
 0x150   : > { %v1237_v42 = vsel %vm550_vm1, %v1122_v61, %v4120_v27  ;;  %1531 = vmatprep.mubr.bf16.mxu1 %v5966_v30  ;;  %1574 = vmatprep.mubr.bf16.mxu0 %v5966_v30  ;;  %v1234_v61 = vsel %vm550_vm1, %v1121_v0, %v4051_v29 }
 0x152   : > { %1553 = vmatpush1.bf16.msra.mxu0 %v1267_v41  ;;  %v1755_v31 = vpop.permute.xlu1 %1754  ;;  %3425 = vmatpush3.bf16.msra.mxu1 %v4770_v52  ;;  %v1753_v55 = vpop.permute.xlu0 %1752  ;;  %v1205_v41 = vsel %vm550_vm1, %v3873_v5, %v4442_v32  ;;  %v3546_v32 = vld [vmem:[%s3697_s30 + $0x54] ss:$0 sps:$4 sm:$0xff]  }
 0x153   : > { %1554 = vmatprep.subr.bf16.mxu0 %v1237_v42  ;;  %3426 = vmatprep.subr.bf16.mxu1 %v1273_v59  ;;  %v1203_v42 = vsel %vm550_vm1, %v3841_v63, %v4434_v11  ;;  %v1774_v0 = vsel %vm539_vm0, %v1753_v55, %v1755_v31  ;;  %v1207_v28 = vsel %vm550_vm1, %v3546_v32, %v4437_v37 }
 0x154   : > { %v1873_v51 = vsel %vm550_vm1, %v1774_v0, 0 }
 0x155   : > { %3283 = vmatmul.mubr.msk.bf16.gmra.mxu1 %vm737_vm4, %v4152_v15 }
 0x156   : > { %1555 = vmatpush1.bf16.msra.mxu0 %v1234_v61  ;;  %v1691_v53 = vpop.permute.xlu1 %1690  ;;  %3427 = vmatpush3.bf16.msra.mxu1 %v1273_v59  ;;  %v1757_v18 = vpop.permute.xlu0 %1756 }
 0x157   : > { %1556 = vmatprep.subr.bf16.mxu0 %v1205_v41  ;;  %3428 = vmatprep.subr.bf16.mxu1 %v1240_v24  ;;  %v1775_v59 = vsel %vm539_vm0, %v1755_v31, %v1757_v18 }
 0x158   : > { %3432 = vmatprep.mubr.msk.bf16.mxu1 %vm737_vm4, %v4098_v16 }
 0x15a   : > { %1557 = vmatpush1.bf16.msra.mxu0 %v1203_v42  ;;  %v1723_v61 = vpop.permute.xlu1 %1722  ;;  %3429 = vmatpush3.bf16.msra.mxu1 %v1240_v24  ;;  %v1693_v5 = vpop.permute.xlu0 %1692 }
 0x15b   : > { %3289 = vmatprep.subr.msk.bf16.mxu0 %vm550_vm1, %v1775_v59  ;;  %3430 = vmatprep.subr.bf16.mxu1 %v1207_v28  ;;  %v1711_v31 = vsel %vm474_vm2, %v1691_v53, %v1693_v5 }
 0x15d   : > { %3285 = vmatmul.mubr.msk.bf16.vlgmr.msra.gmra.mxu0 %vm737_vm4, %v4098_v16 }
 0x15e   : > { %1912 = vmatpush1.bf16.msra.mxu0 %v1873_v51  ;;  %v1689_v63 = vpop.permute.xlu1 %1688  ;;  %3431 = vmatpush3.bf16.msra.mxu1 %v1207_v28  ;;  %v1725_v11 = vpop.permute.xlu0 %1724 }
 0x15f   : > { %v1743_v55 = vsel %vm474_vm2, %v1723_v61, %v1725_v11  ;;  %1584 = vmatprep.mubr.bf16.mxu0 %v5966_v30  ;;  %v1710_v32 = vsel %vm474_vm2, %v1689_v63, %v1691_v53 }
 0x160   : > { %v1834_v37 = vsel %vm550_vm1, %v1711_v31, %v1743_v55  ;;  %v4814_v41 = vsel %vm550_vm1, %v1743_v55, %v1775_v59 }
 0x161   : > { %3433 = vmatmul.mubr.msk.bf16.vlgmr.msra.gmra.mxu1 %vm737_vm4, %v4152_v15  ;;  %1913 = vmatprep.subr.bf16.mxu0 %v1834_v37 }
 0x162   : > { %v1759_v24 = vpop.permute.xlu1 %1758  ;;  %v1721_v42 = vpop.permute.xlu0 %1720  ;;  %1990 = vmatprep.mubr.bf16.mxu1 %v5966_v30 }
 0x163   : > { %v1742_v28 = vsel %vm474_vm2, %v1721_v42, %v1723_v61  ;;  %v1776_v59 = vsel %vm539_vm0, %v1757_v18, %v1759_v24  ;;  %v6028_v61 = vld [vmem:[#allocation17_spill] sm:$0xff] }
 0x164   : > { %v1830_v51 = vsel %vm550_vm1, %v1710_v32, %v1742_v28  ;;  %v4823_v19 = vsel %vm550_vm1, %v1742_v28, %v1774_v0  ;;  %v1879_v53 = vsel %vm550_vm1, %v1776_v59, 0  ;;  %v1808_v63 = vsel %vm550_vm1, %v5999_v21, %v6028_v61  ;;  %v6030_v28 = vld [vmem:[#allocation19_spill] sm:$0xff] }
 0x165   : > { %3286 = vmatmul.mubr.msk.bf16.gmra.mxu0 %vm737_vm4, %v4152_v15 }
 0x166   : > { %1914 = vmatpush1.bf16.msra.mxu0 %v1830_v51  ;;  %v1695_v31 = vpop.permute.xlu1 %1694  ;;  %v1761_v55 = vpop.permute.xlu0 %1760  ;;  %1937 = vmatprep.mubr.bf16.mxu0 %v5966_v30 }
 0x167   : > { %v4830_v37 = vsel %vm539_vm0, %v1759_v24, %v1761_v55  ;;  %1915 = vmatprep.subr.bf16.mxu0 %v4513_v3  ;;  %v6029_v24 = vld [vmem:[#allocation7_spill] sm:$0xff] }
 0x168   : > { %3292 = vmatprep.subr.msk.bf16.mxu1 %vm550_vm1, %v4830_v37  ;;  %v1786_v3 = vsel %vm550_vm1, %v6029_v24, %v3911_v14 }
 0x169   : > { %1965 = vmatpush1.bf16.msra.mxu1 %v1879_v53 }
 0x16a   : > { %1916 = vmatpush1.bf16.msra.mxu0 %v4534_v58  ;;  %v1727_v18 = vpop.permute.xlu1 %1726  ;;  %v1697_v0 = vpop.permute.xlu0 %1696  ;;  %v1806_v58 = vsel %vm550_vm1, %v6000_v9, %v6030_v28 }
 0x16b   : > { %v1744_v42 = vsel %vm474_vm2, %v1725_v11, %v1727_v18  ;;  %1917 = vmatprep.subr.bf16.mxu0 %v1808_v63  ;;  %v1713_v43 = vsel %vm474_vm2, %v1695_v31, %v1697_v0  ;;  %v6031_v11 = vld [vmem:[#allocation8_spill] sm:$0xff] }
 0x16c   : > { %v4845_v32 = vsel %vm550_vm1, %v1744_v42, %v1776_v59  ;;  %v1784_v14 = vsel %vm550_vm1, %v6031_v11, %v3925_v20  ;;  %v1712_v59 = vsel %vm474_vm2, %v1693_v5, %v1695_v31  ;;  %v6032_v31 = vld [vmem:[#allocation28_spill] sm:$0xff] }
 0x16d   : > { %v1838_v9 = vsel %vm550_vm1, %v1712_v59, %v1744_v42 }
 0x16e   : > { %1918 = vmatpush1.bf16.msra.mxu0 %v1806_v58  ;;  %v1763_v51 = vpop.permute.xlu1 %1762  ;;  %v1729_v53 = vpop.permute.xlu0 %1728  ;;  %v6034_v58 = vld [vmem:[#allocation27_spill] sm:$0xff] }
 0x16f   : > { %v4852_v21 = vsel %vm474_vm2, %v1727_v18, %v1729_v53  ;;  %1919 = vmatprep.subr.bf16.mxu0 %v1786_v3  ;;  %v1778_v63 = vsel %vm539_vm0, %v1761_v55, %v1763_v51  ;;  %v1812_v55 = vsel %vm550_vm1, %v6005_v60, %v6032_v31  ;;  %v6036_v31 = vld [vmem:[#allocation42_spill] sm:$0xff] }
 0x170   : > { %v1842_v61 = vsel %vm550_vm1, %v1713_v43, %v4852_v21  ;;  %v1885_v20 = vsel %vm550_vm1, %v1778_v63, 0 }
 0x171   : > { %1966 = vmatprep.subr.bf16.mxu1 %v1842_v61 }
 0x172   : > { %1920 = vmatpush1.bf16.msra.mxu0 %v1784_v14  ;;  %v1699_v24 = vpop.permute.xlu1 %1698  ;;  %1967 = vmatpush1.bf16.msra.mxu1 %v1838_v9  ;;  %v1765_v18 = vpop.permute.xlu0 %1764  ;;  %v6035_v14 = vld [vmem:[#allocation9_spill] sm:$0xff] }
 0x173   : > { %v4863_v3 = vsel %vm539_vm0, %v1763_v51, %v1765_v18  ;;  %1968 = vmatprep.subr.bf16.mxu1 %v4508_v26  ;;  %v6033_v26 = vld [vmem:[#allocation10_spill] sm:$0xff]  ;;  %v1714_v59 = vsel %vm474_vm2, %v1697_v0, %v1699_v24  ;;  %v2752_v0 = vld [vmem:[%s5810_s2] sm:$0xff] }
 0x174   : > { %3295 = vmatprep.subr.msk.bf16.mxu0 %vm550_vm1, %v4863_v3  ;;  %v1790_v28 = vsel %vm550_vm1, %v6033_v26, %v3949_v39  ;;  %v1788_v39 = vsel %vm550_vm1, %v6035_v14, %v3909_v13  ;;  %2758 = vperm.xlu0 %3498, %v2752_v0  }
 0x175   : > { %3290 = vmatmul.mubr.msk.bf16.vlgmr.msra.gmra.mxu0 %vm737_vm4, %v4098_v16 }
 0x176   : > { %2018 = vmatpush1.bf16.msra.mxu0 %v1885_v20  ;;  %v1731_v43 = vpop.permute.xlu1 %1730  ;;  %1969 = vmatpush1.bf16.msra.mxu1 %v4527_v25  ;;  %v1701_v5 = vpop.permute.xlu0 %1700  ;;  %v1810_v25 = vsel %vm550_vm1, %v6006_v17, %v6034_v58  ;;  %v6038_v58 = vld [vmem:[#allocation44_spill] sm:$0xff] }
 0x177   : > { %v1746_v42 = vsel %vm474_vm2, %v1729_v53, %v1731_v43  ;;  %1970 = vmatprep.subr.bf16.mxu1 %v1812_v55  ;;  %1947 = vmatprep.mubr.bf16.mxu0 %v5966_v30  ;;  %v1715_v60 = vsel %vm474_vm2, %v1699_v24, %v1701_v5  ;;  %v1816_v55 = vsel %vm550_vm1, %v6020_v48, %v6036_v31  ;;  %v6041_v31 = vld [vmem:[#allocation14_spill] sm:$0xff] }
 0x178   : > { %v4881_v16 = vsel %vm550_vm1, %v1746_v42, %v1778_v63  ;;  %v1846_v17 = vsel %vm550_vm1, %v1714_v59, %v1746_v42  ;;  %v6037_v42 = vld [vmem:[#allocation12_spill] sm:$0xff] }
 0x179   : > { %v1794_v26 = vsel %vm550_vm1, %v6037_v42, %v4012_v56  ;;  %v6039_v56 = vld [vmem:[#allocation11_spill] sm:$0xff]  ;;  %v6042_v42 = vld [vmem:[#allocation54_spill] sm:$0xff] }
 0x17a   : > { %v1767_v51 = vpop.permute.xlu1 %1766  ;;  %1971 = vmatpush1.bf16.msra.mxu1 %v1810_v25  ;;  %v1733_v11 = vpop.permute.xlu0 %1732  ;;  %v1814_v25 = vsel %vm550_vm1, %v6021_v47, %v6038_v58  ;;  %v6043_v58 = vld [vmem:[#allocation13_spill] sm:$0xff] }
 0x17b   : > { %v4888_v53 = vsel %vm474_vm2, %v1731_v43, %v1733_v11  ;;  %1972 = vmatprep.subr.bf16.mxu1 %v1790_v28  ;;  %v4900_v9 = vsel %vm539_vm0, %v1765_v18, %v1767_v51  ;;  %v4917_v18 = vld [vmem:[%s5809_s1] sm:$0xff]   ;;  %v2753_v28 = vld [vmem:[%s5810_s2 + $0x8] sm:$0xff] }
 0x17c   : > { %v1850_v61 = vsel %vm550_vm1, %v1715_v60, %v4888_v53  ;;  %v1891_v24 = vsel %vm550_vm1, %v4900_v9, 0  ;;  %2763 = vperm.xlu1 %3499, %v2753_v28  }
 0x17d   : > { %3291 = vmatmul.mubr.msk.bf16.gmra.mxu0 %vm737_vm4, %v4152_v15  ;;  %2019 = vmatprep.subr.bf16.mxu0 %v1850_v61  ;;  %v2754_v61 = vld [vmem:[%s5810_s2 + $0x10] sm:$0xff] }
 0x17e   : > { %v1703_v63 = vpop.permute.xlu1 %1702  ;;  %1973 = vmatpush1.bf16.msra.mxu1 %v1788_v39  ;;  %v1769_v20 = vpop.permute.xlu0 %1768  ;;  %2020 = vmatpush1.bf16.msra.mxu0 %v1846_v17  ;;  %v1792_v39 = vsel %vm550_vm1, %v6039_v56, %v3947_v36 }
 0x17f   : > { %v4903_v13 = vsel %vm539_vm0, %v1767_v51, %v1769_v20  ;;  %2021 = vmatprep.subr.bf16.mxu0 %v4621_v1  ;;  %2043 = vmatprep.mubr.bf16.mxu0 %v5966_v30  ;;  %v1716_v59 = vsel %vm474_vm2, %v1701_v5, %v1703_v63 }
 0x180   : > { %3298 = vmatprep.subr.msk.bf16.mxu1 %vm550_vm1, %v4903_v13  ;;  %2768 = vperm.xlu1 %3499, %v2754_v61  }
 0x181   : > { %3293 = vmatmul.mubr.msk.bf16.vlgmr.msra.gmra.mxu1 %vm737_vm4, %v4917_v18 }
 0x182   : > { %v1735_v1 = vpop.permute.xlu1 %1734  ;;  %2071 = vmatpush1.bf16.msra.mxu1 %v1891_v24  ;;  %v1705_v43 = vpop.permute.xlu0 %1704  ;;  %2022 = vmatpush1.bf16.msra.mxu0 %v4642_v7 }
 0x183   : > { %2023 = vmatprep.subr.bf16.mxu0 %v1816_v55  ;;  %2000 = vmatprep.mubr.bf16.mxu1 %v5966_v30  ;;  %v4936_v7 = vsel %vm474_vm2, %v1733_v11, %v1735_v1  ;;  %v1717_v60 = vsel %vm474_vm2, %v1703_v63, %v1705_v43  ;;  %v1798_v55 = vsel %vm550_vm1, %v6041_v31, %v4053_v22 }
 0x184   : > { %v1854_v11 = vsel %vm550_vm1, %v1716_v59, %v4936_v7  ;;  %v6044_v59 = vld [vmem:[#allocation65_spill] sm:$0xff] }
 0x186   : > { %v1771_v48 = vpop.permute.xlu1 %1770  ;;  %v1737_v51 = vpop.permute.xlu0 %1736  ;;  %2024 = vmatpush1.bf16.msra.mxu0 %v1814_v25  ;;  %v1796_v25 = vsel %vm550_vm1, %v6043_v58, %v4010_v46 }
 0x187   : > { %v4940_v14 = vsel %vm474_vm2, %v1735_v1, %v1737_v51  ;;  %2025 = vmatprep.subr.bf16.mxu0 %v1794_v26  ;;  %v4956_v17 = vsel %vm539_vm0, %v1769_v20, %v1771_v48  ;;  %v1818_v26 = vsel %vm550_vm1, %v4284_v33, %v6042_v42 }
 0x188   : > { %v1858_v47 = vsel %vm550_vm1, %v1717_v60, %v4940_v14  ;;  %v1897_v20 = vsel %vm550_vm1, %v4956_v17, 0  ;;  %v5000_v60 = vld [vmem:[%s5809_s1 + $0x8] sm:$0xff]  }
 0x189   : > { %3294 = vmatmul.mubr.msk.bf16.gmra.mxu1 %vm737_vm4, %v4152_v15  ;;  %2072 = vmatprep.subr.bf16.mxu1 %v1858_v47  ;;  %v2755_v15 = vld [vmem:[%s5810_s2 + $0x18] sm:$0xff] }
 0x18a   : > { %v1707_v36 = vpop.permute.xlu1 %1706  ;;  %2073 = vmatpush1.bf16.msra.mxu1 %v1854_v11  ;;  %v1773_v5 = vpop.permute.xlu0 %1772  ;;  %2026 = vmatpush1.bf16.msra.mxu0 %v1792_v39  ;;  %v6045_v11 = vld [vmem:[#allocation60_spill] sm:$0xff] }
 0x18b   : > { %2074 = vmatprep.subr.bf16.mxu1 %v4654_v62  ;;  %v4960_v63 = vsel %vm539_vm0, %v1771_v48, %v1773_v5  ;;  %2096 = vmatprep.mubr.bf16.mxu1 %v5966_v30  ;;  %v6040_v62 = vld [vmem:[#allocation52_spill] sm:$0xff]  ;;  %v1718_v33 = vsel %vm474_vm2, %v1705_v43, %v1707_v36  ;;  %v1903_v56 = vsel %vm550_vm1, %v1773_v5, 0  ;;  %v1822_v61 = vsel %vm550_vm1, %v4395_v12, %v6045_v11 }
 0x18c   : > { %3301 = vmatprep.subr.msk.bf16.mxu0 %vm550_vm1, %v4960_v63  ;;  %2773 = vperm.xlu0 %3498, %v2755_v15   ;;  %v1820_v0 = vsel %vm550_vm1, %v4287_v45, %v6040_v62  ;;  %v6046_v15 = vld [vmem:[#allocation62_spill] sm:$0xff]  ;;  %v6053_v11 = vld [vmem:[#allocation20_spill] sm:$0xff] }
 0x18d   : > { %3296 = vmatmul.mubr.msk.bf16.vlgmr.msra.gmra.mxu0 %vm737_vm4, %v4917_v18 }
 0x18e   : > { %2075 = vmatpush1.bf16.msra.mxu1 %v4676_v8  ;;  %2124 = vmatpush1.bf16.msra.mxu0 %v1897_v20  ;;  %v1739_v1 = vpop.permute.xlu1 %1738 }
 0x18f   : > { %v1709_v24 = vpop.permute.xlu0 %1708  ;;  %2076 = vmatprep.subr.bf16.mxu1 %v1820_v0  ;;  %2053 = vmatprep.mubr.bf16.mxu0 %v5966_v30  ;;  %v4985_v28 = vsel %vm474_vm2, %v1737_v51, %v1739_v1 }
 0x190   : > { %v1719_v8 = vsel %vm474_vm2, %v1707_v36, %v1709_v24  ;;  %v1862_v46 = vsel %vm550_vm1, %v1718_v33, %v4985_v28  ;;  %v6050_v33 = vld [vmem:[#allocation16_spill] sm:$0xff] }
 0x192   : > { %2077 = vmatpush1.bf16.msra.mxu1 %v1818_v26  ;;  %v2264_v43 = vpop.permute.xlu1 %2263  ;;  %v6047_v26 = vld [vmem:[#allocation66_spill] sm:$0xff] }
 0x193   : > { %v1741_v45 = vpop.permute.xlu0 %1740  ;;  %2078 = vmatprep.subr.bf16.mxu1 %v1798_v55 }
 0x194   : > { %v4991_v48 = vsel %vm474_vm2, %v1739_v1, %v1741_v45  ;;  %v4994_v22 = vsel %vm550_vm1, %v1741_v45, %v1773_v5  ;;  %v1870_v39 = vsel %vm550_vm1, %v1709_v24, %v1741_v45 }
 0x195   : > { %3297 = vmatmul.mubr.msk.bf16.gmra.mxu0 %vm737_vm4, %v5000_v60  ;;  %v1866_v51 = vsel %vm550_vm1, %v1719_v8, %v4991_v48  ;;  %v5021_v47 = vpop.f32.mrf.mxu0  ;;  %v6048_v8 = vld [vmem:[#allocation15_spill] sm:$0xff] }
 0x196   : > { %2125 = vmatprep.subr.bf16.mxu0 %v1866_v51  ;;  %2079 = vmatpush1.bf16.msra.mxu1 %v1796_v25  ;;  %v2319_v45 = vsel %vm550_vm1, %v6048_v8, %v6047_v26 }
 0x197   : > { %2126 = vmatpush1.bf16.msra.mxu0 %v1862_v46  ;;  %3466 = vmatprep.subr.msk.bf16.mxu1 %vm550_vm1, %v1773_v5  ;;  %v2266_v36 = vpop.permute.xlu0 %2265  ;;  %v2268_v5 = vpop.permute.xlu1 %2267  ;;  %v2345_v46 = vsel %vm550_vm1, %v4852_v21, %v4830_v37  ;;  %v6055_v37 = vld [vmem:[#allocation69_spill] sm:$0xff]  ;;  %v6056_v21 = vld [vmem:[#allocation22_spill] sm:$0xff] }
 0x198   : > { %2127 = vmatprep.subr.bf16.mxu0 %v4738_v34  ;;  %2149 = vmatprep.mubr.bf16.mxu0 %v5966_v30  ;;  %v1802_v34 = vsel %vm550_vm1, %v3879_v6, %v4120_v27  ;;  %v2285_v6 = vsel %vm539_vm0, %v2264_v43, %v2266_v36  ;;  %v2286_v27 = vsel %vm539_vm0, %v2266_v36, %v2268_v5  ;;  %v5034_v12 = vpop.f32.mrf.mxu0  ;;  %v6051_v43 = vld [vmem:[#allocation18_spill] sm:$0xff] }
 0x199   : > { %3299 = vmatmul.mubr.msk.bf16.vlgmr.msra.gmra.mxu1 %vm737_vm4, %v4917_v18  ;;  %v2362_v20 = vsel %vm550_vm1, %v2285_v6, 0 }
 0x19a   : > { %3437 = vmatpush3.bf16.msra.mxu1 %v1903_v56  ;;  %2106 = vmatprep.mubr.bf16.mxu1 %v5966_v30  ;;  %v5045_v24 = vpop.f32.mrf.mxu0  ;;  %v6052_v56 = vld [vmem:[#allocation70_spill] sm:$0xff] }
 0x19b   : > { %2128 = vmatpush1.bf16.msra.mxu0 %v4759_v38  ;;  %3438 = vmatprep.subr.bf16.mxu1 %v1870_v39  ;;  %v1800_v38 = vsel %vm550_vm1, %v3854_v2, %v4051_v29  ;;  %v3549_v2 = vld [vmem:[%s3697_s30 + $0x80] ss:$0 sps:$4 sm:$0xff]   ;;  %v3550_v29 = vld [vmem:[%s3697_s30 + $0xac] ss:$0 sps:$4 sm:$0xff]   ;;  %v2272_v0 = vpop.permute.xlu1 %2271  ;;  %s5536_s30 = scalar_lea.vmem [#allocation3], %s3694_s29  ;;  %s3379_s29 = smul.u32 (%p3629_p5), 44, %s3177_s15 }
 0x19c   : > { %2129 = vmatprep.subr.bf16.mxu0 %v6044_v59  ;;  %v1804_v62 = vsel %vm550_vm1, %v3549_v2, %v3550_v29  ;;  %v5055_v55 = vpop.f32.mrf.mxu0  ;;  %v6059_v2 = vld [vmem:[#allocation21_spill] sm:$0xff] }
 0x19d   : > { %v5050_v1 = vpop.f32.mrf.mxu1  ;;  %s5754_s4 = scalar_lea.vmem (%p3629_p5), %s5811_s3, %s3379_s29 }
 0x19e   : > { %3439 = vmatpush3.bf16.msra.mxu1 %v1870_v39  ;;  %v5068_v25 = vpop.f32.mrf.mxu0  ;;  %v2297_v39 = vsel %vm550_vm1, %v6052_v56, %v6051_v43 }
 0x19f   : > { %2130 = vmatpush1.bf16.msra.mxu0 %v1822_v61  ;;  %3440 = vmatprep.subr.bf16.mxu1 %v4770_v52  ;;  %v5063_v58 = vpop.f32.mrf.mxu1  ;;  %v6054_v61 = vld [vmem:[#allocation71_spill] sm:$0xff] }
 0x1a0   : > { %2131 = vmatprep.subr.bf16.mxu0 %v1802_v34  ;;  %v5085_v34 = vpop.f32.mrf.mxu0  ;;  %v2295_v36 = vsel %vm550_vm1, %v6054_v61, %v6053_v11  ;;  %v2349_v11 = vsel %vm550_vm1, %v4888_v53, %v4863_v3 }
 0x1a1   : > { %3300 = vmatmul.mubr.msk.bf16.gmra.mxu1 %vm737_vm4, %v5000_v60  ;;  %v5081_v59 = vpop.f32.mrf.mxu1 }
 0x1a2   : > { %3441 = vmatpush3.bf16.msra.mxu1 %v4770_v52  ;;  %3446 = vmatprep.mubr.msk.bf16.mxu1 %vm737_vm4, %v4917_v18  ;;  %v2270_v52 = vpop.permute.xlu0 %2269 }
 0x1a3   : > { %2132 = vmatpush1.bf16.msra.mxu0 %v1800_v38  ;;  %3442 = vmatprep.subr.bf16.mxu1 %v6046_v15  ;;  %v2288_v31 = vsel %vm539_vm0, %v2270_v52, %v2272_v0  ;;  %v2287_v42 = vsel %vm539_vm0, %v2268_v5, %v2270_v52  ;;  %v2323_v5 = vsel %vm550_vm1, %v6056_v21, %v6055_v37  ;;  %v2276_v38 = vpop.permute.xlu1 %2275  ;;  %v5094_v6 = vpop.f32.mrf.mxu1 }
 0x1a4   : > { %3306 = vmatprep.subr.msk.bf16.mxu0 %vm550_vm1, %v2286_v27  ;;  %v5101_v52 = vpop.f32.mrf.mxu0 }
 0x1a6   : > { %3302 = vmatmul.mubr.msk.bf16.vlgmr.msra.gmra.mxu0 %vm737_vm4, %v4917_v18  ;;  %3443 = vmatpush3.bf16.msra.mxu1 %v6046_v15  ;;  %v2274_v27 = vpop.permute.xlu0 %2273  ;;  %v6057_v15 = vld [vmem:[#allocation25_spill] sm:$0xff] }
 0x1a7   : > { %2401 = vmatpush1.bf16.msra.mxu0 %v2362_v20  ;;  %3444 = vmatprep.subr.bf16.mxu1 %v1804_v62  ;;  %v6058_v20 = vld [vmem:[#allocation68_spill] sm:$0xff]  ;;  %v2289_v8 = vsel %vm539_vm0, %v2272_v0, %v2274_v27 }
 0x1a8   : > { %2402 = vmatprep.subr.bf16.mxu0 %v4814_v41  ;;  %2159 = vmatprep.mubr.bf16.mxu0 %v5966_v30  ;;  %v2368_v41 = vsel %vm550_vm1, %v2287_v42, 0  ;;  %v2321_v29 = vsel %vm550_vm1, %v6059_v2, %v6058_v20  ;;  %v6061_v42 = vld [vmem:[#allocation23_spill] sm:$0xff]  ;;  %v2374_v56 = vsel %vm550_vm1, %v2289_v8, 0 }
 0x1aa   : > { %3445 = vmatpush3.bf16.msra.mxu1 %v1804_v62  ;;  %v2290_v62 = vsel %vm539_vm0, %v2274_v27, %v2276_v38  ;;  %v2278_v0 = vpop.permute.xlu0 %2277  ;;  %v6068_v27 = vld [vmem:[#allocation4_spill] sm:$0xff] }
 0x1ab   : > { %2403 = vmatpush1.bf16.msra.mxu0 %v4823_v19  ;;  %3309 = vmatprep.subr.msk.bf16.mxu1 %vm550_vm1, %v2288_v31  ;;  %v6049_v19 = vld [vmem:[#allocation67_spill] sm:$0xff]  ;;  %v6060_v31 = vld [vmem:[#allocation30_spill] sm:$0xff]  ;;  %v2291_v21 = vsel %vm539_vm0, %v2276_v38, %v2278_v0 }
 0x1ac   : > { %2404 = vmatprep.subr.bf16.mxu0 %v2319_v45  ;;  %v2317_v51 = vsel %vm550_vm1, %v6050_v33, %v6049_v19  ;;  %v2301_v26 = vsel %vm550_vm1, %v6061_v42, %v6060_v31  ;;  %v6062_v45 = vld [vmem:[#allocation26_spill] sm:$0xff]  ;;  %v6063_v19 = vld [vmem:[#allocation29_spill] sm:$0xff]  ;;  %v6064_v33 = vld [vmem:[#allocation24_spill] sm:$0xff]  ;;  %v2380_v53 = vsel %vm550_vm1, %v2291_v21, 0 }
 0x1ad   : > { %3447 = vmatmul.mubr.msk.bf16.vlgmr.msra.gmra.mxu1 %vm737_vm4, %v5000_v60  ;;  %v6072_v38 = vld [vmem:[#allocation39_spill] sm:$0xff]  ;;  %v6081_v21 = vld [vmem:[#allocation45_spill] sm:$0xff] }
 0x1ae   : > { %3303 = vmatmul.mubr.msk.bf16.gmra.mxu0 %vm737_vm4, %v5000_v60  ;;  %2454 = vmatpush1.bf16.msra.mxu1 %v2368_v41  ;;  %v2280_v41 = vpop.permute.xlu1 %2279  ;;  %v6073_v42 = vld [vmem:[#allocation43_spill] sm:$0xff] }
 0x1af   : > { %2405 = vmatpush1.bf16.msra.mxu0 %v2317_v51  ;;  %2455 = vmatprep.subr.bf16.mxu1 %v2345_v46  ;;  %v2299_v51 = vsel %vm550_vm1, %v6064_v33, %v6063_v19  ;;  %v5114_v46 = vpop.f32.mrf.mxu0  ;;  %v2292_v61 = vsel %vm539_vm0, %v2278_v0, %v2280_v41 }
 0x1b0   : > { %2406 = vmatprep.subr.bf16.mxu0 %v2297_v39  ;;  %2426 = vmatprep.mubr.bf16.mxu0 %v5966_v30  ;;  %6065 = vst [vmem:[#allocation5_spill] sm:$0xff] %v5114_v46  ;;  %v6066_v39 = vld [vmem:[#allocation35_spill] sm:$0xff] }
 0x1b1   : > { %2479 = vmatprep.mubr.bf16.mxu1 %v5966_v30 }
 0x1b2   : > { %2456 = vmatpush1.bf16.msra.mxu1 %v4845_v32  ;;  %v5103_v32 = vpop.f32.mrf.mxu1 }
 0x1b3   : > { %2407 = vmatpush1.bf16.msra.mxu0 %v2295_v36  ;;  %2457 = vmatprep.subr.bf16.mxu1 %v2323_v5  ;;  %v6067_v5 = vld [vmem:[#allocation36_spill] sm:$0xff] }
 0x1b4   : > { %2408 = vmatprep.subr.bf16.mxu0 %v6057_v15  ;;  %v5116_v43 = vpop.f32.mrf.mxu1  ;;  %v6069_v15 = vld [vmem:[#allocation40_spill] sm:$0xff] }
 0x1b5   : > { %v2327_v20 = vsel %vm550_vm1, %v6069_v15, %v6068_v27 }
 0x1b6   : > { %2458 = vmatpush1.bf16.msra.mxu1 %v2321_v29  ;;  %v5129_v37 = vpop.f32.mrf.mxu1 }
 0x1b7   : > { %2409 = vmatpush1.bf16.msra.mxu0 %v6062_v45  ;;  %2459 = vmatprep.subr.bf16.mxu1 %v2301_v26  ;;  %v6074_v26 = vld [vmem:[#allocation6_spill] sm:$0xff]  ;;  %v2351_v45 = vsel %vm550_vm1, %v4936_v7, %v4900_v9  ;;  %v6079_v9 = vld [vmem:[#allocation49_spill] sm:$0xff] }
 0x1b8   : > { %3312 = vmatprep.subr.msk.bf16.mxu0 %vm550_vm1, %v2290_v62  ;;  %v5143_v2 = vpop.f32.mrf.mxu1  ;;  %v2353_v62 = vsel %vm550_vm1, %v4940_v14, %v4903_v13  ;;  %v2305_v8 = vsel %vm550_vm1, %v6074_v26, %v6073_v42  ;;  %v6075_v13 = vld [vmem:[#allocation41_spill] sm:$0xff]  ;;  %v6076_v14 = vld [vmem:[#allocation32_spill] sm:$0xff]  ;;  %v6080_v7 = vld [vmem:[#allocation34_spill] sm:$0xff] }
 0x1b9   : > { %6070 = vst [vmem:[#allocation48_spill] sm:$0xff] %v5143_v2  ;;  %v2303_v33 = vsel %vm550_vm1, %v6076_v14, %v6075_v13  ;;  %v6088_v13 = vld [vmem:[#allocation57_spill] sm:$0xff]  ;;  %v2355_v14 = vsel %vm550_vm1, %v4985_v28, %v4956_v17  ;;  %v2333_v17 = vsel %vm550_vm1, %v4334_v10, %v4722_v35  ;;  %v2311_v10 = vsel %vm550_vm1, %v4764_v44, %v4368_v50  ;;  %v6092_v35 = vld [vmem:[#allocation38_spill] sm:$0xff]  ;;  %v6098_v50 = vld [vmem:[#allocation59_spill] sm:$0xff] }
 0x1ba   : > { %3307 = vmatmul.mubr.msk.bf16.vlgmr.msra.gmra.mxu0 %vm737_vm4, %v4917_v18  ;;  %2460 = vmatpush1.bf16.msra.mxu1 %v2299_v51  ;;  %v6077_v51 = vld [vmem:[#allocation33_spill] sm:$0xff] }
 0x1bb   : > { %2507 = vmatpush1.bf16.msra.mxu0 %v2374_v56  ;;  %2461 = vmatprep.subr.bf16.mxu1 %v6066_v39  ;;  %v6078_v56 = vld [vmem:[#allocation46_spill] sm:$0xff]  ;;  %v2284_v39 = vpop.permute.xlu1 %2283  ;;  %v6099_v44 = vld [vmem:[#allocation37_spill] sm:$0xff] }
 0x1bc   : > { %2508 = vmatprep.subr.bf16.mxu0 %v2349_v11  ;;  %2436 = vmatprep.mubr.bf16.mxu0 %v5966_v30  ;;  %v2331_v0 = vsel %vm550_vm1, %v6078_v56, %v6077_v51  ;;  %v2335_v51 = vsel %vm550_vm1, %v4341_v54, %v4726_v40  ;;  %v2313_v54 = vsel %vm550_vm1, %v4745_v4, %v4378_v57  ;;  %v6093_v56 = vld [vmem:[#allocation58_spill] sm:$0xff]  ;;  %v6095_v4 = vld [vmem:[#allocation63_spill] sm:$0xff] }
 0x1bd   : > { %v5127_v36 = vpop.f32.mrf.mxu0 }
 0x1be   : > { %2462 = vmatpush1.bf16.msra.mxu1 %v6067_v5  ;;  %v2329_v5 = vsel %vm550_vm1, %v6081_v21, %v6080_v7  ;;  %v6101_v7 = vld [vmem:[#allocation64_spill] sm:$0xff] }
 0x1bf   : > { %2509 = vmatpush1.bf16.msra.mxu0 %v4881_v16  ;;  %3315 = vmatprep.subr.msk.bf16.mxu1 %vm550_vm1, %v2292_v61  ;;  %v5138_v3 = vpop.f32.mrf.mxu0  ;;  %v6071_v16 = vld [vmem:[#allocation31_spill] sm:$0xff]  ;;  %v2282_v61 = vpop.permute.xlu0 %2281 }
 0x1c0   : > { %2510 = vmatprep.subr.bf16.mxu0 %v2327_v20  ;;  %v2325_v29 = vsel %vm550_vm1, %v6072_v38, %v6071_v16  ;;  %v2294_v27 = vsel %vm539_vm0, %v2282_v61, %v2284_v39  ;;  %v6082_v20 = vld [vmem:[#allocation53_spill] sm:$0xff]  ;;  %v2293_v38 = vsel %vm539_vm0, %v2280_v41, %v2282_v61  ;;  %v6086_v41 = vld [vmem:[#allocation56_spill] sm:$0xff] }
 0x1c1   : > { %3310 = vmatmul.mubr.msk.bf16.vlgmr.msra.gmra.mxu1 %vm737_vm4, %v4917_v18  ;;  %v5153_v31 = vpop.f32.mrf.mxu0 }
 0x1c2   : > { %3308 = vmatmul.mubr.msk.bf16.gmra.mxu0 %vm737_vm4, %v5000_v60  ;;  %2560 = vmatpush1.bf16.msra.mxu1 %v2380_v53  ;;  %v2309_v53 = vsel %vm550_vm1, %v4695_v49, %v6082_v20  ;;  %v6105_v20 = vld [vmem:[#allocation61_spill] sm:$0xff] }
 0x1c3   : > { %2511 = vmatpush1.bf16.msra.mxu0 %v2325_v29  ;;  %2561 = vmatprep.subr.bf16.mxu1 %v2353_v62  ;;  %v5171_v11 = vpop.f32.mrf.mxu0  ;;  %v6083_v29 = vld [vmem:[#allocation50_spill] sm:$0xff]  ;;  %v6084_v62 = vld [vmem:[#allocation51_spill] sm:$0xff] }
 0x1c4   : > { %2512 = vmatprep.subr.bf16.mxu0 %v2305_v8  ;;  %2489 = vmatprep.mubr.bf16.mxu1 %v5966_v30  ;;  %v2307_v42 = vsel %vm550_vm1, %v4692_v23, %v6084_v62  ;;  %v2386_v8 = vsel %vm550_vm1, %v2293_v38, 0 }
 0x1c5   : > { %2532 = vmatprep.mubr.bf16.mxu0 %v5966_v30  ;;  %v5163_v19 = vpop.f32.mrf.mxu1  ;;  %v5186_v16 = vpop.f32.mrf.mxu0 }
 0x1c6   : > { %2562 = vmatpush1.bf16.msra.mxu1 %v2351_v45  ;;  %v2357_v45 = vsel %vm550_vm1, %v4991_v48, %v4960_v63  ;;  %v2392_v63 = vsel %vm550_vm1, %v2284_v39, 0 }
 0x1c7   : > { %2513 = vmatpush1.bf16.msra.mxu0 %v2303_v33  ;;  %2563 = vmatprep.subr.bf16.mxu1 %v2331_v0  ;;  %v5180_v15 = vpop.f32.mrf.mxu1  ;;  %v5199_v49 = vpop.f32.mrf.mxu0  ;;  %v2337_v0 = vsel %vm550_vm1, %v6093_v56, %v6092_v35 }
 0x1c8   : > { %2514 = vmatprep.subr.bf16.mxu0 %v6079_v9 }
 0x1c9   : > { %3311 = vmatmul.mubr.msk.bf16.gmra.mxu1 %vm737_vm4, %v5000_v60  ;;  %v5194_v26 = vpop.f32.mrf.mxu1  ;;  %v5212_v33 = vpop.f32.mrf.mxu0 }
 0x1ca   : > { %2564 = vmatpush1.bf16.msra.mxu1 %v2329_v5  ;;  %2585 = vmatprep.mubr.bf16.mxu1 %v5966_v30  ;;  %6085 = vst [vmem:[#allocation47_spill] sm:$0xff] %v5194_v26 }
 0x1cb   : > { %2515 = vmatpush1.bf16.msra.mxu0 %v6083_v29  ;;  %2565 = vmatprep.subr.bf16.mxu1 %v2309_v53  ;;  %v5206_v23 = vpop.f32.mrf.mxu1  ;;  %v5228_v28 = vpop.f32.mrf.mxu0 }
 0x1cc   : > { %3318 = vmatprep.subr.msk.bf16.mxu0 %vm550_vm1, %v2294_v27  ;;  %6087 = vst [vmem:[#allocation55_spill] sm:$0xff] %v5206_v23  ;;  %6090 = vst [vmem:[#allocation7_spill] sm:$0xff] %v5228_v28 }
 0x1ce   : > { %3313 = vmatmul.mubr.msk.bf16.vlgmr.msra.gmra.mxu0 %vm737_vm4, %v4917_v18  ;;  %2566 = vmatpush1.bf16.msra.mxu1 %v2307_v42 }
 0x1cf   : > { %2613 = vmatpush1.bf16.msra.mxu0 %v2386_v8  ;;  %2567 = vmatprep.subr.bf16.mxu1 %v6086_v41  ;;  %v5221_v48 = vpop.f32.mrf.mxu1 }
 0x1d0   : > { %2614 = vmatprep.subr.bf16.mxu0 %v2357_v45  ;;  %2542 = vmatprep.mubr.bf16.mxu0 %v5966_v30  ;;  %6089 = vst [vmem:[#allocation17_spill] sm:$0xff] %v5221_v48 }
 0x1d1   : > { %v5236_v40 = vpop.f32.mrf.mxu1 }
 0x1d2   : > { %2568 = vmatpush1.bf16.msra.mxu1 %v6088_v13  ;;  %6091 = vst [vmem:[#allocation19_spill] sm:$0xff] %v5236_v40 }
 0x1d3   : > { %2615 = vmatpush1.bf16.msra.mxu0 %v2355_v14  ;;  %3467 = vmatprep.subr.msk.bf16.mxu1 %vm550_vm1, %v2284_v39  ;;  %v5252_v61 = vpop.f32.mrf.mxu1 }
 0x1d4   : > { %2616 = vmatprep.subr.bf16.mxu0 %v2335_v51  ;;  %6097 = vst [vmem:[#allocation10_spill] sm:$0xff] %v5252_v61 }
 0x1d5   : > { %3316 = vmatmul.mubr.msk.bf16.vlgmr.msra.gmra.mxu1 %vm737_vm4, %v4917_v18  ;;  %v5264_v5 = vpop.f32.mrf.mxu1 }
 0x1d6   : > { %3314 = vmatmul.mubr.msk.bf16.gmra.mxu0 %vm737_vm4, %v5000_v60  ;;  %3451 = vmatpush3.bf16.msra.mxu1 %v2392_v63  ;;  %6103 = vst [vmem:[#allocation42_spill] sm:$0xff] %v5264_v5 }
 0x1d7   : > { %2617 = vmatpush1.bf16.msra.mxu0 %v2333_v17  ;;  %3452 = vmatprep.subr.bf16.mxu1 %v4994_v22 }
 0x1d8   : > { %2618 = vmatprep.subr.bf16.mxu0 %v2313_v54  ;;  %2595 = vmatprep.mubr.bf16.mxu1 %v5966_v30 }
 0x1d9   : > { %2638 = vmatprep.mubr.bf16.mxu0 %v5966_v30  ;;  %v5274_v38 = vpop.f32.mrf.mxu1 }
 0x1da   : > { %3453 = vmatpush3.bf16.msra.mxu1 %v4994_v22  ;;  %v5245_v57 = vpop.f32.mrf.mxu0  ;;  %v2315_v22 = vsel %vm550_vm1, %v6099_v44, %v6098_v50  ;;  %6107 = vst [vmem:[#allocation11_spill] sm:$0xff] %v5274_v38 }
 0x1db   : > { %6094 = vst [vmem:[#allocation8_spill] sm:$0xff] %v5245_v57  ;;  %2619 = vmatpush1.bf16.msra.mxu0 %v2311_v10  ;;  %3454 = vmatprep.subr.bf16.mxu1 %v2337_v0  ;;  %v5281_v62 = vpop.f32.mrf.mxu1 }
 0x1dc   : > { %2620 = vmatprep.subr.bf16.mxu0 %v6095_v4  ;;  %v5248_v39 = vpop.f32.mrf.mxu0  ;;  %6109 = vst [vmem:[#allocation14_spill] sm:$0xff] %v5281_v62 }
 0x1dd   : > { %6096 = vst [vmem:[#allocation28_spill] sm:$0xff] %v5248_v39  ;;  %3317 = vmatmul.mubr.msk.bf16.gmra.mxu1 %vm737_vm4, %v5000_v60  ;;  %v5287_v42 = vpop.f32.mrf.mxu1 }
 0x1de   : > { %3455 = vmatpush3.bf16.msra.mxu1 %v2337_v0  ;;  %v5257_v9 = vpop.f32.mrf.mxu0  ;;  %3460 = vmatprep.mubr.msk.bf16.mxu1 %vm737_vm4, %v4917_v18  ;;  %6111 = vst [vmem:[#allocation13_spill] sm:$0xff] %v5287_v42 }
 0x1df   : > { %6100 = vst [vmem:[#allocation27_spill] sm:$0xff] %v5257_v9  ;;  %2621 = vmatpush1.bf16.msra.mxu0 %v6101_v7  ;;  %3456 = vmatprep.subr.bf16.mxu1 %v2315_v22  ;;  %v5293_v41 = vpop.f32.mrf.mxu1 }
 0x1e0   : > { %v5262_v21 = vpop.f32.mrf.mxu0  ;;  %6112 = vst [vmem:[#allocation65_spill] sm:$0xff] %v5293_v41 }
 0x1e1   : > { %6102 = vst [vmem:[#allocation9_spill] sm:$0xff] %v5262_v21 }
 0x1e2   : > { %3319 = vmatmul.mubr.msk.bf16.vlgmr.msra.gmra.mxu0 %vm737_vm4, %v4917_v18  ;;  %3457 = vmatpush3.bf16.msra.mxu1 %v2315_v22  ;;  %v5268_v27 = vpop.f32.mrf.mxu0 }
 0x1e3   : > { %6104 = vst [vmem:[#allocation12_spill] sm:$0xff] %v5268_v27  ;;  %3458 = vmatprep.subr.bf16.mxu1 %v6105_v20  ;;  %2648 = vmatprep.mubr.bf16.mxu0 %v5966_v30 }
 0x1e4   : > { %v5272_v53 = vpop.f32.mrf.mxu0 }
 0x1e5   : > { %6106 = vst [vmem:[#allocation44_spill] sm:$0xff] %v5272_v53 }
 0x1e6   : > { %3459 = vmatpush3.bf16.msra.mxu1 %v6105_v20  ;;  %v5277_v29 = vpop.f32.mrf.mxu0 }
 0x1e7   : > { %6108 = vst [vmem:[#allocation52_spill] sm:$0xff] %v5277_v29 }
 0x1e8   : > { %v5285_v18 = vpop.f32.mrf.mxu0 }
 0x1e9   : > { %3461 = vmatmul.mubr.msk.bf16.vlgmr.msra.gmra.mxu1 %vm737_vm4, %v5000_v60  ;;  %6110 = vst [vmem:[#allocation54_spill] sm:$0xff] %v5285_v18 }
 0x1ea   : > { %3320 = vmatmul.mubr.msk.bf16.gmra.mxu0 %vm737_vm4, %v5000_v60 }
 0x1ee   : > { %v5289_v30 = vpop.f32.mrf.mxu0 }
 0x1f0   : > { %v5291_v8 = vpop.f32.mrf.mxu0 }
 0x1f2   : > { %v5295_v45 = vpop.f32.mrf.mxu0 }
 0x1f4   : > { %v5297_v13 = vpop.f32.mrf.mxu0 }
 0x1f5   : > { %v5299_v14 = vpop.f32.mrf.mxu1 }
 0x1f6   : > { %v5301_v51 = vpop.f32.mrf.mxu0 }
 0x1f7   : > { %v5303_v63 = vpop.f32.mrf.mxu1 }
 0x1f8   : > { %v5305_v60 = vpop.f32.mrf.mxu0 }
 0x1f9   : > { %v5307_v17 = vpop.f32.mrf.mxu1 }
 0x1fa   : > { %v5309_v54 = vpop.f32.mrf.mxu0 }
 0x1fb   : > { %v5311_v10 = vpop.f32.mrf.mxu1 }
 0x1fc   : > { %v5313_v35 = vpop.f32.mrf.mxu0 }
 0x1fd   : > { %6113 = vst [vmem:[#allocation60_spill] sm:$0xff] %v5313_v35  ;;  %v5317_v0 = vpop.f32.mrf.mxu1 }
 0x1ff   : > { %v5319_v4 = vpop.f32.mrf.mxu1 }
 0x201   : > { %v5321_v50 = vpop.f32.mrf.mxu1 }
 0x203   : > { %v5323_v44 = vpop.f32.mrf.mxu1 }
 0x204   : > { %6114 = vst [vmem:[#allocation62_spill] sm:$0xff] %v5323_v44 }
 0x205   : > { %v5327_v7 = vpop.f32.mrf.mxu0 }
 0x207   : > { %v5329_v20 = vpop.f32.mrf.mxu0 }
 0x209   : > { %v5331_v29 = vpop.f32.mrf.mxu0 }
 0x20b   : > { %v5333_v53 = vpop.f32.mrf.mxu0 }
 0x20d   : > { %v5335_v56 = vpop.f32.mrf.mxu0  ;;  %v5337_v42 = vpop.f32.mrf.mxu1 }
 0x20f   : > { %v5339_v27 = vpop.f32.mrf.mxu0  ;;  %v5341_v62 = vpop.f32.mrf.mxu1 }
 0x211   : > { %v5343_v21 = vpop.f32.mrf.mxu0  ;;  %v5345_v38 = vpop.f32.mrf.mxu1 }
 0x212   : > { %6115 = vst [vmem:[#allocation66_spill] sm:$0xff] %v5345_v38 }
 0x213   : > { %v5347_v22 = vpop.f32.mrf.mxu0  ;;  %v5349_v9 = vpop.f32.mrf.mxu1 }
 0x214   : > { %6116 = vst [vmem:[#allocation15_spill] sm:$0xff] %v5347_v22  ;;  %6117 = vst [vmem:[#allocation67_spill] sm:$0xff] %v5349_v9 }
 0x215   : > { %v5353_v57 = vpop.f32.mrf.mxu1 }
 0x216   : > { %6118 = vst [vmem:[#allocation16_spill] sm:$0xff] %v5353_v57 }
 0x217   : > { %v5355_v5 = vpop.f32.mrf.mxu1 }
 0x218   : > { %6119 = vst [vmem:[#allocation18_spill] sm:$0xff] %v5355_v5 }
 0x219   : > { %v5357_v61 = vpop.f32.mrf.mxu1 }
 0x21a   : > { %6120 = vst [vmem:[#allocation70_spill] sm:$0xff] %v5357_v61 }
 0x21b   : > { %v5361_v48 = vpop.f32.mrf.mxu1 }
 0x21c   : > { %6122 = vst [vmem:[#allocation71_spill] sm:$0xff] %v5361_v48 }
 0x21d   : > { %v5359_v40 = vpop.f32.mrf.mxu0 }
 0x21e   : > { %6121 = vst [vmem:[#allocation20_spill] sm:$0xff] %v5359_v40 }
 0x21f   : > { %v5363_v44 = vpop.f32.mrf.mxu0 }
 0x220   : > { %6123 = vst [vmem:[#allocation69_spill] sm:$0xff] %v5363_v44 }
 0x221   : > { %v5365_v2 = vpop.f32.mrf.mxu0  ;;  %v5367_v23 = vpop.f32.mrf.mxu1 }
 0x222   : > { %6124 = vst [vmem:[#allocation22_spill] sm:$0xff] %v5365_v2  ;;  %6125 = vst [vmem:[#allocation25_spill] sm:$0xff] %v5367_v23 }
 0x223   : > { %v5369_v9 = vpop.f32.mrf.mxu0  ;;  %v5371_v26 = vpop.f32.mrf.mxu1 }
 0x224   : > { %6126 = vst [vmem:[#allocation68_spill] sm:$0xff] %v5369_v9  ;;  %6127 = vst [vmem:[#allocation21_spill] sm:$0xff] %v5371_v26 }
 0x225   : > { %v5373_v39 = vpop.f32.mrf.mxu0  ;;  %v5375_v22 = vpop.f32.mrf.mxu1 }
 0x226   : > { %6128 = vst [vmem:[#allocation30_spill] sm:$0xff] %v5373_v39  ;;  %6129 = vst [vmem:[#allocation23_spill] sm:$0xff] %v5375_v22 }
 0x227   : > { %v5377_v28 = vpop.f32.mrf.mxu0  ;;  %v5379_v61 = vpop.f32.mrf.mxu1 }
 0x228   : > { %6130 = vst [vmem:[#allocation26_spill] sm:$0xff] %v5377_v28  ;;  %6131 = vst [vmem:[#allocation29_spill] sm:$0xff] %v5379_v61 }
 0x229   : > { %v5383_v44 = vpop.f32.mrf.mxu0 }
 0x22a   : > { %6132 = vst [vmem:[#allocation24_spill] sm:$0xff] %v5383_v44 }
 0x22b   : > { %v5385_v2 = vpop.f32.mrf.mxu0 }
 0x22c   : > { %6133 = vst [vmem:[#allocation35_spill] sm:$0xff] %v5385_v2 }
 0x235   : > { %v1939_v23 = vpop.f32.mrf.mxu0 }
 0x237   : > { %v1941_v26 = vpop.f32.mrf.mxu0 }
 0x239   : > { %v1943_v48 = vpop.f32.mrf.mxu0 }
 0x23b   : > { %v5389_v39 = vpop.f32.mrf.mxu0 }
 0x23d   : > { %v5391_v22 = vpop.f32.mrf.mxu0 }
 0x23f   : > { %v5395_v5 = vpop.f32.mrf.mxu0 }
 0x240   : > { %6134 = vst [vmem:[#allocation36_spill] sm:$0xff] %v5395_v5 }
 0x241   : > { %v5393_v28 = vpop.f32.mrf.mxu1  ;;  %v5401_v61 = vpop.f32.mrf.mxu0 }
 0x242   : > { %6136 = vst [vmem:[#allocation40_spill] sm:$0xff] %v5401_v61 }
 0x243   : > { %v5397_v57 = vpop.f32.mrf.mxu1  ;;  %v5405_v9 = vpop.f32.mrf.mxu0 }
 0x244   : > { %6138 = vst [vmem:[#allocation39_spill] sm:$0xff] %v5405_v9 }
 0x245   : > { %v5399_v40 = vpop.f32.mrf.mxu1 }
 0x246   : > { %6135 = vst [vmem:[#allocation4_spill] sm:$0xff] %v5399_v40 }
 0x247   : > { %v5403_v41 = vpop.f32.mrf.mxu1 }
 0x248   : > { %6137 = vst [vmem:[#allocation31_spill] sm:$0xff] %v5403_v41 }
 0x249   : > { %v5407_v2 = vpop.f32.mrf.mxu1 }
 0x24a   : > { %6139 = vst [vmem:[#allocation43_spill] sm:$0xff] %v5407_v2 }
 0x24b   : > { %v5411_v44 = vpop.f32.mrf.mxu1 }
 0x24c   : > { %6141 = vst [vmem:[#allocation41_spill] sm:$0xff] %v5411_v44 }
 0x24d   : > { %v5409_v18 = vpop.f32.mrf.mxu0  ;;  %v5417_v46 = vpop.f32.mrf.mxu1 }
 0x24e   : > { %6140 = vst [vmem:[#allocation6_spill] sm:$0xff] %v5409_v18  ;;  %6144 = vst [vmem:[#allocation46_spill] sm:$0xff] %v5417_v46 }
 0x24f   : > { %v5413_v38 = vpop.f32.mrf.mxu0  ;;  %v5421_v40 = vpop.f32.mrf.mxu1 }
 0x250   : > { %6142 = vst [vmem:[#allocation32_spill] sm:$0xff] %v5413_v38  ;;  %6146 = vst [vmem:[#allocation34_spill] sm:$0xff] %v5421_v40 }
 0x251   : > { %v5415_v35 = vpop.f32.mrf.mxu0 }
 0x252   : > { %6143 = vst [vmem:[#allocation33_spill] sm:$0xff] %v5415_v35 }
 0x253   : > { %v5419_v5 = vpop.f32.mrf.mxu0 }
 0x254   : > { %6145 = vst [vmem:[#allocation49_spill] sm:$0xff] %v5419_v5 }
 0x255   : > { %v5423_v61 = vpop.f32.mrf.mxu0 }
 0x256   : > { %6147 = vst [vmem:[#allocation45_spill] sm:$0xff] %v5423_v61 }
 0x257   : > { %v5429_v2 = vpop.f32.mrf.mxu0 }
 0x258   : > { %6150 = vst [vmem:[#allocation51_spill] sm:$0xff] %v5429_v2 }
 0x259   : > { %v5425_v41 = vpop.f32.mrf.mxu1  ;;  %v5433_v44 = vpop.f32.mrf.mxu0 }
 0x25a   : > { %6148 = vst [vmem:[#allocation53_spill] sm:$0xff] %v5425_v41  ;;  %6152 = vst [vmem:[#allocation57_spill] sm:$0xff] %v5433_v44 }
 0x25b   : > { %v5427_v9 = vpop.f32.mrf.mxu1  ;;  %v5437_v35 = vpop.f32.mrf.mxu0 }
 0x25c   : > { %6149 = vst [vmem:[#allocation50_spill] sm:$0xff] %v5427_v9  ;;  %6154 = vst [vmem:[#allocation58_spill] sm:$0xff] %v5437_v35 }
 0x25d   : > { %v5431_v18 = vpop.f32.mrf.mxu1 }
 0x25e   : > { %6151 = vst [vmem:[#allocation56_spill] sm:$0xff] %v5431_v18 }
 0x25f   : > { %v5435_v38 = vpop.f32.mrf.mxu1 }
 0x260   : > { %6153 = vst [vmem:[#allocation38_spill] sm:$0xff] %v5435_v38 }
 0x261   : > { %v5439_v46 = vpop.f32.mrf.mxu1 }
 0x262   : > { %6155 = vst [vmem:[#allocation63_spill] sm:$0xff] %v5439_v46 }
 0x263   : > { %v5445_v61 = vpop.f32.mrf.mxu1 }
 0x265   : > { %v5451_v2 = vpop.f32.mrf.mxu1 }
 0x266   : > { %v5441_v5 = vpop.f32.mrf.mxu0 }
 0x267   : > { %6156 = vst [vmem:[#allocation59_spill] sm:$0xff] %v5441_v5  ;;  %v5457_v38 = vpop.f32.mrf.mxu1 }
 0x268   : > { %v5443_v40 = vpop.f32.mrf.mxu0  ;;  %6162 = vst [vmem:[#allocation74_spill] sm:$0xff] %v5457_v38  ;;  %v1656_v38 = vmax.f32 %v5055_v55, %v5297_v13 }
 0x269   : > { %6157 = vst [vmem:[#allocation37_spill] sm:$0xff] %v5443_v40  ;;  %v1644_v40 = vmax.f32 %v5021_v47, %v5289_v30  ;;  %v1646_v47 = vmax.f32 %v5050_v1, %v5299_v14  ;;  %v1647_v30 = vmax.f32 %v5063_v58, %v5303_v63  ;;  %v1658_v1 = vmax.f32 %v5094_v6, %v5311_v10 }
 0x26a   : > { %v5447_v41 = vpop.f32.mrf.mxu0  ;;  %v1668_v58 = vmax.f32 %v5103_v32, %v5317_v0  ;;  %v1649_v6 = vmax.f32 %v5138_v3, %v5329_v20 }
 0x26b   : > { %6158 = vst [vmem:[#allocation64_spill] sm:$0xff] %v5447_v41  ;;  %v2221_v0 = vmax.f32 %v1646_v47, %v5393_v28  ;;  %v6166_v28 = vld [vmem:[#allocation36_spill] sm:$0xff] }
 0x26c   : > { %v5449_v9 = vpop.f32.mrf.mxu0 }
 0x26d   : > { %6159 = vst [vmem:[#allocation61_spill] sm:$0xff] %v5449_v9  ;;  %v5459_v35 = vpop.f32.mrf.mxu1  ;;  %v1645_v9 = vmax.f32 %v5034_v12, %v5291_v8  ;;  %v1667_v12 = vmax.f32 %v5085_v34, %v5305_v60  ;;  %v1669_v8 = vmax.f32 %v5116_v43, %v5319_v4 }
 0x26e   : > { %v5453_v18 = vpop.f32.mrf.mxu0 }
 0x26f   : > { %6160 = vst [vmem:[#allocation72_spill] sm:$0xff] %v5453_v18  ;;  %v5465_v5 = vpop.f32.mrf.mxu1  ;;  %v1655_v18 = vmax.f32 %v5045_v24, %v5295_v45  ;;  %v1657_v24 = vmax.f32 %v5081_v59, %v5307_v17  ;;  %v5497_v45 = vpop.permute.xlu1 %2763  ;;  %v1679_v59 = vmax.f32 %v5129_v37, %v5321_v50  ;;  %v2242_v47 = vmax.f32 %v1667_v12, %v6166_v28 }
 0x270   : > { %v5455_v44 = vpop.f32.mrf.mxu0  ;;  %6164 = vst [vmem:[#allocation76_spill] sm:$0xff] %v5465_v5  ;;  %v5481_v5 = vpop.permute.xlu0 %2758 }
 0x271   : > { %6161 = vst [vmem:[#allocation73_spill] sm:$0xff] %v5455_v44  ;;  %v2219_v44 = vmax.f32 %v1644_v40, %v1939_v23  ;;  %v2220_v23 = vmax.f32 %v1645_v9, %v1941_v26  ;;  %v5487_v55 = vpop.f32.mrf.mxu1  ;;  %v2230_v26 = vmax.f32 %v1655_v18, %v1943_v48  ;;  %v2231_v48 = vmax.f32 %v1656_v38, %v5389_v39 }
 0x272   : > { %v5461_v46 = vpop.f32.mrf.mxu0 }
 0x273   : > { %6163 = vst [vmem:[#allocation75_spill] sm:$0xff] %v5461_v46  ;;  %v1666_v46 = vmax.f32 %v5068_v25, %v5301_v51  ;;  %v1677_v25 = vmax.f32 %v5101_v52, %v5309_v54  ;;  %v1648_v52 = vmax.f32 %v5127_v36, %v5327_v7  ;;  %v5513_v18 = vpop.f32.mrf.mxu1  ;;  %v6188_v7 = vld [vmem:[#allocation32_spill] sm:$0xff] }
 0x274   : > { %v5467_v41 = vpop.f32.mrf.mxu0  ;;  %v5546_v28 = vpop.permute.xlu0 %2773 }
 0x275   : > { %6165 = vst [vmem:[#allocation77_spill] sm:$0xff] %v5467_v41  ;;  %v2241_v10 = vmax.f32 %v1666_v46, %v5391_v22  ;;  %v5528_v22 = vpop.permute.xlu1 %2768 }
 0x27a   : > { %v2428_v41 = vpop.f32.mrf.mxu0 }
 0x27b   : > { %v2708_v40 = vmax.f32 %v2219_v44, %v2428_v41 }
 0x27c   : > { %v2430_v34 = vpop.f32.mrf.mxu0 }
 0x27d   : > { %v2709_v9 = vmax.f32 %v2220_v23, %v2430_v34  ;;  %v2776_v41 = vadd.f32 %v5481_v5, %v2708_v40 }
 0x27e   : > { %v2432_v14 = vpop.f32.mrf.mxu0 }
 0x27f   : > { %v2777_v63 = vadd.f32 %v5481_v5, %v2709_v9  ;;  %v2719_v60 = vmax.f32 %v2230_v26, %v2432_v14  ;;  %v2820_v23 = vmax.f32 %v2776_v41, 0.0  ;;  %v2222_v14 = vmax.f32 %v1647_v30, %v5397_v57  ;;  %v6168_v26 = vld [vmem:[#allocation4_spill] sm:$0xff] }
 0x280   : > { %v2434_v44 = vpop.f32.mrf.mxu0  ;;  %v2232_v51 = vmax.f32 %v1657_v24, %v6168_v26  ;;  %v6173_v24 = vld [vmem:[#allocation31_spill] sm:$0xff] }
 0x281   : > { %v2821_v40 = vmax.f32 %v2777_v63, 0.0  ;;  %v2720_v34 = vmax.f32 %v2231_v48, %v2434_v44  ;;  %v2787_v39 = vadd.f32 %v5497_v45, %v2719_v60  ;;  %v2481_v38 = vpop.f32.mrf.mxu1  ;;  %v6167_v44 = vld [vmem:[#allocation40_spill] sm:$0xff] }
 0x282   : > { %v2438_v54 = vpop.f32.mrf.mxu0  ;;  %v2710_v46 = vmax.f32 %v2221_v0, %v2481_v38  ;;  %v2252_v17 = vmax.f32 %v1677_v25, %v6167_v44  ;;  %v2233_v38 = vmax.f32 %v1658_v1, %v6173_v24  ;;  %v6177_v24 = vld [vmem:[#allocation47_spill] sm:$0xff] }
 0x283   : > { %v3359_v41 = vpack.c.bf16 %v2821_v40, %v2820_v23  ;;  %v2788_v48 = vadd.f32 %v5497_v45, %v2720_v34  ;;  %v2730_v63 = vmax.f32 %v2241_v10, %v2438_v54  ;;  %v2483_v60 = vpop.f32.mrf.mxu1  ;;  %v2831_v57 = vmax.f32 %v2787_v39, 0.0  ;;  %v6169_v54 = vld [vmem:[#allocation39_spill] sm:$0xff]  ;;  %v6170_v10 = vld [vmem:[#allocation5_spill] sm:$0xff]  ;;  %v6171_v40 = vld [vmem:[#allocation60_spill] sm:$0xff] }
 0x284   : > { %v2778_v13 = vadd.f32 %v5481_v5, %v2710_v46  ;;  %v2440_v9 = vpop.f32.mrf.mxu0  ;;  %v2711_v32 = vmax.f32 %v2222_v14, %v2483_v60  ;;  %v6172_v25 = vmax.f32 %v6170_v10, %v6171_v40  ;;  %v6174_v39 = vld [vmem:[#allocation43_spill] sm:$0xff] }
 0x285   : > { %3006 = vst [vmem:[%s5536_s30] sm:$0xff] %v3359_v41  ;;  %v2832_v30 = vmax.f32 %v2788_v48, 0.0  ;;  %v2731_v12 = vmax.f32 %v2242_v47, %v2440_v9  ;;  %v2798_v0 = vadd.f32 %v5528_v22, %v2730_v63  ;;  %v2485_v23 = vpop.f32.mrf.mxu1  ;;  %v2243_v41 = vmax.f32 %v1668_v58, %v6174_v39  ;;  %v6175_v58 = vld [vmem:[#allocation41_spill] sm:$0xff] }
 0x286   : > { %v2253_v34 = vmax.f32 %v6172_v25, %v6169_v54  ;;  %v2779_v26 = vadd.f32 %v5481_v5, %v2711_v32  ;;  %v2442_v14 = vpop.f32.mrf.mxu0  ;;  %v2721_v46 = vmax.f32 %v2232_v51, %v2485_v23  ;;  %v2822_v60 = vmax.f32 %v2778_v13, 0.0 }
 0x287   : > { %v3364_v9 = vpack.c.bf16 %v2832_v30, %v2831_v57  ;;  %v2799_v47 = vadd.f32 %v5528_v22, %v2731_v12  ;;  %v2741_v48 = vmax.f32 %v2252_v17, %v2442_v14  ;;  %v2487_v63 = vpop.f32.mrf.mxu1  ;;  %v2842_v1 = vmax.f32 %v2798_v0, 0.0  ;;  %v6176_v12 = vld [vmem:[#allocation66_spill] sm:$0xff] }
 0x288   : > { %v2823_v44 = vmax.f32 %v2779_v26, 0.0  ;;  %v2789_v54 = vadd.f32 %v5497_v45, %v2721_v46  ;;  %v2722_v10 = vmax.f32 %v2233_v38, %v2487_v63  ;;  %v2444_v40 = vpop.f32.mrf.mxu0  ;;  %v2244_v17 = vmax.f32 %v1669_v8, %v6175_v58  ;;  %v6178_v26 = vld [vmem:[#allocation46_spill] sm:$0xff]  ;;  %v6186_v58 = vld [vmem:[#allocation16_spill] sm:$0xff] }
 0x289   : > { %3012 = vst [vmem:[%s5536_s30 + $0x2c] sm:$0xff] %v3364_v9  ;;  %v2843_v32 = vmax.f32 %v2799_v47, 0.0  ;;  %v2742_v51 = vmax.f32 %v2253_v34, %v2444_v40  ;;  %v2809_v23 = vadd.f32 %v5546_v28, %v2741_v48  ;;  %v2491_v25 = vpop.f32.mrf.mxu1  ;;  %v1661_v38 = vmax.f32 %v6177_v24, %v6176_v12  ;;  %v6179_v9 = vld [vmem:[#allocation67_spill] sm:$0xff]  ;;  %v6181_v48 = vld [vmem:[#allocation6_spill] sm:$0xff] }
 0x28a   : > { %v3360_v13 = vpack.c.bf16 %v2823_v44, %v2822_v60  ;;  %v2790_v57 = vadd.f32 %v5497_v45, %v2722_v10  ;;  %v2732_v30 = vmax.f32 %v2243_v41, %v2491_v25  ;;  %v2254_v0 = vmax.f32 %v1679_v59, %v6178_v26  ;;  %v6180_v41 = vld [vmem:[#allocation55_spill] sm:$0xff]  ;;  %v6182_v60 = vld [vmem:[#allocation34_spill] sm:$0xff]  ;;  %v6183_v44 = vld [vmem:[#allocation48_spill] sm:$0xff] }
 0x28b   : > { %v3369_v34 = vpack.c.bf16 %v2843_v32, %v2842_v1  ;;  %v2810_v14 = vadd.f32 %v5546_v28, %v2742_v51  ;;  %v2493_v46 = vpop.f32.mrf.mxu1  ;;  %v2833_v43 = vmax.f32 %v2789_v54, 0.0  ;;  %v1662_v47 = vmax.f32 %v6180_v41, %v6179_v9  ;;  %v6184_v54 = vld [vmem:[#allocation62_spill] sm:$0xff] }
 0x28c   : > { %3007 = vst [vmem:[%s5536_s30 + $0x8] sm:$0xff] %v3360_v13  ;;  %v2834_v4 = vmax.f32 %v2790_v57, 0.0  ;;  %v2800_v8 = vadd.f32 %v5528_v22, %v2732_v30  ;;  %v2733_v39 = vmax.f32 %v2244_v17, %v2493_v46  ;;  %v2223_v37 = vmax.f32 %v1648_v52, %v6181_v48  ;;  %v6187_v17 = vld [vmem:[#allocation17_spill] sm:$0xff]  ;;  %v6218_v12 = vld [vmem:[#allocation38_spill] sm:$0xff] }
 0x28d   : > { %3018 = vst [vmem:[%s5536_s30 + $0x58] sm:$0xff] %v3369_v34  ;;  %v2853_v50 = vmax.f32 %v2809_v23, 0.0  ;;  %v2854_v59 = vmax.f32 %v2810_v14, 0.0  ;;  %v2495_v63 = vpop.f32.mrf.mxu1  ;;  %v6185_v10 = vmax.f32 %v6183_v44, %v6184_v54  ;;  %v1672_v36 = vmax.f32 %v6187_v17, %v6186_v58 }
 0x28e   : > { %v3365_v1 = vpack.c.bf16 %v2834_v4, %v2833_v43  ;;  %v2801_v32 = vadd.f32 %v5528_v22, %v2733_v39  ;;  %v2743_v51 = vmax.f32 %v2254_v0, %v2495_v63  ;;  %v2534_v25 = vpop.f32.mrf.mxu0  ;;  %v2224_v52 = vmax.f32 %v1649_v6, %v6188_v7  ;;  %v6189_v0 = vld [vmem:[#allocation18_spill] sm:$0xff]  ;;  %v6190_v43 = vld [vmem:[#allocation19_spill] sm:$0xff]  ;;  %v6191_v39 = vld [vmem:[#allocation33_spill] sm:$0xff] }
 0x28f   : > { %v2255_v40 = vmax.f32 %v6185_v10, %v6182_v60  ;;  %v3374_v23 = vpack.c.bf16 %v2854_v59, %v2853_v50  ;;  %v2712_v13 = vmax.f32 %v2223_v37, %v2534_v25  ;;  %v2497_v57 = vpop.f32.mrf.mxu1  ;;  %v2844_v30 = vmax.f32 %v2800_v8, 0.0  ;;  %v6193_v37 = vld [vmem:[#allocation70_spill] sm:$0xff]  ;;  %v6195_v59 = vld [vmem:[#allocation71_spill] sm:$0xff] }
 0x290   : > { %3013 = vst [vmem:[%s5536_s30 + $0x34] sm:$0xff] %v3365_v1  ;;  %v2845_v26 = vmax.f32 %v2801_v32, 0.0  ;;  %v2811_v34 = vadd.f32 %v5546_v28, %v2743_v51  ;;  %v2536_v46 = vpop.f32.mrf.mxu0  ;;  %v1673_v4 = vmax.f32 %v6190_v43, %v6189_v0  ;;  %v6192_v48 = vmax.f32 %v5153_v31, %v5331_v29  ;;  %v6194_v8 = vld [vmem:[#allocation10_spill] sm:$0xff]  ;;  %v6198_v1 = vld [vmem:[#allocation8_spill] sm:$0xff]  ;;  %v6199_v31 = vld [vmem:[#allocation49_spill] sm:$0xff] }
 0x291   : > { %v2744_v14 = vmax.f32 %v2255_v40, %v2497_v57  ;;  %3024 = vst [vmem:[%s5536_s30 + $0x84] sm:$0xff] %v3374_v23  ;;  %v2780_v20 = vadd.f32 %v5481_v5, %v2712_v13  ;;  %v2713_v6 = vmax.f32 %v2224_v52, %v2536_v46  ;;  %v1683_v50 = vmax.f32 %v6194_v8, %v6193_v37  ;;  %v6196_v63 = vld [vmem:[#allocation42_spill] sm:$0xff]  ;;  %v6197_v40 = vld [vmem:[#allocation20_spill] sm:$0xff]  ;;  %v6201_v52 = vld [vmem:[#allocation45_spill] sm:$0xff] }
 0x292   : > { %v2234_v3 = vmax.f32 %v6192_v48, %v6191_v39  ;;  %v1684_v60 = vmax.f32 %v6196_v63, %v6195_v59  ;;  %v3370_v44 = vpack.c.bf16 %v2845_v26, %v2844_v30  ;;  %v2538_v10 = vpop.f32.mrf.mxu0  ;;  %v1652_v32 = vmax.f32 %v6198_v1, %v6197_v40  ;;  %v6203_v57 = vld [vmem:[#allocation53_spill] sm:$0xff] }
 0x293   : > { %v2812_v54 = vadd.f32 %v5546_v28, %v2744_v14  ;;  %v6200_v29 = vmax.f32 %v5171_v11, %v5333_v53  ;;  %v2781_v25 = vadd.f32 %v5481_v5, %v2713_v6  ;;  %v6202_v23 = vmax.f32 %v5186_v16, %v5335_v56  ;;  %v6207_v56 = vld [vmem:[#allocation50_spill] sm:$0xff]  ;;  %v6228_v1 = vld [vmem:[#allocation37_spill] sm:$0xff] }
 0x294   : > { %v2723_v7 = vmax.f32 %v2234_v3, %v2538_v10  ;;  %v6204_v30 = vmax.f32 %v5163_v19, %v5337_v42  ;;  %3019 = vst [vmem:[%s5536_s30 + $0x60] sm:$0xff] %v3370_v44  ;;  %v2855_v14 = vmax.f32 %v2811_v34, 0.0  ;;  %v2540_v39 = vpop.f32.mrf.mxu0  ;;  %v2824_v48 = vmax.f32 %v2780_v20, 0.0  ;;  %v6205_v10 = vld [vmem:[#allocation69_spill] sm:$0xff] }
 0x295   : > { %v2235_v51 = vmax.f32 %v6200_v29, %v6199_v31  ;;  %v2245_v13 = vmax.f32 %v6202_v23, %v6201_v52  ;;  %v2856_v46 = vmax.f32 %v2812_v54, 0.0  ;;  %v2825_v11 = vmax.f32 %v2781_v25, 0.0  ;;  %v2587_v6 = vpop.f32.mrf.mxu1  ;;  %v6206_v31 = vld [vmem:[#allocation28_spill] sm:$0xff]  ;;  %v6209_v54 = vld [vmem:[#allocation51_spill] sm:$0xff] }
 0x296   : > { %v2225_v26 = vmax.f32 %v6204_v30, %v6203_v57  ;;  %v2791_v53 = vadd.f32 %v5497_v45, %v2723_v7  ;;  %v1653_v16 = vmax.f32 %v6206_v31, %v6205_v10  ;;  %v6208_v29 = vmax.f32 %v5180_v15, %v5341_v62  ;;  %v2544_v34 = vpop.f32.mrf.mxu0  ;;  %v6211_v57 = vld [vmem:[#allocation57_spill] sm:$0xff]  ;;  %v6213_v62 = vld [vmem:[#allocation56_spill] sm:$0xff] }
 0x297   : > { %v2724_v3 = vmax.f32 %v2235_v51, %v2540_v39  ;;  %v3375_v42 = vpack.c.bf16 %v2856_v46, %v2855_v14  ;;  %v6210_v20 = vmax.f32 %v5199_v49, %v5339_v27  ;;  %v3361_v7 = vpack.c.bf16 %v2825_v11, %v2824_v48  ;;  %v2589_v23 = vpop.f32.mrf.mxu1 }
 0x298   : > { %v2226_v19 = vmax.f32 %v6208_v29, %v6207_v56  ;;  %v2714_v44 = vmax.f32 %v2225_v26, %v2587_v6  ;;  %v2734_v52 = vmax.f32 %v2245_v13, %v2544_v34  ;;  %v6212_v30 = vmax.f32 %v5212_v33, %v5343_v21  ;;  %v2546_v49 = vpop.f32.mrf.mxu0  ;;  %v6215_v33 = vld [vmem:[#allocation7_spill] sm:$0xff] }
 0x299   : > { %v2246_v25 = vmax.f32 %v6210_v20, %v6209_v54  ;;  %v2792_v51 = vadd.f32 %v5497_v45, %v2724_v3  ;;  %v2236_v26 = vmax.f32 %v1661_v38, %v6213_v62  ;;  %3025 = vst [vmem:[%s5536_s30 + $0x8c] sm:$0xff] %v3375_v42  ;;  %3008 = vst [vmem:[%s5536_s30 + $0x10] sm:$0xff] %v3361_v7  ;;  %v2835_v46 = vmax.f32 %v2791_v53, 0.0  ;;  %v2591_v11 = vpop.f32.mrf.mxu1  ;;  %v6214_v3 = vld [vmem:[#allocation58_spill] sm:$0xff]  ;;  %v6216_v21 = vld [vmem:[#allocation15_spill] sm:$0xff] }
 0x29a   : > { %v2256_v15 = vmax.f32 %v6212_v30, %v6211_v57  ;;  %v2782_v14 = vadd.f32 %v5481_v5, %v2714_v44  ;;  %v2715_v27 = vmax.f32 %v2226_v19, %v2589_v23  ;;  %v2802_v13 = vadd.f32 %v5528_v22, %v2734_v52  ;;  %v2548_v29 = vpop.f32.mrf.mxu0  ;;  %v6219_v19 = vld [vmem:[#allocation63_spill] sm:$0xff]  ;;  %v6220_v62 = vld [vmem:[#allocation22_spill] sm:$0xff] }
 0x29b   : > { %v2836_v39 = vmax.f32 %v2792_v51, 0.0  ;;  %v2735_v48 = vmax.f32 %v2246_v25, %v2546_v49  ;;  %v6217_v6 = vmax.f32 %v6215_v33, %v6216_v21  ;;  %v2237_v24 = vmax.f32 %v1662_v47, %v6218_v12  ;;  %v2593_v20 = vpop.f32.mrf.mxu1  ;;  %v6225_v33 = vld [vmem:[#allocation74_spill] sm:$0xff] }
 0x29c   : > { %v2783_v38 = vadd.f32 %v5481_v5, %v2715_v27  ;;  %v2725_v53 = vmax.f32 %v2236_v26, %v2591_v11  ;;  %v2247_v42 = vmax.f32 %v1672_v36, %v6219_v19  ;;  %v2745_v54 = vmax.f32 %v2256_v15, %v2548_v29  ;;  %v2550_v9 = vpop.f32.mrf.mxu0  ;;  %v6221_v26 = vld [vmem:[#allocation27_spill] sm:$0xff]  ;;  %v6227_v29 = vld [vmem:[#allocation9_spill] sm:$0xff] }
 0x29d   : > { %v2257_v56 = vmax.f32 %v6217_v6, %v6214_v3  ;;  %v3366_v34 = vpack.c.bf16 %v2836_v39, %v2835_v46  ;;  %v2803_v44 = vadd.f32 %v5528_v22, %v2735_v48  ;;  %v2826_v25 = vmax.f32 %v2782_v14, 0.0  ;;  %v2597_v58 = vpop.f32.mrf.mxu1  ;;  %v6223_v48 = vld [vmem:[#allocation11_spill] sm:$0xff] }
 0x29e   : > { %v2827_v7 = vmax.f32 %v2783_v38, 0.0  ;;  %v2793_v51 = vadd.f32 %v5497_v45, %v2725_v53  ;;  %v2726_v41 = vmax.f32 %v2237_v24, %v2593_v20  ;;  %v2846_v47 = vmax.f32 %v2802_v13, 0.0  ;;  %v6222_v13 = vld [vmem:[#allocation25_spill] sm:$0xff]  ;;  %v6224_v3 = vld [vmem:[#allocation59_spill] sm:$0xff]  ;;  %v6226_v38 = vld [vmem:[#allocation68_spill] sm:$0xff] }
 0x29f   : > { %3014 = vst [vmem:[%s5536_s30 + $0x3c] sm:$0xff] %v3366_v34  ;;  %v2847_v52 = vmax.f32 %v2803_v44, 0.0  ;;  %v2813_v23 = vadd.f32 %v5546_v28, %v2745_v54  ;;  %v2746_v57 = vmax.f32 %v2257_v56, %v2550_v9  ;;  %v2248_v17 = vmax.f32 %v1673_v4, %v5445_v61  ;;  %v2599_v39 = vpop.f32.mrf.mxu1  ;;  %v6229_v54 = vld [vmem:[#allocation21_spill] sm:$0xff]  ;;  %v6230_v20 = vld [vmem:[#allocation14_spill] sm:$0xff]  ;;  %v6233_v9 = vld [vmem:[#allocation12_spill] sm:$0xff] }
 0x2a0   : > { %v3362_v36 = vpack.c.bf16 %v2827_v7, %v2826_v25  ;;  %v2794_v30 = vadd.f32 %v5497_v45, %v2726_v41  ;;  %v2736_v15 = vmax.f32 %v2247_v42, %v2597_v58  ;;  %v1663_v14 = vmax.f32 %v6221_v26, %v6220_v62  ;;  %v6231_v7 = vld [vmem:[#allocation64_spill] sm:$0xff]  ;;  %v6238_v62 = vld [vmem:[#allocation61_spill] sm:$0xff] }
 0x2a1   : > { %v2258_v49 = vmax.f32 %v1683_v50, %v5451_v2  ;;  %v3371_v27 = vpack.c.bf16 %v2847_v52, %v2846_v47  ;;  %v2814_v46 = vadd.f32 %v5546_v28, %v2746_v57  ;;  %v2837_v0 = vmax.f32 %v2793_v51, 0.0  ;;  %v2601_v50 = vpop.f32.mrf.mxu1  ;;  %v6234_v47 = vld [vmem:[#allocation23_spill] sm:$0xff]  ;;  %v6235_v52 = vld [vmem:[#allocation13_spill] sm:$0xff] }
 0x2a2   : > { %3009 = vst [vmem:[%s5536_s30 + $0x18] sm:$0xff] %v3362_v36  ;;  %v2838_v61 = vmax.f32 %v2794_v30, 0.0  ;;  %v2804_v43 = vadd.f32 %v5528_v22, %v2736_v15  ;;  %v2737_v4 = vmax.f32 %v2248_v17, %v2599_v39  ;;  %v1676_v11 = vmax.f32 %v6223_v48, %v6222_v13  ;;  %v2640_v24 = vpop.f32.mrf.mxu0  ;;  %v6236_v36 = vld [vmem:[#allocation26_spill] sm:$0xff]  ;;  %v6237_v30 = vld [vmem:[#allocation44_spill] sm:$0xff] }
 0x2a3   : > { %v2227_v37 = vmax.f32 %v1652_v32, %v6224_v3  ;;  %3020 = vst [vmem:[%s5536_s30 + $0x68] sm:$0xff] %v3371_v27  ;;  %v2857_v2 = vmax.f32 %v2813_v23, 0.0  ;;  %v2858_v8 = vmax.f32 %v2814_v46, 0.0  ;;  %v2259_v21 = vmax.f32 %v1684_v60, %v6225_v33  ;;  %v2603_v42 = vpop.f32.mrf.mxu1  ;;  %v6239_v27 = vld [vmem:[#allocation72_spill] sm:$0xff] }
 0x2a4   : > { %v3367_v6 = vpack.c.bf16 %v2838_v61, %v2837_v0  ;;  %v2805_v56 = vadd.f32 %v5528_v22, %v2737_v4  ;;  %v2747_v12 = vmax.f32 %v2258_v49, %v2601_v50  ;;  %v1664_v40 = vmax.f32 %v6227_v29, %v6226_v38  ;;  %v2642_v44 = vpop.f32.mrf.mxu0  ;;  %v6242_v33 = vld [vmem:[#allocation76_spill] sm:$0xff] }
 0x2a5   : > { %v2228_v32 = vmax.f32 %v1653_v16, %v6228_v1  ;;  %v3376_v53 = vpack.c.bf16 %v2858_v8, %v2857_v2  ;;  %v2716_v19 = vmax.f32 %v2227_v37, %v2640_v24  ;;  %v2848_v59 = vmax.f32 %v2804_v43, 0.0  ;;  %v6232_v16 = vld [vmem:[#allocation30_spill] sm:$0xff]  ;;  %v6240_v2 = vld [vmem:[#allocation24_spill] sm:$0xff]  ;;  %v6244_v1 = vld [vmem:[#allocation75_spill] sm:$0xff] }
 0x2a6   : > { %3015 = vst [vmem:[%s5536_s30 + $0x44] sm:$0xff] %v3367_v6  ;;  %v2849_v63 = vmax.f32 %v2805_v56, 0.0  ;;  %v2815_v60 = vadd.f32 %v5546_v28, %v2747_v12  ;;  %v2748_v34 = vmax.f32 %v2259_v21, %v2603_v42  ;;  %v1654_v25 = vmax.f32 %v6230_v20, %v6229_v54  ;;  %v2644_v17 = vpop.f32.mrf.mxu0  ;;  %v6241_v8 = vld [vmem:[#allocation52_spill] sm:$0xff]  ;;  %v6245_v54 = vld [vmem:[#allocation65_spill] sm:$0xff] }
 0x2a7   : > { %v2238_v51 = vmax.f32 %v1663_v14, %v6231_v7  ;;  %3026 = vst [vmem:[%s5536_s30 + $0x94] sm:$0xff] %v3376_v53  ;;  %v2784_v10 = vadd.f32 %v5481_v5, %v2716_v19  ;;  %v2717_v31 = vmax.f32 %v2228_v32, %v2642_v44  ;;  %v1674_v41 = vmax.f32 %v6233_v9, %v6232_v16  ;;  %v6246_v20 = vld [vmem:[#allocation29_spill] sm:$0xff]  ;;  %v6249_v16 = vld [vmem:[#allocation54_spill] sm:$0xff]  ;;  %v6250_v9 = vld [vmem:[#allocation35_spill] sm:$0xff] }
 0x2a8   : > { %v1687_v23 = vmax.f32 %v6235_v52, %v6234_v47  ;;  %v3372_v57 = vpack.c.bf16 %v2849_v63, %v2848_v59  ;;  %v2816_v58 = vadd.f32 %v5546_v28, %v2748_v34  ;;  %v1675_v15 = vmax.f32 %v6237_v30, %v6236_v36  ;;  %v2646_v43 = vpop.f32.mrf.mxu0 }
 0x2a9   : > { %v2239_v26 = vmax.f32 %v1664_v40, %v6238_v62  ;;  %v2785_v14 = vadd.f32 %v5481_v5, %v2717_v31  ;;  %v2727_v49 = vmax.f32 %v2238_v51, %v2644_v17  ;;  %v2249_v46 = vmax.f32 %v1674_v41, %v6239_v27  ;;  %v3462_v37 = vpop.f32.mrf.mxu1  ;;  %v6248_v31 = vld [vmem:[#allocation77_spill] sm:$0xff] }
 0x2aa   : > { %v2251_v39 = vmax.f32 %v1676_v11, %v5459_v35  ;;  %3021 = vst [vmem:[%s5536_s30 + $0x70] sm:$0xff] %v3372_v57  ;;  %v2859_v0 = vmax.f32 %v2815_v60, 0.0  ;;  %v2860_v61 = vmax.f32 %v2816_v58, 0.0  ;;  %v2828_v4 = vmax.f32 %v2784_v10, 0.0  ;;  %v2650_v56 = vpop.f32.mrf.mxu0  ;;  %v6243_v11 = vld [vmem:[#allocation73_spill] sm:$0xff] }
 0x2ab   : > { %v2829_v13 = vmax.f32 %v2785_v14, 0.0  ;;  %v2795_v48 = vadd.f32 %v5497_v45, %v2727_v49  ;;  %v2728_v3 = vmax.f32 %v2239_v26, %v2646_v43  ;;  %v1685_v50 = vmax.f32 %v6241_v8, %v6240_v2  ;;  %v2693_v40 = vpop.f32.mrf.mxu1 }
 0x2ac   : > { %v2229_v21 = vmax.f32 %v1654_v25, %v6242_v33  ;;  %v3377_v6 = vpack.c.bf16 %v2860_v61, %v2859_v0  ;;  %v2740_v35 = vmax.f32 %v2251_v39, %v3462_v37  ;;  %v2250_v12 = vmax.f32 %v1675_v15, %v6243_v11  ;;  %v2652_v19 = vpop.f32.mrf.mxu0  ;;  %v3056_v33 = vld [vmem:[%s5536_s30 + $0x8] sm:$0xff] (%p3629_p5)  ;;  %v3066_v11 = vld [vmem:[%s5536_s30 + $0x34] sm:$0xff] (%p3629_p5) }
 0x2ad   : > { %v3363_v24 = vpack.c.bf16 %v2829_v13, %v2828_v4  ;;  %v2796_v38 = vadd.f32 %v5497_v45, %v2728_v3  ;;  %v2738_v29 = vmax.f32 %v2249_v46, %v2650_v56  ;;  %v2260_v32 = vmax.f32 %v1685_v50, %v6244_v1  ;;  %v3463_v44 = vpop.f32.mrf.mxu1  ;;  %3057 = vst [vmem:[%s5754_s4 + $0x8] sm:$0xff] (%p3629_p5), %v3056_v33  ;;  %v3078_v1 = vld [vmem:[%s5536_s30 + $0x68] sm:$0xff] (%p3629_p5) }
 0x2ae   : > { %v2262_v53 = vmax.f32 %v1687_v23, %v5487_v55  ;;  %3027 = vst [vmem:[%s5536_s30 + $0x9c] sm:$0xff] %v3377_v6  ;;  %v2718_v42 = vmax.f32 %v2229_v21, %v2693_v40  ;;  %v2839_v59 = vmax.f32 %v2795_v48, 0.0  ;;  %v2739_v34 = vmax.f32 %v2250_v12, %v2652_v19  ;;  %v2654_v10 = vpop.f32.mrf.mxu0  ;;  %v3058_v21 = vld [vmem:[%s5536_s30 + $0x10] sm:$0xff] (%p3629_p5)  ;;  %v3060_v6 = vld [vmem:[%s5536_s30 + $0x18] sm:$0xff] (%p3629_p5)  ;;  %3067 = vst [vmem:[%s5754_s4 + $0x60] sm:$0xff] (%p3629_p5), %v3066_v11 }
 0x2af   : > { %3010 = vst [vmem:[%s5536_s30 + $0x20] sm:$0xff] %v3363_v24  ;;  %v2840_v63 = vmax.f32 %v2796_v38, 0.0  ;;  %v2806_v60 = vadd.f32 %v5528_v22, %v2738_v29  ;;  %v6247_v25 = vmax.f32 %v6245_v54, %v6246_v20  ;;  %v2808_v51 = vadd.f32 %v5528_v22, %v2740_v35  ;;  %v2696_v58 = vpop.f32.mrf.mxu1  ;;  %v3064_v35 = vld [vmem:[%s5536_s30 + $0x2c] sm:$0xff] (%p3629_p5)  ;;  %v3068_v12 = vld [vmem:[%s5536_s30 + $0x3c] sm:$0xff] (%p3629_p5)  ;;  %v3070_v24 = vld [vmem:[%s5536_s30 + $0x44] sm:$0xff] (%p3629_p5) }
 0x2b0   : > { %v2751_v55 = vmax.f32 %v2262_v53, %v3463_v44  ;;  %v6251_v41 = vmax.f32 %v6249_v16, %v6250_v9  ;;  %v2807_v23 = vadd.f32 %v5528_v22, %v2739_v34  ;;  %v2749_v57 = vmax.f32 %v2260_v32, %v2654_v10  ;;  %v2656_v30 = vpop.f32.mrf.mxu0  ;;  %3059 = vst [vmem:[%s5754_s4 + $0x10] sm:$0xff] (%p3629_p5), %v3058_v21  ;;  %v3074_v29 = vld [vmem:[%s5536_s30 + $0x58] sm:$0xff] (%p3629_p5)  ;;  %v3076_v40 = vld [vmem:[%s5536_s30 + $0x60] sm:$0xff] (%p3629_p5) }
 0x2b1   : > { %v2240_v7 = vmax.f32 %v6247_v25, %v5513_v18  ;;  %v3368_v52 = vpack.c.bf16 %v2840_v63, %v2839_v59  ;;  %v2786_v17 = vadd.f32 %v5481_v5, %v2718_v42  ;;  %v2850_v15 = vmax.f32 %v2806_v60, 0.0  ;;  %3061 = vst [vmem:[%s5754_s4 + $0x18] sm:$0xff] (%p3629_p5), %v3060_v6  ;;  %3065 = vst [vmem:[%s5754_s4 + $0x58] sm:$0xff] (%p3629_p5), %v3064_v35  ;;  %v3080_v32 = vld [vmem:[%s5536_s30 + $0x70] sm:$0xff] (%p3629_p5)  ;;  %v3084_v19 = vld [vmem:[%s5536_s30 + $0x84] sm:$0xff] (%p3629_p5) }
 0x2b2   : > { %v2261_v47 = vmax.f32 %v6251_v41, %v6248_v31  ;;  %v2819_v36 = vadd.f32 %v5546_v28, %v2751_v55  ;;  %v2851_v62 = vmax.f32 %v2807_v23, 0.0  ;;  %v2817_v26 = vadd.f32 %v5546_v28, %v2749_v57  ;;  %3069 = vst [vmem:[%s5754_s4 + $0x68] sm:$0xff] (%p3629_p5), %v3068_v12  ;;  %3071 = vst [vmem:[%s5754_s4 + $0x70] sm:$0xff] (%p3629_p5), %v3070_v24  ;;  %v3086_v42 = vld [vmem:[%s5536_s30 + $0x8c] sm:$0xff] (%p3629_p5)  ;;  %v3088_v59 = vld [vmem:[%s5536_s30 + $0x94] sm:$0xff] (%p3629_p5) }
 0x2b3   : > { %v2729_v18 = vmax.f32 %v2240_v7, %v2696_v58  ;;  %3016 = vst [vmem:[%s5536_s30 + $0x4c] sm:$0xff] %v3368_v52  ;;  %v2852_v49 = vmax.f32 %v2808_v51, 0.0  ;;  %v2830_v39 = vmax.f32 %v2786_v17, 0.0  ;;  %3075 = vst [vmem:[%s5754_s4 + $0xb0] sm:$0xff] (%p3629_p5), %v3074_v29 }
 0x2b4   : > { %v2750_v14 = vmax.f32 %v2261_v47, %v2656_v30  ;;  %v2863_v27 = vmax.f32 %v2819_v36, 0.0  ;;  %v3373_v22 = vpack.c.bf16 %v2851_v62, %v2850_v15  ;;  %v2861_v43 = vmax.f32 %v2817_v26, 0.0  ;;  %3077 = vst [vmem:[%s5754_s4 + $0xb8] sm:$0xff] (%p3629_p5), %v3076_v40  ;;  %3079 = vst [vmem:[%s5754_s4 + $0xc0] sm:$0xff] (%p3629_p5), %v3078_v1 }
 0x2b5   : > { %v2797_v46 = vadd.f32 %v5497_v45, %v2729_v18  ;;  %3081 = vst [vmem:[%s5754_s4 + $0xc8] sm:$0xff] (%p3629_p5), %v3080_v32  ;;  %3085 = vst [vmem:[%s5754_s4 + $0x108] sm:$0xff] (%p3629_p5), %v3084_v19  ;;  %v3090_v63 = vld [vmem:[%s5536_s30 + $0x9c] sm:$0xff] (%p3629_p5) }
 0x2b6   : > { %v2818_v5 = vadd.f32 %v5546_v28, %v2750_v14  ;;  %v2885_v0 = vpack.c.bf16 %v2863_v27, %v2852_v49  ;;  %3022 = vst [vmem:[%s5536_s30 + $0x78] sm:$0xff] %v3373_v22  ;;  %v3054_v28 = vld [vmem:[%s5536_s30] sm:$0xff] (%p3629_p5)  ;;  %3087 = vst [vmem:[%s5754_s4 + $0x110] sm:$0xff] (%p3629_p5), %v3086_v42 }
 0x2b7   : > { %v2841_v61 = vmax.f32 %v2797_v46, 0.0  ;;  %v3062_v56 = vld [vmem:[%s5536_s30 + $0x20] sm:$0xff] (%p3629_p5)  ;;  %3055 = vst [vmem:[%s5754_s4] sm:$0xff] (%p3629_p5), %v3054_v28  ;;  %3089 = vst [vmem:[%s5754_s4 + $0x118] sm:$0xff] (%p3629_p5), %v3088_v59 }
 0x2b8   : > { %v2862_v4 = vmax.f32 %v2818_v5, 0.0  ;;  %v2891_v13 = vsel %vm2886_vm5, %v2885_v0, 0  ;;  %3063 = vst [vmem:[%s5754_s4 + $0x20] sm:$0xff] (%p3629_p5), %v3062_v56  ;;  %3091 = vst [vmem:[%s5754_s4 + $0x120] sm:$0xff] (%p3629_p5), %v3090_v63 }
 0x2b9   : > { %v2874_v48 = vpack.c.bf16 %v2841_v61, %v2830_v39  ;;  %v3340_v3 = vcombine.low %v2891_v13, %v2891_v13  ;;  %v3346_v37 = vcombine.high %v2891_v13, %v2891_v13 }
 0x2ba   : > { %v3378_v45 = vpack.c.bf16 %v2862_v4, %v2861_v43  ;;  %3036 = sbr.rel (!%p3629_p5) target bundleno = 711 (0x2c7), region = 62  ;;  %v3072_v38 = vld [vmem:[%s5536_s30 + $0x4c] sm:$0xff] (%p3629_p5) }
 0x2bb   : > { %v2889_v2 = vsel %vm2886_vm5, %v2874_v48, 0  ;;  %3023 = vst [vmem:[%s5536_s30 + $0x80] sm:$0xf] %v3340_v3  ;;  %3029 = vst [vmem:[%s5536_s30 + $0xac] sm:$0xf] %v3346_v37 }
 0x2bc   : > { %3028 = vst [vmem:[%s5536_s30 + $0xa4] sm:$0xff] %v3378_v45  ;;  %v3328_v8 = vcombine.low %v2889_v2, %v2889_v2  ;;  %v3334_v50 = vcombine.high %v2889_v2, %v2889_v2  ;;  %3073 = vst [vmem:[%s5754_s4 + $0x78] sm:$0xff] (%p3629_p5), %v3072_v38 }
 0x2bd   : > { %v3082_v53 = vld [vmem:[%s5536_s30 + $0x78] sm:$0xff] (%p3629_p5) }
 0x2be   : > { %3011 = vst [vmem:[%s5536_s30 + $0x28] sm:$0xf] %v3328_v8  ;;  %3017 = vst [vmem:[%s5536_s30 + $0x54] sm:$0xf] %v3334_v50 }
 0x2bf   : > { %3083 = vst [vmem:[%s5754_s4 + $0xd0] sm:$0xff] %v3082_v53 }
 0x2c2   : > { %v3352_v54 = vld [vmem:[%s5536_s30 + $0x80] sm:$0xf]  ;;  %v3354_v20 = vld [vmem:[%s5536_s30 + $0xac] sm:$0xf] }
 0x2c3   : > { %v3092_v60 = vld [vmem:[%s5536_s30 + $0xa4] sm:$0xff]  ;;  %3353 = vst [vmem:[%s5754_s4 + $0xd8] sm:$0xf] %v3352_v54  ;;  %3355 = vst [vmem:[%s5754_s4 + $0x130] sm:$0xf] %v3354_v20 }
 0x2c4   : > { %3093 = vst [vmem:[%s5754_s4 + $0x128] sm:$0xff] %v3092_v60 }
 0x2c5   : > { %v3348_v34 = vld [vmem:[%s5536_s30 + $0x28] sm:$0xf]  ;;  %v3350_v44 = vld [vmem:[%s5536_s30 + $0x54] sm:$0xf] }
 0x2c6   : > { %3349 = vst [vmem:[%s5754_s4 + $0x28] sm:$0xf] %v3348_v34  ;;  %3351 = vst [vmem:[%s5754_s4 + $0x80] sm:$0xf] %v3350_v44 }
 0x2c7 PF: > { %p10_p10 = scmp.ge.s32.totalorder %s3616_s16, 4   ;;  %s6252_s12 = smov %s3569_s13 }
 0x2c8   : > { %s6253_s13 = smov %s3627_s19  ;;  %s6254_s14 = smov %s3616_s16 }
 0x2c9   :  { %12 = sbr.rel (!%p10_p10) target bundleno = 2 (0x2), region = 134 }

// kernel: cnn_forward.4
= control target key start
LH: loop header
LB: loop body
LE: loop exit
PB: predicated region body
PF: predicated region fallthrough
CT: control target
= control target key end

     0   :  { %s2813_s12 = smov 0   ;;  %s2815_s13 = smov 0   ;;  %s4650_s0 = inlined_call_operand.vmem [shape: bf16[4,32,1024], index: 0, kind: input, shape index: {}]   ;;  %s4651_s1 = inlined_call_operand.vmem [shape: bf16[64,288], index: 1, kind: input, shape index: {}]   ;;  %s4652_s2 = inlined_call_operand.vmem [shape: f32[64,1], index: 2, kind: input, shape index: {}]   ;;  %s4653_s3 = inlined_call_operand.vmem [shape: bf16[64,1024], index: 3, kind: output, shape index: {}]  }
   0x1   :  { %s2817_s14 = smov 0  }
   0x2 LB: > { %s2508_s15 = sadd.s32 4294967295, %s2787_s14   ;;  %s2830_s16 = sadd.s32 1, %s2787_s14   ;;  %s2787_s14 = sphi %s2817_s14, %s4934_s14   ;;  %s2783_s13 = sphi %s2815_s13, %s4933_s13   ;;  %s2779_s12 = sphi %s2813_s12, %s4932_s12  }
   0x3   : > { %s17_s17 = ssub.s32 %s2787_s14, %s2830_s16  ;;  %s20_s18 = sadd.s32 1, %s2783_s13 }
   0x4   : > { %p18_p0 = scmp.eq.s32.totalorder %s17_s17, 0  ;;  %p27_p1 = scmp.ne.s32.totalorder %s2783_s13, %s2779_s12 }
   0x5   : > { %p28_p2 = scmp.eq.s32.totalorder %s2787_s14, 0  ;;  %p99_p3 = scmp.eq.s32.totalorder %s2508_s15, 1 }
   0x6   : > { %s2841_s19 = scalar_select %p18_p0, %s2783_s13, %s20_s18  }
   0x7   : > { %p29_p4 = por %p28_p2, %p27_p1  ;;  %p2843_p5 = por %p99_p3, %p27_p1 }
   0x8   : > { %p2511_p6 = scmp.ge.s32.totalorder %s2787_s14, 2 }
   0xa   : > { %127 = sbr.rel (%p2511_p6) target bundleno = 35 (0x23), region = 24 }
   0xf   : > { %130 = sbr.rel (!%p29_p4) target bundleno = 35 (0x23), region = 28  ;;  %s132_s21 = sand.u32 (%p29_p4), 1, %s2783_s13  }
  0x10   : > { %s2639_s22 = sshll.u32 (%p29_p4), %s2787_s14, 4  ;;  %s2512_s23 = sshll.u32 (%p29_p4), %s132_s21, 8 }
  0x11   : > { %s2853_s26 = scalar_lea.vmem (%p29_p4), %s4650_s0, %s2639_s22  ;;  %s2858_s27 = scalar_lea.vmem (%p29_p4), [#allocation2], %s2512_s23 }
  0x12   : > { %v150_v0 = vld [vmem:[%s2853_s26] sm:$0xff] (%p29_p4)  ;;  %v152_v1 = vld [vmem:[%s2853_s26 + $0x8] sm:$0xff] (%p29_p4) }
  0x13   : > { %v154_v2 = vld [vmem:[%s2853_s26 + $0x20] sm:$0xff] (%p29_p4)  ;;  %151 = vst [vmem:[%s2858_s27] sm:$0xff] (%p29_p4), %v150_v0  ;;  %153 = vst [vmem:[%s2858_s27 + $0x8] sm:$0xff] (%p29_p4), %v152_v1  ;;  %v156_v3 = vld [vmem:[%s2853_s26 + $0x28] sm:$0xff] (%p29_p4) }
  0x14   : > { %155 = vst [vmem:[%s2858_s27 + $0x10] sm:$0xff] %v154_v2  ;;  %v158_v4 = vld [vmem:[%s2853_s26 + $0x40] sm:$0xff]  ;;  %v160_v5 = vld [vmem:[%s2853_s26 + $0x48] sm:$0xff]  ;;  %157 = vst [vmem:[%s2858_s27 + $0x18] sm:$0xff] %v156_v3 }
  0x15   : > { %159 = vst [vmem:[%s2858_s27 + $0x20] sm:$0xff] %v158_v4  ;;  %161 = vst [vmem:[%s2858_s27 + $0x28] sm:$0xff] %v160_v5  ;;  %v162_v6 = vld [vmem:[%s2853_s26 + $0x60] sm:$0xff]  ;;  %v164_v7 = vld [vmem:[%s2853_s26 + $0x68] sm:$0xff] }
  0x16   : > { %v166_v8 = vld [vmem:[%s2853_s26 + $0x80] sm:$0xff]  ;;  %163 = vst [vmem:[%s2858_s27 + $0x30] sm:$0xff] %v162_v6  ;;  %165 = vst [vmem:[%s2858_s27 + $0x38] sm:$0xff] %v164_v7  ;;  %v168_v9 = vld [vmem:[%s2853_s26 + $0x88] sm:$0xff] }
  0x17   : > { %167 = vst [vmem:[%s2858_s27 + $0x40] sm:$0xff] %v166_v8  ;;  %v170_v10 = vld [vmem:[%s2853_s26 + $0xa0] sm:$0xff]  ;;  %v172_v11 = vld [vmem:[%s2853_s26 + $0xa8] sm:$0xff]  ;;  %169 = vst [vmem:[%s2858_s27 + $0x48] sm:$0xff] %v168_v9 }
  0x18   : > { %171 = vst [vmem:[%s2858_s27 + $0x50] sm:$0xff] %v170_v10  ;;  %173 = vst [vmem:[%s2858_s27 + $0x58] sm:$0xff] %v172_v11  ;;  %v174_v12 = vld [vmem:[%s2853_s26 + $0xc0] sm:$0xff]  ;;  %v176_v13 = vld [vmem:[%s2853_s26 + $0xc8] sm:$0xff] }
  0x19   : > { %v178_v14 = vld [vmem:[%s2853_s26 + $0xe0] sm:$0xff]  ;;  %175 = vst [vmem:[%s2858_s27 + $0x60] sm:$0xff] %v174_v12  ;;  %177 = vst [vmem:[%s2858_s27 + $0x68] sm:$0xff] %v176_v13  ;;  %v180_v15 = vld [vmem:[%s2853_s26 + $0xe8] sm:$0xff] }
  0x1a   : > { %179 = vst [vmem:[%s2858_s27 + $0x70] sm:$0xff] %v178_v14  ;;  %v182_v16 = vld [vmem:[%s2853_s26 + $0x100] sm:$0xff]  ;;  %v184_v17 = vld [vmem:[%s2853_s26 + $0x108] sm:$0xff]  ;;  %181 = vst [vmem:[%s2858_s27 + $0x78] sm:$0xff] %v180_v15 }
  0x1b   : > { %183 = vst [vmem:[%s2858_s27 + $0x80] sm:$0xff] %v182_v16  ;;  %185 = vst [vmem:[%s2858_s27 + $0x88] sm:$0xff] %v184_v17  ;;  %v186_v18 = vld [vmem:[%s2853_s26 + $0x120] sm:$0xff]  ;;  %v188_v19 = vld [vmem:[%s2853_s26 + $0x128] sm:$0xff] }
  0x1c   : > { %v190_v20 = vld [vmem:[%s2853_s26 + $0x140] sm:$0xff]  ;;  %187 = vst [vmem:[%s2858_s27 + $0x90] sm:$0xff] %v186_v18  ;;  %189 = vst [vmem:[%s2858_s27 + $0x98] sm:$0xff] %v188_v19  ;;  %v192_v21 = vld [vmem:[%s2853_s26 + $0x148] sm:$0xff] }
  0x1d   : > { %191 = vst [vmem:[%s2858_s27 + $0xa0] sm:$0xff] %v190_v20  ;;  %v194_v22 = vld [vmem:[%s2853_s26 + $0x160] sm:$0xff]  ;;  %v196_v23 = vld [vmem:[%s2853_s26 + $0x168] sm:$0xff]  ;;  %193 = vst [vmem:[%s2858_s27 + $0xa8] sm:$0xff] %v192_v21 }
  0x1e   : > { %195 = vst [vmem:[%s2858_s27 + $0xb0] sm:$0xff] %v194_v22  ;;  %197 = vst [vmem:[%s2858_s27 + $0xb8] sm:$0xff] %v196_v23  ;;  %v198_v24 = vld [vmem:[%s2853_s26 + $0x180] sm:$0xff]  ;;  %v200_v25 = vld [vmem:[%s2853_s26 + $0x188] sm:$0xff] }
  0x1f   : > { %v202_v26 = vld [vmem:[%s2853_s26 + $0x1a0] sm:$0xff]  ;;  %199 = vst [vmem:[%s2858_s27 + $0xc0] sm:$0xff] %v198_v24  ;;  %201 = vst [vmem:[%s2858_s27 + $0xc8] sm:$0xff] %v200_v25  ;;  %v204_v27 = vld [vmem:[%s2853_s26 + $0x1a8] sm:$0xff] }
  0x20   : > { %203 = vst [vmem:[%s2858_s27 + $0xd0] sm:$0xff] %v202_v26  ;;  %v206_v28 = vld [vmem:[%s2853_s26 + $0x1c0] sm:$0xff]  ;;  %v208_v29 = vld [vmem:[%s2853_s26 + $0x1c8] sm:$0xff]  ;;  %205 = vst [vmem:[%s2858_s27 + $0xd8] sm:$0xff] %v204_v27 }
  0x21   : > { %207 = vst [vmem:[%s2858_s27 + $0xe0] sm:$0xff] %v206_v28  ;;  %209 = vst [vmem:[%s2858_s27 + $0xe8] sm:$0xff] %v208_v29  ;;  %v210_v30 = vld [vmem:[%s2853_s26 + $0x1e0] sm:$0xff]  ;;  %v212_v31 = vld [vmem:[%s2853_s26 + $0x1e8] sm:$0xff] }
  0x22   : > { %211 = vst [vmem:[%s2858_s27 + $0xf0] sm:$0xff] %v210_v30  ;;  %213 = vst [vmem:[%s2858_s27 + $0xf8] sm:$0xff] %v212_v31 }
  0x23 PF: > { %p2515_p7 = scmp.ge.s32.totalorder %s2787_s14, 1  ;;  %p218_p8 = scmp.lt.s32.totalorder %s2787_s14, 3 }
  0x25   : > { %p219_p9 = pnand %p2515_p7, %p218_p8 }
  0x27   : > { %222 = sbr.rel (%p219_p9) target bundleno = 801 (0x321), region = 51 }
  0x2c   : > { %s225_s28 = sand.u32 1, %s2779_s12   ;;  %s2789_s4 = smov 127   ;;  %v4654_v42 = vmov 0   ;;  %v3058_v53 = vld [vmem:[%s4651_s1 + $0x4] ss:$12 sps:$4 sm:$0xff]   ;;  %vm397_vm0 = vcmask 1039360  }
  0x2d   : > { %s2516_s29 = sshll.u32 %s225_s28, 8  ;;  %s2790_s5 = smov 117   ;;  %792 = vmatprep.mubr.bf16.mxu1 %v4654_v42  ;;  %2677 = vset.pattern.permute.xlu0 %v4654_v42  ;;  %vm599_vm1 = vcmask 957440   ;;  %v3224_v22 = vld [vmem:[%s4651_s1 + $0x8] ss:$12 sps:$4 sm:$0xff]   ;;  %vm674_vm2 = vcmask 261120  }
  0x2e   : > { %s2926_s30 = scalar_lea.vmem [#allocation2], %s2516_s29  ;;  %2678 = vset.pattern.permute.xlu1 %v4654_v42  ;;  %s2792_s6 = smov 118   ;;  %719 = vmatprep.mubr.bf16.mxu0 %v3058_v53  ;;  %vm538_vm3 = vcmask 965632   ;;  %v3261_v29 = vld [vmem:[%s4651_s1 + $0x20] ss:$12 sps:$4 sm:$0xff]   ;;  %vm2289_vm4 = vcmask 785408  }
  0x2f   : > { %v2929_v32 = vld [vmem:[%s2926_s30 + $0x24] ss:$16 sps:$4 sm:$0xff]   ;;  %v2932_v33 = vld [vmem:[%s2926_s30 + $0x20] ss:$16 sps:$4 sm:$0xff]   ;;  %v2937_v34 = vld [vmem:[%s2926_s30 + $0x28] ss:$16 sps:$4 sm:$0xff]  }
  0x30   : > { %391 = vrot.lane.b32.xlu0 %v2929_v32, %s2789_s4  ;;  %389 = vrot.lane.b32.xlu1 %v2932_v33, %s2789_s4  ;;  %v2942_v35 = vld [vmem:[%s2926_s30 + $0x4] ss:$16 sps:$4 sm:$0xff]   ;;  %v2947_v36 = vld [vmem:[%s2926_s30 + $0x8] ss:$16 sps:$4 sm:$0xff]   ;;  %s2517_s23 = sshll.u32 %s225_s28, 7  ;;  %s2648_s28 = sshll.u32 (%p2843_p5), %s2508_s15, 4 }
  0x31   : > { %v2952_v37 = vld [vmem:[%s2926_s30] ss:$16 sps:$4 sm:$0xff]   ;;  %v2957_v38 = vld [vmem:[%s2926_s30 + $0xa4] ss:$16 sps:$4 sm:$0xff]   ;;  %v2989_v44 = vld [vmem:[%s2926_s30 + $0x68] ss:$16 sps:$4 sm:$0xff]   ;;  %s2404_s20 = scalar_lea.vmem (%p2843_p5), %s4653_s3, %s2648_s28 }
  0x32   : > { %4731 = vst [vmem:[#allocation4_spill] sm:$0xff] %v2957_v38  ;;  %v2962_v39 = vld [vmem:[%s2926_s30 + $0xa0] ss:$16 sps:$4 sm:$0xff]   ;;  %687 = vmatprep.subr.bf16.mxu0 %v2957_v38  ;;  %v2966_v40 = vld [vmem:[%s2926_s30 + $0x84] ss:$16 sps:$4 sm:$0xff]   ;;  %s4516_s12 = scalar_lea.vmem [#allocation3], %s2517_s23 }
  0x33   : > { %4732 = vst [vmem:[#allocation5_spill] sm:$0xff] %v2962_v39  ;;  %4733 = vst [vmem:[#allocation6_spill] sm:$0xff] %v2966_v40  ;;  %688 = vmatpush1.bf16.msra.mxu0 %v2962_v39  ;;  %v2975_v41 = vld [vmem:[%s2926_s30 + $0x80] ss:$16 sps:$4 sm:$0xff]   ;;  %v2986_v43 = vld [vmem:[%s2926_s30 + $0x64] ss:$16 sps:$4 sm:$0xff]  }
  0x34   : > { %393 = vrot.lane.b32.xlu0 %v2937_v34, %s2789_s4  ;;  %383 = vrot.lane.b32.xlu1 %v2942_v35, %s2789_s4  ;;  %4734 = vst [vmem:[#allocation7_spill] sm:$0xff] %v2975_v41  ;;  %v2998_v45 = vld [vmem:[%s2926_s30 + $0x60] ss:$16 sps:$4 sm:$0xff]   ;;  %v3003_v46 = vld [vmem:[%s2926_s30 + $0x44] ss:$16 sps:$4 sm:$0xff]  }
  0x35   : > { %689 = vmatprep.subr.bf16.mxu0 %v2966_v40  ;;  %v3008_v47 = vld [vmem:[%s2926_s30 + $0x48] ss:$16 sps:$4 sm:$0xff]   ;;  %v3013_v48 = vld [vmem:[%s2926_s30 + $0x40] ss:$16 sps:$4 sm:$0xff]   ;;  %v3018_v49 = vld [vmem:[%s2926_s30 + $0x2c] ss:$16 sps:$4 sm:$0xff]  }
  0x36   : > { %v3029_v50 = vld [vmem:[%s2926_s30 + $0xc] ss:$16 sps:$4 sm:$0xff]   ;;  %v3042_v51 = vld [vmem:[%s2926_s30 + $0xa8] ss:$16 sps:$4 sm:$0xff]   ;;  %v3120_v58 = vld [vmem:[%s2926_s30 + $0xe4] ss:$16 sps:$4 sm:$0xff]  }
  0x37   : > { %690 = vmatpush1.bf16.msra.mxu0 %v2975_v41  ;;  %v3051_v52 = vld [vmem:[%s2926_s30 + $0x88] ss:$16 sps:$4 sm:$0xff]   ;;  %v3063_v54 = vld [vmem:[%s2926_s30 + $0x6c] ss:$16 sps:$4 sm:$0xff]   ;;  %4737 = vst [vmem:[#allocation10_spill] sm:$0xff] %v3120_v58 }
  0x38   : > { %385 = vrot.lane.b32.xlu0 %v2947_v36, %s2789_s4  ;;  %381 = vrot.lane.b32.xlu1 %v2952_v37, %s2789_s4  ;;  %v3069_v55 = vld [vmem:[%s2926_s30 + $0x4c] ss:$16 sps:$4 sm:$0xff]   ;;  %v3125_v59 = vld [vmem:[%s2926_s30 + $0xe8] ss:$16 sps:$4 sm:$0xff]  }
  0x39   : > { %v3078_v56 = vld [vmem:[%s2926_s30 + $0xac] ss:$16 sps:$4 sm:$0xff]   ;;  %v3130_v60 = vld [vmem:[%s2926_s30 + $0xe0] ss:$16 sps:$4 sm:$0xff]   ;;  %v3135_v61 = vld [vmem:[%s2926_s30 + $0xc4] ss:$16 sps:$4 sm:$0xff]  }
  0x3a   : > { %4735 = vst [vmem:[#allocation8_spill] sm:$0xff] %v3078_v56  ;;  %v3083_v57 = vld [vmem:[%s2926_s30 + $0x8c] ss:$16 sps:$4 sm:$0xff]   ;;  %4738 = vst [vmem:[#allocation11_spill] sm:$0xff] %v3130_v60  ;;  %v3140_v62 = vld [vmem:[%s2926_s30 + $0xc8] ss:$16 sps:$4 sm:$0xff]  }
  0x3b   : > { %4736 = vst [vmem:[#allocation9_spill] sm:$0xff] %v3083_v57  ;;  %4739 = vst [vmem:[#allocation12_spill] sm:$0xff] %v3135_v61  ;;  %v3145_v63 = vld [vmem:[%s2926_s30 + $0xc0] ss:$16 sps:$4 sm:$0xff]   ;;  %v3150_v2 = vld [vmem:[%s2926_s30 + $0xec] ss:$16 sps:$4 sm:$0xff]  }
  0x3c   : > { %593 = vrot.lane.b32.xlu0 %v2929_v32, %s2790_s5  ;;  %595 = vrot.lane.b32.xlu1 %v2937_v34, %s2790_s5  ;;  %4740 = vst [vmem:[#allocation13_spill] sm:$0xff] %v3145_v63  ;;  %v3155_v3 = vld [vmem:[%s2926_s30 + $0xcc] ss:$16 sps:$4 sm:$0xff]  }
  0x40   : > { %591 = vrot.lane.b32.xlu0 %v2932_v33, %s2790_s5  ;;  %585 = vrot.lane.b32.xlu1 %v2942_v35, %s2790_s5 }
  0x44   : > { %587 = vrot.lane.b32.xlu0 %v2947_v36, %s2790_s5  ;;  %583 = vrot.lane.b32.xlu1 %v2952_v37, %s2790_s5 }
  0x48   : > { %563 = vrot.lane.b32.xlu0 %v2986_v43, %s2792_s6  ;;  %565 = vrot.lane.b32.xlu1 %v2989_v44, %s2792_s6 }
  0x4c   : > { %561 = vrot.lane.b32.xlu0 %v2998_v45, %s2792_s6  ;;  %555 = vrot.lane.b32.xlu1 %v3003_v46, %s2792_s6 }
  0x50   : > { %557 = vrot.lane.b32.xlu0 %v3008_v47, %s2792_s6  ;;  %553 = vrot.lane.b32.xlu1 %v3013_v48, %s2792_s6 }
  0x54   : > { %395 = vrot.lane.b32.xlu0 %v3018_v49, %s2789_s4  ;;  %532 = vrot.lane.b32.xlu1 %v2929_v32, %s2792_s6 }
  0x58   : > { %534 = vrot.lane.b32.xlu0 %v2937_v34, %s2792_s6  ;;  %530 = vrot.lane.b32.xlu1 %v2932_v33, %s2792_s6 }
  0x5c   : > { %387 = vrot.lane.b32.xlu0 %v3029_v50, %s2789_s4  ;;  %524 = vrot.lane.b32.xlu1 %v2942_v35, %s2792_s6 }
  0x60   : > { %526 = vrot.lane.b32.xlu0 %v2947_v36, %s2792_s6  ;;  %522 = vrot.lane.b32.xlu1 %v2952_v37, %s2792_s6 }
  0x64   : > { %502 = vrot.lane.b32.xlu0 %v2957_v38, %s2789_s4  ;;  %504 = vrot.lane.b32.xlu1 %v3042_v51, %s2789_s4 }
  0x68   : > { %500 = vrot.lane.b32.xlu0 %v2962_v39, %s2789_s4  ;;  %494 = vrot.lane.b32.xlu1 %v2966_v40, %s2789_s4 }
  0x6c   : > { %496 = vrot.lane.b32.xlu0 %v3051_v52, %s2789_s4  ;;  %492 = vrot.lane.b32.xlu1 %v2975_v41, %s2789_s4 }
  0x70   : > { %567 = vrot.lane.b32.xlu0 %v3063_v54, %s2792_s6  ;;  %559 = vrot.lane.b32.xlu1 %v3069_v55, %s2792_s6 }
  0x74   : > { %536 = vrot.lane.b32.xlu0 %v3018_v49, %s2792_s6  ;;  %528 = vrot.lane.b32.xlu1 %v3029_v50, %s2792_s6 }
  0x78   : > { %506 = vrot.lane.b32.xlu0 %v3078_v56, %s2789_s4  ;;  %498 = vrot.lane.b32.xlu1 %v3083_v57, %s2789_s4 }
  0x7c   : > { %597 = vrot.lane.b32.xlu0 %v3018_v49, %s2790_s5  ;;  %589 = vrot.lane.b32.xlu1 %v3029_v50, %s2790_s5 }
  0x80   : > { %989 = vrot.lane.b32.xlu0 %v2986_v43, %s2789_s4  ;;  %991 = vrot.lane.b32.xlu1 %v2989_v44, %s2789_s4 }
  0x84   : > { %987 = vrot.lane.b32.xlu0 %v2998_v45, %s2789_s4  ;;  %981 = vrot.lane.b32.xlu1 %v3003_v46, %s2789_s4 }
  0x88   : > { %983 = vrot.lane.b32.xlu0 %v3008_v47, %s2789_s4  ;;  %979 = vrot.lane.b32.xlu1 %v3013_v48, %s2789_s4 }
  0x8c   : > { %1049 = vrot.lane.b32.xlu0 %v2986_v43, %s2790_s5  ;;  %1051 = vrot.lane.b32.xlu1 %v2989_v44, %s2790_s5 }
  0x90   : > { %1047 = vrot.lane.b32.xlu0 %v2998_v45, %s2790_s5  ;;  %1041 = vrot.lane.b32.xlu1 %v3003_v46, %s2790_s5 }
  0x94   : > { %1043 = vrot.lane.b32.xlu0 %v3008_v47, %s2790_s5  ;;  %1039 = vrot.lane.b32.xlu1 %v3013_v48, %s2790_s5 }
  0x98   : > { %993 = vrot.lane.b32.xlu0 %v3063_v54, %s2789_s4  ;;  %985 = vrot.lane.b32.xlu1 %v3069_v55, %s2789_s4 }
  0x9c   : > { %1019 = vrot.lane.b32.xlu0 %v3120_v58, %s2789_s4  ;;  %1021 = vrot.lane.b32.xlu1 %v3125_v59, %s2789_s4 }
  0xa0   : > { %1017 = vrot.lane.b32.xlu0 %v3130_v60, %s2789_s4  ;;  %1011 = vrot.lane.b32.xlu1 %v3135_v61, %s2789_s4 }
  0xa2   : > { %v392_v0 = vpop.permute.xlu0 %391  ;;  %v390_v1 = vpop.permute.xlu1 %389 }
  0xa3   : > { %v3167_v7 = vsel %vm397_vm0, %v390_v1, %v392_v0  ;;  %v3297_v1 = vld [vmem:[%s4651_s1 + $0x38] ss:$12 sps:$4 sm:$0xff]  }
  0xa4   : > { %1013 = vrot.lane.b32.xlu0 %v3140_v62, %s2789_s4  ;;  %1009 = vrot.lane.b32.xlu1 %v3145_v63, %s2789_s4 }
  0xa6   : > { %v3157_v4 = vpop.permute.xlu0 %393  ;;  %v384_v5 = vpop.permute.xlu1 %383 }
  0xa7   : > { %v3161_v6 = vsel %vm397_vm0, %v392_v0, %v3157_v4 }
  0xa8   : > { %691 = vmatprep.subr.bf16.mxu0 %v3161_v6  ;;  %1023 = vrot.lane.b32.xlu0 %v3150_v2, %s2789_s4 }
  0xa9   : > { %1015 = vrot.lane.b32.xlu1 %v3155_v3, %s2789_s4  ;;  %692 = vmatpush1.bf16.msra.mxu0 %v3167_v7 }
  0xaa   : > { %v3172_v8 = vpop.permute.xlu0 %385  ;;  %v382_v9 = vpop.permute.xlu1 %381 }
  0xab   : > { %v3176_v10 = vsel %vm397_vm0, %v384_v5, %v3172_v8  ;;  %v3182_v11 = vsel %vm397_vm0, %v382_v9, %v384_v5 }
  0xac   : > { %1053 = vrot.lane.b32.xlu0 %v3063_v54, %s2790_s5  ;;  %693 = vmatprep.subr.bf16.mxu0 %v3176_v10 }
  0xad   : > { %1045 = vrot.lane.b32.xlu1 %v3069_v55, %s2790_s5  ;;  %694 = vmatpush1.bf16.msra.mxu0 %v3182_v11 }
  0xae   : > { %v594_v12 = vpop.permute.xlu0 %593  ;;  %695 = vmatprep.subr.bf16.mxu0 %v2986_v43  ;;  %v3188_v13 = vpop.permute.xlu1 %595 }
  0xaf   : > { %v3192_v14 = vsel %vm599_vm1, %v594_v12, %v3188_v13 }
  0xb0   : > { %1463 = vrot.lane.b32.xlu0 %v2957_v38, %s2790_s5  ;;  %772 = vmatprep.subr.bf16.mxu1 %v3192_v14 }
  0xb1   : > { %696 = vmatpush1.bf16.msra.mxu0 %v2998_v45  ;;  %1465 = vrot.lane.b32.xlu1 %v3042_v51, %s2790_s5 }
  0xb2   : > { %v592_v15 = vpop.permute.xlu0 %591  ;;  %697 = vmatprep.subr.bf16.mxu0 %v3003_v46  ;;  %v586_v17 = vpop.permute.xlu1 %585 }
  0xb3   : > { %v3202_v16 = vsel %vm599_vm1, %v592_v15, %v594_v12 }
  0xb4   : > { %773 = vmatpush1.bf16.msra.mxu1 %v3202_v16  ;;  %1461 = vrot.lane.b32.xlu0 %v2962_v39, %s2790_s5 }
  0xb5   : > { %698 = vmatpush1.bf16.msra.mxu0 %v3013_v48  ;;  %1455 = vrot.lane.b32.xlu1 %v2966_v40, %s2790_s5 }
  0xb6   : > { %v3208_v18 = vpop.permute.xlu0 %587  ;;  %699 = vmatprep.subr.bf16.mxu0 %v2929_v32  ;;  %v584_v20 = vpop.permute.xlu1 %583 }
  0xb7   : > { %v3215_v19 = vsel %vm599_vm1, %v586_v17, %v3208_v18  ;;  %v3218_v21 = vsel %vm599_vm1, %v584_v20, %v586_v17 }
  0xb8   : > { %774 = vmatprep.subr.bf16.mxu1 %v3215_v19  ;;  %1457 = vrot.lane.b32.xlu0 %v3051_v52, %s2790_s5 }
  0xb9   : > { %700 = vmatpush1.bf16.msra.mxu0 %v2932_v33  ;;  %775 = vmatpush1.bf16.msra.mxu1 %v3218_v21 }
  0xba   : > { %v564_v23 = vpop.permute.xlu0 %563  ;;  %701 = vmatprep.subr.bf16.mxu0 %v2942_v35  ;;  %833 = vmatprep.subr.bf16.mxu1 %v3078_v56  ;;  %v3232_v24 = vpop.permute.xlu1 %565 }
  0xbb   : > { %1453 = vrot.lane.b32.xlu1 %v2975_v41, %s2790_s5  ;;  %v3242_v25 = vsel %vm538_vm3, %v564_v23, %v3232_v24 }
  0xbc   : > { %2586 = vmatmul.mubr.msk.bf16.vlgmr.msra.gmra.mxu1 %vm674_vm2, %v3224_v22  ;;  %1433 = vrot.lane.b32.xlu0 %v3120_v58, %s2792_s6 }
  0xbd   : > { %702 = vmatpush1.bf16.msra.mxu0 %v2952_v37  ;;  %834 = vmatpush1.bf16.msra.mxu1 %v3042_v51 }
  0xbe   : > { %v562_v26 = vpop.permute.xlu0 %561  ;;  %703 = vmatprep.subr.bf16.mxu0 %v3242_v25  ;;  %835 = vmatprep.subr.bf16.mxu1 %v3083_v57  ;;  %v556_v28 = vpop.permute.xlu1 %555 }
  0xbf   : > { %v3249_v27 = vsel %vm538_vm3, %v562_v26, %v564_v23  ;;  %1435 = vrot.lane.b32.xlu1 %v3125_v59, %s2792_s6  ;;  %802 = vmatprep.mubr.bf16.mxu1 %v4654_v42  ;;  %v3336_v23 = vld [vmem:[%s4651_s1 + $0x50] ss:$12 sps:$4 sm:$0xff]  }
  0xc0   : > { %1431 = vrot.lane.b32.xlu0 %v3130_v60, %s2792_s6 }
  0xc1   : > { %704 = vmatpush2.bf16.msra.mxu0 %v3249_v27  ;;  %836 = vmatpush1.bf16.msra.mxu1 %v3051_v52 }
  0xc2   : > { %v3263_v30 = vpop.permute.xlu0 %557  ;;  %v554_v32 = vpop.permute.xlu1 %553 }
  0xc3   : > { %v3267_v31 = vsel %vm538_vm3, %v556_v28, %v3263_v30  ;;  %1425 = vrot.lane.b32.xlu1 %v3135_v61, %s2792_s6  ;;  %v3272_v33 = vsel %vm538_vm3, %v554_v32, %v556_v28 }
  0xc4   : > { %705 = vmatprep.subr.bf16.mxu0 %v3267_v31  ;;  %1427 = vrot.lane.b32.xlu0 %v3140_v62, %s2792_s6 }
  0xc5   : > { %706 = vmatpush2.bf16.msra.mxu0 %v3272_v33  ;;  %2587 = vmatmul.mubr.msk.bf16.gmra.mxu1 %vm674_vm2, %v3261_v29 }
  0xc6   : > { %v3280_v35 = vpop.permute.xlu0 %395  ;;  %812 = vmatprep.mubr.bf16.mxu1 %v4654_v42  ;;  %v533_v37 = vpop.permute.xlu1 %532 }
  0xc7   : > { %837 = vmatprep.subr.bf16.mxu1 %v3280_v35  ;;  %v3287_v0 = vsel %vm397_vm0, %v3157_v4, %v3280_v35  ;;  %1423 = vrot.lane.b32.xlu1 %v3145_v63, %s2792_s6 }
  0xc8   : > { %838 = vmatpush1.bf16.msra.mxu1 %v3287_v0  ;;  %1403 = vrot.lane.b32.xlu0 %v2957_v38, %s2792_s6 }
  0xca   : > { %v3299_v5 = vpop.permute.xlu0 %534  ;;  %v531_v9 = vpop.permute.xlu1 %530 }
  0xcb   : > { %v3303_v4 = vsel %vm538_vm3, %v533_v37, %v3299_v5  ;;  %1405 = vrot.lane.b32.xlu1 %v3042_v51, %s2792_s6  ;;  %v3309_v12 = vsel %vm538_vm3, %v531_v9, %v533_v37 }
  0xcc   : > { %707 = vmatprep.subr.bf16.mxu0 %v3303_v4  ;;  %4741 = vst [vmem:[#allocation14_spill] sm:$0xff] %v3309_v12  ;;  %1401 = vrot.lane.b32.xlu0 %v2962_v39, %s2792_s6 }
  0xcd   : > { %708 = vmatpush2.bf16.msra.mxu0 %v3309_v12  ;;  %2588 = vmatmul.mubr.msk.bf16.gmra.mxu1 %vm674_vm2, %v3297_v1 }
  0xce   : > { %v3316_v15 = vpop.permute.xlu0 %387  ;;  %822 = vmatprep.mubr.bf16.mxu1 %v4654_v42  ;;  %v525_v17 = vpop.permute.xlu1 %524 }
  0xcf   : > { %839 = vmatprep.subr.bf16.mxu1 %v3316_v15  ;;  %v3323_v51 = vsel %vm397_vm0, %v3172_v8, %v3316_v15  ;;  %1395 = vrot.lane.b32.xlu1 %v2966_v40, %s2792_s6 }
  0xd0   : > { %840 = vmatpush1.bf16.msra.mxu1 %v3323_v51  ;;  %1397 = vrot.lane.b32.xlu0 %v3051_v52, %s2792_s6 }
  0xd1   : > { %841 = vmatprep.subr.bf16.mxu1 %v3063_v54 }
  0xd2   : > { %v3331_v20 = vpop.permute.xlu0 %526  ;;  %v523_v26 = vpop.permute.xlu1 %522 }
  0xd3   : > { %v3340_v8 = vsel %vm538_vm3, %v525_v17, %v3331_v20  ;;  %1393 = vrot.lane.b32.xlu1 %v2975_v41, %s2792_s6  ;;  %v3347_v52 = vsel %vm538_vm3, %v523_v26, %v525_v17 }
  0xd4   : > { %4742 = vst [vmem:[#allocation15_spill] sm:$0xff] %v3340_v8  ;;  %709 = vmatprep.subr.bf16.mxu0 %v3340_v8  ;;  %842 = vmatpush1.bf16.msra.mxu1 %v2989_v44  ;;  %4743 = vst [vmem:[#allocation16_spill] sm:$0xff] %v3347_v52 }
  0xd5   : > { %710 = vmatpush2.bf16.msra.mxu0 %v3347_v52  ;;  %843 = vmatprep.subr.bf16.mxu1 %v3069_v55 }
  0xd6   : > { %v503_v28 = vpop.permute.xlu0 %502  ;;  %1437 = vrot.lane.b32.xlu0 %v3150_v2, %s2792_s6  ;;  %2589 = vmatmul.mubr.msk.bf16.gmra.mxu1 %vm674_vm2, %v3336_v23  ;;  %v3355_v32 = vpop.permute.xlu1 %504 }
  0xd7   : > { %1429 = vrot.lane.b32.xlu1 %v3155_v3, %s2792_s6  ;;  %865 = vmatprep.mubr.bf16.mxu1 %v3058_v53  ;;  %v3362_v37 = vsel %vm397_vm0, %v503_v28, %v3355_v32 }
  0xd8   : > { %844 = vmatpush1.bf16.msra.mxu1 %v3008_v47  ;;  %711 = vmatprep.subr.bf16.mxu0 %v3362_v37 }
  0xd9   : > { %845 = vmatprep.subr.bf16.mxu1 %v3018_v49 }
  0xda   : > { %v501_v9 = vpop.permute.xlu0 %500  ;;  %1407 = vrot.lane.b32.xlu0 %v3078_v56, %s2792_s6  ;;  %v495_v26 = vpop.permute.xlu1 %494 }
  0xdb   : > { %v3370_v17 = vsel %vm397_vm0, %v501_v9, %v503_v28  ;;  %1399 = vrot.lane.b32.xlu1 %v3083_v57, %s2792_s6 }
  0xdc   : > { %712 = vmatpush2.bf16.msra.mxu0 %v3370_v17  ;;  %846 = vmatpush1.bf16.msra.mxu1 %v2937_v34 }
  0xdd   : > { %847 = vmatprep.subr.bf16.mxu1 %v3029_v50 }
  0xde   : > { %v3377_v42 = vpop.permute.xlu0 %496  ;;  %1467 = vrot.lane.b32.xlu0 %v3078_v56, %s2790_s5  ;;  %v493_v28 = vpop.permute.xlu1 %492  ;;  %v3436_v56 = vld [vmem:[%s4651_s1 + $0x1c] ss:$12 sps:$4 sm:$0xff]  }
  0xdf   : > { %v3383_v49 = vsel %vm397_vm0, %v495_v26, %v3377_v42  ;;  %1459 = vrot.lane.b32.xlu1 %v3083_v57, %s2790_s5  ;;  %v3388_v9 = vsel %vm397_vm0, %v493_v28, %v495_v26  ;;  %v3429_v57 = vld [vmem:[%s4651_s1] ss:$12 sps:$4 sm:$0xff]  }
  0xe0   : > { %713 = vmatprep.subr.bf16.mxu0 %v3383_v49  ;;  %848 = vmatpush1.bf16.msra.mxu1 %v2947_v36 }
  0xe1   : > { %714 = vmatpush2.bf16.msra.mxu0 %v3388_v9 }
  0xe2   : > { %v3393_v34 = vpop.permute.xlu0 %567  ;;  %715 = vmatprep.subr.bf16.mxu0 %v3120_v58  ;;  %1817 = vrot.lane.b32.xlu0 %v3120_v58, %s2790_s5  ;;  %v3398_v50 = vpop.permute.xlu1 %559 }
  0xe3   : > { %4744 = vst [vmem:[#allocation17_spill] sm:$0xff] %v3393_v34  ;;  %4745 = vst [vmem:[#allocation18_spill] sm:$0xff] %v3398_v50  ;;  %849 = vmatprep.subr.bf16.mxu1 %v3393_v34  ;;  %v3404_v26 = vsel %vm538_vm3, %v3232_v24, %v3393_v34  ;;  %1819 = vrot.lane.b32.xlu1 %v3125_v59, %s2790_s5  ;;  %v3421_v24 = vsel %vm538_vm3, %v3263_v30, %v3398_v50  ;;  %v4760_v34 = vmov 0  }
  0xe4   : > { %4746 = vst [vmem:[#allocation19_spill] sm:$0xff] %v3404_v26  ;;  %850 = vmatpush2.bf16.msra.mxu1 %v3404_v26  ;;  %4749 = vst [vmem:[#allocation22_spill] sm:$0xff] %v3421_v24 }
  0xe5   : > { %716 = vmatpush2.bf16.msra.mxu0 %v3130_v60  ;;  %851 = vmatprep.subr.bf16.mxu1 %v3398_v50 }
  0xe6   : > { %v3411_v36 = vpop.permute.xlu0 %536  ;;  %717 = vmatprep.subr.bf16.mxu0 %v3135_v61  ;;  %1815 = vrot.lane.b32.xlu0 %v3130_v60, %s2790_s5  ;;  %v3416_v28 = vpop.permute.xlu1 %528 }
  0xe7   : > { %4747 = vst [vmem:[#allocation20_spill] sm:$0xff] %v3411_v36  ;;  %4748 = vst [vmem:[#allocation21_spill] sm:$0xff] %v3416_v28  ;;  %1809 = vrot.lane.b32.xlu1 %v3135_v61, %s2790_s5  ;;  %v3447_v40 = vsel %vm538_vm3, %v3299_v5, %v3411_v36  ;;  %v3465_v5 = vsel %vm538_vm3, %v3331_v20, %v3416_v28 }
  0xe8   : > { %852 = vmatpush2.bf16.msra.mxu1 %v3421_v24  ;;  %4752 = vst [vmem:[#allocation25_spill] sm:$0xff] %v3447_v40  ;;  %4754 = vst [vmem:[#allocation27_spill] sm:$0xff] %v3465_v5 }
  0xe9   : > { %718 = vmatpush2.bf16.msra.mxu0 %v3145_v63  ;;  %853 = vmatprep.subr.bf16.mxu1 %v3411_v36  ;;  %v3479_v36 = vld [vmem:[%s4651_s1 + $0x18] ss:$12 sps:$4 sm:$0xff]  }
  0xea   : > { %v3438_v30 = vpop.permute.xlu0 %506  ;;  %1811 = vrot.lane.b32.xlu0 %v3140_v62, %s2790_s5  ;;  %v3442_v41 = vpop.permute.xlu1 %498 }
  0xeb   : > { %4750 = vst [vmem:[#allocation23_spill] sm:$0xff] %v3438_v30  ;;  %4751 = vst [vmem:[#allocation24_spill] sm:$0xff] %v3442_v41  ;;  %1807 = vrot.lane.b32.xlu1 %v3145_v63, %s2790_s5 }
  0xec   : > { %720 = vmatmul.mubr.bf16.vlgmr.msra.gmra.mxu0 %v3429_v57  ;;  %854 = vmatpush2.bf16.msra.mxu1 %v3447_v40 }
  0xed   : > { %855 = vmatprep.subr.bf16.mxu1 %v3416_v28  ;;  %729 = vmatprep.mubr.bf16.mxu0 %v3436_v56 }
  0xee   : > { %v3455_v39 = vpop.permute.xlu0 %597  ;;  %1821 = vrot.lane.b32.xlu0 %v3150_v2, %s2790_s5  ;;  %v3459_v38 = vpop.permute.xlu1 %589 }
  0xef   : > { %4753 = vst [vmem:[#allocation26_spill] sm:$0xff] %v3459_v38  ;;  %918 = vmatprep.subr.bf16.mxu0 %v3455_v39  ;;  %v3470_v40 = vsel %vm599_vm1, %v3188_v13, %v3455_v39  ;;  %1813 = vrot.lane.b32.xlu1 %v3155_v3, %s2790_s5  ;;  %v3486_v13 = vld [vmem:[%s4651_s1 + $0x34] ss:$12 sps:$4 sm:$0xff]   ;;  %v3500_v52 = vsel %vm599_vm1, %v3208_v18, %v3459_v38  ;;  %v3514_v18 = vld [vmem:[%s4651_s1 + $0x30] ss:$12 sps:$4 sm:$0xff]  }
  0xf0   : > { %4755 = vst [vmem:[#allocation28_spill] sm:$0xff] %v3470_v40  ;;  %856 = vmatpush2.bf16.msra.mxu1 %v3465_v5  ;;  %919 = vmatpush1.bf16.msra.mxu0 %v3470_v40  ;;  %v3493_v5 = vsel %vm397_vm0, %v3355_v32, %v3438_v30  ;;  %4757 = vst [vmem:[#allocation30_spill] sm:$0xff] %v3500_v52  ;;  %v3508_v32 = vsel %vm397_vm0, %v3377_v42, %v3442_v41 }
  0xf1   : > { %857 = vmatprep.subr.bf16.mxu1 %v3438_v30  ;;  %920 = vmatprep.subr.bf16.mxu0 %v3459_v38  ;;  %4756 = vst [vmem:[#allocation29_spill] sm:$0xff] %v3493_v5  ;;  %4758 = vst [vmem:[#allocation31_spill] sm:$0xff] %v3508_v32 }
  0xf2   : > { %v990_v20 = vpop.permute.xlu0 %989  ;;  %v3488_v28 = vpop.permute.xlu1 %991 }
  0xf4   : > { %730 = vmatmul.mubr.bf16.gmra.mxu0 %v3479_v36  ;;  %858 = vmatpush2.bf16.msra.mxu1 %v3493_v5  ;;  %v3520_v5 = vld [vmem:[%s4651_s1 + $0x4c] ss:$12 sps:$4 sm:$0xff]  }
  0xf5   : > { %921 = vmatpush1.bf16.msra.mxu0 %v3500_v52  ;;  %859 = vmatprep.subr.bf16.mxu1 %v3442_v41  ;;  %v3534_v41 = vld [vmem:[%s4651_s1 + $0x48] ss:$12 sps:$4 sm:$0xff]   ;;  %v999_v52 = vsel %vm397_vm0, %v990_v20, %v3488_v28 }
  0xf6   : > { %v988_v8 = vpop.permute.xlu0 %987  ;;  %739 = vmatprep.mubr.bf16.mxu0 %v3486_v13  ;;  %v982_v12 = vpop.permute.xlu1 %981 }
  0xf8   : > { %860 = vmatpush2.bf16.msra.mxu1 %v3508_v32 }
  0xf9   : > { %861 = vmatprep.subr.bf16.mxu1 %v3150_v2 }
  0xfa   : > { %v3522_v30 = vpop.permute.xlu0 %983  ;;  %v980_v24 = vpop.permute.xlu1 %979 }
  0xfc   : > { %740 = vmatmul.mubr.bf16.gmra.mxu0 %v3514_v18  ;;  %862 = vmatpush2.bf16.msra.mxu1 %v3125_v59 }
  0xfd   : > { %863 = vmatprep.subr.bf16.mxu1 %v3155_v3  ;;  %749 = vmatprep.mubr.bf16.mxu0 %v3520_v5 }
  0xfe   : > { %v1050_v42 = vpop.permute.xlu0 %1049  ;;  %v3528_v32 = vpop.permute.xlu1 %1051 }
  0xff   : > { %v3538_v50 = vsel %vm599_vm1, %v1050_v42, %v3528_v32 }
 0x100   : > { %864 = vmatpush2.bf16.msra.mxu1 %v3140_v62  ;;  %4759 = vst [vmem:[#allocation32_spill] sm:$0xff] %v3538_v50  ;;  %1154 = vmatprep.subr.bf16.mxu0 %v3538_v50  ;;  %v998_v50 = vsel %vm397_vm0, %v988_v8, %v990_v20  ;;  %v995_v8 = vsel %vm397_vm0, %v980_v24, %v982_v12 }
 0x101   : > { %1069 = vmatprep.subr.bf16.mxu1 %v3120_v58 }
 0x102   : > { %v1048_v26 = vpop.permute.xlu0 %1047  ;;  %v1042_v38 = vpop.permute.xlu1 %1041 }
 0x103   : > { %866 = vmatmul.mubr.bf16.vlgmr.msra.gmra.mxu1 %v3429_v57  ;;  %v3553_v58 = vsel %vm599_vm1, %v1048_v26, %v1050_v42 }
 0x104   : > { %750 = vmatmul.mubr.bf16.gmra.mxu0 %v3534_v41  ;;  %1070 = vmatpush1.bf16.msra.mxu1 %v3130_v60  ;;  %4761 = vst [vmem:[#allocation33_spill] sm:$0xff] %v3553_v58  ;;  %v996_v60 = vsel %vm397_vm0, %v982_v12, %v3522_v30 }
 0x105   : > { %1071 = vmatprep.subr.bf16.mxu1 %v3135_v61  ;;  %938 = vmatprep.mubr.bf16.mxu0 %v4760_v34 }
 0x106   : > { %875 = vmatprep.mubr.bf16.mxu1 %v3436_v56  ;;  %v3557_v61 = vpop.permute.xlu0 %1043 }
 0x108   : > { %1072 = vmatpush1.bf16.msra.mxu1 %v3145_v63  ;;  %v3564_v63 = vsel %vm599_vm1, %v1042_v38, %v3557_v61 }
 0x109   : > { %1073 = vmatprep.subr.bf16.mxu1 %v999_v52  ;;  %4762 = vst [vmem:[#allocation34_spill] sm:$0xff] %v3564_v63  ;;  %v1040_v52 = vpop.permute.xlu1 %1039 }
 0x10a   : > { %v3569_v26 = vsel %vm599_vm1, %v1040_v52, %v1042_v38  ;;  %v994_v38 = vpop.permute.xlu0 %993 }
 0x10b   : > { %876 = vmatmul.mubr.bf16.gmra.mxu1 %v3479_v36  ;;  %4763 = vst [vmem:[#allocation35_spill] sm:$0xff] %v3569_v26  ;;  %v1000_v12 = vsel %vm397_vm0, %v3488_v28, %v994_v38 }
 0x10c   : > { %2590 = vmatmul.mubr.msk.bf16.vlgmr.msra.gmra.mxu0 %vm674_vm2, %v3224_v22  ;;  %1074 = vmatpush1.bf16.msra.mxu1 %v998_v50 }
 0x10d   : > { %1155 = vmatpush1.bf16.msra.mxu0 %v3553_v58  ;;  %1075 = vmatprep.subr.bf16.mxu1 %v996_v60  ;;  %v986_v60 = vpop.permute.xlu1 %985 }
 0x10e   : > { %948 = vmatprep.mubr.bf16.mxu0 %v4760_v34  ;;  %885 = vmatprep.mubr.bf16.mxu1 %v3486_v13  ;;  %v997_v20 = vsel %vm397_vm0, %v3522_v30, %v986_v60 }
 0x10f   : > { %1156 = vmatprep.subr.bf16.mxu0 %v3564_v63  ;;  %v4791_v63 = vld [vmem:[#allocation13_spill] sm:$0xff] }
 0x110   : > { %1076 = vmatpush1.bf16.msra.mxu1 %v995_v8 }
 0x111   : > { %1077 = vmatprep.subr.bf16.mxu1 %v3161_v6  ;;  %1157 = vmatpush1.bf16.msra.mxu0 %v3569_v26  ;;  %v4790_v26 = vld [vmem:[#allocation12_spill] sm:$0xff] }
 0x112   : > { %1215 = vmatprep.subr.bf16.mxu0 %v3150_v2 }
 0x113   : > { %886 = vmatmul.mubr.bf16.gmra.mxu1 %v3514_v18 }
 0x114   : > { %2591 = vmatmul.mubr.msk.bf16.gmra.mxu0 %vm674_vm2, %v3261_v29  ;;  %1078 = vmatpush1.bf16.msra.mxu1 %v3167_v7 }
 0x115   : > { %1079 = vmatprep.subr.bf16.mxu1 %v3176_v10  ;;  %958 = vmatprep.mubr.bf16.mxu0 %v4760_v34 }
 0x116   : > { %895 = vmatprep.mubr.bf16.mxu1 %v3520_v5 }
 0x118   : > { %1080 = vmatpush1.bf16.msra.mxu1 %v3182_v11 }
 0x119   : > { %1081 = vmatprep.subr.bf16.mxu1 %v2986_v43  ;;  %v1020_v43 = vpop.permute.xlu0 %1019 }
 0x11b   : > { %896 = vmatmul.mubr.bf16.gmra.mxu1 %v3534_v41 }
 0x11c   : > { %2592 = vmatmul.mubr.msk.bf16.gmra.mxu0 %vm674_vm2, %v3297_v1  ;;  %1082 = vmatpush1.bf16.msra.mxu1 %v2998_v45  ;;  %v3600_v45 = vpop.permute.xlu1 %1021 }
 0x11d   : > { %1083 = vmatprep.subr.bf16.mxu1 %v3003_v46  ;;  %968 = vmatprep.mubr.bf16.mxu0 %v4760_v34  ;;  %v1018_v46 = vpop.permute.xlu0 %1017  ;;  %v3612_v6 = vsel %vm397_vm0, %v1020_v43, %v3600_v45 }
 0x11e   : > { %1101 = vmatprep.mubr.bf16.mxu1 %v3058_v53  ;;  %v3617_v7 = vsel %vm397_vm0, %v1018_v46, %v1020_v43  ;;  %v4778_v43 = vld [vmem:[#allocation23_spill] sm:$0xff] }
 0x120   : > { %1084 = vmatpush1.bf16.msra.mxu1 %v3013_v48  ;;  %v1012_v48 = vpop.permute.xlu1 %1011 }
 0x121   : > { %1085 = vmatprep.subr.bf16.mxu1 %v3192_v14  ;;  %v3619_v10 = vpop.permute.xlu0 %1013 }
 0x122   : > { %v3625_v11 = vsel %vm397_vm0, %v1012_v48, %v3619_v10 }
 0x124   : > { %2593 = vmatmul.mubr.msk.bf16.gmra.mxu0 %vm674_vm2, %v3336_v23  ;;  %1086 = vmatpush2.bf16.msra.mxu1 %v3202_v16  ;;  %v1010_v50 = vpop.permute.xlu1 %1009 }
 0x125   : > { %1087 = vmatprep.subr.bf16.mxu1 %v3215_v19  ;;  %1174 = vmatprep.mubr.bf16.mxu0 %v4760_v34  ;;  %v3633_v24 = vsel %vm397_vm0, %v1010_v50, %v1012_v48  ;;  %v3641_v28 = vpop.permute.xlu0 %1023  ;;  %v4780_v48 = vld [vmem:[#allocation29_spill] sm:$0xff] }
 0x126   : > { %4764 = vst [vmem:[#allocation36_spill] sm:$0xff] %v3641_v28  ;;  %v3702_v8 = vsel %vm397_vm0, %v3600_v45, %v3641_v28  ;;  %v4779_v45 = vld [vmem:[#allocation14_spill] sm:$0xff] }
 0x128   : > { %1088 = vmatpush2.bf16.msra.mxu1 %v3218_v21  ;;  %v3649_v42 = vpop.permute.xlu1 %1015 }
 0x129   : > { %1089 = vmatprep.subr.bf16.mxu1 %v3242_v25  ;;  %4765 = vst [vmem:[#allocation37_spill] sm:$0xff] %v3649_v42  ;;  %v3653_v30 = vpop.permute.xlu0 %1053 }
 0x12a   : > { %4766 = vst [vmem:[#allocation38_spill] sm:$0xff] %v3653_v30 }
 0x12c   : > { %1090 = vmatpush2.bf16.msra.mxu1 %v3249_v27  ;;  %2594 = vmatmul.mubr.msk.bf16.vlgmr.msra.gmra.mxu0 %vm674_vm2, %v3224_v22 }
 0x12d   : > { %1216 = vmatpush1.bf16.msra.mxu0 %v3125_v59  ;;  %1091 = vmatprep.subr.bf16.mxu1 %v3267_v31 }
 0x12e   : > { %1217 = vmatprep.subr.bf16.mxu0 %v3155_v3  ;;  %1184 = vmatprep.mubr.bf16.mxu0 %v4760_v34 }
 0x130   : > { %1092 = vmatpush2.bf16.msra.mxu1 %v3272_v33 }
 0x131   : > { %1218 = vmatpush1.bf16.msra.mxu0 %v3140_v62  ;;  %1093 = vmatprep.subr.bf16.mxu1 %v3612_v6 }
 0x132   : > { %1219 = vmatprep.subr.bf16.mxu0 %v994_v38  ;;  %v3710_v38 = vsel %vm397_vm0, %v3619_v10, %v3649_v42  ;;  %v4782_v10 = vld [vmem:[#allocation24_spill] sm:$0xff] }
 0x134   : > { %1094 = vmatpush2.bf16.msra.mxu1 %v3617_v7  ;;  %2595 = vmatmul.mubr.msk.bf16.gmra.mxu0 %vm674_vm2, %v3261_v29 }
 0x135   : > { %1220 = vmatpush1.bf16.msra.mxu0 %v1000_v12  ;;  %1095 = vmatprep.subr.bf16.mxu1 %v3625_v11  ;;  %v4781_v12 = vld [vmem:[#allocation15_spill] sm:$0xff] }
 0x136   : > { %1221 = vmatprep.subr.bf16.mxu0 %v986_v60  ;;  %1194 = vmatprep.mubr.bf16.mxu0 %v4760_v34 }
 0x138   : > { %1096 = vmatpush2.bf16.msra.mxu1 %v3633_v24 }
 0x139   : > { %1222 = vmatpush1.bf16.msra.mxu0 %v997_v20  ;;  %1097 = vmatprep.subr.bf16.mxu1 %v3362_v37 }
 0x13a   : > { %1223 = vmatprep.subr.bf16.mxu0 %v3280_v35  ;;  %v3663_v35 = vsel %vm599_vm1, %v3528_v32, %v3653_v30 }
 0x13b   : > { %4767 = vst [vmem:[#allocation39_spill] sm:$0xff] %v3663_v35 }
 0x13c   : > { %1098 = vmatpush2.bf16.msra.mxu1 %v3370_v17  ;;  %2596 = vmatmul.mubr.msk.bf16.gmra.mxu0 %vm674_vm2, %v3297_v1 }
 0x13d   : > { %1224 = vmatpush1.bf16.msra.mxu0 %v3287_v0  ;;  %1099 = vmatprep.subr.bf16.mxu1 %v3383_v49  ;;  %v3665_v0 = vpop.permute.xlu1 %1045 }
 0x13e   : > { %1225 = vmatprep.subr.bf16.mxu0 %v3316_v15  ;;  %1204 = vmatprep.mubr.bf16.mxu0 %v4760_v34  ;;  %4768 = vst [vmem:[#allocation40_spill] sm:$0xff] %v3665_v0  ;;  %v1464_v15 = vpop.permute.xlu0 %1463 }
 0x140   : > { %1100 = vmatpush2.bf16.msra.mxu1 %v3388_v9 }
 0x141   : > { %1226 = vmatpush1.bf16.msra.mxu0 %v3323_v51  ;;  %1300 = vmatprep.subr.bf16.mxu1 %v3653_v30  ;;  %v4775_v51 = vld [vmem:[#allocation22_spill] sm:$0xff]  ;;  %v3697_v32 = vpop.permute.xlu1 %1465 }
 0x142   : > { %1227 = vmatprep.subr.bf16.mxu0 %v3063_v54  ;;  %v3677_v54 = vsel %vm599_vm1, %v3557_v61, %v3665_v0  ;;  %v4772_v61 = vld [vmem:[#allocation17_spill] sm:$0xff]  ;;  %v1462_v52 = vpop.permute.xlu0 %1461  ;;  %v3725_v50 = vsel %vm599_vm1, %v1464_v15, %v3697_v32  ;;  %v4787_v30 = vld [vmem:[#allocation10_spill] sm:$0xff] }
 0x143   : > { %1102 = vmatmul.mubr.bf16.vlgmr.msra.gmra.mxu1 %v3429_v57  ;;  %4769 = vst [vmem:[#allocation41_spill] sm:$0xff] %v3677_v54  ;;  %4776 = vst [vmem:[#allocation17_spill] sm:$0xff] %v3702_v8 }
 0x144   : > { %1301 = vmatpush1.bf16.msra.mxu1 %v3663_v35  ;;  %1111 = vmatprep.mubr.bf16.mxu1 %v3436_v56 }
 0x145   : > { %1228 = vmatpush1.bf16.msra.mxu0 %v2989_v44  ;;  %1302 = vmatprep.subr.bf16.mxu1 %v3665_v0  ;;  %v4770_v44 = vld [vmem:[#allocation26_spill] sm:$0xff]  ;;  %v1456_v60 = vpop.permute.xlu1 %1455  ;;  %v4784_v0 = vld [vmem:[#allocation31_spill] sm:$0xff] }
 0x146   : > { %1229 = vmatprep.subr.bf16.mxu0 %v3069_v55  ;;  %2597 = vmatmul.mubr.msk.bf16.gmra.mxu0 %vm674_vm2, %v3336_v23  ;;  %v4771_v55 = vld [vmem:[#allocation30_spill] sm:$0xff]  ;;  %v3718_v46 = vpop.permute.xlu0 %1457 }
 0x147   : > { %1247 = vmatprep.mubr.bf16.mxu0 %v3058_v53 }
 0x148   : > { %1303 = vmatpush1.bf16.msra.mxu1 %v3677_v54  ;;  %v4783_v54 = vld [vmem:[#allocation16_spill] sm:$0xff] }
 0x149   : > { %1230 = vmatpush1.bf16.msra.mxu0 %v3008_v47  ;;  %1483 = vmatprep.subr.bf16.mxu1 %v3303_v4  ;;  %v4773_v47 = vld [vmem:[#allocation19_spill] sm:$0xff]  ;;  %v4774_v4 = vld [vmem:[#allocation18_spill] sm:$0xff]  ;;  %v1454_v20 = vpop.permute.xlu1 %1453 }
 0x14a   : > { %1231 = vmatprep.subr.bf16.mxu0 %v3455_v39  ;;  %4777 = vst [vmem:[#allocation19_spill] sm:$0xff] %v3710_v38  ;;  %v1434_v35 = vpop.permute.xlu0 %1433 }
 0x14b   : > { %1112 = vmatmul.mubr.bf16.gmra.mxu1 %v3479_v36 }
 0x14c   : > { %1121 = vmatprep.mubr.bf16.mxu1 %v3486_v13 }
 0x14d   : > { %1232 = vmatpush2.bf16.msra.mxu0 %v3470_v40 }
 0x14e   : > { %1233 = vmatprep.subr.bf16.mxu0 %v4770_v44 }
 0x151   : > { %1234 = vmatpush2.bf16.msra.mxu0 %v4771_v55 }
 0x152   : > { %1235 = vmatprep.subr.bf16.mxu0 %v4772_v61 }
 0x153   : > { %1122 = vmatmul.mubr.bf16.gmra.mxu1 %v3514_v18 }
 0x154   : > { %1131 = vmatprep.mubr.bf16.mxu1 %v3520_v5 }
 0x155   : > { %1236 = vmatpush2.bf16.msra.mxu0 %v4773_v47 }
 0x156   : > { %1237 = vmatprep.subr.bf16.mxu0 %v4774_v4 }
 0x159   : > { %1238 = vmatpush2.bf16.msra.mxu0 %v4775_v51 }
 0x15a   : > { %1239 = vmatprep.subr.bf16.mxu0 %v3641_v28 }
 0x15b   : > { %1132 = vmatmul.mubr.bf16.gmra.mxu1 %v3534_v41 }
 0x15c   : > { %1320 = vmatprep.mubr.bf16.mxu1 %v4760_v34 }
 0x15d   : > { %1240 = vmatpush2.bf16.msra.mxu0 %v3702_v8  ;;  %v4793_v8 = vld [vmem:[#allocation5_spill] sm:$0xff] }
 0x15e   : > { %1241 = vmatprep.subr.bf16.mxu0 %v3649_v42 }
 0x161   : > { %1242 = vmatpush2.bf16.msra.mxu0 %v3710_v38  ;;  %v4788_v38 = vld [vmem:[#allocation20_spill] sm:$0xff] }
 0x162   : > { %1243 = vmatprep.subr.bf16.mxu0 %v4778_v43 }
 0x163   : > { %2598 = vmatmul.mubr.msk.bf16.vlgmr.msra.gmra.mxu1 %vm674_vm2, %v3224_v22 }
 0x164   : > { %1484 = vmatpush1.bf16.msra.mxu1 %v4779_v45  ;;  %1330 = vmatprep.mubr.bf16.mxu1 %v4760_v34  ;;  %v3731_v45 = vsel %vm599_vm1, %v1462_v52, %v1464_v15  ;;  %v3747_v15 = vpop.permute.xlu1 %1435  ;;  %v1432_v52 = vpop.permute.xlu0 %1431 }
 0x165   : > { %1244 = vmatpush2.bf16.msra.mxu0 %v4780_v48  ;;  %1485 = vmatprep.subr.bf16.mxu1 %v4781_v12  ;;  %v3736_v12 = vsel %vm599_vm1, %v1456_v60, %v3718_v46  ;;  %v3775_v58 = vsel %vm538_vm3, %v1434_v35, %v3747_v15  ;;  %v3782_v28 = vsel %vm538_vm3, %v1432_v52, %v1434_v35 }
 0x166   : > { %1245 = vmatprep.subr.bf16.mxu0 %v4782_v10  ;;  %4785 = vst [vmem:[#allocation18_spill] sm:$0xff] %v3736_v12  ;;  %4795 = vst [vmem:[#allocation23_spill] sm:$0xff] %v3775_v58 }
 0x167   : > { %4797 = vst [vmem:[#allocation14_spill] sm:$0xff] %v3782_v28 }
 0x168   : > { %1486 = vmatpush1.bf16.msra.mxu1 %v4783_v54  ;;  %v3745_v54 = vsel %vm599_vm1, %v1454_v20, %v1456_v60  ;;  %v1426_v60 = vpop.permute.xlu1 %1425  ;;  %v4789_v20 = vld [vmem:[#allocation11_spill] sm:$0xff]  ;;  %v3763_v42 = vpop.permute.xlu0 %1427 }
 0x169   : > { %1246 = vmatpush2.bf16.msra.mxu0 %v4784_v0  ;;  %1487 = vmatprep.subr.bf16.mxu1 %v3362_v37  ;;  %4786 = vst [vmem:[#allocation22_spill] sm:$0xff] %v3745_v54 }
 0x16a   : > { %1568 = vmatprep.subr.bf16.mxu0 %v3725_v50 }
 0x16b   : > { %2599 = vmatmul.mubr.msk.bf16.gmra.mxu1 %vm674_vm2, %v3261_v29 }
 0x16c   : > { %1248 = vmatmul.mubr.bf16.vlgmr.msra.gmra.mxu0 %v3429_v57  ;;  %1488 = vmatpush1.bf16.msra.mxu1 %v3370_v17 }
 0x16d   : > { %1489 = vmatprep.subr.bf16.mxu1 %v3383_v49  ;;  %1569 = vmatpush1.bf16.msra.mxu0 %v3731_v45 }
 0x16e   : > { %1570 = vmatprep.subr.bf16.mxu0 %v3736_v12  ;;  %1257 = vmatprep.mubr.bf16.mxu0 %v3436_v56  ;;  %v4800_v12 = vld [vmem:[#allocation25_spill] sm:$0xff] }
 0x16f   : > { %1340 = vmatprep.mubr.bf16.mxu1 %v4760_v34 }
 0x170   : > { %1490 = vmatpush1.bf16.msra.mxu1 %v3388_v9 }
 0x171   : > { %1571 = vmatpush1.bf16.msra.mxu0 %v3745_v54  ;;  %1491 = vmatprep.subr.bf16.mxu1 %v4787_v30  ;;  %v4792_v30 = vld [vmem:[#allocation4_spill] sm:$0xff] }
 0x172   : > { %1629 = vmatprep.subr.bf16.mxu0 %v4788_v38  ;;  %v1424_v38 = vpop.permute.xlu1 %1423 }
 0x173   : > { %2600 = vmatmul.mubr.msk.bf16.gmra.mxu1 %vm674_vm2, %v3297_v1 }
 0x174   : > { %1258 = vmatmul.mubr.bf16.gmra.mxu0 %v3479_v36  ;;  %1492 = vmatpush1.bf16.msra.mxu1 %v4789_v20  ;;  %v1404_v20 = vpop.permute.xlu0 %1403 }
 0x175   : > { %1493 = vmatprep.subr.bf16.mxu1 %v4790_v26  ;;  %1267 = vmatprep.mubr.bf16.mxu0 %v3486_v13  ;;  %v4794_v26 = vld [vmem:[#allocation6_spill] sm:$0xff] }
 0x176   : > { %1350 = vmatprep.mubr.bf16.mxu1 %v4760_v34 }
 0x178   : > { %1494 = vmatpush1.bf16.msra.mxu1 %v4791_v63  ;;  %v3778_v63 = vpop.permute.xlu1 %1405 }
 0x179   : > { %1495 = vmatprep.subr.bf16.mxu1 %v4792_v30  ;;  %v4796_v30 = vld [vmem:[#allocation7_spill] sm:$0xff]  ;;  %v1413_v52 = vsel %vm538_vm3, %v1404_v20, %v3778_v63 }
 0x17b   : > { %2601 = vmatmul.mubr.msk.bf16.gmra.mxu1 %vm674_vm2, %v3336_v23 }
 0x17c   : > { %1268 = vmatmul.mubr.bf16.gmra.mxu0 %v3514_v18  ;;  %1496 = vmatpush1.bf16.msra.mxu1 %v4793_v8  ;;  %v3787_v8 = vsel %vm538_vm3, %v1426_v60, %v3763_v42  ;;  %v1396_v35 = vpop.permute.xlu1 %1395 }
 0x17d   : > { %1497 = vmatprep.subr.bf16.mxu1 %v4794_v26  ;;  %1277 = vmatprep.mubr.bf16.mxu0 %v3520_v5  ;;  %4798 = vst [vmem:[#allocation29_spill] sm:$0xff] %v3787_v8  ;;  %v1402_v26 = vpop.permute.xlu0 %1401 }
 0x17e   : > { %1515 = vmatprep.mubr.bf16.mxu1 %v3058_v53  ;;  %v3792_v53 = vsel %vm538_vm3, %v1424_v38, %v1426_v60 }
 0x17f   : > { %4799 = vst [vmem:[#allocation15_spill] sm:$0xff] %v3792_v53 }
 0x180   : > { %1498 = vmatpush1.bf16.msra.mxu1 %v4796_v30  ;;  %v3795_v30 = vpop.f32.mrf.mxu1  ;;  %v1394_v38 = vpop.permute.xlu1 %1393 }
 0x181   : > { %1499 = vmatprep.subr.bf16.mxu1 %v3775_v58  ;;  %v1412_v58 = vsel %vm538_vm3, %v1402_v26, %v1404_v20  ;;  %v3802_v54 = vpop.permute.xlu0 %1397  ;;  %v4801_v20 = vld [vmem:[#allocation21_spill] sm:$0xff] }
 0x182   : > { %v1410_v60 = vsel %vm538_vm3, %v1396_v35, %v3802_v54 }
 0x184   : > { %1278 = vmatmul.mubr.bf16.gmra.mxu0 %v3534_v41  ;;  %1500 = vmatpush2.bf16.msra.mxu1 %v3782_v28  ;;  %v3804_v28 = vpop.f32.mrf.mxu1 }
 0x185   : > { %1501 = vmatprep.subr.bf16.mxu1 %v3787_v8  ;;  %1588 = vmatprep.mubr.bf16.mxu0 %v4760_v34  ;;  %v1409_v8 = vsel %vm538_vm3, %v1394_v38, %v1396_v35  ;;  %v3823_v35 = vpop.permute.xlu0 %1437 }
 0x186   : > { %4804 = vst [vmem:[#allocation16_spill] sm:$0xff] %v3823_v35 }
 0x188   : > { %1502 = vmatpush2.bf16.msra.mxu1 %v3792_v53  ;;  %v3812_v53 = vpop.f32.mrf.mxu1 }
 0x189   : > { %1503 = vmatprep.subr.bf16.mxu1 %v1413_v52  ;;  %v4803_v52 = vld [vmem:[#allocation27_spill] sm:$0xff] }
 0x18a   : > { %v3816_v26 = vpop.f32.mrf.mxu1 }
 0x18b   : > { %4802 = vst [vmem:[#allocation24_spill] sm:$0xff] %v3816_v26  ;;  %v4807_v26 = vld [vmem:[#allocation8_spill] sm:$0xff] }
 0x18c   : > { %1504 = vmatpush2.bf16.msra.mxu1 %v1412_v58  ;;  %2602 = vmatmul.mubr.msk.bf16.vlgmr.msra.gmra.mxu0 %vm674_vm2, %v3224_v22  ;;  %v3821_v58 = vpop.f32.mrf.mxu1 }
 0x18d   : > { %1630 = vmatpush1.bf16.msra.mxu0 %v4800_v12  ;;  %1505 = vmatprep.subr.bf16.mxu1 %v1410_v60  ;;  %v1408_v60 = vpop.permute.xlu0 %1407 }
 0x18e   : > { %1631 = vmatprep.subr.bf16.mxu0 %v4801_v20  ;;  %1598 = vmatprep.mubr.bf16.mxu0 %v4760_v34  ;;  %v3832_v12 = vpop.f32.mrf.mxu1 }
 0x190   : > { %1506 = vmatpush2.bf16.msra.mxu1 %v1409_v8  ;;  %v3834_v8 = vpop.permute.xlu1 %1429  ;;  %v3840_v38 = vpop.f32.mrf.mxu1 }
 0x191   : > { %1632 = vmatpush1.bf16.msra.mxu0 %v4803_v52  ;;  %1507 = vmatprep.subr.bf16.mxu1 %v3192_v14 }
 0x192   : > { %1633 = vmatprep.subr.bf16.mxu0 %v4778_v43  ;;  %v3849_v52 = vpop.f32.mrf.mxu1 }
 0x193   : > { %4805 = vst [vmem:[#allocation31_spill] sm:$0xff] %v3849_v52 }
 0x194   : > { %1508 = vmatpush2.bf16.msra.mxu1 %v3202_v16  ;;  %2603 = vmatmul.mubr.msk.bf16.gmra.mxu0 %vm674_vm2, %v3261_v29  ;;  %v1400_v20 = vpop.permute.xlu1 %1399 }
 0x195   : > { %1634 = vmatpush1.bf16.msra.mxu0 %v4780_v48  ;;  %1509 = vmatprep.subr.bf16.mxu1 %v3215_v19 }
 0x196   : > { %1635 = vmatprep.subr.bf16.mxu0 %v4782_v10  ;;  %1608 = vmatprep.mubr.bf16.mxu0 %v4760_v34 }
 0x198   : > { %1510 = vmatpush2.bf16.msra.mxu1 %v3218_v21  ;;  %v3863_v52 = vpop.permute.xlu1 %1459 }
 0x199   : > { %1636 = vmatpush1.bf16.msra.mxu0 %v4784_v0  ;;  %1511 = vmatprep.subr.bf16.mxu1 %v3242_v25  ;;  %4809 = vst [vmem:[#allocation11_spill] sm:$0xff] %v3863_v52 }
 0x19a   : > { %1637 = vmatprep.subr.bf16.mxu0 %v3150_v2  ;;  %v3851_v2 = vpop.permute.xlu0 %1467 }
 0x19b   : > { %4806 = vst [vmem:[#allocation10_spill] sm:$0xff] %v3851_v2 }
 0x19c   : > { %1512 = vmatpush2.bf16.msra.mxu1 %v3249_v27  ;;  %2604 = vmatmul.mubr.msk.bf16.gmra.mxu0 %vm674_vm2, %v3297_v1 }
 0x19d   : > { %1638 = vmatpush1.bf16.msra.mxu0 %v3125_v59  ;;  %1513 = vmatprep.subr.bf16.mxu1 %v3267_v31  ;;  %v3861_v59 = vsel %vm599_vm1, %v3697_v32, %v3851_v2  ;;  %v3875_v32 = vsel %vm599_vm1, %v3718_v46, %v3863_v52  ;;  %v3891_v46 = vsel %vm538_vm3, %v3747_v15, %v3823_v35 }
 0x19e   : > { %1639 = vmatprep.subr.bf16.mxu0 %v3155_v3  ;;  %1618 = vmatprep.mubr.bf16.mxu0 %v4760_v34  ;;  %4808 = vst [vmem:[#allocation20_spill] sm:$0xff] %v3861_v59  ;;  %v814_v3 = vpop.f32.mrf.mxu1  ;;  %4811 = vst [vmem:[#allocation12_spill] sm:$0xff] %v3875_v32  ;;  %v3907_v15 = vsel %vm538_vm3, %v3763_v42, %v3834_v8 }
 0x19f   : > { %4812 = vst [vmem:[#allocation13_spill] sm:$0xff] %v3891_v46  ;;  %4815 = vst [vmem:[#allocation6_spill] sm:$0xff] %v3907_v15 }
 0x1a0   : > { %1514 = vmatpush2.bf16.msra.mxu1 %v3272_v33 }
 0x1a1   : > { %1640 = vmatpush1.bf16.msra.mxu0 %v3140_v62  ;;  %1714 = vmatprep.subr.bf16.mxu1 %v3851_v2  ;;  %v2743_v62 = vld [vmem:[%s2926_s30 + $0xa8] ss:$16 sps:$4 sm:$0xff]   ;;  %v816_v2 = vpop.f32.mrf.mxu1 }
 0x1a2   : > { %1641 = vmatprep.subr.bf16.mxu0 %v4807_v26  ;;  %v4810_v26 = vld [vmem:[#allocation9_spill] sm:$0xff] }
 0x1a3   : > { %1516 = vmatmul.mubr.bf16.vlgmr.msra.gmra.mxu1 %v3429_v57 }
 0x1a4   : > { %1715 = vmatpush1.bf16.msra.mxu1 %v3861_v59  ;;  %1525 = vmatprep.mubr.bf16.mxu1 %v3436_v56  ;;  %v3880_v59 = vld [vmem:[%s4651_s1 + $0x4] ss:$12 sps:$4 sm:$0xff]  }
 0x1a5   : > { %1642 = vmatpush1.bf16.msra.mxu0 %v2743_v62  ;;  %1716 = vmatprep.subr.bf16.mxu1 %v3863_v52  ;;  %v2745_v62 = vld [vmem:[%s2926_s30 + $0x88] ss:$16 sps:$4 sm:$0xff]  }
 0x1a6   : > { %1643 = vmatprep.subr.bf16.mxu0 %v4810_v26  ;;  %2605 = vmatmul.mubr.msk.bf16.gmra.mxu0 %vm674_vm2, %v3336_v23  ;;  %v818_v23 = vpop.f32.mrf.mxu1 }
 0x1a7   : > { %1661 = vmatprep.mubr.bf16.mxu0 %v3880_v59 }
 0x1a8   : > { %1717 = vmatpush1.bf16.msra.mxu1 %v3875_v32  ;;  %v3902_v52 = vpop.f32.mrf.mxu1 }
 0x1a9   : > { %1644 = vmatpush1.bf16.msra.mxu0 %v2745_v62  ;;  %1837 = vmatprep.subr.bf16.mxu1 %v3242_v25  ;;  %4814 = vst [vmem:[#allocation5_spill] sm:$0xff] %v3902_v52 }
 0x1aa   : > { %1645 = vmatprep.subr.bf16.mxu0 %v3823_v35 }
 0x1ab   : > { %1526 = vmatmul.mubr.bf16.gmra.mxu1 %v3479_v36 }
 0x1ac   : > { %v721_v26 = vpop.f32.mrf.mxu0  ;;  %1535 = vmatprep.mubr.bf16.mxu1 %v3486_v13 }
 0x1ad   : > { %1646 = vmatpush2.bf16.msra.mxu0 %v3891_v46  ;;  %v3896_v32 = vadd.f32 %v3795_v30, %v721_v26  ;;  %v1414_v26 = vsel %vm538_vm3, %v3778_v63, %v1408_v60 }
 0x1ae   : > { %v723_v62 = vpop.f32.mrf.mxu0  ;;  %1647 = vmatprep.subr.bf16.mxu0 %v3834_v8 }
 0x1af   : > { %v3900_v25 = vadd.f32 %v3804_v28, %v723_v62  ;;  %v824_v28 = vpop.f32.mrf.mxu1 }
 0x1b0   : > { %v725_v35 = vpop.f32.mrf.mxu0 }
 0x1b1   : > { %4813 = vst [vmem:[#allocation4_spill] sm:$0xff] %v3900_v25  ;;  %1648 = vmatpush2.bf16.msra.mxu0 %v3907_v15  ;;  %v3911_v46 = vadd.f32 %v3812_v53, %v725_v35  ;;  %v826_v35 = vpop.f32.mrf.mxu1 }
 0x1b2   : > { %1649 = vmatprep.subr.bf16.mxu0 %v1408_v60  ;;  %v3913_v30 = vpop.f32.mrf.mxu0 }
 0x1b3   : > { %4816 = vst [vmem:[#allocation7_spill] sm:$0xff] %v3913_v30  ;;  %1536 = vmatmul.mubr.bf16.gmra.mxu1 %v3514_v18  ;;  %v1411_v30 = vsel %vm538_vm3, %v3802_v54, %v1400_v20 }
 0x1b4   : > { %v731_v62 = vpop.f32.mrf.mxu0  ;;  %1545 = vmatprep.mubr.bf16.mxu1 %v3520_v5 }
 0x1b5   : > { %1650 = vmatpush2.bf16.msra.mxu0 %v1414_v26  ;;  %v3920_v42 = vadd.f32 %v3821_v58, %v731_v62  ;;  %v828_v58 = vpop.f32.mrf.mxu1  ;;  %v1818_v62 = vpop.permute.xlu0 %1817 }
 0x1b6   : > { %v733_v52 = vpop.f32.mrf.mxu0  ;;  %1651 = vmatprep.subr.bf16.mxu0 %v1400_v20  ;;  %v3941_v20 = vpop.permute.xlu1 %1819 }
 0x1b7   : > { %v3923_v53 = vadd.f32 %v3832_v12, %v733_v52  ;;  %v3943_v52 = vpop.f32.mrf.mxu1 }
 0x1b8   : > { %v735_v15 = vpop.f32.mrf.mxu0  ;;  %4820 = vst [vmem:[#allocation8_spill] sm:$0xff] %v3943_v52 }
 0x1b9   : > { %4817 = vst [vmem:[#allocation25_spill] sm:$0xff] %v3923_v53  ;;  %1652 = vmatpush2.bf16.msra.mxu0 %v1411_v30  ;;  %v3928_v63 = vadd.f32 %v3840_v38, %v735_v15 }
 0x1ba   : > { %1653 = vmatprep.subr.bf16.mxu0 %v3455_v39  ;;  %v3931_v60 = vpop.f32.mrf.mxu0 }
 0x1bb   : > { %4818 = vst [vmem:[#allocation21_spill] sm:$0xff] %v3931_v60  ;;  %1546 = vmatmul.mubr.bf16.gmra.mxu1 %v3534_v41 }
 0x1bc   : > { %v741_v26 = vpop.f32.mrf.mxu0  ;;  %1734 = vmatprep.mubr.bf16.mxu1 %v4760_v34 }
 0x1bd   : > { %1654 = vmatpush2.bf16.msra.mxu0 %v3470_v40  ;;  %v3936_v12 = vadd.f32 %v814_v3, %v741_v26  ;;  %v1816_v3 = vpop.permute.xlu0 %1815 }
 0x1be   : > { %1655 = vmatprep.subr.bf16.mxu0 %v4770_v44  ;;  %v743_v54 = vpop.f32.mrf.mxu0 }
 0x1bf   : > { %v3939_v38 = vadd.f32 %v816_v2, %v743_v54  ;;  %v1810_v54 = vpop.permute.xlu1 %1809 }
 0x1c0   : > { %v745_v15 = vpop.f32.mrf.mxu0 }
 0x1c1   : > { %4819 = vst [vmem:[#allocation27_spill] sm:$0xff] %v3939_v38  ;;  %1656 = vmatpush2.bf16.msra.mxu0 %v4771_v55  ;;  %v3946_v30 = vadd.f32 %v818_v23, %v745_v15  ;;  %v3965_v55 = vpop.permute.xlu0 %1811 }
 0x1c2   : > { %1657 = vmatprep.subr.bf16.mxu0 %v4772_v61  ;;  %v3949_v60 = vpop.f32.mrf.mxu0  ;;  %v1824_v40 = vsel %vm599_vm1, %v1810_v54, %v3965_v55 }
 0x1c3   : > { %4821 = vst [vmem:[#allocation9_spill] sm:$0xff] %v3949_v60  ;;  %2606 = vmatmul.mubr.msk.bf16.vlgmr.msra.gmra.mxu1 %vm674_vm2, %v3224_v22  ;;  %v867_v26 = vpop.f32.mrf.mxu1  ;;  %v1827_v22 = vsel %vm599_vm1, %v1818_v62, %v3941_v20 }
 0x1c4   : > { %1838 = vmatpush1.bf16.msra.mxu1 %v3249_v27  ;;  %v751_v2 = vpop.f32.mrf.mxu0  ;;  %1744 = vmatprep.mubr.bf16.mxu1 %v4760_v34 }
 0x1c5   : > { %1658 = vmatpush2.bf16.msra.mxu0 %v4773_v47  ;;  %1839 = vmatprep.subr.bf16.mxu1 %v3267_v31  ;;  %v3957_v23 = vadd.f32 %v824_v28, %v751_v2  ;;  %v869_v15 = vpop.f32.mrf.mxu1  ;;  %v1826_v2 = vsel %vm599_vm1, %v1816_v3, %v1818_v62 }
 0x1c6   : > { %1659 = vmatprep.subr.bf16.mxu0 %v4774_v4  ;;  %v753_v52 = vpop.f32.mrf.mxu0 }
 0x1c7   : > { %v3960_v60 = vadd.f32 %v826_v35, %v753_v52  ;;  %v871_v27 = vpop.f32.mrf.mxu1  ;;  %v1808_v52 = vpop.permute.xlu1 %1807 }
 0x1c8   : > { %1840 = vmatpush1.bf16.msra.mxu1 %v3272_v33  ;;  %v755_v44 = vpop.f32.mrf.mxu0  ;;  %v1823_v3 = vsel %vm599_vm1, %v1808_v52, %v1810_v54  ;;  %v2164_v54 = vld [vmem:[%s4652_s2 + $0x18] sm:$0xff]  ;;  %v2165_v52 = vld [vmem:[%s4652_s2 + $0x20] sm:$0xff] }
 0x1c9   : > { %4822 = vst [vmem:[#allocation42_spill] sm:$0xff] %v3960_v60  ;;  %1660 = vmatpush2.bf16.msra.mxu0 %v4775_v51  ;;  %1841 = vmatprep.subr.bf16.mxu1 %v3612_v6  ;;  %v3969_v31 = vadd.f32 %v828_v58, %v755_v44  ;;  %v873_v28 = vpop.f32.mrf.mxu1  ;;  %v2161_v44 = vld [vmem:[%s4652_s2] sm:$0xff] }
 0x1ca   : > { %v3972_v35 = vpop.f32.mrf.mxu0  ;;  %1922 = vmatprep.subr.bf16.mxu0 %v1827_v22  ;;  %2171 = vperm.xlu0 %2677, %v2161_v44  }
 0x1cb   : > { %4823 = vst [vmem:[#allocation43_spill] sm:$0xff] %v3972_v35  ;;  %2607 = vmatmul.mubr.msk.bf16.gmra.mxu1 %vm674_vm2, %v3261_v29  ;;  %v877_v33 = vpop.f32.mrf.mxu1 }
 0x1cc   : > { %1662 = vmatmul.mubr.bf16.vlgmr.msra.gmra.mxu0 %v3429_v57  ;;  %1842 = vmatpush1.bf16.msra.mxu1 %v3617_v7  ;;  %v940_v6 = vpop.f32.mrf.mxu0  ;;  %v2162_v57 = vld [vmem:[%s4652_s2 + $0x8] sm:$0xff] }
 0x1cd   : > { %1843 = vmatprep.subr.bf16.mxu1 %v3625_v11  ;;  %1923 = vmatpush1.bf16.msra.mxu0 %v1826_v2  ;;  %v3984_v58 = vadd.f32 %v940_v6, %v867_v26  ;;  %v879_v62 = vpop.f32.mrf.mxu1 }
 0x1ce   : > { %v942_v22 = vpop.f32.mrf.mxu0  ;;  %1924 = vmatprep.subr.bf16.mxu0 %v1824_v40  ;;  %1671 = vmatprep.mubr.bf16.mxu0 %v3436_v56 }
 0x1cf   : > { %v3991_v29 = vadd.f32 %v942_v22, %v869_v15  ;;  %v881_v7 = vpop.f32.mrf.mxu1  ;;  %1754 = vmatprep.mubr.bf16.mxu1 %v4760_v34  ;;  %2176 = vperm.xlu1 %2678, %v2162_v57   ;;  %v2748_v22 = vld [vmem:[%s2926_s30 + $0xe0] ss:$16 sps:$4 sm:$0xff]  }
 0x1d0   : > { %1844 = vmatpush1.bf16.msra.mxu1 %v3633_v24  ;;  %v944_v11 = vpop.f32.mrf.mxu0  ;;  %2186 = vperm.xlu0 %2677, %v2164_v54  }
 0x1d1   : > { %1845 = vmatprep.subr.bf16.mxu1 %v3362_v37  ;;  %1925 = vmatpush1.bf16.msra.mxu0 %v1823_v3  ;;  %v3996_v40 = vadd.f32 %v944_v11, %v871_v27  ;;  %v883_v56 = vpop.f32.mrf.mxu1  ;;  %v2163_v37 = vld [vmem:[%s4652_s2 + $0x10] sm:$0xff]  ;;  %v2166_v27 = vld [vmem:[%s4652_s2 + $0x28] sm:$0xff] }
 0x1d2   : > { %1983 = vmatprep.subr.bf16.mxu0 %v4772_v61  ;;  %v946_v26 = vpop.f32.mrf.mxu0  ;;  %v4033_v3 = vld [vmem:[%s4651_s1 + $0x50] ss:$12 sps:$4 sm:$0xff]  }
 0x1d3   : > { %v4002_v15 = vadd.f32 %v946_v26, %v873_v28  ;;  %2608 = vmatmul.mubr.msk.bf16.gmra.mxu1 %vm674_vm2, %v3297_v1  ;;  %v887_v24 = vpop.f32.mrf.mxu1  ;;  %2181 = vperm.xlu1 %2678, %v2163_v37   ;;  %v2750_v37 = vld [vmem:[%s2926_s30 + $0xc0] ss:$16 sps:$4 sm:$0xff]  }
 0x1d4   : > { %1672 = vmatmul.mubr.bf16.gmra.mxu0 %v3479_v36  ;;  %1846 = vmatpush1.bf16.msra.mxu1 %v3370_v17  ;;  %v950_v61 = vpop.f32.mrf.mxu0 }
 0x1d5   : > { %1847 = vmatprep.subr.bf16.mxu1 %v3383_v49  ;;  %v4015_v28 = vadd.f32 %v950_v61, %v877_v33  ;;  %1681 = vmatprep.mubr.bf16.mxu0 %v3486_v13  ;;  %v889_v1 = vpop.f32.mrf.mxu1  ;;  %v2746_v13 = vld [vmem:[%s2926_s30 + $0xe4] ss:$16 sps:$4 sm:$0xff]  }
 0x1d6   : > { %v952_v2 = vpop.f32.mrf.mxu0  ;;  %1764 = vmatprep.mubr.bf16.mxu1 %v4760_v34  ;;  %2196 = vperm.xlu0 %2677, %v2166_v27  }
 0x1d7   : > { %v4019_v36 = vadd.f32 %v952_v2, %v879_v62  ;;  %v891_v17 = vpop.f32.mrf.mxu1  ;;  %2191 = vperm.xlu1 %2678, %v2165_v52  }
 0x1d8   : > { %1848 = vmatpush1.bf16.msra.mxu1 %v3388_v9  ;;  %v954_v49 = vpop.f32.mrf.mxu0  ;;  %v2167_v9 = vld [vmem:[%s4652_s2 + $0x30] sm:$0xff] }
 0x1d9   : > { %v4025_v33 = vadd.f32 %v954_v49, %v881_v7  ;;  %1849 = vmatprep.subr.bf16.mxu1 %v2746_v13  ;;  %v893_v6 = vpop.f32.mrf.mxu1  ;;  %v4824_v49 = vld [vmem:[#allocation18_spill] sm:$0xff] }
 0x1da   : > { %v956_v44 = vpop.f32.mrf.mxu0 }
 0x1db   : > { %v4028_v62 = vadd.f32 %v956_v44, %v883_v56  ;;  %2609 = vmatmul.mubr.msk.bf16.gmra.mxu1 %vm674_vm2, %v4033_v3  ;;  %v897_v7 = vpop.f32.mrf.mxu1  ;;  %v2749_v56 = vld [vmem:[%s2926_s30 + $0xc4] ss:$16 sps:$4 sm:$0xff]   ;;  %2201 = vperm.xlu1 %2678, %v2167_v9  }
 0x1dc   : > { %1682 = vmatmul.mubr.bf16.gmra.mxu0 %v3514_v18  ;;  %1850 = vmatpush1.bf16.msra.mxu1 %v2748_v22  ;;  %v960_v57 = vpop.f32.mrf.mxu0 }
 0x1dd   : > { %v4042_v11 = vadd.f32 %v960_v57, %v887_v24  ;;  %1851 = vmatprep.subr.bf16.mxu1 %v2749_v56  ;;  %1691 = vmatprep.mubr.bf16.mxu0 %v3520_v5  ;;  %v899_v18 = vpop.f32.mrf.mxu1  ;;  %v4076_v56 = vld [vmem:[%s4651_s1 + $0x8] ss:$12 sps:$4 sm:$0xff]  }
 0x1de   : > { %v962_v26 = vpop.f32.mrf.mxu0  ;;  %1869 = vmatprep.mubr.bf16.mxu1 %v3880_v59 }
 0x1df   : > { %v4047_v54 = vadd.f32 %v962_v26, %v889_v1  ;;  %v901_v52 = vpop.f32.mrf.mxu1 }
 0x1e0   : > { %1852 = vmatpush1.bf16.msra.mxu1 %v2750_v37  ;;  %v964_v61 = vpop.f32.mrf.mxu0  ;;  %v4828_v37 = vld [vmem:[#allocation29_spill] sm:$0xff] }
 0x1e1   : > { %1853 = vmatprep.subr.bf16.mxu1 %v3725_v50  ;;  %v4051_v27 = vadd.f32 %v964_v61, %v891_v17  ;;  %v4825_v50 = vld [vmem:[#allocation22_spill] sm:$0xff] }
 0x1e2   : > { %v966_v24 = vpop.f32.mrf.mxu0 }
 0x1e3   : > { %v4053_v2 = vadd.f32 %v966_v24, %v893_v6  ;;  %v903_v6 = vpop.f32.mrf.mxu1 }
 0x1e4   : > { %1692 = vmatmul.mubr.bf16.gmra.mxu0 %v3534_v41  ;;  %1854 = vmatpush2.bf16.msra.mxu1 %v3731_v45  ;;  %v970_v5 = vpop.f32.mrf.mxu0  ;;  %v2168_v41 = vld [vmem:[%s4652_s2 + $0x38] sm:$0xff] }
 0x1e5   : > { %1855 = vmatprep.subr.bf16.mxu1 %v4824_v49  ;;  %v4058_v1 = vadd.f32 %v970_v5, %v897_v7  ;;  %1942 = vmatprep.mubr.bf16.mxu0 %v4760_v34  ;;  %v4826_v45 = vld [vmem:[#allocation23_spill] sm:$0xff]  ;;  %v4827_v7 = vld [vmem:[#allocation14_spill] sm:$0xff]  ;;  %v4830_v5 = vld [vmem:[#allocation32_spill] sm:$0xff] }
 0x1e6   : > { %v972_v13 = vpop.f32.mrf.mxu0  ;;  %2206 = vperm.xlu0 %2677, %v2168_v41   ;;  %v4836_v41 = vld [vmem:[#allocation35_spill] sm:$0xff] }
 0x1e7   : > { %v4061_v44 = vadd.f32 %v972_v13, %v899_v18  ;;  %v4829_v18 = vld [vmem:[#allocation15_spill] sm:$0xff]  ;;  %v4832_v13 = vld [vmem:[#allocation33_spill] sm:$0xff] }
 0x1e8   : > { %1856 = vmatpush2.bf16.msra.mxu1 %v4825_v50  ;;  %v974_v17 = vpop.f32.mrf.mxu0  ;;  %v4833_v50 = vld [vmem:[#allocation17_spill] sm:$0xff] }
 0x1e9   : > { %1857 = vmatprep.subr.bf16.mxu1 %v4826_v45  ;;  %v4068_v9 = vadd.f32 %v974_v17, %v901_v52  ;;  %v4831_v52 = vld [vmem:[#allocation36_spill] sm:$0xff]  ;;  %v4834_v17 = vld [vmem:[#allocation34_spill] sm:$0xff]  ;;  %v4837_v45 = vld [vmem:[#allocation19_spill] sm:$0xff] }
 0x1ea   : > { %v976_v22 = vpop.f32.mrf.mxu0 }
 0x1eb   : > { %v4070_v57 = vadd.f32 %v976_v22, %v903_v6 }
 0x1ec   : > { %1858 = vmatpush2.bf16.msra.mxu1 %v4827_v7  ;;  %2610 = vmatmul.mubr.msk.bf16.vlgmr.msra.gmra.mxu0 %vm674_vm2, %v4076_v56  ;;  %v1176_v26 = vpop.f32.mrf.mxu0  ;;  %v4110_v7 = vld [vmem:[%s4651_s1 + $0x38] ss:$12 sps:$4 sm:$0xff]  }
 0x1ed   : > { %1984 = vmatpush1.bf16.msra.mxu0 %v4773_v47  ;;  %1859 = vmatprep.subr.bf16.mxu1 %v4828_v37  ;;  %v4092_v47 = vld [vmem:[%s4651_s1 + $0x20] ss:$12 sps:$4 sm:$0xff]  }
 0x1ee   : > { %1985 = vmatprep.subr.bf16.mxu0 %v4774_v4  ;;  %v1178_v61 = vpop.f32.mrf.mxu0  ;;  %1952 = vmatprep.mubr.bf16.mxu0 %v4760_v34 }
 0x1f0   : > { %1860 = vmatpush2.bf16.msra.mxu1 %v4829_v18  ;;  %v1180_v24 = vpop.f32.mrf.mxu0  ;;  %v1814_v18 = vpop.permute.xlu1 %1813 }
 0x1f1   : > { %1986 = vmatpush1.bf16.msra.mxu0 %v4775_v51  ;;  %1861 = vmatprep.subr.bf16.mxu1 %v4830_v5  ;;  %v4835_v51 = vld [vmem:[#allocation37_spill] sm:$0xff] }
 0x1f2   : > { %1987 = vmatprep.subr.bf16.mxu0 %v4831_v52  ;;  %v1182_v49 = vpop.f32.mrf.mxu0  ;;  %v4849_v52 = vld [vmem:[#allocation6_spill] sm:$0xff] }
 0x1f4   : > { %1862 = vmatpush2.bf16.msra.mxu1 %v4832_v13  ;;  %2611 = vmatmul.mubr.msk.bf16.gmra.mxu0 %vm674_vm2, %v4092_v47  ;;  %v1186_v4 = vpop.f32.mrf.mxu0 }
 0x1f5   : > { %1988 = vmatpush1.bf16.msra.mxu0 %v4833_v50  ;;  %1863 = vmatprep.subr.bf16.mxu1 %v4834_v17  ;;  %v2758_v50 = vld [vmem:[%s2926_s30 + $0xcc] ss:$16 sps:$4 sm:$0xff]  }
 0x1f6   : > { %1989 = vmatprep.subr.bf16.mxu0 %v4835_v51  ;;  %1962 = vmatprep.mubr.bf16.mxu0 %v4760_v34  ;;  %v4100_v6 = vpop.f32.mrf.mxu0 }
 0x1f8   : > { %1864 = vmatpush2.bf16.msra.mxu1 %v4836_v41  ;;  %v1190_v22 = vpop.f32.mrf.mxu0 }
 0x1f9   : > { %1990 = vmatpush1.bf16.msra.mxu0 %v4837_v45  ;;  %1865 = vmatprep.subr.bf16.mxu1 %v3192_v14 }
 0x1fa   : > { %1991 = vmatprep.subr.bf16.mxu0 %v4778_v43  ;;  %v1192_v14 = vpop.f32.mrf.mxu0  ;;  %v1822_v43 = vpop.permute.xlu0 %1821 }
 0x1fb   : > { %v1828_v37 = vsel %vm599_vm1, %v3941_v20, %v1822_v43  ;;  %v2757_v20 = vld [vmem:[%s2926_s30 + $0xe8] ss:$16 sps:$4 sm:$0xff]  }
 0x1fc   : > { %1866 = vmatpush2.bf16.msra.mxu1 %v3202_v16  ;;  %2612 = vmatmul.mubr.msk.bf16.gmra.mxu0 %vm674_vm2, %v4110_v7  ;;  %v2754_v16 = vld [vmem:[%s2926_s30 + $0xec] ss:$16 sps:$4 sm:$0xff]  }
 0x1fd   : > { %1992 = vmatpush1.bf16.msra.mxu0 %v4780_v48  ;;  %1867 = vmatprep.subr.bf16.mxu1 %v3215_v19  ;;  %v4126_v19 = vld [vmem:[%s4651_s1] ss:$12 sps:$4 sm:$0xff]  }
 0x1fe   : > { %1993 = vmatprep.subr.bf16.mxu0 %v4782_v10  ;;  %1972 = vmatprep.mubr.bf16.mxu0 %v4760_v34  ;;  %v1196_v10 = vpop.f32.mrf.mxu0 }
 0x200   : > { %1868 = vmatpush2.bf16.msra.mxu1 %v3218_v21  ;;  %v1198_v51 = vpop.f32.mrf.mxu0 }
 0x201   : > { %1994 = vmatpush1.bf16.msra.mxu0 %v4784_v0  ;;  %2068 = vmatprep.subr.bf16.mxu1 %v1822_v43  ;;  %v4134_v0 = vld [vmem:[%s4651_s1 + $0x1c] ss:$12 sps:$4 sm:$0xff]  }
 0x202   : > { %1995 = vmatprep.subr.bf16.mxu0 %v2754_v16  ;;  %v4845_v16 = vld [vmem:[#allocation16_spill] sm:$0xff] }
 0x203   : > { %1870 = vmatmul.mubr.bf16.vlgmr.msra.gmra.mxu1 %v4126_v19  ;;  %v1103_v48 = vpop.f32.mrf.mxu1 }
 0x204   : > { %2069 = vmatpush1.bf16.msra.mxu1 %v1828_v37  ;;  %v4129_v21 = vadd.f32 %v1176_v26, %v1103_v48  ;;  %1879 = vmatprep.mubr.bf16.mxu1 %v4134_v0  ;;  %v1825_v26 = vsel %vm599_vm1, %v3965_v55, %v1814_v18  ;;  %v4839_v37 = vld [vmem:[#allocation10_spill] sm:$0xff]  ;;  %v4161_v55 = vld [vmem:[%s4651_s1 + $0x18] ss:$12 sps:$4 sm:$0xff]  }
 0x205   : > { %1996 = vmatpush1.bf16.msra.mxu0 %v2757_v20  ;;  %v1105_v5 = vpop.f32.mrf.mxu1  ;;  %2070 = vmatprep.subr.bf16.mxu1 %v1814_v18  ;;  %v4169_v20 = vld [vmem:[%s4651_s1 + $0x34] ss:$12 sps:$4 sm:$0xff]  }
 0x206   : > { %v4140_v13 = vadd.f32 %v1178_v61, %v1105_v5  ;;  %1997 = vmatprep.subr.bf16.mxu0 %v2758_v50  ;;  %2613 = vmatmul.mubr.msk.bf16.gmra.mxu0 %vm674_vm2, %v4033_v3  ;;  %v2759_v61 = vld [vmem:[%s2926_s30 + $0xc8] ss:$16 sps:$4 sm:$0xff]  }
 0x207   : > { %v1107_v17 = vpop.f32.mrf.mxu1  ;;  %2015 = vmatprep.mubr.bf16.mxu0 %v3880_v59 }
 0x208   : > { %4838 = vst [vmem:[#allocation18_spill] sm:$0xff] %v4140_v13  ;;  %2071 = vmatpush1.bf16.msra.mxu1 %v1825_v26  ;;  %v4150_v45 = vadd.f32 %v1180_v24, %v1107_v17  ;;  %v1200_v24 = vpop.f32.mrf.mxu0  ;;  %v4842_v26 = vld [vmem:[#allocation11_spill] sm:$0xff] }
 0x209   : > { %1998 = vmatpush1.bf16.msra.mxu0 %v2759_v61  ;;  %v1109_v43 = vpop.f32.mrf.mxu1 }
 0x20a   : > { %1999 = vmatprep.subr.bf16.mxu0 %v4839_v37  ;;  %v4156_v48 = vadd.f32 %v1182_v49, %v1109_v43  ;;  %v4841_v49 = vld [vmem:[#allocation20_spill] sm:$0xff]  ;;  %v1202_v61 = vpop.f32.mrf.mxu0 }
 0x20b   : > { %1880 = vmatmul.mubr.bf16.gmra.mxu1 %v4161_v55  ;;  %v1113_v59 = vpop.f32.mrf.mxu1 }
 0x20c   : > { %4840 = vst [vmem:[#allocation22_spill] sm:$0xff] %v4156_v48  ;;  %v4164_v18 = vadd.f32 %v1186_v4, %v1113_v59  ;;  %1889 = vmatprep.mubr.bf16.mxu1 %v4169_v20  ;;  %v4844_v59 = vld [vmem:[#allocation12_spill] sm:$0xff] }
 0x20d   : > { %2000 = vmatpush2.bf16.msra.mxu0 %v4841_v49  ;;  %v1115_v5 = vpop.f32.mrf.mxu1 }
 0x20e   : > { %2001 = vmatprep.subr.bf16.mxu0 %v4842_v26  ;;  %v4177_v17 = vadd.f32 %v4100_v6, %v1115_v5  ;;  %v4192_v6 = vld [vmem:[%s4651_s1 + $0x30] ss:$12 sps:$4 sm:$0xff]  }
 0x20f   : > { %v1117_v4 = vpop.f32.mrf.mxu1 }
 0x210   : > { %4843 = vst [vmem:[#allocation23_spill] sm:$0xff] %v4177_v17  ;;  %v4181_v37 = vadd.f32 %v1190_v22, %v1117_v4  ;;  %v1206_v22 = vpop.f32.mrf.mxu0  ;;  %v4200_v4 = vld [vmem:[%s4651_s1 + $0x4c] ss:$12 sps:$4 sm:$0xff]   ;;  %v4850_v17 = vld [vmem:[#allocation38_spill] sm:$0xff] }
 0x211   : > { %2002 = vmatpush2.bf16.msra.mxu0 %v4844_v59  ;;  %v1119_v41 = vpop.f32.mrf.mxu1 }
 0x212   : > { %2003 = vmatprep.subr.bf16.mxu0 %v4845_v16  ;;  %v4187_v50 = vadd.f32 %v1192_v14, %v1119_v41  ;;  %v4847_v14 = vld [vmem:[#allocation13_spill] sm:$0xff] }
 0x213   : > { %1890 = vmatmul.mubr.bf16.gmra.mxu1 %v4192_v6  ;;  %v1123_v5 = vpop.f32.mrf.mxu1 }
 0x214   : > { %4846 = vst [vmem:[#allocation14_spill] sm:$0xff] %v4187_v50  ;;  %v4195_v26 = vadd.f32 %v1196_v10, %v1123_v5  ;;  %1899 = vmatprep.mubr.bf16.mxu1 %v4200_v4  ;;  %v1208_v10 = vpop.f32.mrf.mxu0 }
 0x215   : > { %2004 = vmatpush2.bf16.msra.mxu0 %v4847_v14  ;;  %v1125_v41 = vpop.f32.mrf.mxu1 }
 0x216   : > { %2005 = vmatprep.subr.bf16.mxu0 %v3834_v8  ;;  %v4207_v59 = vadd.f32 %v1198_v51, %v1125_v41  ;;  %v4222_v8 = vld [vmem:[%s4651_s1 + $0x48] ss:$12 sps:$4 sm:$0xff]  }
 0x217   : > { %v1127_v43 = vpop.f32.mrf.mxu1 }
 0x218   : > { %4848 = vst [vmem:[#allocation29_spill] sm:$0xff] %v4207_v59  ;;  %v4211_v49 = vadd.f32 %v1200_v24, %v1127_v43  ;;  %v1210_v24 = vpop.f32.mrf.mxu0 }
 0x219   : > { %2006 = vmatpush2.bf16.msra.mxu0 %v4849_v52  ;;  %v1129_v35 = vpop.f32.mrf.mxu1  ;;  %v4852_v52 = vld [vmem:[#allocation39_spill] sm:$0xff] }
 0x21a   : > { %2007 = vmatprep.subr.bf16.mxu0 %v4850_v17  ;;  %v4217_v16 = vadd.f32 %v1202_v61, %v1129_v35  ;;  %v4853_v17 = vld [vmem:[#allocation40_spill] sm:$0xff]  ;;  %v1212_v14 = vpop.f32.mrf.mxu0 }
 0x21b   : > { %1900 = vmatmul.mubr.bf16.gmra.mxu1 %v4222_v8  ;;  %v1133_v51 = vpop.f32.mrf.mxu1 }
 0x21c   : > { %4851 = vst [vmem:[#allocation15_spill] sm:$0xff] %v4217_v16  ;;  %v4225_v43 = vadd.f32 %v1206_v22, %v1133_v51  ;;  %2088 = vmatprep.mubr.bf16.mxu1 %v4760_v34  ;;  %v4855_v22 = vld [vmem:[#allocation41_spill] sm:$0xff] }
 0x21d   : > { %2008 = vmatpush2.bf16.msra.mxu0 %v4852_v52  ;;  %v1135_v41 = vpop.f32.mrf.mxu1 }
 0x21e   : > { %2009 = vmatprep.subr.bf16.mxu0 %v4853_v17  ;;  %v4232_v61 = vadd.f32 %v1208_v10, %v1135_v41  ;;  %v4857_v41 = vld [vmem:[#allocation28_spill] sm:$0xff] }
 0x21f   : > { %v1137_v5 = vpop.f32.mrf.mxu1 }
 0x220   : > { %4854 = vst [vmem:[#allocation32_spill] sm:$0xff] %v4232_v61  ;;  %v4236_v59 = vadd.f32 %v1210_v24, %v1137_v5  ;;  %v4858_v24 = vld [vmem:[#allocation26_spill] sm:$0xff] }
 0x221   : > { %2010 = vmatpush2.bf16.msra.mxu0 %v4855_v22  ;;  %v1139_v51 = vpop.f32.mrf.mxu1  ;;  %v4859_v22 = vld [vmem:[#allocation30_spill] sm:$0xff] }
 0x222   : > { %2011 = vmatprep.subr.bf16.mxu0 %v3455_v39  ;;  %v4242_v35 = vadd.f32 %v1212_v14, %v1139_v51 }
 0x223   : > { %2614 = vmatmul.mubr.msk.bf16.vlgmr.msra.gmra.mxu1 %vm674_vm2, %v4076_v56  ;;  %v1322_v10 = vpop.f32.mrf.mxu1 }
 0x224   : > { %4856 = vst [vmem:[#allocation36_spill] sm:$0xff] %v4242_v35  ;;  %2098 = vmatprep.mubr.bf16.mxu1 %v4760_v34 }
 0x225   : > { %2012 = vmatpush2.bf16.msra.mxu0 %v4857_v41  ;;  %v1324_v5 = vpop.f32.mrf.mxu1 }
 0x226   : > { %2013 = vmatprep.subr.bf16.mxu0 %v4858_v24 }
 0x227   : > { %v1326_v17 = vpop.f32.mrf.mxu1 }
 0x229   : > { %2014 = vmatpush2.bf16.msra.mxu0 %v4859_v22  ;;  %v1328_v16 = vpop.f32.mrf.mxu1 }
 0x22b   : > { %2615 = vmatmul.mubr.msk.bf16.gmra.mxu1 %vm674_vm2, %v4092_v47  ;;  %v1332_v39 = vpop.f32.mrf.mxu1 }
 0x22c   : > { %2016 = vmatmul.mubr.bf16.vlgmr.msra.gmra.mxu0 %v4126_v19  ;;  %v1249_v14 = vpop.f32.mrf.mxu0  ;;  %2108 = vmatprep.mubr.bf16.mxu1 %v4760_v34 }
 0x22d   : > { %v4254_v56 = vadd.f32 %v1322_v10, %v1249_v14  ;;  %2025 = vmatprep.mubr.bf16.mxu0 %v4134_v0  ;;  %v1334_v51 = vpop.f32.mrf.mxu1 }
 0x22e   : > { %v1251_v41 = vpop.f32.mrf.mxu0 }
 0x22f   : > { %v4259_v22 = vadd.f32 %v1324_v5, %v1251_v41  ;;  %v1336_v52 = vpop.f32.mrf.mxu1 }
 0x230   : > { %v1253_v35 = vpop.f32.mrf.mxu0 }
 0x231   : > { %v4263_v19 = vadd.f32 %v1326_v17, %v1253_v35  ;;  %v1338_v61 = vpop.f32.mrf.mxu1 }
 0x232   : > { %v1255_v60 = vpop.f32.mrf.mxu0 }
 0x233   : > { %v4267_v0 = vadd.f32 %v1328_v16, %v1255_v60  ;;  %2616 = vmatmul.mubr.msk.bf16.gmra.mxu1 %vm674_vm2, %v4110_v7  ;;  %v1342_v14 = vpop.f32.mrf.mxu1 }
 0x234   : > { %2026 = vmatmul.mubr.bf16.gmra.mxu0 %v4161_v55  ;;  %v1259_v5 = vpop.f32.mrf.mxu0  ;;  %2118 = vmatprep.mubr.bf16.mxu1 %v4760_v34 }
 0x235   : > { %v4275_v17 = vadd.f32 %v1332_v39, %v1259_v5  ;;  %2035 = vmatprep.mubr.bf16.mxu0 %v4169_v20  ;;  %v1344_v41 = vpop.f32.mrf.mxu1 }
 0x236   : > { %v1261_v10 = vpop.f32.mrf.mxu0 }
 0x237   : > { %v4280_v16 = vadd.f32 %v1334_v51, %v1261_v10  ;;  %v1346_v7 = vpop.f32.mrf.mxu1 }
 0x238   : > { %v1263_v47 = vpop.f32.mrf.mxu0 }
 0x239   : > { %v4284_v34 = vadd.f32 %v1336_v52, %v1263_v47  ;;  %v1348_v24 = vpop.f32.mrf.mxu1 }
 0x23a   : > { %v1265_v35 = vpop.f32.mrf.mxu0 }
 0x23b   : > { %v4288_v20 = vadd.f32 %v1338_v61, %v1265_v35  ;;  %2617 = vmatmul.mubr.msk.bf16.gmra.mxu1 %vm674_vm2, %v4033_v3  ;;  %v1352_v10 = vpop.f32.mrf.mxu1 }
 0x23c   : > { %2036 = vmatmul.mubr.bf16.gmra.mxu0 %v4192_v6  ;;  %v1269_v51 = vpop.f32.mrf.mxu0 }
 0x23d   : > { %v4295_v55 = vadd.f32 %v1342_v14, %v1269_v51  ;;  %2045 = vmatprep.mubr.bf16.mxu0 %v4200_v4  ;;  %v1354_v39 = vpop.f32.mrf.mxu1 }
 0x23e   : > { %v1271_v52 = vpop.f32.mrf.mxu0 }
 0x23f   : > { %v4300_v61 = vadd.f32 %v1344_v41, %v1271_v52  ;;  %v1356_v5 = vpop.f32.mrf.mxu1 }
 0x240   : > { %v1273_v35 = vpop.f32.mrf.mxu0 }
 0x241   : > { %v4304_v6 = vadd.f32 %v1346_v7, %v1273_v35  ;;  %v1358_v38 = vpop.f32.mrf.mxu1 }
 0x242   : > { %v1275_v60 = vpop.f32.mrf.mxu0 }
 0x243   : > { %v4308_v51 = vadd.f32 %v1348_v24, %v1275_v60 }
 0x244   : > { %2046 = vmatmul.mubr.bf16.gmra.mxu0 %v4222_v8  ;;  %v1279_v4 = vpop.f32.mrf.mxu0 }
 0x245   : > { %v4313_v52 = vadd.f32 %v1352_v10, %v1279_v4 }
 0x246   : > { %v1281_v47 = vpop.f32.mrf.mxu0 }
 0x247   : > { %v4317_v35 = vadd.f32 %v1354_v39, %v1281_v47 }
 0x248   : > { %v1283_v3 = vpop.f32.mrf.mxu0 }
 0x249   : > { %v4321_v60 = vadd.f32 %v1356_v5, %v1283_v3 }
 0x24a   : > { %v1285_v8 = vpop.f32.mrf.mxu0 }
 0x24b   : > { %v4325_v41 = vadd.f32 %v1358_v38, %v1285_v8  ;;  %v4866_v8 = vmax.f32 %v3896_v32, %v4129_v21  ;;  %v4868_v32 = vmax.f32 %v3920_v42, %v4164_v18  ;;  %v4870_v42 = vmax.f32 %v3936_v12, %v4195_v26 }
 0x24c   : > { %v1590_v10 = vpop.f32.mrf.mxu0  ;;  %v4874_v12 = vmax.f32 %v3957_v23, %v4225_v43 }
 0x24d   : > { %4860 = vst [vmem:[#allocation33_spill] sm:$0xff] %v4325_v41 }
 0x24e   : > { %v4329_v7 = vpop.f32.mrf.mxu0 }
 0x24f   : > { %4861 = vst [vmem:[#allocation17_spill] sm:$0xff] %v4329_v7 }
 0x250   : > { %v1594_v39 = vpop.f32.mrf.mxu0 }
 0x252   : > { %v4331_v47 = vpop.f32.mrf.mxu0 }
 0x253   : > { %4862 = vst [vmem:[#allocation34_spill] sm:$0xff] %v4331_v47 }
 0x254   : > { %v1600_v53 = vpop.f32.mrf.mxu0 }
 0x256   : > { %v4333_v50 = vpop.f32.mrf.mxu0 }
 0x257   : > { %4863 = vst [vmem:[#allocation37_spill] sm:$0xff] %v4333_v50  ;;  %v4867_v50 = vmax.f32 %v3911_v46, %v4150_v45  ;;  %v4869_v46 = vmax.f32 %v3928_v63, %v4181_v37  ;;  %v4872_v63 = vmax.f32 %v3946_v30, %v4211_v49 }
 0x258   : > { %v1604_v5 = vpop.f32.mrf.mxu0 }
 0x25a   : > { %v4335_v3 = vpop.f32.mrf.mxu0 }
 0x25b   : > { %4864 = vst [vmem:[#allocation35_spill] sm:$0xff] %v4335_v3 }
 0x25c   : > { %v1610_v38 = vpop.f32.mrf.mxu0 }
 0x25e   : > { %v4346_v47 = vpop.f32.mrf.mxu0 }
 0x260   : > { %v1614_v41 = vpop.f32.mrf.mxu0 }
 0x263   : > { %v1517_v24 = vpop.f32.mrf.mxu1 }
 0x264   : > { %v1591_v48 = vadd.f32 %v1590_v10, %v1517_v24 }
 0x265   : > { %v4337_v14 = vpop.f32.mrf.mxu1 }
 0x266   : > { %4865 = vst [vmem:[#allocation19_spill] sm:$0xff] %v4337_v14  ;;  %v4342_v4 = vmax.f32 %v4866_v8, %v1591_v48  ;;  %v4362_v8 = vpop.f32.mrf.mxu0 }
 0x267   : > { %v1521_v13 = vpop.f32.mrf.mxu1 }
 0x268   : > { %v1595_v25 = vadd.f32 %v1594_v39, %v1521_v13 }
 0x269   : > { %v4344_v7 = vpop.f32.mrf.mxu1 }
 0x26a   : > { %v4351_v3 = vmax.f32 %v4867_v50, %v1595_v25 }
 0x26b   : > { %v1527_v24 = vpop.f32.mrf.mxu1 }
 0x26c   : > { %v1601_v10 = vadd.f32 %v1600_v53, %v1527_v24  ;;  %v1620_v24 = vpop.f32.mrf.mxu0 }
 0x26d   : > { %v4353_v14 = vpop.f32.mrf.mxu1 }
 0x26e   : > { %v4358_v21 = vmax.f32 %v4868_v32, %v1601_v10 }
 0x26f   : > { %v1531_v13 = vpop.f32.mrf.mxu1 }
 0x270   : > { %v1605_v48 = vadd.f32 %v1604_v5, %v1531_v13  ;;  %v4378_v13 = vpop.f32.mrf.mxu0 }
 0x271   : > { %v4360_v39 = vpop.f32.mrf.mxu1  ;;  %4871 = vst [vmem:[#allocation10_spill] sm:$0xff] %v4378_v13 }
 0x272   : > { %v4367_v25 = vmax.f32 %v4869_v46, %v1605_v48 }
 0x273   : > { %v1537_v53 = vpop.f32.mrf.mxu1 }
 0x274   : > { %v1611_v45 = vadd.f32 %v1610_v38, %v1537_v53  ;;  %v1624_v53 = vpop.f32.mrf.mxu0 }
 0x275   : > { %v4369_v50 = vpop.f32.mrf.mxu1 }
 0x276   : > { %v4374_v18 = vmax.f32 %v4870_v42, %v1611_v45 }
 0x277   : > { %v1541_v5 = vpop.f32.mrf.mxu1 }
 0x278   : > { %v1615_v10 = vadd.f32 %v1614_v41, %v1541_v5  ;;  %v4877_v5 = vmax.f32 %v3969_v31, %v4236_v59 }
 0x279   : > { %v4376_v32 = vpop.f32.mrf.mxu1 }
 0x27a   : > { %v4383_v37 = vmax.f32 %v4872_v63, %v1615_v10 }
 0x27b   : > { %v1547_v38 = vpop.f32.mrf.mxu1 }
 0x27c   : > { %4873 = vst [vmem:[#allocation20_spill] sm:$0xff] %v4383_v37  ;;  %v1621_v48 = vadd.f32 %v1620_v24, %v1547_v38  ;;  %v4399_v38 = vpop.f32.mrf.mxu0 }
 0x27d   : > { %v4385_v46 = vpop.f32.mrf.mxu1  ;;  %4879 = vst [vmem:[#allocation13_spill] sm:$0xff] %v4399_v38 }
 0x27e   : > { %v4390_v26 = vmax.f32 %v4874_v12, %v1621_v48 }
 0x27f   : > { %v1551_v41 = vpop.f32.mrf.mxu1 }
 0x280   : > { %4875 = vst [vmem:[#allocation11_spill] sm:$0xff] %v4390_v26  ;;  %v1625_v45 = vadd.f32 %v1624_v53, %v1551_v41  ;;  %v4880_v53 = vmax.f32 %v3984_v58, %v4254_v56 }
 0x281   : > { %v4392_v42 = vpop.f32.mrf.mxu1 }
 0x282   : > { %4876 = vst [vmem:[#allocation12_spill] sm:$0xff] %v4392_v42  ;;  %v4397_v30 = vmax.f32 %v4877_v5, %v1625_v45  ;;  %v4881_v45 = vmax.f32 %v3991_v29, %v4259_v22 }
 0x283   : > { %v1736_v49 = vpop.f32.mrf.mxu1 }
 0x284   : > { %4878 = vst [vmem:[#allocation16_spill] sm:$0xff] %v4397_v30 }
 0x285   : > { %v1738_v10 = vpop.f32.mrf.mxu1 }
 0x287   : > { %v1740_v24 = vpop.f32.mrf.mxu1 }
 0x289   : > { %v1742_v63 = vpop.f32.mrf.mxu1 }
 0x28b   : > { %v1746_v37 = vpop.f32.mrf.mxu1 }
 0x28c   : > { %v1663_v13 = vpop.f32.mrf.mxu0 }
 0x28d   : > { %v1737_v23 = vadd.f32 %v1736_v49, %v1663_v13  ;;  %v1748_v43 = vpop.f32.mrf.mxu1  ;;  %v4882_v13 = vmax.f32 %v3996_v40, %v4263_v19 }
 0x28e   : > { %v1665_v48 = vpop.f32.mrf.mxu0 }
 0x28f   : > { %v4404_v12 = vmax.f32 %v4880_v53, %v1737_v23  ;;  %v1739_v41 = vadd.f32 %v1738_v10, %v1665_v48  ;;  %v1750_v31 = vpop.f32.mrf.mxu1  ;;  %v4883_v10 = vmax.f32 %v4002_v15, %v4267_v0 }
 0x290   : > { %v1667_v59 = vpop.f32.mrf.mxu0 }
 0x291   : > { %v4409_v5 = vmax.f32 %v4881_v45, %v1739_v41  ;;  %v1741_v30 = vadd.f32 %v1740_v24, %v1667_v59  ;;  %v1752_v26 = vpop.f32.mrf.mxu1  ;;  %v4884_v24 = vmax.f32 %v4015_v28, %v4275_v17 }
 0x292   : > { %v1669_v38 = vpop.f32.mrf.mxu0 }
 0x293   : > { %v4414_v49 = vmax.f32 %v4882_v13, %v1741_v30  ;;  %v1743_v42 = vadd.f32 %v1742_v63, %v1669_v38  ;;  %v1756_v58 = vpop.f32.mrf.mxu1  ;;  %v4885_v30 = vmax.f32 %v4019_v36, %v4280_v16  ;;  %v4888_v16 = vmax.f32 %v4042_v11, %v4295_v55 }
 0x294   : > { %v1673_v56 = vpop.f32.mrf.mxu0  ;;  %v4891_v55 = vmax.f32 %v4053_v2, %v4308_v51  ;;  %v4894_v2 = vmax.f32 %v4068_v9, %v4321_v60 }
 0x295   : > { %v4419_v23 = vmax.f32 %v4883_v10, %v1743_v42  ;;  %v1747_v48 = vadd.f32 %v1746_v37, %v1673_v56  ;;  %v1758_v29 = vpop.f32.mrf.mxu1  ;;  %v4886_v37 = vmax.f32 %v4025_v33, %v4284_v34  ;;  %v4889_v34 = vmax.f32 %v4047_v54, %v4300_v61 }
 0x296   : > { %v1675_v22 = vpop.f32.mrf.mxu0  ;;  %v4892_v54 = vmax.f32 %v4058_v1, %v4313_v52  ;;  %v4895_v1 = vld [vmem:[#allocation33_spill] sm:$0xff] }
 0x297   : > { %v4424_v53 = vmax.f32 %v4884_v24, %v1747_v48  ;;  %v1749_v41 = vadd.f32 %v1748_v43, %v1675_v22  ;;  %v1760_v40 = vpop.f32.mrf.mxu1  ;;  %v4887_v43 = vmax.f32 %v4028_v62, %v4288_v20  ;;  %v4890_v62 = vmax.f32 %v4051_v27, %v4304_v6 }
 0x298   : > { %v1677_v19 = vpop.f32.mrf.mxu0  ;;  %v4893_v6 = vmax.f32 %v4061_v44, %v4317_v35  ;;  %v4896_v52 = vmax.f32 %v4070_v57, %v4895_v1  ;;  %v4495_v1 = vpop.permute.xlu1 %2176 }
 0x299   : > { %v4429_v63 = vmax.f32 %v4885_v30, %v1749_v41  ;;  %v1751_v38 = vadd.f32 %v1750_v31, %v1677_v19  ;;  %v1762_v15 = vpop.f32.mrf.mxu1 }
 0x29a   : > { %v1679_v0 = vpop.f32.mrf.mxu0 }
 0x29b   : > { %v4434_v42 = vmax.f32 %v4886_v37, %v1751_v38  ;;  %v1753_v59 = vadd.f32 %v1752_v26, %v1679_v0  ;;  %v1766_v17 = vpop.f32.mrf.mxu1 }
 0x29c   : > { %v1683_v28 = vpop.f32.mrf.mxu0 }
 0x29d   : > { %v4439_v45 = vmax.f32 %v4887_v43, %v1753_v59  ;;  %v1757_v13 = vadd.f32 %v1756_v58, %v1683_v28  ;;  %v1768_v33 = vpop.f32.mrf.mxu1 }
 0x29e   : > { %v1685_v36 = vpop.f32.mrf.mxu0 }
 0x29f   : > { %v4444_v31 = vmax.f32 %v4888_v16, %v1757_v13  ;;  %v1759_v56 = vadd.f32 %v1758_v29, %v1685_v36  ;;  %v1770_v11 = vpop.f32.mrf.mxu1 }
 0x2a0   : > { %v1687_v10 = vpop.f32.mrf.mxu0 }
 0x2a1   : > { %v4449_v26 = vmax.f32 %v4889_v34, %v1759_v56  ;;  %v1761_v48 = vadd.f32 %v1760_v40, %v1687_v10  ;;  %v1772_v27 = vpop.f32.mrf.mxu1  ;;  %v4897_v56 = vld [vmem:[#allocation19_spill] sm:$0xff]  ;;  %v4898_v10 = vld [vmem:[#allocation17_spill] sm:$0xff] }
 0x2a2   : > { %v1689_v22 = vpop.f32.mrf.mxu0 }
 0x2a3   : > { %v4454_v20 = vmax.f32 %v4890_v62, %v1761_v48  ;;  %v1763_v58 = vadd.f32 %v1762_v15, %v1689_v22  ;;  %v4899_v48 = vld [vmem:[#allocation7_spill] sm:$0xff]  ;;  %v4900_v22 = vld [vmem:[#allocation24_spill] sm:$0xff] }
 0x2a4   : > { %v1693_v24 = vpop.f32.mrf.mxu0  ;;  %v801_v62 = vadd.f32 %v4900_v22, %v4899_v48 }
 0x2a5   : > { %v4459_v29 = vmax.f32 %v4891_v55, %v1763_v58  ;;  %v1767_v41 = vadd.f32 %v1766_v17, %v1693_v24  ;;  %v4485_v58 = vpop.permute.xlu0 %2171  ;;  %v4901_v24 = vld [vmem:[#allocation4_spill] sm:$0xff] }
 0x2a6   : > { %v1695_v19 = vpop.f32.mrf.mxu0 }
 0x2a7   : > { %v4464_v61 = vmax.f32 %v4892_v54, %v1767_v41  ;;  %v1769_v40 = vadd.f32 %v1768_v33, %v1695_v19  ;;  %v1593_v33 = vadd.f32 %v4898_v10, %v4897_v56  ;;  %v4904_v19 = vld [vmem:[#allocation34_spill] sm:$0xff] }
 0x2a8   : > { %v1697_v30 = vpop.f32.mrf.mxu0  ;;  %v1597_v54 = vadd.f32 %v4904_v19, %v4344_v7 }
 0x2a9   : > { %v4469_v38 = vmax.f32 %v4893_v6, %v1769_v40  ;;  %v1771_v15 = vadd.f32 %v1770_v11, %v1697_v30  ;;  %v4902_v11 = vld [vmem:[#allocation18_spill] sm:$0xff] }
 0x2aa   : > { %v1699_v0 = vpop.f32.mrf.mxu0  ;;  %v4903_v55 = vmax.f32 %v4901_v24, %v4902_v11  ;;  %v4907_v24 = vld [vmem:[#allocation21_spill] sm:$0xff]  ;;  %v4908_v11 = vld [vmem:[#allocation31_spill] sm:$0xff] }
 0x2ab   : > { %v4474_v51 = vmax.f32 %v4894_v2, %v1771_v15  ;;  %v1773_v37 = vadd.f32 %v1772_v27, %v1699_v0  ;;  %v4905_v15 = vld [vmem:[#allocation22_spill] sm:$0xff] }
 0x2ac   : > { %v1944_v59 = vpop.f32.mrf.mxu0  ;;  %v1776_v41 = vmax.f32 %v4903_v55, %v1593_v33  ;;  %v1366_v0 = vmax.f32 %v801_v62, %v4905_v15  ;;  %v811_v55 = vadd.f32 %v4908_v11, %v4907_v24  ;;  %v4911_v15 = vld [vmem:[#allocation25_spill] sm:$0xff] }
 0x2ad   : > { %v4479_v28 = vmax.f32 %v4896_v52, %v1773_v37 }
 0x2ae   : > { %v1946_v17 = vpop.f32.mrf.mxu0  ;;  %v1780_v56 = vmax.f32 %v1366_v0, %v1597_v54 }
 0x2b0   : > { %v1948_v43 = vpop.f32.mrf.mxu0 }
 0x2b2   : > { %v1950_v13 = vpop.f32.mrf.mxu0 }
 0x2b4   : > { %v1954_v44 = vpop.f32.mrf.mxu0 }
 0x2b6   : > { %v1956_v35 = vpop.f32.mrf.mxu0 }
 0x2b8   : > { %v1958_v36 = vpop.f32.mrf.mxu0 }
 0x2ba   : > { %v1960_v16 = vpop.f32.mrf.mxu0 }
 0x2bc   : > { %v1964_v60 = vpop.f32.mrf.mxu0 }
 0x2be   : > { %v1966_v6 = vpop.f32.mrf.mxu0 }
 0x2c0   : > { %v1968_v48 = vpop.f32.mrf.mxu0 }
 0x2c3   : > { %v1871_v9 = vpop.f32.mrf.mxu1 }
 0x2c4   : > { %v1945_v34 = vadd.f32 %v1944_v59, %v1871_v9 }
 0x2c5   : > { %v1873_v57 = vpop.f32.mrf.mxu1 }
 0x2c6   : > { %v2129_v40 = vmax.f32 %v4342_v4, %v1945_v34  ;;  %v1947_v30 = vadd.f32 %v1946_v17, %v1873_v57  ;;  %v4906_v17 = vld [vmem:[#allocation37_spill] sm:$0xff] }
 0x2c7   : > { %v1875_v27 = vpop.f32.mrf.mxu1  ;;  %v1603_v33 = vadd.f32 %v4906_v17, %v4353_v14 }
 0x2c8   : > { %v2130_v2 = vmax.f32 %v1776_v41, %v1947_v30  ;;  %v2209_v37 = vadd.f32 %v4485_v58, %v2129_v40  ;;  %v1949_v59 = vadd.f32 %v1948_v43, %v1875_v27  ;;  %v4909_v41 = vld [vmem:[#allocation35_spill] sm:$0xff]  ;;  %v4510_v40 = vpop.permute.xlu1 %2181  ;;  %v4910_v30 = vld [vmem:[#allocation14_spill] sm:$0xff] }
 0x2c9   : > { %v1877_v52 = vpop.f32.mrf.mxu1  ;;  %v1607_v19 = vadd.f32 %v4909_v41, %v4360_v39  ;;  %v1374_v27 = vmax.f32 %v811_v55, %v4910_v30  ;;  %v4917_v30 = vld [vmem:[#allocation9_spill] sm:$0xff] }
 0x2ca   : > { %v2210_v10 = vadd.f32 %v4485_v58, %v2130_v2  ;;  %v2133_v7 = vmax.f32 %v4351_v3, %v1949_v59  ;;  %v1951_v4 = vadd.f32 %v1950_v13, %v1877_v52  ;;  %v2241_v9 = vmax.f32 %v2209_v37, 0.0  ;;  %v1970_v52 = vpop.f32.mrf.mxu0 }
 0x2cb   : > { %v1881_v34 = vpop.f32.mrf.mxu1 }
 0x2cc   : > { %v2242_v22 = vmax.f32 %v2210_v10, 0.0  ;;  %v2134_v62 = vmax.f32 %v1780_v56, %v1951_v4  ;;  %v1955_v43 = vadd.f32 %v1954_v44, %v1881_v34  ;;  %v2213_v57 = vadd.f32 %v4495_v1, %v2133_v7  ;;  %v4912_v44 = vld [vmem:[#allocation23_spill] sm:$0xff] }
 0x2cd   : > { %v1883_v54 = vpop.f32.mrf.mxu1  ;;  %v4913_v0 = vmax.f32 %v4911_v15, %v4912_v44  ;;  %v1788_v10 = vmax.f32 %v1374_v27, %v1607_v19  ;;  %v4918_v27 = vld [vmem:[#allocation5_spill] sm:$0xff] }
 0x2ce   : > { %v2640_v3 = vpack.c.bf16 %v2242_v22, %v2241_v9  ;;  %v2137_v13 = vmax.f32 %v4358_v21, %v1955_v43  ;;  %v2214_v14 = vadd.f32 %v4495_v1, %v2134_v62  ;;  %v1957_v37 = vadd.f32 %v1956_v35, %v1883_v54  ;;  %v4520_v9 = vpop.permute.xlu0 %2186  ;;  %v4528_v54 = vpop.permute.xlu1 %2191 }
 0x2cf   : > { %v1784_v2 = vmax.f32 %v4913_v0, %v1603_v33  ;;  %v1885_v59 = vpop.f32.mrf.mxu1  ;;  %v2245_v39 = vmax.f32 %v2213_v57, 0.0  ;;  %v1613_v35 = vadd.f32 %v4346_v47, %v4369_v50  ;;  %v1974_v57 = vpop.f32.mrf.mxu0  ;;  %v4915_v47 = vld [vmem:[#allocation29_spill] sm:$0xff]  ;;  %v821_v15 = vadd.f32 %v4918_v27, %v4917_v30 }
 0x2d0   : > { %2379 = vst [vmem:[%s4516_s12] sm:$0xff] %v2640_v3  ;;  %v2246_v21 = vmax.f32 %v2214_v14, 0.0  ;;  %v1959_v56 = vadd.f32 %v1958_v36, %v1885_v59  ;;  %v2217_v4 = vadd.f32 %v4510_v40, %v2137_v13  ;;  %v4914_v3 = vld [vmem:[#allocation27_spill] sm:$0xff] }
 0x2d1   : > { %v2138_v7 = vmax.f32 %v1784_v2, %v1957_v37  ;;  %v1887_v17 = vpop.f32.mrf.mxu1  ;;  %v4916_v50 = vmax.f32 %v4914_v3, %v4915_v47  ;;  %v1976_v37 = vpop.f32.mrf.mxu0 }
 0x2d2   : > { %v2641_v33 = vpack.c.bf16 %v2246_v21, %v2245_v39  ;;  %v2141_v34 = vmax.f32 %v4367_v25, %v1959_v56  ;;  %v1961_v22 = vadd.f32 %v1960_v16, %v1887_v17  ;;  %v2249_v55 = vmax.f32 %v2217_v4, 0.0 }
 0x2d3   : > { %v2218_v62 = vadd.f32 %v4510_v40, %v2138_v7  ;;  %v1891_v43 = vpop.f32.mrf.mxu1  ;;  %v1792_v13 = vmax.f32 %v4916_v50, %v1613_v35  ;;  %v4921_v35 = vld [vmem:[#allocation20_spill] sm:$0xff] }
 0x2d4   : > { %2381 = vst [vmem:[%s4516_s12 + $0x10] sm:$0xff] %v2641_v33  ;;  %v2142_v36 = vmax.f32 %v1788_v10, %v1961_v22  ;;  %v2221_v24 = vadd.f32 %v4520_v9, %v2141_v34  ;;  %v1965_v11 = vadd.f32 %v1964_v60, %v1891_v43  ;;  %v1617_v60 = vadd.f32 %v4362_v8, %v4376_v32  ;;  %v4919_v10 = vld [vmem:[#allocation15_spill] sm:$0xff]  ;;  %v4546_v33 = vpop.permute.xlu0 %2196 }
 0x2d5   : > { %v2250_v41 = vmax.f32 %v2218_v62, 0.0  ;;  %v1893_v19 = vpop.f32.mrf.mxu1  ;;  %v1382_v7 = vmax.f32 %v821_v15, %v4919_v10  ;;  %v4929_v15 = vld [vmem:[#allocation11_spill] sm:$0xff] }
 0x2d6   : > { %v2222_v25 = vadd.f32 %v4520_v9, %v2142_v36  ;;  %v2145_v16 = vmax.f32 %v4374_v18, %v1965_v11  ;;  %v1967_v14 = vadd.f32 %v1966_v6, %v1893_v19  ;;  %v2253_v0 = vmax.f32 %v2221_v24, 0.0  ;;  %v4920_v18 = vld [vmem:[#allocation10_spill] sm:$0xff]  ;;  %v4922_v11 = vld [vmem:[#allocation43_spill] sm:$0xff]  ;;  %v4925_v19 = vld [vmem:[#allocation32_spill] sm:$0xff] }
 0x2d7   : > { %v2642_v44 = vpack.c.bf16 %v2250_v41, %v2249_v55  ;;  %v1895_v2 = vpop.f32.mrf.mxu1  ;;  %v1623_v6 = vadd.f32 %v4920_v18, %v4385_v46  ;;  %v1796_v34 = vmax.f32 %v1382_v7, %v1617_v60  ;;  %v4923_v46 = vld [vmem:[#allocation8_spill] sm:$0xff]  ;;  %v4924_v41 = vld [vmem:[#allocation42_spill] sm:$0xff] }
 0x2d8   : > { %v2254_v59 = vmax.f32 %v2222_v25, 0.0  ;;  %v2146_v39 = vmax.f32 %v1792_v13, %v1967_v14  ;;  %v1969_v21 = vadd.f32 %v1968_v48, %v1895_v2  ;;  %v2225_v56 = vadd.f32 %v4528_v54, %v2145_v16  ;;  %v1978_v48 = vpop.f32.mrf.mxu0  ;;  %v4555_v16 = vpop.permute.xlu1 %2201  ;;  %v4928_v14 = vld [vmem:[#allocation13_spill] sm:$0xff] }
 0x2d9   : > { %2383 = vst [vmem:[%s4516_s12 + $0x20] sm:$0xff] %v2642_v44  ;;  %v1897_v4 = vpop.f32.mrf.mxu1  ;;  %v831_v55 = vadd.f32 %v4923_v46, %v4922_v11  ;;  %v4926_v3 = vmax.f32 %v4924_v41, %v4925_v19 }
 0x2da   : > { %v2643_v17 = vpack.c.bf16 %v2254_v59, %v2253_v0  ;;  %v2149_v8 = vmax.f32 %v4921_v35, %v1969_v21  ;;  %v2226_v32 = vadd.f32 %v4528_v54, %v2146_v39  ;;  %v1971_v22 = vadd.f32 %v1970_v52, %v1897_v4  ;;  %v4927_v52 = vld [vmem:[#allocation12_spill] sm:$0xff]  ;;  %v1980_v2 = vpop.f32.mrf.mxu0  ;;  %v4564_v4 = vpop.permute.xlu0 %2206 }
 0x2db   : > { %v1901_v62 = vpop.f32.mrf.mxu1  ;;  %v2257_v43 = vmax.f32 %v2225_v56, 0.0  ;;  %v1800_v47 = vmax.f32 %v4926_v3, %v1623_v6  ;;  %v1627_v30 = vadd.f32 %v4928_v14, %v4927_v52  ;;  %v4930_v59 = vld [vmem:[#allocation36_spill] sm:$0xff] }
 0x2dc   : > { %2385 = vst [vmem:[%s4516_s12 + $0x30] sm:$0xff] %v2643_v17  ;;  %v2258_v36 = vmax.f32 %v2226_v32, 0.0  ;;  %v1975_v24 = vadd.f32 %v1974_v57, %v1901_v62  ;;  %v2150_v50 = vmax.f32 %v1796_v34, %v1971_v22  ;;  %v2229_v13 = vadd.f32 %v4546_v33, %v2149_v8 }
 0x2dd   : > { %v1903_v25 = vpop.f32.mrf.mxu1  ;;  %v1390_v39 = vmax.f32 %v831_v55, %v4930_v59 }
 0x2de   : > { %v2644_v27 = vpack.c.bf16 %v2258_v36, %v2257_v43  ;;  %v2153_v60 = vmax.f32 %v4929_v15, %v1975_v24  ;;  %v1977_v57 = vadd.f32 %v1976_v37, %v1903_v25  ;;  %v2230_v44 = vadd.f32 %v4546_v33, %v2150_v50  ;;  %v4931_v37 = vld [vmem:[#allocation16_spill] sm:$0xff] }
 0x2df   : > { %v1905_v0 = vpop.f32.mrf.mxu1  ;;  %v2261_v7 = vmax.f32 %v2229_v13, 0.0  ;;  %v1804_v17 = vmax.f32 %v1390_v39, %v1627_v30 }
 0x2e0   : > { %2387 = vst [vmem:[%s4516_s12 + $0x40] sm:$0xff] %v2644_v27  ;;  %v2154_v21 = vmax.f32 %v1800_v47, %v1977_v57  ;;  %v1979_v56 = vadd.f32 %v1978_v48, %v1905_v0  ;;  %v2233_v10 = vadd.f32 %v4555_v16, %v2153_v60  ;;  %v2262_v18 = vmax.f32 %v2230_v44, 0.0 }
 0x2e1   : > { %v1907_v6 = vpop.f32.mrf.mxu1 }
 0x2e2   : > { %v2157_v35 = vmax.f32 %v4931_v37, %v1979_v56  ;;  %v2234_v8 = vadd.f32 %v4555_v16, %v2154_v21  ;;  %v1981_v32 = vadd.f32 %v1980_v2, %v1907_v6  ;;  %v2645_v34 = vpack.c.bf16 %v2262_v18, %v2261_v7 }
 0x2e3   : > { %v2090_v22 = vpop.f32.mrf.mxu1  ;;  %v2265_v62 = vmax.f32 %v2233_v10, 0.0 }
 0x2e4   : > { %v2266_v48 = vmax.f32 %v2234_v8, 0.0  ;;  %v2158_v43 = vmax.f32 %v1804_v17, %v1981_v32  ;;  %v2237_v36 = vadd.f32 %v4564_v4, %v2157_v35  ;;  %2389 = vst [vmem:[%s4516_s12 + $0x50] sm:$0xff] %v2645_v34 }
 0x2e5   : > { %v2092_v24 = vpop.f32.mrf.mxu1 }
 0x2e6   : > { %v2646_v11 = vpack.c.bf16 %v2266_v48, %v2265_v62  ;;  %v2238_v46 = vadd.f32 %v4564_v4, %v2158_v43  ;;  %v2269_v41 = vmax.f32 %v2237_v36, 0.0 }
 0x2e7   : > { %v2094_v55 = vpop.f32.mrf.mxu1 }
 0x2e8   : > { %2391 = vst [vmem:[%s4516_s12 + $0x60] sm:$0xff] %v2646_v11  ;;  %v2270_v19 = vmax.f32 %v2238_v46, 0.0 }
 0x2e9   : > { %v2096_v3 = vpop.f32.mrf.mxu1 }
 0x2ea   : > { %v2647_v47 = vpack.c.bf16 %v2270_v19, %v2269_v41 }
 0x2eb   : > { %v2100_v50 = vpop.f32.mrf.mxu1 }
 0x2ec   : > { %2393 = vst [vmem:[%s4516_s12 + $0x70] sm:$0xff] %v2647_v47  ;;  %v2017_v13 = vpop.f32.mrf.mxu0 }
 0x2ed   : > { %v2091_v25 = vadd.f32 %v2090_v22, %v2017_v13  ;;  %v2102_v52 = vpop.f32.mrf.mxu1 }
 0x2ee   : > { %v2019_v14 = vpop.f32.mrf.mxu0 }
 0x2ef   : > { %v2131_v30 = vmax.f32 %v4404_v12, %v2091_v25  ;;  %v2093_v27 = vadd.f32 %v2092_v24, %v2019_v14  ;;  %v2104_v15 = vpop.f32.mrf.mxu1 }
 0x2f0   : > { %v2021_v60 = vpop.f32.mrf.mxu0 }
 0x2f1   : > { %v2132_v57 = vmax.f32 %v4409_v5, %v2093_v27  ;;  %v2095_v44 = vadd.f32 %v2094_v55, %v2021_v60  ;;  %v2106_v0 = vpop.f32.mrf.mxu1  ;;  %v2211_v59 = vadd.f32 %v4485_v58, %v2131_v30 }
 0x2f2   : > { %v2023_v2 = vpop.f32.mrf.mxu0 }
 0x2f3   : > { %v2135_v39 = vmax.f32 %v4414_v49, %v2095_v44  ;;  %v2097_v21 = vadd.f32 %v2096_v3, %v2023_v2  ;;  %v2110_v56 = vpop.f32.mrf.mxu1  ;;  %v2212_v7 = vadd.f32 %v4485_v58, %v2132_v57  ;;  %v2243_v5 = vmax.f32 %v2211_v59, 0.0 }
 0x2f4   : > { %v2027_v10 = vpop.f32.mrf.mxu0 }
 0x2f5   : > { %v2215_v18 = vadd.f32 %v4495_v1, %v2135_v39  ;;  %v2136_v12 = vmax.f32 %v4419_v23, %v2097_v21  ;;  %v2101_v6 = vadd.f32 %v2100_v50, %v2027_v10  ;;  %v2112_v17 = vpop.f32.mrf.mxu1  ;;  %v2244_v62 = vmax.f32 %v2212_v7, 0.0 }
 0x2f6   : > { %v2029_v37 = vpop.f32.mrf.mxu0 }
 0x2f7   : > { %v2247_v35 = vmax.f32 %v2215_v18, 0.0  ;;  %v2216_v8 = vadd.f32 %v4495_v1, %v2136_v12  ;;  %v2103_v32 = vadd.f32 %v2102_v52, %v2029_v37  ;;  %v2114_v34 = vpop.f32.mrf.mxu1  ;;  %v2139_v49 = vmax.f32 %v4424_v53, %v2101_v6 }
 0x2f8   : > { %v2031_v22 = vpop.f32.mrf.mxu0 }
 0x2f9   : > { %v2275_v48 = vpack.c.bf16 %v2247_v35, %v2243_v5  ;;  %v2248_v43 = vmax.f32 %v2216_v8, 0.0  ;;  %v2140_v58 = vmax.f32 %v4429_v63, %v2103_v32  ;;  %v2105_v36 = vadd.f32 %v2104_v15, %v2031_v22  ;;  %v2116_v24 = vpop.f32.mrf.mxu1 }
 0x2fa   : > { %v2033_v23 = vpop.f32.mrf.mxu0  ;;  %v2219_v55 = vadd.f32 %v4510_v40, %v2139_v49 }
 0x2fb   : > { %v2276_v11 = vpack.c.bf16 %v2248_v43, %v2244_v62  ;;  %v2107_v46 = vadd.f32 %v2106_v0, %v2033_v23  ;;  %v2143_v1 = vmax.f32 %v4434_v42, %v2105_v36  ;;  %v2220_v19 = vadd.f32 %v4510_v40, %v2140_v58  ;;  %v2120_v52 = vpop.f32.mrf.mxu1 }
 0x2fc   : > { %v2037_v41 = vpop.f32.mrf.mxu0  ;;  %v2251_v42 = vmax.f32 %v2219_v55, 0.0 }
 0x2fd   : > { %v2292_v53 = vsel %vm2289_vm4, %v2276_v11, 0  ;;  %v2144_v3 = vmax.f32 %v4439_v45, %v2107_v46  ;;  %v2111_v63 = vadd.f32 %v2110_v56, %v2037_v41  ;;  %v2223_v13 = vadd.f32 %v4520_v9, %v2143_v1  ;;  %v2122_v59 = vpop.f32.mrf.mxu1 }
 0x2fe   : > { %v2619_v47 = vcombine.low %v2275_v48, %v2292_v53  ;;  %v2621_v50 = vcombine.high %v2275_v48, %v2292_v53  ;;  %v2039_v25 = vpop.f32.mrf.mxu0  ;;  %v2252_v40 = vmax.f32 %v2220_v19, 0.0 }
 0x2ff   : > { %v2224_v14 = vadd.f32 %v4520_v9, %v2144_v3  ;;  %v2147_v30 = vmax.f32 %v4444_v31, %v2111_v63  ;;  %v2113_v27 = vadd.f32 %v2112_v17, %v2039_v25  ;;  %v2255_v15 = vmax.f32 %v2223_v13, 0.0  ;;  %v2124_v5 = vpop.f32.mrf.mxu1  ;;  %v2421_v25 = vld [vmem:[%s4516_s12 + $0x10] sm:$0xff] (%p2843_p5) }
 0x300   : > { %2380 = vst [vmem:[%s4516_s12 + $0x8] sm:$0xff] %v2619_v47  ;;  %2382 = vst [vmem:[%s4516_s12 + $0x18] sm:$0xff] %v2621_v50  ;;  %v2041_v60 = vpop.f32.mrf.mxu0 }
 0x301   : > { %v2256_v57 = vmax.f32 %v2224_v14, 0.0  ;;  %v2115_v45 = vadd.f32 %v2114_v34, %v2041_v60  ;;  %v2279_v44 = vpack.c.bf16 %v2255_v15, %v2251_v42  ;;  %v2148_v0 = vmax.f32 %v4449_v26, %v2113_v27  ;;  %v2126_v58 = vpop.f32.mrf.mxu1  ;;  %v2425_v14 = vld [vmem:[%s4516_s12 + $0x20] sm:$0xff] (%p2843_p5)  ;;  %2422 = vst [vmem:[%s2404_s20 + $0x20] sm:$0xff] (%p2843_p5), %v2421_v25  ;;  %v2429_v27 = vld [vmem:[%s4516_s12 + $0x30] sm:$0xff] (%p2843_p5) }
 0x302   : > { %v2043_v2 = vpop.f32.mrf.mxu0  ;;  %v2227_v21 = vadd.f32 %v4528_v54, %v2147_v30  ;;  %2426 = vst [vmem:[%s2404_s20 + $0x40] sm:$0xff] (%p2843_p5), %v2425_v14  ;;  %v2433_v15 = vld [vmem:[%s4516_s12 + $0x40] sm:$0xff] (%p2843_p5)  ;;  %2430 = vst [vmem:[%s2404_s20 + $0x60] sm:$0xff] (%p2843_p5), %v2429_v27 }
 0x303   : > { %v2280_v39 = vpack.c.bf16 %v2256_v57, %v2252_v40  ;;  %v2151_v9 = vmax.f32 %v4454_v20, %v2115_v45  ;;  %v2117_v31 = vadd.f32 %v2116_v24, %v2043_v2  ;;  %v2228_v26 = vadd.f32 %v4528_v54, %v2148_v0  ;;  %2434 = vst [vmem:[%s2404_s20 + $0x80] sm:$0xff] (%p2843_p5), %v2433_v15  ;;  %v2437_v40 = vld [vmem:[%s4516_s12 + $0x50] sm:$0xff] (%p2843_p5)  ;;  %v2441_v45 = vld [vmem:[%s4516_s12 + $0x60] sm:$0xff] (%p2843_p5) }
 0x304   : > { %v2047_v56 = vpop.f32.mrf.mxu0  ;;  %v2259_v35 = vmax.f32 %v2227_v21, 0.0  ;;  %2438 = vst [vmem:[%s2404_s20 + $0xa0] sm:$0xff] (%p2843_p5), %v2437_v40  ;;  %v2445_v0 = vld [vmem:[%s4516_s12 + $0x70] sm:$0xff] (%p2843_p5)  ;;  %2442 = vst [vmem:[%s2404_s20 + $0xc0] sm:$0xff] (%p2843_p5), %v2441_v45 }
 0x305   : > { %v2294_v10 = vsel %vm2289_vm4, %v2280_v39, 0  ;;  %v2231_v7 = vadd.f32 %v4546_v33, %v2151_v9  ;;  %v2121_v18 = vadd.f32 %v2120_v52, %v2047_v56  ;;  %v2152_v17 = vmax.f32 %v4459_v29, %v2117_v31  ;;  %2446 = vst [vmem:[%s2404_s20 + $0xe0] sm:$0xff] (%p2843_p5), %v2445_v0 }
 0x306   : > { %v2623_v12 = vcombine.low %v2279_v44, %v2294_v10  ;;  %v2625_v6 = vcombine.high %v2279_v44, %v2294_v10  ;;  %v2049_v37 = vpop.f32.mrf.mxu0  ;;  %v2260_v43 = vmax.f32 %v2228_v26, 0.0 }
 0x307   : > { %v2263_v8 = vmax.f32 %v2231_v7, 0.0  ;;  %v2155_v20 = vmax.f32 %v4464_v61, %v2121_v18  ;;  %v2123_v32 = vadd.f32 %v2122_v59, %v2049_v37  ;;  %v2232_v34 = vadd.f32 %v4546_v33, %v2152_v17  ;;  %v2419_v13 = vld [vmem:[%s4516_s12 + $0x8] sm:$0xff] (%p2843_p5)  ;;  %v2423_v52 = vld [vmem:[%s4516_s12 + $0x18] sm:$0xff] (%p2843_p5) }
 0x308   : > { %2384 = vst [vmem:[%s4516_s12 + $0x28] sm:$0xff] %v2623_v12  ;;  %2386 = vst [vmem:[%s4516_s12 + $0x38] sm:$0xff] %v2625_v6  ;;  %v2051_v49 = vpop.f32.mrf.mxu0 }
 0x309   : > { %v2283_v22 = vpack.c.bf16 %v2263_v8, %v2259_v35  ;;  %v2156_v62 = vmax.f32 %v4469_v38, %v2123_v32  ;;  %v2125_v48 = vadd.f32 %v2124_v5, %v2051_v49  ;;  %v2264_v54 = vmax.f32 %v2232_v34, 0.0  ;;  %2420 = vst [vmem:[%s2404_s20 + $0x8] sm:$0xff] (%p2843_p5), %v2419_v13  ;;  %2424 = vst [vmem:[%s2404_s20 + $0x28] sm:$0xff] (%p2843_p5), %v2423_v52 }
 0x30a   : > { %v2235_v29 = vadd.f32 %v4555_v16, %v2155_v20  ;;  %v2053_v36 = vpop.f32.mrf.mxu0 }
 0x30b   : > { %v2159_v61 = vmax.f32 %v4474_v51, %v2125_v48  ;;  %v2127_v23 = vadd.f32 %v2126_v58, %v2053_v36  ;;  %v2284_v24 = vpack.c.bf16 %v2264_v54, %v2260_v43  ;;  %v2236_v11 = vadd.f32 %v4555_v16, %v2156_v62 }
 0x30c   : > { %v2267_v55 = vmax.f32 %v2235_v29, 0.0 }
 0x30d   : > { %v2239_v33 = vadd.f32 %v4564_v4, %v2159_v61  ;;  %v2160_v46 = vmax.f32 %v4479_v28, %v2127_v23  ;;  %v2296_v38 = vsel %vm2289_vm4, %v2284_v24, 0  ;;  %v2268_v51 = vmax.f32 %v2236_v11, 0.0 }
 0x30e   : > { %v2627_v1 = vcombine.low %v2283_v22, %v2296_v38  ;;  %v2629_v41 = vcombine.high %v2283_v22, %v2296_v38 }
 0x30f   : > { %v2271_v53 = vmax.f32 %v2239_v33, 0.0  ;;  %v2240_v19 = vadd.f32 %v4564_v4, %v2160_v46  ;;  %v2417_v4 = vld [vmem:[%s4516_s12] sm:$0xff] (%p2843_p5)  ;;  %v2427_v30 = vld [vmem:[%s4516_s12 + $0x28] sm:$0xff] (%p2843_p5)  ;;  %v2431_v42 = vld [vmem:[%s4516_s12 + $0x38] sm:$0xff] (%p2843_p5) }
 0x310   : > { %2388 = vst [vmem:[%s4516_s12 + $0x48] sm:$0xff] %v2627_v1  ;;  %2390 = vst [vmem:[%s4516_s12 + $0x58] sm:$0xff] %v2629_v41 }
 0x311   : > { %v2287_v3 = vpack.c.bf16 %v2271_v53, %v2267_v55  ;;  %v2272_v63 = vmax.f32 %v2240_v19, 0.0  ;;  %2418 = vst [vmem:[%s2404_s20] sm:$0xff] (%p2843_p5), %v2417_v4  ;;  %2428 = vst [vmem:[%s2404_s20 + $0x48] sm:$0xff] (%p2843_p5), %v2427_v30 }
 0x312   : > { %2432 = vst [vmem:[%s2404_s20 + $0x68] sm:$0xff] (%p2843_p5), %v2431_v42 }
 0x313   : > { %v2288_v16 = vpack.c.bf16 %v2272_v63, %v2268_v51 }
 0x314   : > { %2401 = sbr.rel (!%p2843_p5) target bundleno = 801 (0x321), region = 59 }
 0x315   : > { %v2298_v47 = vsel %vm2289_vm4, %v2288_v16, 0 }
 0x316   : > { %v2631_v50 = vcombine.low %v2287_v3, %v2298_v47  ;;  %v2633_v28 = vcombine.high %v2287_v3, %v2298_v47 }
 0x317   : > { %v2435_v60 = vld [vmem:[%s4516_s12 + $0x48] sm:$0xff] (%p2843_p5)  ;;  %v2439_v57 = vld [vmem:[%s4516_s12 + $0x58] sm:$0xff] (%p2843_p5) }
 0x318   : > { %2392 = vst [vmem:[%s4516_s12 + $0x68] sm:$0xff] %v2631_v50  ;;  %2394 = vst [vmem:[%s4516_s12 + $0x78] sm:$0xff] %v2633_v28 }
 0x319   : > { %2436 = vst [vmem:[%s2404_s20 + $0x88] sm:$0xff] %v2435_v60  ;;  %2440 = vst [vmem:[%s2404_s20 + $0xa8] sm:$0xff] %v2439_v57 }
 0x31f   : > { %v2443_v44 = vld [vmem:[%s4516_s12 + $0x68] sm:$0xff]  ;;  %v2447_v2 = vld [vmem:[%s4516_s12 + $0x78] sm:$0xff] }
 0x320   : > { %2444 = vst [vmem:[%s2404_s20 + $0xc8] sm:$0xff] %v2443_v44  ;;  %2448 = vst [vmem:[%s2404_s20 + $0xe8] sm:$0xff] %v2447_v2 }
 0x321 PF: > { %p10_p10 = scmp.ge.s32.totalorder %s2830_s16, 4   ;;  %s4932_s12 = smov %s2783_s13 }
 0x322   : > { %s4933_s13 = smov %s2841_s19  ;;  %s4934_s14 = smov %s2830_s16 }
 0x323   :  { %12 = sbr.rel (!%p10_p10) target bundleno = 2 (0x2), region = 116 }

// kernel: cnn_forward.5
= control target key start
LH: loop header
LB: loop body
LE: loop exit
PB: predicated region body
PF: predicated region fallthrough
CT: control target
= control target key end

     0   :  { %s9442_s0 = inlined_call_operand.vmem [shape: bf16[8,8192], index: 0, kind: input, shape index: {}]   ;;  %s9443_s1 = inlined_call_operand.vmem [shape: bf16[8192,128], index: 1, kind: input, shape index: {}]   ;;  %s9444_s2 = inlined_call_operand.vmem [shape: f32[1,128], index: 2, kind: input, shape index: {}]   ;;  %s9445_s3 = inlined_call_operand.vmem [shape: bf16[128,128], index: 3, kind: input, shape index: {}]   ;;  %s9446_s4 = inlined_call_operand.vmem [shape: f32[1,128], index: 4, kind: input, shape index: {}]   ;;  %s9447_s5 = inlined_call_operand.hbm [shape: f32[8,128], index: 5, kind: output, shape index: {}]  }
   0x1   :  { %v7111_v0 = vld [vmem:[%s9443_s1 + $0x78] sm:$0xff]   ;;  %v7115_v4 = vld [vmem:[%s9443_s1 + $0x70] sm:$0xff]   ;;  %v7119_v8 = vld [vmem:[%s9443_s1 + $0x68] sm:$0xff]  }
   0x2   :  { %v7112_v1 = vld [vmem:[%s9443_s1 + $0xf8] sm:$0xff]   ;;  %6375 = vmatprep.subr.bf16.mxu0 %v7111_v0  ;;  %v7116_v5 = vld [vmem:[%s9443_s1 + $0xf0] sm:$0xff]   ;;  %v7120_v9 = vld [vmem:[%s9443_s1 + $0xe8] sm:$0xff]  }
   0x3   :  { %v7113_v2 = vld [vmem:[%s9443_s1 + $0x38] sm:$0xff]   ;;  %6397 = vmatprep.subr.bf16.mxu1 %v7112_v1  ;;  %v7117_v6 = vld [vmem:[%s9443_s1 + $0x30] sm:$0xff]   ;;  %v7121_v10 = vld [vmem:[%s9443_s1 + $0x28] sm:$0xff]  }
   0x4   :  { %v7114_v3 = vld [vmem:[%s9443_s1 + $0xb8] sm:$0xff]   ;;  %6376 = vmatpush3.bf16.msra.mxu0 %v7113_v2  ;;  %v7118_v7 = vld [vmem:[%s9443_s1 + $0xb0] sm:$0xff]   ;;  %v7122_v11 = vld [vmem:[%s9443_s1 + $0xa8] sm:$0xff]  }
   0x5   :  { %6398 = vmatpush3.bf16.msra.mxu1 %v7114_v3  ;;  %6377 = vmatprep.subr.bf16.mxu0 %v7115_v4  ;;  %v7123_v12 = vld [vmem:[%s9443_s1 + $0x60] sm:$0xff]   ;;  %v7127_v16 = vld [vmem:[%s9443_s1 + $0x58] sm:$0xff]   ;;  %v7131_v20 = vld [vmem:[%s9443_s1 + $0x50] sm:$0xff]  }
   0x6   :  { %6399 = vmatprep.subr.bf16.mxu1 %v7116_v5  ;;  %v7124_v13 = vld [vmem:[%s9443_s1 + $0xe0] sm:$0xff]   ;;  %v7128_v17 = vld [vmem:[%s9443_s1 + $0xd8] sm:$0xff]   ;;  %v7132_v21 = vld [vmem:[%s9443_s1 + $0xd0] sm:$0xff]  }
   0x7   :  { %v7125_v14 = vld [vmem:[%s9443_s1 + $0x20] sm:$0xff]   ;;  %v7129_v18 = vld [vmem:[%s9443_s1 + $0x18] sm:$0xff]   ;;  %v7133_v22 = vld [vmem:[%s9443_s1 + $0x10] sm:$0xff]  }
   0x8   :  { %6378 = vmatpush3.bf16.msra.mxu0 %v7117_v6  ;;  %v7126_v15 = vld [vmem:[%s9443_s1 + $0xa0] sm:$0xff]   ;;  %v7130_v19 = vld [vmem:[%s9443_s1 + $0x98] sm:$0xff]   ;;  %v7134_v23 = vld [vmem:[%s9443_s1 + $0x90] sm:$0xff]  }
   0x9   :  { %6400 = vmatpush3.bf16.msra.mxu1 %v7118_v7  ;;  %6379 = vmatprep.subr.bf16.mxu0 %v7119_v8  ;;  %v7135_v24 = vld [vmem:[%s9443_s1 + $0x48] sm:$0xff]   ;;  %v7139_v28 = vld [vmem:[%s9443_s1 + $0x40] sm:$0xff]   ;;  %v7147_v38 = vld [vmem:[%s9443_s1 + $0x178] sm:$0xff]  }
   0xa   :  { %6401 = vmatprep.subr.bf16.mxu1 %v7120_v9  ;;  %v7136_v25 = vld [vmem:[%s9443_s1 + $0xc8] sm:$0xff]   ;;  %v7140_v29 = vld [vmem:[%s9443_s1 + $0xc0] sm:$0xff]   ;;  %v7148_v39 = vld [vmem:[%s9443_s1 + $0x1f8] sm:$0xff]  }
   0xb   :  { %v7137_v26 = vld [vmem:[%s9443_s1 + $0x8] sm:$0xff]   ;;  %v7141_v30 = vld [vmem:[%s9443_s1] sm:$0xff]   ;;  %v7149_v40 = vld [vmem:[%s9443_s1 + $0x138] sm:$0xff]  }
   0xc   :  { %6380 = vmatpush3.bf16.msra.mxu0 %v7121_v10  ;;  %v7138_v27 = vld [vmem:[%s9443_s1 + $0x88] sm:$0xff]   ;;  %v7142_v31 = vld [vmem:[%s9443_s1 + $0x80] sm:$0xff]   ;;  %v7150_v41 = vld [vmem:[%s9443_s1 + $0x1b8] sm:$0xff]  }
   0xd   :  { %6402 = vmatpush3.bf16.msra.mxu1 %v7122_v11  ;;  %6381 = vmatprep.subr.bf16.mxu0 %v7123_v12  ;;  %v22_v32 = vld [vmem:[%s9442_s0] sm:$0xff]  ;;  %v23_v33 = vld [vmem:[%s9442_s0 + $0x8] sm:$0xff]  ;;  %v7151_v42 = vld [vmem:[%s9443_s1 + $0x170] sm:$0xff]  }
   0xe   :  { %6403 = vmatprep.subr.bf16.mxu1 %v7124_v13  ;;  %v5790_v34 = vcombine.low %v22_v32, %v22_v32  ;;  %v5791_v35 = vcombine.high %v22_v32, %v22_v32  ;;  %v5792_v36 = vcombine.low %v23_v33, %v23_v33  ;;  %v5793_v37 = vcombine.high %v23_v33, %v23_v33  ;;  %v7152_v43 = vld [vmem:[%s9443_s1 + $0x1f0] sm:$0xff]   ;;  %v7155_v46 = vld [vmem:[%s9443_s1 + $0x168] sm:$0xff]   ;;  %v7159_v50 = vld [vmem:[%s9443_s1 + $0x160] sm:$0xff]  }
   0xf   :  { %v7153_v44 = vld [vmem:[%s9443_s1 + $0x130] sm:$0xff]   ;;  %v7156_v47 = vld [vmem:[%s9443_s1 + $0x1e8] sm:$0xff]   ;;  %v7160_v51 = vld [vmem:[%s9443_s1 + $0x1e0] sm:$0xff]  }
  0x10   :  { %6382 = vmatpush3.bf16.msra.mxu0 %v7125_v14  ;;  %4413 = vmatprep.mubr.bf16.mxu0 %v5791_v35  ;;  %v7154_v45 = vld [vmem:[%s9443_s1 + $0x1b0] sm:$0xff]   ;;  %v7157_v48 = vld [vmem:[%s9443_s1 + $0x128] sm:$0xff]   ;;  %v7161_v52 = vld [vmem:[%s9443_s1 + $0x120] sm:$0xff]  }
  0x11   :  { %6404 = vmatpush3.bf16.msra.mxu1 %v7126_v15  ;;  %6383 = vmatprep.subr.bf16.mxu0 %v7127_v16  ;;  %v7158_v49 = vld [vmem:[%s9443_s1 + $0x1a8] sm:$0xff]   ;;  %v7162_v53 = vld [vmem:[%s9443_s1 + $0x1a0] sm:$0xff]   ;;  %v7163_v54 = vld [vmem:[%s9443_s1 + $0x158] sm:$0xff]  }
  0x12   :  { %6405 = vmatprep.subr.bf16.mxu1 %v7128_v17  ;;  %4453 = vmatprep.mubr.bf16.mxu1 %v5793_v37  ;;  %v7164_v55 = vld [vmem:[%s9443_s1 + $0x1d8] sm:$0xff]   ;;  %v7167_v58 = vld [vmem:[%s9443_s1 + $0x150] sm:$0xff]   ;;  %v7171_v62 = vld [vmem:[%s9443_s1 + $0x148] sm:$0xff]  }
  0x13   :  { %v7165_v56 = vld [vmem:[%s9443_s1 + $0x118] sm:$0xff]   ;;  %v7168_v59 = vld [vmem:[%s9443_s1 + $0x1d0] sm:$0xff]   ;;  %v7172_v63 = vld [vmem:[%s9443_s1 + $0x1c8] sm:$0xff]  }
  0x14   :  { %6384 = vmatpush3.bf16.msra.mxu0 %v7129_v18  ;;  %v7166_v57 = vld [vmem:[%s9443_s1 + $0x198] sm:$0xff]   ;;  %v7169_v60 = vld [vmem:[%s9443_s1 + $0x110] sm:$0xff]   ;;  %v7173_v0 = vld [vmem:[%s9443_s1 + $0x108] sm:$0xff]  }
  0x15   :  { %6406 = vmatpush3.bf16.msra.mxu1 %v7130_v19  ;;  %6385 = vmatprep.subr.bf16.mxu0 %v7131_v20  ;;  %v7170_v61 = vld [vmem:[%s9443_s1 + $0x190] sm:$0xff]   ;;  %v7174_v1 = vld [vmem:[%s9443_s1 + $0x188] sm:$0xff]   ;;  %v7175_v2 = vld [vmem:[%s9443_s1 + $0x140] sm:$0xff]  }
  0x16   :  { %6407 = vmatprep.subr.bf16.mxu1 %v7132_v21  ;;  %v7176_v3 = vld [vmem:[%s9443_s1 + $0x1c0] sm:$0xff]   ;;  %v24_v6 = vld [vmem:[%s9442_s0 + $0x10] sm:$0xff]  ;;  %v25_v9 = vld [vmem:[%s9442_s0 + $0x18] sm:$0xff] }
  0x17   :  { %v7177_v4 = vld [vmem:[%s9443_s1 + $0x100] sm:$0xff]   ;;  %v5794_v7 = vcombine.low %v24_v6, %v24_v6  ;;  %v5795_v8 = vcombine.high %v24_v6, %v24_v6  ;;  %v5796_v10 = vcombine.low %v25_v9, %v25_v9  ;;  %v5797_v11 = vcombine.high %v25_v9, %v25_v9  ;;  %v7183_v12 = vld [vmem:[%s9443_s1 + $0x278] sm:$0xff]   ;;  %v7187_v16 = vld [vmem:[%s9443_s1 + $0x270] sm:$0xff]  }
  0x18   :  { %6386 = vmatpush3.bf16.msra.mxu0 %v7133_v22  ;;  %v7178_v5 = vld [vmem:[%s9443_s1 + $0x180] sm:$0xff]   ;;  %v7184_v13 = vld [vmem:[%s9443_s1 + $0x2f8] sm:$0xff]   ;;  %v7188_v17 = vld [vmem:[%s9443_s1 + $0x2f0] sm:$0xff]  }
  0x19   :  { %6408 = vmatpush3.bf16.msra.mxu1 %v7134_v23  ;;  %6387 = vmatprep.subr.bf16.mxu0 %v7135_v24  ;;  %v7185_v14 = vld [vmem:[%s9443_s1 + $0x238] sm:$0xff]   ;;  %v7189_v18 = vld [vmem:[%s9443_s1 + $0x230] sm:$0xff]   ;;  %v7191_v20 = vld [vmem:[%s9443_s1 + $0x268] sm:$0xff]  }
  0x1a   :  { %6409 = vmatprep.subr.bf16.mxu1 %v7136_v25  ;;  %v7186_v15 = vld [vmem:[%s9443_s1 + $0x2b8] sm:$0xff]   ;;  %v7190_v19 = vld [vmem:[%s9443_s1 + $0x2b0] sm:$0xff]   ;;  %v7192_v21 = vld [vmem:[%s9443_s1 + $0x2e8] sm:$0xff]  }
  0x1b   :  { %v7193_v22 = vld [vmem:[%s9443_s1 + $0x228] sm:$0xff]   ;;  %v7195_v24 = vld [vmem:[%s9443_s1 + $0x260] sm:$0xff]   ;;  %v7203_v32 = vld [vmem:[%s9443_s1 + $0x250] sm:$0xff]  }
  0x1c   :  { %6388 = vmatpush3.bf16.msra.mxu0 %v7137_v26  ;;  %v7194_v23 = vld [vmem:[%s9443_s1 + $0x2a8] sm:$0xff]   ;;  %v7196_v25 = vld [vmem:[%s9443_s1 + $0x2e0] sm:$0xff]   ;;  %v7204_v33 = vld [vmem:[%s9443_s1 + $0x2d0] sm:$0xff]  }
  0x1d   :  { %6410 = vmatpush3.bf16.msra.mxu1 %v7138_v27  ;;  %6389 = vmatprep.subr.bf16.mxu0 %v7139_v28  ;;  %v7197_v26 = vld [vmem:[%s9443_s1 + $0x220] sm:$0xff]   ;;  %v7199_v28 = vld [vmem:[%s9443_s1 + $0x258] sm:$0xff]   ;;  %v7206_v35 = vld [vmem:[%s9443_s1 + $0x290] sm:$0xff]  }
  0x1e   :  { %6411 = vmatprep.subr.bf16.mxu1 %v7140_v29  ;;  %v7198_v27 = vld [vmem:[%s9443_s1 + $0x2a0] sm:$0xff]   ;;  %v7200_v29 = vld [vmem:[%s9443_s1 + $0x2d8] sm:$0xff]   ;;  %v7208_v37 = vld [vmem:[%s9443_s1 + $0x2c8] sm:$0xff]  }
  0x1f   :  { %v7239_v6 = vld [vmem:[%s9443_s1 + $0x350] sm:$0xff]  }
  0x20   :  { %6390 = vmatpush3.bf16.msra.mxu0 %v7141_v30  ;;  %v7201_v30 = vld [vmem:[%s9443_s1 + $0x218] sm:$0xff]   ;;  %v7242_v9 = vld [vmem:[%s9443_s1 + $0x390] sm:$0xff]  }
  0x21   :  { %6412 = vmatpush3.bf16.msra.mxu1 %v7142_v31  ;;  %6419 = vmatprep.subr.bf16.mxu0 %v7147_v38  ;;  %v7202_v31 = vld [vmem:[%s9443_s1 + $0x298] sm:$0xff]   ;;  %v7209_v38 = vld [vmem:[%s9443_s1 + $0x208] sm:$0xff]  }
  0x22   :  { %6441 = vmatprep.subr.bf16.mxu1 %v7148_v39  ;;  %v7210_v39 = vld [vmem:[%s9443_s1 + $0x288] sm:$0xff]  }
  0x23   :  { %4414 = vmatmul.mubr.bf16.vlgmr.msra.gmra.mxu0 %v5790_v34  ;;  %v7205_v34 = vld [vmem:[%s9443_s1 + $0x210] sm:$0xff]  }
  0x24   :  { %4454 = vmatmul.mubr.bf16.vlgmr.msra.gmra.mxu1 %v5792_v36  ;;  %6420 = vmatpush3.bf16.msra.mxu0 %v7149_v40  ;;  %v7207_v36 = vld [vmem:[%s9443_s1 + $0x248] sm:$0xff]   ;;  %v7211_v40 = vld [vmem:[%s9443_s1 + $0x240] sm:$0xff]  }
  0x25   :  { %6442 = vmatpush3.bf16.msra.mxu1 %v7150_v41  ;;  %6421 = vmatprep.subr.bf16.mxu0 %v7151_v42  ;;  %v7212_v41 = vld [vmem:[%s9443_s1 + $0x2c0] sm:$0xff]  }
  0x26   :  { %6443 = vmatprep.subr.bf16.mxu1 %v7152_v43  ;;  %4493 = vmatprep.mubr.bf16.mxu0 %v5795_v8  ;;  %v7213_v42 = vld [vmem:[%s9443_s1 + $0x200] sm:$0xff]   ;;  %v7241_v8 = vld [vmem:[%s9443_s1 + $0x310] sm:$0xff]  }
  0x27   :  { %4533 = vmatprep.mubr.bf16.mxu1 %v5797_v11  ;;  %v7214_v43 = vld [vmem:[%s9443_s1 + $0x280] sm:$0xff]   ;;  %v7244_v11 = vld [vmem:[%s9443_s1 + $0x3c8] sm:$0xff]  }
  0x28   :  { %6422 = vmatpush3.bf16.msra.mxu0 %v7153_v44  ;;  %v26_v44 = vld [vmem:[%s9442_s0 + $0x20] sm:$0xff] }
  0x29   :  { %6444 = vmatpush3.bf16.msra.mxu1 %v7154_v45  ;;  %6423 = vmatprep.subr.bf16.mxu0 %v7155_v46  ;;  %v27_v45 = vld [vmem:[%s9442_s0 + $0x28] sm:$0xff]  ;;  %v5798_v46 = vcombine.low %v26_v44, %v26_v44 }
  0x2a   :  { %6445 = vmatprep.subr.bf16.mxu1 %v7156_v47  ;;  %v5799_v47 = vcombine.high %v26_v44, %v26_v44  ;;  %v7275_v44 = vld [vmem:[%s9443_s1 + $0x450] sm:$0xff]  }
  0x2c   :  { %6424 = vmatpush3.bf16.msra.mxu0 %v7157_v48  ;;  %v5800_v48 = vcombine.low %v27_v45, %v27_v45 }
  0x2d   :  { %6446 = vmatpush3.bf16.msra.mxu1 %v7158_v49  ;;  %6425 = vmatprep.subr.bf16.mxu0 %v7159_v50  ;;  %v5801_v49 = vcombine.high %v27_v45, %v27_v45  ;;  %v7219_v50 = vld [vmem:[%s9443_s1 + $0x378] sm:$0xff]   ;;  %v7276_v45 = vld [vmem:[%s9443_s1 + $0x4d0] sm:$0xff]  }
  0x2e   :  { %6447 = vmatprep.subr.bf16.mxu1 %v7160_v51  ;;  %v7220_v51 = vld [vmem:[%s9443_s1 + $0x3f8] sm:$0xff]  }
  0x30   :  { %6426 = vmatpush3.bf16.msra.mxu0 %v7161_v52  ;;  %v7221_v52 = vld [vmem:[%s9443_s1 + $0x338] sm:$0xff]  }
  0x31   :  { %6448 = vmatpush3.bf16.msra.mxu1 %v7162_v53  ;;  %6427 = vmatprep.subr.bf16.mxu0 %v7163_v54  ;;  %v7222_v53 = vld [vmem:[%s9443_s1 + $0x3b8] sm:$0xff]   ;;  %v7223_v54 = vld [vmem:[%s9443_s1 + $0x370] sm:$0xff]  }
  0x32   :  { %6449 = vmatprep.subr.bf16.mxu1 %v7164_v55  ;;  %v7224_v55 = vld [vmem:[%s9443_s1 + $0x3f0] sm:$0xff]  }
  0x34   :  { %6428 = vmatpush3.bf16.msra.mxu0 %v7165_v56  ;;  %v7225_v56 = vld [vmem:[%s9443_s1 + $0x330] sm:$0xff]  }
  0x35   :  { %6450 = vmatpush3.bf16.msra.mxu1 %v7166_v57  ;;  %6429 = vmatprep.subr.bf16.mxu0 %v7167_v58  ;;  %v7226_v57 = vld [vmem:[%s9443_s1 + $0x3b0] sm:$0xff]   ;;  %v7227_v58 = vld [vmem:[%s9443_s1 + $0x368] sm:$0xff]  }
  0x36   :  { %6451 = vmatprep.subr.bf16.mxu1 %v7168_v59  ;;  %v7228_v59 = vld [vmem:[%s9443_s1 + $0x3e8] sm:$0xff]  }
  0x38   :  { %6430 = vmatpush3.bf16.msra.mxu0 %v7169_v60  ;;  %v7229_v60 = vld [vmem:[%s9443_s1 + $0x328] sm:$0xff]  }
  0x39   :  { %6452 = vmatpush3.bf16.msra.mxu1 %v7170_v61  ;;  %6431 = vmatprep.subr.bf16.mxu0 %v7171_v62  ;;  %v7230_v61 = vld [vmem:[%s9443_s1 + $0x3a8] sm:$0xff]   ;;  %v7231_v62 = vld [vmem:[%s9443_s1 + $0x360] sm:$0xff]  }
  0x3a   :  { %6453 = vmatprep.subr.bf16.mxu1 %v7172_v63  ;;  %v7232_v63 = vld [vmem:[%s9443_s1 + $0x3e0] sm:$0xff]  }
  0x3c   :  { %6432 = vmatpush3.bf16.msra.mxu0 %v7173_v0  ;;  %v7233_v0 = vld [vmem:[%s9443_s1 + $0x320] sm:$0xff]  }
  0x3d   :  { %6454 = vmatpush3.bf16.msra.mxu1 %v7174_v1  ;;  %6433 = vmatprep.subr.bf16.mxu0 %v7175_v2  ;;  %v7234_v1 = vld [vmem:[%s9443_s1 + $0x3a0] sm:$0xff]   ;;  %v7235_v2 = vld [vmem:[%s9443_s1 + $0x358] sm:$0xff]  }
  0x3e   :  { %6455 = vmatprep.subr.bf16.mxu1 %v7176_v3  ;;  %v7236_v3 = vld [vmem:[%s9443_s1 + $0x3d8] sm:$0xff]  }
  0x40   :  { %6434 = vmatpush3.bf16.msra.mxu0 %v7177_v4  ;;  %v7237_v4 = vld [vmem:[%s9443_s1 + $0x318] sm:$0xff]  }
  0x41   :  { %6456 = vmatpush3.bf16.msra.mxu1 %v7178_v5  ;;  %6463 = vmatprep.subr.bf16.mxu0 %v7183_v12  ;;  %v7238_v5 = vld [vmem:[%s9443_s1 + $0x398] sm:$0xff]   ;;  %v7245_v12 = vld [vmem:[%s9443_s1 + $0x308] sm:$0xff]  }
  0x42   :  { %6485 = vmatprep.subr.bf16.mxu1 %v7184_v13  ;;  %v7246_v13 = vld [vmem:[%s9443_s1 + $0x388] sm:$0xff]  }
  0x43   :  { %4494 = vmatmul.mubr.bf16.vlgmr.msra.gmra.mxu0 %v5794_v7  ;;  %v7240_v7 = vld [vmem:[%s9443_s1 + $0x3d0] sm:$0xff]  }
  0x44   :  { %4534 = vmatmul.mubr.bf16.vlgmr.msra.gmra.mxu1 %v5796_v10  ;;  %6464 = vmatpush3.bf16.msra.mxu0 %v7185_v14  ;;  %v7243_v10 = vld [vmem:[%s9443_s1 + $0x348] sm:$0xff]   ;;  %v7247_v14 = vld [vmem:[%s9443_s1 + $0x340] sm:$0xff]  }
  0x45   :  { %6486 = vmatpush3.bf16.msra.mxu1 %v7186_v15  ;;  %6465 = vmatprep.subr.bf16.mxu0 %v7187_v16  ;;  %v7248_v15 = vld [vmem:[%s9443_s1 + $0x3c0] sm:$0xff]  }
  0x46   :  { %6487 = vmatprep.subr.bf16.mxu1 %v7188_v17  ;;  %4573 = vmatprep.mubr.bf16.mxu0 %v5799_v47  ;;  %v7249_v16 = vld [vmem:[%s9443_s1 + $0x300] sm:$0xff]   ;;  %v7278_v47 = vld [vmem:[%s9443_s1 + $0x490] sm:$0xff]  }
  0x47   :  { %4613 = vmatprep.mubr.bf16.mxu1 %v5801_v49  ;;  %v7250_v17 = vld [vmem:[%s9443_s1 + $0x380] sm:$0xff]   ;;  %v7280_v49 = vld [vmem:[%s9443_s1 + $0x4c8] sm:$0xff]  }
  0x48   :  { %6466 = vmatpush3.bf16.msra.mxu0 %v7189_v18  ;;  %v28_v18 = vld [vmem:[%s9442_s0 + $0x30] sm:$0xff] }
  0x49   :  { %6488 = vmatpush3.bf16.msra.mxu1 %v7190_v19  ;;  %6467 = vmatprep.subr.bf16.mxu0 %v7191_v20  ;;  %v29_v19 = vld [vmem:[%s9442_s0 + $0x38] sm:$0xff]  ;;  %v5802_v20 = vcombine.low %v28_v18, %v28_v18 }
  0x4a   :  { %6489 = vmatprep.subr.bf16.mxu1 %v7192_v21  ;;  %v5803_v21 = vcombine.high %v28_v18, %v28_v18  ;;  %v7311_v18 = vld [vmem:[%s9443_s1 + $0x550] sm:$0xff]  }
  0x4c   :  { %6468 = vmatpush3.bf16.msra.mxu0 %v7193_v22  ;;  %v5804_v22 = vcombine.low %v29_v19, %v29_v19 }
  0x4d   :  { %6490 = vmatpush3.bf16.msra.mxu1 %v7194_v23  ;;  %6469 = vmatprep.subr.bf16.mxu0 %v7195_v24  ;;  %v7255_v23 = vld [vmem:[%s9443_s1 + $0x478] sm:$0xff]   ;;  %v5805_v24 = vcombine.high %v29_v19, %v29_v19  ;;  %v7312_v19 = vld [vmem:[%s9443_s1 + $0x5d0] sm:$0xff]  }
  0x4e   :  { %6491 = vmatprep.subr.bf16.mxu1 %v7196_v25  ;;  %v7256_v25 = vld [vmem:[%s9443_s1 + $0x4f8] sm:$0xff]  }
  0x50   :  { %6470 = vmatpush3.bf16.msra.mxu0 %v7197_v26  ;;  %v7257_v26 = vld [vmem:[%s9443_s1 + $0x438] sm:$0xff]  }
  0x51   :  { %6492 = vmatpush3.bf16.msra.mxu1 %v7198_v27  ;;  %6471 = vmatprep.subr.bf16.mxu0 %v7199_v28  ;;  %v7258_v27 = vld [vmem:[%s9443_s1 + $0x4b8] sm:$0xff]   ;;  %v7259_v28 = vld [vmem:[%s9443_s1 + $0x470] sm:$0xff]  }
  0x52   :  { %6493 = vmatprep.subr.bf16.mxu1 %v7200_v29  ;;  %v7260_v29 = vld [vmem:[%s9443_s1 + $0x4f0] sm:$0xff]  }
  0x54   :  { %6472 = vmatpush3.bf16.msra.mxu0 %v7201_v30  ;;  %v7261_v30 = vld [vmem:[%s9443_s1 + $0x430] sm:$0xff]  }
  0x55   :  { %6494 = vmatpush3.bf16.msra.mxu1 %v7202_v31  ;;  %6473 = vmatprep.subr.bf16.mxu0 %v7203_v32  ;;  %v7262_v31 = vld [vmem:[%s9443_s1 + $0x4b0] sm:$0xff]   ;;  %v7263_v32 = vld [vmem:[%s9443_s1 + $0x468] sm:$0xff]  }
  0x56   :  { %6495 = vmatprep.subr.bf16.mxu1 %v7204_v33  ;;  %v7264_v33 = vld [vmem:[%s9443_s1 + $0x4e8] sm:$0xff]  }
  0x58   :  { %6474 = vmatpush3.bf16.msra.mxu0 %v7205_v34  ;;  %v7265_v34 = vld [vmem:[%s9443_s1 + $0x428] sm:$0xff]  }
  0x59   :  { %6496 = vmatpush3.bf16.msra.mxu1 %v7206_v35  ;;  %6475 = vmatprep.subr.bf16.mxu0 %v7207_v36  ;;  %v7266_v35 = vld [vmem:[%s9443_s1 + $0x4a8] sm:$0xff]   ;;  %v7267_v36 = vld [vmem:[%s9443_s1 + $0x460] sm:$0xff]  }
  0x5a   :  { %6497 = vmatprep.subr.bf16.mxu1 %v7208_v37  ;;  %v7268_v37 = vld [vmem:[%s9443_s1 + $0x4e0] sm:$0xff]  }
  0x5c   :  { %6476 = vmatpush3.bf16.msra.mxu0 %v7209_v38  ;;  %v7269_v38 = vld [vmem:[%s9443_s1 + $0x420] sm:$0xff]  }
  0x5d   :  { %6498 = vmatpush3.bf16.msra.mxu1 %v7210_v39  ;;  %6477 = vmatprep.subr.bf16.mxu0 %v7211_v40  ;;  %v7270_v39 = vld [vmem:[%s9443_s1 + $0x4a0] sm:$0xff]   ;;  %v7271_v40 = vld [vmem:[%s9443_s1 + $0x458] sm:$0xff]  }
  0x5e   :  { %6499 = vmatprep.subr.bf16.mxu1 %v7212_v41  ;;  %v7272_v41 = vld [vmem:[%s9443_s1 + $0x4d8] sm:$0xff]  }
  0x60   :  { %6478 = vmatpush3.bf16.msra.mxu0 %v7213_v42  ;;  %v7273_v42 = vld [vmem:[%s9443_s1 + $0x418] sm:$0xff]  }
  0x61   :  { %6500 = vmatpush3.bf16.msra.mxu1 %v7214_v43  ;;  %6507 = vmatprep.subr.bf16.mxu0 %v7219_v50  ;;  %v7274_v43 = vld [vmem:[%s9443_s1 + $0x498] sm:$0xff]   ;;  %v7281_v50 = vld [vmem:[%s9443_s1 + $0x408] sm:$0xff]  }
  0x62   :  { %6529 = vmatprep.subr.bf16.mxu1 %v7220_v51  ;;  %v7282_v51 = vld [vmem:[%s9443_s1 + $0x488] sm:$0xff]  }
  0x63   :  { %4574 = vmatmul.mubr.bf16.vlgmr.msra.gmra.mxu0 %v5798_v46  ;;  %v7277_v46 = vld [vmem:[%s9443_s1 + $0x410] sm:$0xff]  }
  0x64   :  { %4614 = vmatmul.mubr.bf16.vlgmr.msra.gmra.mxu1 %v5800_v48  ;;  %6508 = vmatpush3.bf16.msra.mxu0 %v7221_v52  ;;  %v7279_v48 = vld [vmem:[%s9443_s1 + $0x448] sm:$0xff]   ;;  %v7283_v52 = vld [vmem:[%s9443_s1 + $0x440] sm:$0xff]  }
  0x65   :  { %6530 = vmatpush3.bf16.msra.mxu1 %v7222_v53  ;;  %6509 = vmatprep.subr.bf16.mxu0 %v7223_v54  ;;  %v7284_v53 = vld [vmem:[%s9443_s1 + $0x4c0] sm:$0xff]  }
  0x66   :  { %6531 = vmatprep.subr.bf16.mxu1 %v7224_v55  ;;  %4653 = vmatprep.mubr.bf16.mxu0 %v5803_v21  ;;  %v7285_v54 = vld [vmem:[%s9443_s1 + $0x400] sm:$0xff]   ;;  %v7314_v21 = vld [vmem:[%s9443_s1 + $0x590] sm:$0xff]  }
  0x67   :  { %4693 = vmatprep.mubr.bf16.mxu1 %v5805_v24  ;;  %v7286_v55 = vld [vmem:[%s9443_s1 + $0x480] sm:$0xff]   ;;  %v7317_v24 = vld [vmem:[%s9443_s1 + $0x508] sm:$0xff]  }
  0x68   :  { %6510 = vmatpush3.bf16.msra.mxu0 %v7225_v56  ;;  %v30_v56 = vld [vmem:[%s9442_s0 + $0x40] sm:$0xff] }
  0x69   :  { %6532 = vmatpush3.bf16.msra.mxu1 %v7226_v57  ;;  %6511 = vmatprep.subr.bf16.mxu0 %v7227_v58  ;;  %v5806_v57 = vcombine.low %v30_v56, %v30_v56  ;;  %v5807_v58 = vcombine.high %v30_v56, %v30_v56  ;;  %v7347_v56 = vld [vmem:[%s9443_s1 + $0x650] sm:$0xff]  }
  0x6a   :  { %6533 = vmatprep.subr.bf16.mxu1 %v7228_v59  ;;  %v31_v59 = vld [vmem:[%s9442_s0 + $0x48] sm:$0xff] }
  0x6c   :  { %6512 = vmatpush3.bf16.msra.mxu0 %v7229_v60  ;;  %v5808_v60 = vcombine.low %v31_v59, %v31_v59 }
  0x6d   :  { %6534 = vmatpush3.bf16.msra.mxu1 %v7230_v61  ;;  %6513 = vmatprep.subr.bf16.mxu0 %v7231_v62  ;;  %v5809_v61 = vcombine.high %v31_v59, %v31_v59  ;;  %v7291_v62 = vld [vmem:[%s9443_s1 + $0x578] sm:$0xff]   ;;  %v7350_v59 = vld [vmem:[%s9443_s1 + $0x690] sm:$0xff]  }
  0x6e   :  { %6535 = vmatprep.subr.bf16.mxu1 %v7232_v63  ;;  %v7292_v63 = vld [vmem:[%s9443_s1 + $0x5f8] sm:$0xff]  }
  0x70   :  { %6514 = vmatpush3.bf16.msra.mxu0 %v7233_v0  ;;  %v7293_v0 = vld [vmem:[%s9443_s1 + $0x538] sm:$0xff]  }
  0x71   :  { %6536 = vmatpush3.bf16.msra.mxu1 %v7234_v1  ;;  %6515 = vmatprep.subr.bf16.mxu0 %v7235_v2  ;;  %v7294_v1 = vld [vmem:[%s9443_s1 + $0x5b8] sm:$0xff]   ;;  %v7295_v2 = vld [vmem:[%s9443_s1 + $0x570] sm:$0xff]  }
  0x72   :  { %6537 = vmatprep.subr.bf16.mxu1 %v7236_v3  ;;  %v7296_v3 = vld [vmem:[%s9443_s1 + $0x5f0] sm:$0xff]  }
  0x74   :  { %6516 = vmatpush3.bf16.msra.mxu0 %v7237_v4  ;;  %v7297_v4 = vld [vmem:[%s9443_s1 + $0x530] sm:$0xff]  }
  0x75   :  { %6538 = vmatpush3.bf16.msra.mxu1 %v7238_v5  ;;  %6517 = vmatprep.subr.bf16.mxu0 %v7239_v6  ;;  %v7298_v5 = vld [vmem:[%s9443_s1 + $0x5b0] sm:$0xff]   ;;  %v7299_v6 = vld [vmem:[%s9443_s1 + $0x568] sm:$0xff]  }
  0x76   :  { %6539 = vmatprep.subr.bf16.mxu1 %v7240_v7  ;;  %v7300_v7 = vld [vmem:[%s9443_s1 + $0x5e8] sm:$0xff]  }
  0x78   :  { %6518 = vmatpush3.bf16.msra.mxu0 %v7241_v8  ;;  %v7301_v8 = vld [vmem:[%s9443_s1 + $0x528] sm:$0xff]  }
  0x79   :  { %6540 = vmatpush3.bf16.msra.mxu1 %v7242_v9  ;;  %6519 = vmatprep.subr.bf16.mxu0 %v7243_v10  ;;  %v7302_v9 = vld [vmem:[%s9443_s1 + $0x5a8] sm:$0xff]   ;;  %v7303_v10 = vld [vmem:[%s9443_s1 + $0x560] sm:$0xff]  }
  0x7a   :  { %6541 = vmatprep.subr.bf16.mxu1 %v7244_v11  ;;  %v7304_v11 = vld [vmem:[%s9443_s1 + $0x5e0] sm:$0xff]  }
  0x7c   :  { %6520 = vmatpush3.bf16.msra.mxu0 %v7245_v12  ;;  %v7305_v12 = vld [vmem:[%s9443_s1 + $0x520] sm:$0xff]  }
  0x7d   :  { %6542 = vmatpush3.bf16.msra.mxu1 %v7246_v13  ;;  %6521 = vmatprep.subr.bf16.mxu0 %v7247_v14  ;;  %v7306_v13 = vld [vmem:[%s9443_s1 + $0x5a0] sm:$0xff]   ;;  %v7307_v14 = vld [vmem:[%s9443_s1 + $0x558] sm:$0xff]  }
  0x7e   :  { %6543 = vmatprep.subr.bf16.mxu1 %v7248_v15  ;;  %v7308_v15 = vld [vmem:[%s9443_s1 + $0x5d8] sm:$0xff]  }
  0x80   :  { %6522 = vmatpush3.bf16.msra.mxu0 %v7249_v16  ;;  %v7309_v16 = vld [vmem:[%s9443_s1 + $0x518] sm:$0xff]  }
  0x81   :  { %6544 = vmatpush3.bf16.msra.mxu1 %v7250_v17  ;;  %6551 = vmatprep.subr.bf16.mxu0 %v7255_v23  ;;  %v7310_v17 = vld [vmem:[%s9443_s1 + $0x598] sm:$0xff]   ;;  %v7316_v23 = vld [vmem:[%s9443_s1 + $0x5c8] sm:$0xff]  }
  0x82   :  { %6573 = vmatprep.subr.bf16.mxu1 %v7256_v25  ;;  %v7318_v25 = vld [vmem:[%s9443_s1 + $0x588] sm:$0xff]  }
  0x83   :  { %4654 = vmatmul.mubr.bf16.vlgmr.msra.gmra.mxu0 %v5802_v20  ;;  %v7313_v20 = vld [vmem:[%s9443_s1 + $0x510] sm:$0xff]  }
  0x84   :  { %4694 = vmatmul.mubr.bf16.vlgmr.msra.gmra.mxu1 %v5804_v22  ;;  %6552 = vmatpush3.bf16.msra.mxu0 %v7257_v26  ;;  %v7315_v22 = vld [vmem:[%s9443_s1 + $0x548] sm:$0xff]   ;;  %v7319_v26 = vld [vmem:[%s9443_s1 + $0x540] sm:$0xff]  }
  0x85   :  { %6574 = vmatpush3.bf16.msra.mxu1 %v7258_v27  ;;  %6553 = vmatprep.subr.bf16.mxu0 %v7259_v28  ;;  %v7320_v27 = vld [vmem:[%s9443_s1 + $0x5c0] sm:$0xff]  }
  0x86   :  { %6575 = vmatprep.subr.bf16.mxu1 %v7260_v29  ;;  %4733 = vmatprep.mubr.bf16.mxu0 %v5807_v58  ;;  %v7321_v28 = vld [vmem:[%s9443_s1 + $0x500] sm:$0xff]   ;;  %v7349_v58 = vld [vmem:[%s9443_s1 + $0x610] sm:$0xff]  }
  0x87   :  { %4773 = vmatprep.mubr.bf16.mxu1 %v5809_v61  ;;  %v7322_v29 = vld [vmem:[%s9443_s1 + $0x580] sm:$0xff]   ;;  %v7352_v61 = vld [vmem:[%s9443_s1 + $0x6c8] sm:$0xff]  }
  0x88   :  { %6554 = vmatpush3.bf16.msra.mxu0 %v7261_v30  ;;  %v32_v30 = vld [vmem:[%s9442_s0 + $0x50] sm:$0xff] }
  0x89   :  { %6576 = vmatpush3.bf16.msra.mxu1 %v7262_v31  ;;  %6555 = vmatprep.subr.bf16.mxu0 %v7263_v32  ;;  %v33_v31 = vld [vmem:[%s9442_s0 + $0x58] sm:$0xff]  ;;  %v5810_v32 = vcombine.low %v32_v30, %v32_v30 }
  0x8a   :  { %6577 = vmatprep.subr.bf16.mxu1 %v7264_v33  ;;  %v5811_v33 = vcombine.high %v32_v30, %v32_v30  ;;  %v7370_v30 = vld [vmem:[%s9443_s1 + $0x7b0] sm:$0xff]  }
  0x8c   :  { %6556 = vmatpush3.bf16.msra.mxu0 %v7265_v34  ;;  %v5812_v34 = vcombine.low %v33_v31, %v33_v31 }
  0x8d   :  { %6578 = vmatpush3.bf16.msra.mxu1 %v7266_v35  ;;  %6557 = vmatprep.subr.bf16.mxu0 %v7267_v36  ;;  %v5813_v35 = vcombine.high %v33_v31, %v33_v31  ;;  %v7327_v36 = vld [vmem:[%s9443_s1 + $0x678] sm:$0xff]   ;;  %v7371_v31 = vld [vmem:[%s9443_s1 + $0x768] sm:$0xff]  }
  0x8e   :  { %6579 = vmatprep.subr.bf16.mxu1 %v7268_v37  ;;  %v7328_v37 = vld [vmem:[%s9443_s1 + $0x6f8] sm:$0xff]  }
  0x90   :  { %6558 = vmatpush3.bf16.msra.mxu0 %v7269_v38  ;;  %v7329_v38 = vld [vmem:[%s9443_s1 + $0x638] sm:$0xff]  }
  0x91   :  { %6580 = vmatpush3.bf16.msra.mxu1 %v7270_v39  ;;  %6559 = vmatprep.subr.bf16.mxu0 %v7271_v40  ;;  %v7330_v39 = vld [vmem:[%s9443_s1 + $0x6b8] sm:$0xff]   ;;  %v7331_v40 = vld [vmem:[%s9443_s1 + $0x670] sm:$0xff]  }
  0x92   :  { %6581 = vmatprep.subr.bf16.mxu1 %v7272_v41  ;;  %v7332_v41 = vld [vmem:[%s9443_s1 + $0x6f0] sm:$0xff]  }
  0x94   :  { %6560 = vmatpush3.bf16.msra.mxu0 %v7273_v42  ;;  %v7333_v42 = vld [vmem:[%s9443_s1 + $0x630] sm:$0xff]  }
  0x95   :  { %6582 = vmatpush3.bf16.msra.mxu1 %v7274_v43  ;;  %6561 = vmatprep.subr.bf16.mxu0 %v7275_v44  ;;  %v7334_v43 = vld [vmem:[%s9443_s1 + $0x6b0] sm:$0xff]   ;;  %v7335_v44 = vld [vmem:[%s9443_s1 + $0x668] sm:$0xff]  }
  0x96   :  { %6583 = vmatprep.subr.bf16.mxu1 %v7276_v45  ;;  %v7336_v45 = vld [vmem:[%s9443_s1 + $0x6e8] sm:$0xff]  }
  0x98   :  { %6562 = vmatpush3.bf16.msra.mxu0 %v7277_v46  ;;  %v7337_v46 = vld [vmem:[%s9443_s1 + $0x628] sm:$0xff]  }
  0x99   :  { %6584 = vmatpush3.bf16.msra.mxu1 %v7278_v47  ;;  %6563 = vmatprep.subr.bf16.mxu0 %v7279_v48  ;;  %v7338_v47 = vld [vmem:[%s9443_s1 + $0x6a8] sm:$0xff]   ;;  %v7339_v48 = vld [vmem:[%s9443_s1 + $0x660] sm:$0xff]  }
  0x9a   :  { %6585 = vmatprep.subr.bf16.mxu1 %v7280_v49  ;;  %v7340_v49 = vld [vmem:[%s9443_s1 + $0x6e0] sm:$0xff]  }
  0x9c   :  { %6564 = vmatpush3.bf16.msra.mxu0 %v7281_v50  ;;  %v7341_v50 = vld [vmem:[%s9443_s1 + $0x620] sm:$0xff]  }
  0x9d   :  { %6586 = vmatpush3.bf16.msra.mxu1 %v7282_v51  ;;  %6565 = vmatprep.subr.bf16.mxu0 %v7283_v52  ;;  %v7342_v51 = vld [vmem:[%s9443_s1 + $0x6a0] sm:$0xff]   ;;  %v7343_v52 = vld [vmem:[%s9443_s1 + $0x658] sm:$0xff]  }
  0x9e   :  { %6587 = vmatprep.subr.bf16.mxu1 %v7284_v53  ;;  %v7344_v53 = vld [vmem:[%s9443_s1 + $0x6d8] sm:$0xff]  }
  0xa0   :  { %6566 = vmatpush3.bf16.msra.mxu0 %v7285_v54  ;;  %v7345_v54 = vld [vmem:[%s9443_s1 + $0x618] sm:$0xff]  }
  0xa1   :  { %6588 = vmatpush3.bf16.msra.mxu1 %v7286_v55  ;;  %6595 = vmatprep.subr.bf16.mxu0 %v7291_v62  ;;  %v7346_v55 = vld [vmem:[%s9443_s1 + $0x698] sm:$0xff]   ;;  %v7353_v62 = vld [vmem:[%s9443_s1 + $0x608] sm:$0xff]  }
  0xa2   :  { %6617 = vmatprep.subr.bf16.mxu1 %v7292_v63  ;;  %v7354_v63 = vld [vmem:[%s9443_s1 + $0x688] sm:$0xff]  }
  0xa3   :  { %4734 = vmatmul.mubr.bf16.vlgmr.msra.gmra.mxu0 %v5806_v57  ;;  %v7348_v57 = vld [vmem:[%s9443_s1 + $0x6d0] sm:$0xff]  }
  0xa4   :  { %4774 = vmatmul.mubr.bf16.vlgmr.msra.gmra.mxu1 %v5808_v60  ;;  %6596 = vmatpush3.bf16.msra.mxu0 %v7293_v0  ;;  %v7351_v60 = vld [vmem:[%s9443_s1 + $0x648] sm:$0xff]   ;;  %v7355_v0 = vld [vmem:[%s9443_s1 + $0x640] sm:$0xff]  }
  0xa5   :  { %6618 = vmatpush3.bf16.msra.mxu1 %v7294_v1  ;;  %6597 = vmatprep.subr.bf16.mxu0 %v7295_v2  ;;  %v7356_v1 = vld [vmem:[%s9443_s1 + $0x6c0] sm:$0xff]  }
  0xa6   :  { %6619 = vmatprep.subr.bf16.mxu1 %v7296_v3  ;;  %4813 = vmatprep.mubr.bf16.mxu0 %v5811_v33  ;;  %v7357_v2 = vld [vmem:[%s9443_s1 + $0x600] sm:$0xff]   ;;  %v7373_v33 = vld [vmem:[%s9443_s1 + $0x728] sm:$0xff]  }
  0xa7   :  { %4853 = vmatprep.mubr.bf16.mxu1 %v5813_v35  ;;  %v7358_v3 = vld [vmem:[%s9443_s1 + $0x680] sm:$0xff]  }
  0xa8   :  { %6598 = vmatpush3.bf16.msra.mxu0 %v7297_v4  ;;  %v34_v4 = vld [vmem:[%s9442_s0 + $0x60] sm:$0xff] }
  0xa9   :  { %6620 = vmatpush3.bf16.msra.mxu1 %v7298_v5  ;;  %6599 = vmatprep.subr.bf16.mxu0 %v7299_v6  ;;  %v35_v5 = vld [vmem:[%s9442_s0 + $0x68] sm:$0xff]  ;;  %v7375_v35 = vld [vmem:[%s9443_s1 + $0x760] sm:$0xff]  }
  0xaa   :  { %6621 = vmatprep.subr.bf16.mxu1 %v7300_v7 }
  0xac   :  { %6600 = vmatpush3.bf16.msra.mxu0 %v7301_v8  ;;  %v5814_v8 = vcombine.low %v34_v4, %v34_v4 }
  0xad   :  { %6622 = vmatpush3.bf16.msra.mxu1 %v7302_v9  ;;  %6601 = vmatprep.subr.bf16.mxu0 %v7303_v10  ;;  %v5815_v9 = vcombine.high %v34_v4, %v34_v4  ;;  %v5816_v10 = vcombine.low %v35_v5, %v35_v5 }
  0xae   :  { %6623 = vmatprep.subr.bf16.mxu1 %v7304_v11  ;;  %v7363_v11 = vld [vmem:[%s9443_s1 + $0x778] sm:$0xff]  }
  0xb0   :  { %6602 = vmatpush3.bf16.msra.mxu0 %v7305_v12  ;;  %v5817_v12 = vcombine.high %v35_v5, %v35_v5 }
  0xb1   :  { %6624 = vmatpush3.bf16.msra.mxu1 %v7306_v13  ;;  %6603 = vmatprep.subr.bf16.mxu0 %v7307_v14  ;;  %v7364_v13 = vld [vmem:[%s9443_s1 + $0x7f8] sm:$0xff]  }
  0xb2   :  { %6625 = vmatprep.subr.bf16.mxu1 %v7308_v15 }
  0xb4   :  { %6604 = vmatpush3.bf16.msra.mxu0 %v7309_v16  ;;  %v7365_v16 = vld [vmem:[%s9443_s1 + $0x738] sm:$0xff]  }
  0xb5   :  { %6626 = vmatpush3.bf16.msra.mxu1 %v7310_v17  ;;  %6605 = vmatprep.subr.bf16.mxu0 %v7311_v18 }
  0xb6   :  { %6627 = vmatprep.subr.bf16.mxu1 %v7312_v19  ;;  %v7366_v19 = vld [vmem:[%s9443_s1 + $0x7b8] sm:$0xff]  }
  0xb8   :  { %6606 = vmatpush3.bf16.msra.mxu0 %v7313_v20  ;;  %v5789_v20 = vld [vmem:[%s9444_s2] ss:$0 sm:$0xff] }
  0xb9   :  { %6628 = vmatpush3.bf16.msra.mxu1 %v7314_v21  ;;  %6607 = vmatprep.subr.bf16.mxu0 %v7315_v22 }
  0xba   :  { %6629 = vmatprep.subr.bf16.mxu1 %v7316_v23 }
  0xbc   :  { %6608 = vmatpush3.bf16.msra.mxu0 %v7317_v24  ;;  %v7367_v24 = vld [vmem:[%s9443_s1 + $0x770] sm:$0xff]  }
  0xbd   :  { %6630 = vmatpush3.bf16.msra.mxu1 %v7318_v25  ;;  %6609 = vmatprep.subr.bf16.mxu0 %v7319_v26  ;;  %v7368_v25 = vld [vmem:[%s9443_s1 + $0x7f0] sm:$0xff]  }
  0xbe   :  { %6631 = vmatprep.subr.bf16.mxu1 %v7320_v27 }
  0xc0   :  { %6610 = vmatpush3.bf16.msra.mxu0 %v7321_v28 }
  0xc1   :  { %6632 = vmatpush3.bf16.msra.mxu1 %v7322_v29  ;;  %6639 = vmatprep.subr.bf16.mxu0 %v7327_v36  ;;  %v7369_v29 = vld [vmem:[%s9443_s1 + $0x730] sm:$0xff]   ;;  %v7376_v36 = vld [vmem:[%s9443_s1 + $0x7e0] sm:$0xff]  }
  0xc2   :  { %6661 = vmatprep.subr.bf16.mxu1 %v7328_v37  ;;  %v7377_v37 = vld [vmem:[%s9443_s1 + $0x720] sm:$0xff]  }
  0xc3   :  { %4814 = vmatmul.mubr.bf16.vlgmr.msra.gmra.mxu0 %v5810_v32  ;;  %v7372_v32 = vld [vmem:[%s9443_s1 + $0x7e8] sm:$0xff]  }
  0xc4   :  { %4854 = vmatmul.mubr.bf16.vlgmr.msra.gmra.mxu1 %v5812_v34  ;;  %6640 = vmatpush3.bf16.msra.mxu0 %v7329_v38  ;;  %v7374_v34 = vld [vmem:[%s9443_s1 + $0x7a8] sm:$0xff]   ;;  %v7378_v38 = vld [vmem:[%s9443_s1 + $0x7a0] sm:$0xff]  }
  0xc5   :  { %6662 = vmatpush3.bf16.msra.mxu1 %v7330_v39  ;;  %6641 = vmatprep.subr.bf16.mxu0 %v7331_v40  ;;  %v7379_v39 = vld [vmem:[%s9443_s1 + $0x758] sm:$0xff]  }
  0xc6   :  { %6663 = vmatprep.subr.bf16.mxu1 %v7332_v41  ;;  %4893 = vmatprep.mubr.bf16.mxu0 %v5815_v9  ;;  %v7380_v40 = vld [vmem:[%s9443_s1 + $0x7d8] sm:$0xff]  }
  0xc7   :  { %4933 = vmatprep.mubr.bf16.mxu1 %v5817_v12  ;;  %v7381_v41 = vld [vmem:[%s9443_s1 + $0x718] sm:$0xff]  }
  0xc8   :  { %6642 = vmatpush3.bf16.msra.mxu0 %v7333_v42  ;;  %v7382_v42 = vld [vmem:[%s9443_s1 + $0x798] sm:$0xff]  }
  0xc9   :  { %6664 = vmatpush3.bf16.msra.mxu1 %v7334_v43  ;;  %6643 = vmatprep.subr.bf16.mxu0 %v7335_v44  ;;  %v7383_v43 = vld [vmem:[%s9443_s1 + $0x750] sm:$0xff]  }
  0xca   :  { %6665 = vmatprep.subr.bf16.mxu1 %v7336_v45  ;;  %v7384_v44 = vld [vmem:[%s9443_s1 + $0x7d0] sm:$0xff]  }
  0xcb   :  { %v7385_v45 = vld [vmem:[%s9443_s1 + $0x710] sm:$0xff]  }
  0xcc   :  { %6644 = vmatpush3.bf16.msra.mxu0 %v7337_v46  ;;  %v7386_v46 = vld [vmem:[%s9443_s1 + $0x790] sm:$0xff]  }
  0xcd   :  { %6666 = vmatpush3.bf16.msra.mxu1 %v7338_v47  ;;  %6645 = vmatprep.subr.bf16.mxu0 %v7339_v48  ;;  %v7387_v47 = vld [vmem:[%s9443_s1 + $0x748] sm:$0xff]  }
  0xce   :  { %6667 = vmatprep.subr.bf16.mxu1 %v7340_v49  ;;  %v7388_v48 = vld [vmem:[%s9443_s1 + $0x7c8] sm:$0xff]  }
  0xcf   :  { %v7389_v49 = vld [vmem:[%s9443_s1 + $0x708] sm:$0xff]  }
  0xd0   :  { %6646 = vmatpush3.bf16.msra.mxu0 %v7341_v50  ;;  %v7390_v50 = vld [vmem:[%s9443_s1 + $0x788] sm:$0xff]  }
  0xd1   :  { %6668 = vmatpush3.bf16.msra.mxu1 %v7342_v51  ;;  %6647 = vmatprep.subr.bf16.mxu0 %v7343_v52  ;;  %v7391_v51 = vld [vmem:[%s9443_s1 + $0x740] sm:$0xff]  }
  0xd2   :  { %6669 = vmatprep.subr.bf16.mxu1 %v7344_v53  ;;  %v7392_v52 = vld [vmem:[%s9443_s1 + $0x7c0] sm:$0xff]  }
  0xd3   :  { %v7393_v53 = vld [vmem:[%s9443_s1 + $0x700] sm:$0xff]  }
  0xd4   :  { %6648 = vmatpush3.bf16.msra.mxu0 %v7345_v54  ;;  %v7394_v54 = vld [vmem:[%s9443_s1 + $0x780] sm:$0xff]  }
  0xd5   :  { %6670 = vmatpush3.bf16.msra.mxu1 %v7346_v55  ;;  %6649 = vmatprep.subr.bf16.mxu0 %v7347_v56  ;;  %v36_v55 = vld [vmem:[%s9442_s0 + $0x70] sm:$0xff]  ;;  %v37_v56 = vld [vmem:[%s9442_s0 + $0x78] sm:$0xff] }
  0xd6   :  { %6671 = vmatprep.subr.bf16.mxu1 %v7348_v57 }
  0xd8   :  { %6650 = vmatpush3.bf16.msra.mxu0 %v7349_v58 }
  0xd9   :  { %6672 = vmatpush3.bf16.msra.mxu1 %v7350_v59  ;;  %6651 = vmatprep.subr.bf16.mxu0 %v7351_v60  ;;  %v5818_v59 = vcombine.low %v36_v55, %v36_v55  ;;  %v5819_v60 = vcombine.high %v36_v55, %v36_v55 }
  0xda   :  { %6673 = vmatprep.subr.bf16.mxu1 %v7352_v61  ;;  %v5820_v61 = vcombine.low %v37_v56, %v37_v56 }
  0xdc   :  { %6652 = vmatpush3.bf16.msra.mxu0 %v7353_v62  ;;  %v7399_v62 = vld [vmem:[%s9443_s1 + $0x878] sm:$0xff]  }
  0xdd   :  { %6674 = vmatpush3.bf16.msra.mxu1 %v7354_v63  ;;  %6653 = vmatprep.subr.bf16.mxu0 %v7355_v0  ;;  %v5821_v63 = vcombine.high %v37_v56, %v37_v56  ;;  %v7400_v0 = vld [vmem:[%s9443_s1 + $0x8f8] sm:$0xff]  }
  0xde   :  { %6675 = vmatprep.subr.bf16.mxu1 %v7356_v1 }
  0xe0   :  { %6654 = vmatpush3.bf16.msra.mxu0 %v7357_v2 }
  0xe1   :  { %6676 = vmatpush3.bf16.msra.mxu1 %v7358_v3  ;;  %6683 = vmatprep.subr.bf16.mxu0 %v7363_v11  ;;  %v7401_v3 = vld [vmem:[%s9443_s1 + $0x838] sm:$0xff]   ;;  %v7404_v11 = vld [vmem:[%s9443_s1 + $0x8f0] sm:$0xff]  }
  0xe2   :  { %6705 = vmatprep.subr.bf16.mxu1 %v7364_v13 }
  0xe3   :  { %v6391_v6 = vpop.f32.mrf.mxu0  ;;  %4894 = vmatmul.mubr.bf16.vlgmr.msra.gmra.mxu0 %v5814_v8 }
  0xe4   :  { %v6413_v7 = vpop.f32.mrf.mxu1  ;;  %4934 = vmatmul.mubr.bf16.vlgmr.msra.gmra.mxu1 %v5816_v10  ;;  %6684 = vmatpush3.bf16.msra.mxu0 %v7365_v16  ;;  %v7403_v10 = vld [vmem:[%s9443_s1 + $0x870] sm:$0xff]  }
  0xe5   :  { %v6392_v14 = vpop.f32.mrf.mxu0  ;;  %6706 = vmatpush3.bf16.msra.mxu1 %v7366_v19  ;;  %6685 = vmatprep.subr.bf16.mxu0 %v7367_v24  ;;  %v7406_v16 = vld [vmem:[%s9443_s1 + $0x8b0] sm:$0xff]   ;;  %v7409_v19 = vld [vmem:[%s9443_s1 + $0x828] sm:$0xff]   ;;  %v7414_v24 = vld [vmem:[%s9443_s1 + $0x8a0] sm:$0xff]  }
  0xe6   :  { %v6414_v15 = vpop.f32.mrf.mxu1  ;;  %v6393_v17 = vadd.f32 %v6392_v14, %v6391_v6  ;;  %6707 = vmatprep.subr.bf16.mxu1 %v7368_v25  ;;  %4973 = vmatprep.mubr.bf16.mxu0 %v5819_v60  ;;  %v7402_v6 = vld [vmem:[%s9443_s1 + $0x8b8] sm:$0xff]   ;;  %v7439_v60 = vld [vmem:[%s9443_s1 + $0x970] sm:$0xff]  }
  0xe7   :  { %v6415_v18 = vadd.f32 %v6414_v15, %v6413_v7  ;;  %v6394_v21 = vpop.f32.mrf.mxu0  ;;  %5013 = vmatprep.mubr.bf16.mxu1 %v5821_v63  ;;  %v7405_v15 = vld [vmem:[%s9443_s1 + $0x830] sm:$0xff]   ;;  %v7415_v25 = vld [vmem:[%s9443_s1 + $0x858] sm:$0xff]  }
  0xe8   :  { %v6416_v22 = vpop.f32.mrf.mxu1  ;;  %v4416_v23 = vadd.f32 %v6393_v17, %v5789_v20  ;;  %6686 = vmatpush3.bf16.msra.mxu0 %v7369_v29  ;;  %v7407_v17 = vld [vmem:[%s9443_s1 + $0x868] sm:$0xff]   ;;  %v7411_v21 = vld [vmem:[%s9443_s1 + $0x860] sm:$0xff]   ;;  %v7419_v29 = vld [vmem:[%s9443_s1 + $0x850] sm:$0xff]  }
  0xe9   :  { %v6395_v26 = vpop.f32.mrf.mxu0  ;;  %6708 = vmatpush3.bf16.msra.mxu1 %v7370_v30  ;;  %6687 = vmatprep.subr.bf16.mxu0 %v7371_v31  ;;  %v7410_v20 = vld [vmem:[%s9443_s1 + $0x8a8] sm:$0xff]   ;;  %v7412_v22 = vld [vmem:[%s9443_s1 + $0x8e0] sm:$0xff]   ;;  %v7420_v30 = vld [vmem:[%s9443_s1 + $0x8d0] sm:$0xff]  }
  0xea   :  { %v6417_v27 = vpop.f32.mrf.mxu1  ;;  %v8485_v28 = vadd.f32 %v6415_v18, %v4416_v23  ;;  %6709 = vmatprep.subr.bf16.mxu1 %v7372_v32  ;;  %v7408_v18 = vld [vmem:[%s9443_s1 + $0x8e8] sm:$0xff]   ;;  %v7413_v23 = vld [vmem:[%s9443_s1 + $0x820] sm:$0xff]   ;;  %v7416_v26 = vld [vmem:[%s9443_s1 + $0x8d8] sm:$0xff]  }
  0xeb   :  { %v7417_v27 = vld [vmem:[%s9443_s1 + $0x818] sm:$0xff]   ;;  %v7421_v31 = vld [vmem:[%s9443_s1 + $0x810] sm:$0xff]  }
  0xec   :  { %6688 = vmatpush3.bf16.msra.mxu0 %v7373_v33  ;;  %v7422_v32 = vld [vmem:[%s9443_s1 + $0x890] sm:$0xff]   ;;  %v7423_v33 = vld [vmem:[%s9443_s1 + $0x848] sm:$0xff]  }
  0xed   :  { %6710 = vmatpush3.bf16.msra.mxu1 %v7374_v34  ;;  %6689 = vmatprep.subr.bf16.mxu0 %v7375_v35  ;;  %v7424_v34 = vld [vmem:[%s9443_s1 + $0x8c8] sm:$0xff]   ;;  %v7440_v63 = vld [vmem:[%s9443_s1 + $0x9f0] sm:$0xff]  }
  0xee   :  { %6711 = vmatprep.subr.bf16.mxu1 %v7376_v36  ;;  %v7425_v35 = vld [vmem:[%s9443_s1 + $0x808] sm:$0xff]  }
  0xef   :  { %v7426_v36 = vld [vmem:[%s9443_s1 + $0x888] sm:$0xff]  }
  0xf0   :  { %6690 = vmatpush3.bf16.msra.mxu0 %v7377_v37  ;;  %v7427_v37 = vld [vmem:[%s9443_s1 + $0x840] sm:$0xff]  }
  0xf1   :  { %6712 = vmatpush3.bf16.msra.mxu1 %v7378_v38  ;;  %6691 = vmatprep.subr.bf16.mxu0 %v7379_v39  ;;  %v7428_v38 = vld [vmem:[%s9443_s1 + $0x8c0] sm:$0xff]  }
  0xf2   :  { %6713 = vmatprep.subr.bf16.mxu1 %v7380_v40  ;;  %v7429_v39 = vld [vmem:[%s9443_s1 + $0x800] sm:$0xff]  }
  0xf3   :  { %v7430_v40 = vld [vmem:[%s9443_s1 + $0x880] sm:$0xff]  }
  0xf4   :  { %6692 = vmatpush3.bf16.msra.mxu0 %v7381_v41  ;;  %v38_v41 = vld [vmem:[%s9442_s0 + $0x80] sm:$0xff] }
  0xf5   :  { %6714 = vmatpush3.bf16.msra.mxu1 %v7382_v42  ;;  %6693 = vmatprep.subr.bf16.mxu0 %v7383_v43  ;;  %v5822_v43 = vcombine.low %v38_v41, %v38_v41 }
  0xf6   :  { %6715 = vmatprep.subr.bf16.mxu1 %v7384_v44  ;;  %v5823_v44 = vcombine.high %v38_v41, %v38_v41  ;;  %v7474_v41 = vld [vmem:[%s9443_s1 + $0xab8] sm:$0xff]  }
  0xf8   :  { %6694 = vmatpush3.bf16.msra.mxu0 %v7385_v45  ;;  %v39_v45 = vld [vmem:[%s9442_s0 + $0x88] sm:$0xff] }
  0xf9   :  { %6716 = vmatpush3.bf16.msra.mxu1 %v7386_v46  ;;  %6695 = vmatprep.subr.bf16.mxu0 %v7387_v47  ;;  %v5824_v47 = vcombine.low %v39_v45, %v39_v45 }
  0xfa   :  { %6717 = vmatprep.subr.bf16.mxu1 %v7388_v48  ;;  %v5825_v48 = vcombine.high %v39_v45, %v39_v45 }
  0xfc   :  { %6696 = vmatpush3.bf16.msra.mxu0 %v7389_v49  ;;  %v7435_v49 = vld [vmem:[%s9443_s1 + $0x978] sm:$0xff]  }
  0xfd   :  { %6718 = vmatpush3.bf16.msra.mxu1 %v7390_v50  ;;  %6697 = vmatprep.subr.bf16.mxu0 %v7391_v51  ;;  %v7436_v51 = vld [vmem:[%s9443_s1 + $0x9f8] sm:$0xff]  }
  0xfe   :  { %6719 = vmatprep.subr.bf16.mxu1 %v7392_v52 }
 0x100   :  { %6698 = vmatpush3.bf16.msra.mxu0 %v7393_v53 }
 0x101   :  { %6720 = vmatpush3.bf16.msra.mxu1 %v7394_v54  ;;  %6727 = vmatprep.subr.bf16.mxu0 %v7399_v62  ;;  %v7437_v54 = vld [vmem:[%s9443_s1 + $0x938] sm:$0xff]  }
 0x102   :  { %6749 = vmatprep.subr.bf16.mxu1 %v7400_v0 }
 0x103   :  { %v6435_v57 = vpop.f32.mrf.mxu0  ;;  %4974 = vmatmul.mubr.bf16.vlgmr.msra.gmra.mxu0 %v5818_v59 }
 0x104   :  { %v6457_v58 = vpop.f32.mrf.mxu1  ;;  %5014 = vmatmul.mubr.bf16.vlgmr.msra.gmra.mxu1 %v5820_v61  ;;  %6728 = vmatpush3.bf16.msra.mxu0 %v7401_v3  ;;  %v7443_v3 = vld [vmem:[%s9443_s1 + $0x968] sm:$0xff]  }
 0x105   :  { %v6436_v1 = vpop.f32.mrf.mxu0  ;;  %6750 = vmatpush3.bf16.msra.mxu1 %v7402_v6  ;;  %6729 = vmatprep.subr.bf16.mxu0 %v7403_v10  ;;  %v7446_v6 = vld [vmem:[%s9443_s1 + $0x9a8] sm:$0xff]   ;;  %v7450_v10 = vld [vmem:[%s9443_s1 + $0x9a0] sm:$0xff]  }
 0x106   :  { %v6458_v2 = vpop.f32.mrf.mxu1  ;;  %v6437_v4 = vadd.f32 %v6436_v1, %v6435_v57  ;;  %6751 = vmatprep.subr.bf16.mxu1 %v7404_v11  ;;  %5053 = vmatprep.mubr.bf16.mxu0 %v5823_v44  ;;  %v7438_v57 = vld [vmem:[%s9443_s1 + $0x9b8] sm:$0xff]   ;;  %v7441_v1 = vld [vmem:[%s9443_s1 + $0x930] sm:$0xff]  }
 0x107   :  { %v6459_v5 = vadd.f32 %v6458_v2, %v6457_v58  ;;  %v6438_v7 = vpop.f32.mrf.mxu0  ;;  %5093 = vmatprep.mubr.bf16.mxu1 %v5825_v48  ;;  %v7442_v2 = vld [vmem:[%s9443_s1 + $0x9b0] sm:$0xff]   ;;  %v7451_v11 = vld [vmem:[%s9443_s1 + $0x958] sm:$0xff]  }
 0x108   :  { %v6460_v8 = vpop.f32.mrf.mxu1  ;;  %v4496_v9 = vadd.f32 %v6437_v4, %v8485_v28  ;;  %6730 = vmatpush3.bf16.msra.mxu0 %v7405_v15  ;;  %v7418_v28 = vld [vmem:[%s9443_s1 + $0x898] sm:$0xff]   ;;  %v7444_v4 = vld [vmem:[%s9443_s1 + $0x9e8] sm:$0xff]   ;;  %v7447_v7 = vld [vmem:[%s9443_s1 + $0x960] sm:$0xff]  }
 0x109   :  { %v6439_v12 = vpop.f32.mrf.mxu0  ;;  %6752 = vmatpush3.bf16.msra.mxu1 %v7406_v16  ;;  %6731 = vmatprep.subr.bf16.mxu0 %v7407_v17  ;;  %v7448_v8 = vld [vmem:[%s9443_s1 + $0x9e0] sm:$0xff]   ;;  %v7455_v15 = vld [vmem:[%s9443_s1 + $0x950] sm:$0xff]  }
 0x10a   :  { %v6461_v13 = vpop.f32.mrf.mxu1  ;;  %v8590_v14 = vadd.f32 %v6459_v5, %v4496_v9  ;;  %6753 = vmatprep.subr.bf16.mxu1 %v7408_v18  ;;  %v7445_v5 = vld [vmem:[%s9443_s1 + $0x928] sm:$0xff]   ;;  %v7449_v9 = vld [vmem:[%s9443_s1 + $0x920] sm:$0xff]   ;;  %v7452_v12 = vld [vmem:[%s9443_s1 + $0x9d8] sm:$0xff]  }
 0x10b   :  { %v7453_v13 = vld [vmem:[%s9443_s1 + $0x918] sm:$0xff]   ;;  %v7456_v16 = vld [vmem:[%s9443_s1 + $0x9d0] sm:$0xff]  }
 0x10c   :  { %6732 = vmatpush3.bf16.msra.mxu0 %v7409_v19  ;;  %v7457_v17 = vld [vmem:[%s9443_s1 + $0x910] sm:$0xff]   ;;  %v7459_v19 = vld [vmem:[%s9443_s1 + $0x948] sm:$0xff]  }
 0x10d   :  { %6754 = vmatpush3.bf16.msra.mxu1 %v7410_v20  ;;  %6733 = vmatprep.subr.bf16.mxu0 %v7411_v21  ;;  %v7458_v18 = vld [vmem:[%s9443_s1 + $0x990] sm:$0xff]   ;;  %v7460_v20 = vld [vmem:[%s9443_s1 + $0x9c8] sm:$0xff]  }
 0x10e   :  { %6755 = vmatprep.subr.bf16.mxu1 %v7412_v22  ;;  %v7461_v21 = vld [vmem:[%s9443_s1 + $0x908] sm:$0xff]  }
 0x10f   :  { %v7462_v22 = vld [vmem:[%s9443_s1 + $0x988] sm:$0xff]  }
 0x110   :  { %6734 = vmatpush3.bf16.msra.mxu0 %v7413_v23  ;;  %v7463_v23 = vld [vmem:[%s9443_s1 + $0x940] sm:$0xff]  }
 0x111   :  { %6756 = vmatpush3.bf16.msra.mxu1 %v7414_v24  ;;  %6735 = vmatprep.subr.bf16.mxu0 %v7415_v25  ;;  %v7464_v24 = vld [vmem:[%s9443_s1 + $0x9c0] sm:$0xff]  }
 0x112   :  { %6757 = vmatprep.subr.bf16.mxu1 %v7416_v26  ;;  %v7465_v25 = vld [vmem:[%s9443_s1 + $0x900] sm:$0xff]  }
 0x113   :  { %v7466_v26 = vld [vmem:[%s9443_s1 + $0x980] sm:$0xff]  }
 0x114   :  { %6736 = vmatpush3.bf16.msra.mxu0 %v7417_v27  ;;  %v40_v27 = vld [vmem:[%s9442_s0 + $0x90] sm:$0xff] }
 0x115   :  { %6758 = vmatpush3.bf16.msra.mxu1 %v7418_v28  ;;  %6737 = vmatprep.subr.bf16.mxu0 %v7419_v29  ;;  %v41_v28 = vld [vmem:[%s9442_s0 + $0x98] sm:$0xff] }
 0x116   :  { %6759 = vmatprep.subr.bf16.mxu1 %v7420_v30  ;;  %v5826_v30 = vcombine.low %v40_v27, %v40_v27 }
 0x118   :  { %6738 = vmatpush3.bf16.msra.mxu0 %v7421_v31  ;;  %v5827_v31 = vcombine.high %v40_v27, %v40_v27 }
 0x119   :  { %6760 = vmatpush3.bf16.msra.mxu1 %v7422_v32  ;;  %6739 = vmatprep.subr.bf16.mxu0 %v7423_v33  ;;  %v5828_v32 = vcombine.low %v41_v28, %v41_v28  ;;  %v5829_v33 = vcombine.high %v41_v28, %v41_v28  ;;  %v7510_v28 = vld [vmem:[%s9443_s1 + $0xbb8] sm:$0xff]  }
 0x11a   :  { %6761 = vmatprep.subr.bf16.mxu1 %v7424_v34 }
 0x11c   :  { %6740 = vmatpush3.bf16.msra.mxu0 %v7425_v35  ;;  %v7471_v35 = vld [vmem:[%s9443_s1 + $0xa78] sm:$0xff]  }
 0x11d   :  { %6762 = vmatpush3.bf16.msra.mxu1 %v7426_v36  ;;  %6741 = vmatprep.subr.bf16.mxu0 %v7427_v37  ;;  %v7472_v36 = vld [vmem:[%s9443_s1 + $0xaf8] sm:$0xff]  }
 0x11e   :  { %6763 = vmatprep.subr.bf16.mxu1 %v7428_v38  ;;  %v7473_v38 = vld [vmem:[%s9443_s1 + $0xa38] sm:$0xff]  }
 0x120   :  { %6742 = vmatpush3.bf16.msra.mxu0 %v7429_v39 }
 0x121   :  { %6764 = vmatpush3.bf16.msra.mxu1 %v7430_v40  ;;  %6771 = vmatprep.subr.bf16.mxu0 %v7435_v49 }
 0x122   :  { %6793 = vmatprep.subr.bf16.mxu1 %v7436_v51 }
 0x123   :  { %v6479_v42 = vpop.f32.mrf.mxu0  ;;  %5054 = vmatmul.mubr.bf16.vlgmr.msra.gmra.mxu0 %v5822_v43 }
 0x124   :  { %v6501_v46 = vpop.f32.mrf.mxu1  ;;  %5094 = vmatmul.mubr.bf16.vlgmr.msra.gmra.mxu1 %v5824_v47  ;;  %6772 = vmatpush3.bf16.msra.mxu0 %v7437_v54  ;;  %v7476_v47 = vld [vmem:[%s9443_s1 + $0xaf0] sm:$0xff]   ;;  %v7480_v54 = vld [vmem:[%s9443_s1 + $0xae8] sm:$0xff]  }
 0x125   :  { %v6480_v50 = vpop.f32.mrf.mxu0  ;;  %6794 = vmatpush3.bf16.msra.mxu1 %v7438_v57  ;;  %6773 = vmatprep.subr.bf16.mxu0 %v7439_v60  ;;  %v7483_v57 = vld [vmem:[%s9443_s1 + $0xa60] sm:$0xff]  }
 0x126   :  { %v6481_v52 = vadd.f32 %v6480_v50, %v6479_v42  ;;  %v6502_v53 = vpop.f32.mrf.mxu1  ;;  %6795 = vmatprep.subr.bf16.mxu1 %v7440_v63  ;;  %5133 = vmatprep.mubr.bf16.mxu0 %v5827_v31  ;;  %v7477_v50 = vld [vmem:[%s9443_s1 + $0xa30] sm:$0xff]   ;;  %v7486_v60 = vld [vmem:[%s9443_s1 + $0xaa0] sm:$0xff]   ;;  %v7489_v63 = vld [vmem:[%s9443_s1 + $0xa18] sm:$0xff]  }
 0x127   :  { %v6503_v55 = vadd.f32 %v6502_v53, %v6501_v46  ;;  %v6482_v56 = vpop.f32.mrf.mxu0  ;;  %5173 = vmatprep.mubr.bf16.mxu1 %v5829_v33  ;;  %v7475_v46 = vld [vmem:[%s9443_s1 + $0xa70] sm:$0xff]   ;;  %v7479_v53 = vld [vmem:[%s9443_s1 + $0xa68] sm:$0xff]  }
 0x128   :  { %v4576_v58 = vadd.f32 %v6481_v52, %v8590_v14  ;;  %v6504_v59 = vpop.f32.mrf.mxu1  ;;  %6774 = vmatpush3.bf16.msra.mxu0 %v7441_v1  ;;  %v7454_v14 = vld [vmem:[%s9443_s1 + $0x998] sm:$0xff]   ;;  %v7478_v52 = vld [vmem:[%s9443_s1 + $0xab0] sm:$0xff]   ;;  %v7482_v56 = vld [vmem:[%s9443_s1 + $0xaa8] sm:$0xff]  }
 0x129   :  { %v6483_v61 = vpop.f32.mrf.mxu0  ;;  %6796 = vmatpush3.bf16.msra.mxu1 %v7442_v2  ;;  %6775 = vmatprep.subr.bf16.mxu0 %v7443_v3  ;;  %v7485_v59 = vld [vmem:[%s9443_s1 + $0xa20] sm:$0xff]   ;;  %v7491_v1 = vld [vmem:[%s9443_s1 + $0xa50] sm:$0xff]  }
 0x12a   :  { %v8692_v62 = vadd.f32 %v6503_v55, %v4576_v58  ;;  %v6505_v0 = vpop.f32.mrf.mxu1  ;;  %6797 = vmatprep.subr.bf16.mxu1 %v7444_v4  ;;  %v7481_v55 = vld [vmem:[%s9443_s1 + $0xa28] sm:$0xff]   ;;  %v7484_v58 = vld [vmem:[%s9443_s1 + $0xae0] sm:$0xff]   ;;  %v7487_v61 = vld [vmem:[%s9443_s1 + $0xa58] sm:$0xff]  }
 0x12b   :  { %v7490_v0 = vld [vmem:[%s9443_s1 + $0xa98] sm:$0xff]   ;;  %v7492_v2 = vld [vmem:[%s9443_s1 + $0xad0] sm:$0xff]  }
 0x12c   :  { %6776 = vmatpush3.bf16.msra.mxu0 %v7445_v5  ;;  %v7493_v3 = vld [vmem:[%s9443_s1 + $0xa10] sm:$0xff]   ;;  %v7495_v5 = vld [vmem:[%s9443_s1 + $0xa48] sm:$0xff]  }
 0x12d   :  { %6798 = vmatpush3.bf16.msra.mxu1 %v7446_v6  ;;  %6777 = vmatprep.subr.bf16.mxu0 %v7447_v7  ;;  %v7494_v4 = vld [vmem:[%s9443_s1 + $0xa90] sm:$0xff]   ;;  %v7496_v6 = vld [vmem:[%s9443_s1 + $0xac8] sm:$0xff]  }
 0x12e   :  { %6799 = vmatprep.subr.bf16.mxu1 %v7448_v8  ;;  %v7497_v7 = vld [vmem:[%s9443_s1 + $0xa08] sm:$0xff]   ;;  %v7512_v33 = vld [vmem:[%s9443_s1 + $0xbf0] sm:$0xff]  }
 0x12f   :  { %v7498_v8 = vld [vmem:[%s9443_s1 + $0xa88] sm:$0xff]  }
 0x130   :  { %6778 = vmatpush3.bf16.msra.mxu0 %v7449_v9  ;;  %v7499_v9 = vld [vmem:[%s9443_s1 + $0xa40] sm:$0xff]  }
 0x131   :  { %6800 = vmatpush3.bf16.msra.mxu1 %v7450_v10  ;;  %6779 = vmatprep.subr.bf16.mxu0 %v7451_v11  ;;  %v7500_v10 = vld [vmem:[%s9443_s1 + $0xac0] sm:$0xff]  }
 0x132   :  { %6801 = vmatprep.subr.bf16.mxu1 %v7452_v12  ;;  %v7501_v11 = vld [vmem:[%s9443_s1 + $0xa00] sm:$0xff]  }
 0x133   :  { %v7502_v12 = vld [vmem:[%s9443_s1 + $0xa80] sm:$0xff]  }
 0x134   :  { %6780 = vmatpush3.bf16.msra.mxu0 %v7453_v13  ;;  %v42_v13 = vld [vmem:[%s9442_s0 + $0xa0] sm:$0xff] }
 0x135   :  { %6802 = vmatpush3.bf16.msra.mxu1 %v7454_v14  ;;  %6781 = vmatprep.subr.bf16.mxu0 %v7455_v15  ;;  %v43_v14 = vld [vmem:[%s9442_s0 + $0xa8] sm:$0xff] }
 0x136   :  { %6803 = vmatprep.subr.bf16.mxu1 %v7456_v16 }
 0x138   :  { %6782 = vmatpush3.bf16.msra.mxu0 %v7457_v17  ;;  %v5830_v17 = vcombine.low %v42_v13, %v42_v13 }
 0x139   :  { %6804 = vmatpush3.bf16.msra.mxu1 %v7458_v18  ;;  %6783 = vmatprep.subr.bf16.mxu0 %v7459_v19  ;;  %v5831_v18 = vcombine.high %v42_v13, %v42_v13  ;;  %v5832_v19 = vcombine.low %v43_v14, %v43_v14 }
 0x13a   :  { %6805 = vmatprep.subr.bf16.mxu1 %v7460_v20  ;;  %v7507_v20 = vld [vmem:[%s9443_s1 + $0xb78] sm:$0xff]  }
 0x13c   :  { %6784 = vmatpush3.bf16.msra.mxu0 %v7461_v21  ;;  %v5833_v21 = vcombine.high %v43_v14, %v43_v14 }
 0x13d   :  { %6806 = vmatpush3.bf16.msra.mxu1 %v7462_v22  ;;  %6785 = vmatprep.subr.bf16.mxu0 %v7463_v23  ;;  %v7508_v22 = vld [vmem:[%s9443_s1 + $0xbf8] sm:$0xff]  }
 0x13e   :  { %6807 = vmatprep.subr.bf16.mxu1 %v7464_v24 }
 0x140   :  { %6786 = vmatpush3.bf16.msra.mxu0 %v7465_v25  ;;  %v7509_v25 = vld [vmem:[%s9443_s1 + $0xb38] sm:$0xff]  }
 0x141   :  { %6808 = vmatpush3.bf16.msra.mxu1 %v7466_v26  ;;  %6815 = vmatprep.subr.bf16.mxu0 %v7471_v35 }
 0x142   :  { %6837 = vmatprep.subr.bf16.mxu1 %v7472_v36 }
 0x143   :  { %v6523_v29 = vpop.f32.mrf.mxu0  ;;  %5134 = vmatmul.mubr.bf16.vlgmr.msra.gmra.mxu0 %v5826_v30 }
 0x144   :  { %v6545_v34 = vpop.f32.mrf.mxu1  ;;  %5174 = vmatmul.mubr.bf16.vlgmr.msra.gmra.mxu1 %v5828_v32  ;;  %6816 = vmatpush3.bf16.msra.mxu0 %v7473_v38  ;;  %v7511_v32 = vld [vmem:[%s9443_s1 + $0xb70] sm:$0xff]  }
 0x145   :  { %v6524_v37 = vpop.f32.mrf.mxu0  ;;  %6838 = vmatpush3.bf16.msra.mxu1 %v7474_v41  ;;  %6817 = vmatprep.subr.bf16.mxu0 %v7475_v46  ;;  %v7514_v38 = vld [vmem:[%s9443_s1 + $0xbb0] sm:$0xff]   ;;  %v7517_v41 = vld [vmem:[%s9443_s1 + $0xb28] sm:$0xff]   ;;  %v7522_v46 = vld [vmem:[%s9443_s1 + $0xba0] sm:$0xff]  }
 0x146   :  { %v6525_v39 = vadd.f32 %v6524_v37, %v6523_v29  ;;  %v6546_v40 = vpop.f32.mrf.mxu1  ;;  %6839 = vmatprep.subr.bf16.mxu1 %v7476_v47  ;;  %5213 = vmatprep.mubr.bf16.mxu0 %v5831_v18  ;;  %v7513_v37 = vld [vmem:[%s9443_s1 + $0xb30] sm:$0xff]   ;;  %v7523_v47 = vld [vmem:[%s9443_s1 + $0xb58] sm:$0xff]  }
 0x147   :  { %v6547_v42 = vadd.f32 %v6546_v40, %v6545_v34  ;;  %v6526_v43 = vpop.f32.mrf.mxu0  ;;  %5253 = vmatprep.mubr.bf16.mxu1 %v5833_v21  ;;  %v7516_v40 = vld [vmem:[%s9443_s1 + $0xbe8] sm:$0xff]   ;;  %v7547_v18 = vld [vmem:[%s9443_s1 + $0xc70] sm:$0xff]  }
 0x148   :  { %v4656_v44 = vadd.f32 %v6525_v39, %v8692_v62  ;;  %v6548_v45 = vpop.f32.mrf.mxu1  ;;  %6818 = vmatpush3.bf16.msra.mxu0 %v7477_v50  ;;  %v7488_v62 = vld [vmem:[%s9443_s1 + $0xad8] sm:$0xff]   ;;  %v7515_v39 = vld [vmem:[%s9443_s1 + $0xb68] sm:$0xff]   ;;  %v7519_v43 = vld [vmem:[%s9443_s1 + $0xb60] sm:$0xff]  }
 0x149   :  { %v6527_v48 = vpop.f32.mrf.mxu0  ;;  %6840 = vmatpush3.bf16.msra.mxu1 %v7478_v52  ;;  %6819 = vmatprep.subr.bf16.mxu0 %v7479_v53  ;;  %v7521_v45 = vld [vmem:[%s9443_s1 + $0xb20] sm:$0xff]   ;;  %v7526_v50 = vld [vmem:[%s9443_s1 + $0xb98] sm:$0xff]   ;;  %v7528_v52 = vld [vmem:[%s9443_s1 + $0xbd0] sm:$0xff]  }
 0x14a   :  { %v8800_v49 = vadd.f32 %v6547_v42, %v4656_v44  ;;  %v6549_v51 = vpop.f32.mrf.mxu1  ;;  %6841 = vmatprep.subr.bf16.mxu1 %v7480_v54  ;;  %v7518_v42 = vld [vmem:[%s9443_s1 + $0xba8] sm:$0xff]   ;;  %v7520_v44 = vld [vmem:[%s9443_s1 + $0xbe0] sm:$0xff]   ;;  %v7524_v48 = vld [vmem:[%s9443_s1 + $0xbd8] sm:$0xff]  }
 0x14b   :  { %v7527_v51 = vld [vmem:[%s9443_s1 + $0xb50] sm:$0xff]  }
 0x14c   :  { %6820 = vmatpush3.bf16.msra.mxu0 %v7481_v55  ;;  %v7529_v53 = vld [vmem:[%s9443_s1 + $0xb10] sm:$0xff]   ;;  %v7531_v55 = vld [vmem:[%s9443_s1 + $0xb48] sm:$0xff]  }
 0x14d   :  { %6842 = vmatpush3.bf16.msra.mxu1 %v7482_v56  ;;  %6821 = vmatprep.subr.bf16.mxu0 %v7483_v57  ;;  %v7530_v54 = vld [vmem:[%s9443_s1 + $0xb90] sm:$0xff]   ;;  %v7532_v56 = vld [vmem:[%s9443_s1 + $0xbc8] sm:$0xff]  }
 0x14e   :  { %6843 = vmatprep.subr.bf16.mxu1 %v7484_v58  ;;  %v7533_v57 = vld [vmem:[%s9443_s1 + $0xb08] sm:$0xff]   ;;  %v7548_v21 = vld [vmem:[%s9443_s1 + $0xcf0] sm:$0xff]  }
 0x14f   :  { %v7534_v58 = vld [vmem:[%s9443_s1 + $0xb88] sm:$0xff]  }
 0x150   :  { %6822 = vmatpush3.bf16.msra.mxu0 %v7485_v59  ;;  %v7535_v59 = vld [vmem:[%s9443_s1 + $0xb40] sm:$0xff]  }
 0x151   :  { %6844 = vmatpush3.bf16.msra.mxu1 %v7486_v60  ;;  %6823 = vmatprep.subr.bf16.mxu0 %v7487_v61  ;;  %v7536_v60 = vld [vmem:[%s9443_s1 + $0xbc0] sm:$0xff]  }
 0x152   :  { %6845 = vmatprep.subr.bf16.mxu1 %v7488_v62  ;;  %v7537_v61 = vld [vmem:[%s9443_s1 + $0xb00] sm:$0xff]  }
 0x153   :  { %v7538_v62 = vld [vmem:[%s9443_s1 + $0xb80] sm:$0xff]  }
 0x154   :  { %6824 = vmatpush3.bf16.msra.mxu0 %v7489_v63  ;;  %v44_v63 = vld [vmem:[%s9442_s0 + $0xb0] sm:$0xff] }
 0x155   :  { %6846 = vmatpush3.bf16.msra.mxu1 %v7490_v0  ;;  %6825 = vmatprep.subr.bf16.mxu0 %v7491_v1  ;;  %v5834_v1 = vcombine.low %v44_v63, %v44_v63 }
 0x156   :  { %6847 = vmatprep.subr.bf16.mxu1 %v7492_v2  ;;  %v5835_v2 = vcombine.high %v44_v63, %v44_v63  ;;  %v7582_v63 = vld [vmem:[%s9443_s1 + $0xdb8] sm:$0xff]  }
 0x158   :  { %6826 = vmatpush3.bf16.msra.mxu0 %v7493_v3  ;;  %v45_v3 = vld [vmem:[%s9442_s0 + $0xb8] sm:$0xff] }
 0x159   :  { %6848 = vmatpush3.bf16.msra.mxu1 %v7494_v4  ;;  %6827 = vmatprep.subr.bf16.mxu0 %v7495_v5  ;;  %v5836_v5 = vcombine.low %v45_v3, %v45_v3 }
 0x15a   :  { %6849 = vmatprep.subr.bf16.mxu1 %v7496_v6  ;;  %v5837_v6 = vcombine.high %v45_v3, %v45_v3 }
 0x15c   :  { %6828 = vmatpush3.bf16.msra.mxu0 %v7497_v7  ;;  %v7543_v7 = vld [vmem:[%s9443_s1 + $0xc78] sm:$0xff]  }
 0x15d   :  { %6850 = vmatpush3.bf16.msra.mxu1 %v7498_v8  ;;  %6829 = vmatprep.subr.bf16.mxu0 %v7499_v9  ;;  %v7544_v9 = vld [vmem:[%s9443_s1 + $0xcf8] sm:$0xff]  }
 0x15e   :  { %6851 = vmatprep.subr.bf16.mxu1 %v7500_v10 }
 0x160   :  { %6830 = vmatpush3.bf16.msra.mxu0 %v7501_v11 }
 0x161   :  { %6852 = vmatpush3.bf16.msra.mxu1 %v7502_v12  ;;  %6859 = vmatprep.subr.bf16.mxu0 %v7507_v20  ;;  %v7545_v12 = vld [vmem:[%s9443_s1 + $0xc38] sm:$0xff]  }
 0x162   :  { %6881 = vmatprep.subr.bf16.mxu1 %v7508_v22 }
 0x163   :  { %v6567_v15 = vpop.f32.mrf.mxu0  ;;  %5214 = vmatmul.mubr.bf16.vlgmr.msra.gmra.mxu0 %v5830_v17 }
 0x164   :  { %v6589_v16 = vpop.f32.mrf.mxu1  ;;  %5254 = vmatmul.mubr.bf16.vlgmr.msra.gmra.mxu1 %v5832_v19  ;;  %6860 = vmatpush3.bf16.msra.mxu0 %v7509_v25  ;;  %v7551_v25 = vld [vmem:[%s9443_s1 + $0xc68] sm:$0xff]  }
 0x165   :  { %v6568_v23 = vpop.f32.mrf.mxu0  ;;  %6882 = vmatpush3.bf16.msra.mxu1 %v7510_v28  ;;  %6861 = vmatprep.subr.bf16.mxu0 %v7511_v32  ;;  %v7554_v28 = vld [vmem:[%s9443_s1 + $0xca8] sm:$0xff]   ;;  %v7558_v32 = vld [vmem:[%s9443_s1 + $0xca0] sm:$0xff]  }
 0x166   :  { %v6590_v24 = vpop.f32.mrf.mxu1  ;;  %v6569_v26 = vadd.f32 %v6568_v23, %v6567_v15  ;;  %6883 = vmatprep.subr.bf16.mxu1 %v7512_v33  ;;  %5293 = vmatprep.mubr.bf16.mxu0 %v5835_v2  ;;  %v7546_v15 = vld [vmem:[%s9443_s1 + $0xcb8] sm:$0xff]   ;;  %v7549_v23 = vld [vmem:[%s9443_s1 + $0xc30] sm:$0xff]  }
 0x167   :  { %v6591_v27 = vadd.f32 %v6590_v24, %v6589_v16  ;;  %v6570_v29 = vpop.f32.mrf.mxu0  ;;  %5333 = vmatprep.mubr.bf16.mxu1 %v5837_v6  ;;  %v7550_v24 = vld [vmem:[%s9443_s1 + $0xcb0] sm:$0xff]   ;;  %v7559_v33 = vld [vmem:[%s9443_s1 + $0xc58] sm:$0xff]  }
 0x168   :  { %v6592_v30 = vpop.f32.mrf.mxu1  ;;  %v4736_v31 = vadd.f32 %v6569_v26, %v8800_v49  ;;  %6862 = vmatpush3.bf16.msra.mxu0 %v7513_v37  ;;  %v7525_v49 = vld [vmem:[%s9443_s1 + $0xb18] sm:$0xff]   ;;  %v7552_v26 = vld [vmem:[%s9443_s1 + $0xce8] sm:$0xff]   ;;  %v7555_v29 = vld [vmem:[%s9443_s1 + $0xc60] sm:$0xff]  }
 0x169   :  { %v6571_v34 = vpop.f32.mrf.mxu0  ;;  %6884 = vmatpush3.bf16.msra.mxu1 %v7514_v38  ;;  %6863 = vmatprep.subr.bf16.mxu0 %v7515_v39  ;;  %v7556_v30 = vld [vmem:[%s9443_s1 + $0xce0] sm:$0xff]   ;;  %v7563_v37 = vld [vmem:[%s9443_s1 + $0xc50] sm:$0xff]  }
 0x16a   :  { %v6593_v35 = vpop.f32.mrf.mxu1  ;;  %v8905_v36 = vadd.f32 %v6591_v27, %v4736_v31  ;;  %6885 = vmatprep.subr.bf16.mxu1 %v7516_v40  ;;  %v7553_v27 = vld [vmem:[%s9443_s1 + $0xc28] sm:$0xff]   ;;  %v7557_v31 = vld [vmem:[%s9443_s1 + $0xc20] sm:$0xff]   ;;  %v7560_v34 = vld [vmem:[%s9443_s1 + $0xcd8] sm:$0xff]  }
 0x16b   :  { %v7561_v35 = vld [vmem:[%s9443_s1 + $0xc18] sm:$0xff]   ;;  %v7564_v38 = vld [vmem:[%s9443_s1 + $0xcd0] sm:$0xff]  }
 0x16c   :  { %6864 = vmatpush3.bf16.msra.mxu0 %v7517_v41  ;;  %v7565_v39 = vld [vmem:[%s9443_s1 + $0xc10] sm:$0xff]   ;;  %v7567_v41 = vld [vmem:[%s9443_s1 + $0xc48] sm:$0xff]  }
 0x16d   :  { %6886 = vmatpush3.bf16.msra.mxu1 %v7518_v42  ;;  %6865 = vmatprep.subr.bf16.mxu0 %v7519_v43  ;;  %v7566_v40 = vld [vmem:[%s9443_s1 + $0xc90] sm:$0xff]   ;;  %v7568_v42 = vld [vmem:[%s9443_s1 + $0xcc8] sm:$0xff]  }
 0x16e   :  { %6887 = vmatprep.subr.bf16.mxu1 %v7520_v44  ;;  %v7569_v43 = vld [vmem:[%s9443_s1 + $0xc08] sm:$0xff]  }
 0x16f   :  { %v7570_v44 = vld [vmem:[%s9443_s1 + $0xc88] sm:$0xff]  }
 0x170   :  { %6866 = vmatpush3.bf16.msra.mxu0 %v7521_v45  ;;  %v7571_v45 = vld [vmem:[%s9443_s1 + $0xc40] sm:$0xff]  }
 0x171   :  { %6888 = vmatpush3.bf16.msra.mxu1 %v7522_v46  ;;  %6867 = vmatprep.subr.bf16.mxu0 %v7523_v47  ;;  %v7572_v46 = vld [vmem:[%s9443_s1 + $0xcc0] sm:$0xff]  }
 0x172   :  { %6889 = vmatprep.subr.bf16.mxu1 %v7524_v48  ;;  %v7573_v47 = vld [vmem:[%s9443_s1 + $0xc00] sm:$0xff]  }
 0x173   :  { %v7574_v48 = vld [vmem:[%s9443_s1 + $0xc80] sm:$0xff]  }
 0x174   :  { %6868 = vmatpush3.bf16.msra.mxu0 %v7525_v49  ;;  %v46_v49 = vld [vmem:[%s9442_s0 + $0xc0] sm:$0xff] }
 0x175   :  { %6890 = vmatpush3.bf16.msra.mxu1 %v7526_v50  ;;  %6869 = vmatprep.subr.bf16.mxu0 %v7527_v51  ;;  %v47_v50 = vld [vmem:[%s9442_s0 + $0xc8] sm:$0xff] }
 0x176   :  { %6891 = vmatprep.subr.bf16.mxu1 %v7528_v52  ;;  %v5838_v52 = vcombine.low %v46_v49, %v46_v49 }
 0x178   :  { %6870 = vmatpush3.bf16.msra.mxu0 %v7529_v53  ;;  %v5839_v53 = vcombine.high %v46_v49, %v46_v49  ;;  %v7618_v49 = vld [vmem:[%s9443_s1 + $0xeb8] sm:$0xff]  }
 0x179   :  { %6892 = vmatpush3.bf16.msra.mxu1 %v7530_v54  ;;  %6871 = vmatprep.subr.bf16.mxu0 %v7531_v55  ;;  %v5840_v54 = vcombine.low %v47_v50, %v47_v50  ;;  %v5841_v55 = vcombine.high %v47_v50, %v47_v50 }
 0x17a   :  { %6893 = vmatprep.subr.bf16.mxu1 %v7532_v56 }
 0x17c   :  { %6872 = vmatpush3.bf16.msra.mxu0 %v7533_v57  ;;  %v7579_v57 = vld [vmem:[%s9443_s1 + $0xd78] sm:$0xff]  }
 0x17d   :  { %6894 = vmatpush3.bf16.msra.mxu1 %v7534_v58  ;;  %6873 = vmatprep.subr.bf16.mxu0 %v7535_v59  ;;  %v7580_v58 = vld [vmem:[%s9443_s1 + $0xdf8] sm:$0xff]  }
 0x17e   :  { %6895 = vmatprep.subr.bf16.mxu1 %v7536_v60  ;;  %v7581_v60 = vld [vmem:[%s9443_s1 + $0xd38] sm:$0xff]  }
 0x180   :  { %6874 = vmatpush3.bf16.msra.mxu0 %v7537_v61 }
 0x181   :  { %6896 = vmatpush3.bf16.msra.mxu1 %v7538_v62  ;;  %6903 = vmatprep.subr.bf16.mxu0 %v7543_v7 }
 0x182   :  { %6925 = vmatprep.subr.bf16.mxu1 %v7544_v9 }
 0x183   :  { %v6611_v0 = vpop.f32.mrf.mxu0  ;;  %5294 = vmatmul.mubr.bf16.vlgmr.msra.gmra.mxu0 %v5834_v1 }
 0x184   :  { %v6633_v4 = vpop.f32.mrf.mxu1  ;;  %5334 = vmatmul.mubr.bf16.vlgmr.msra.gmra.mxu1 %v5836_v5  ;;  %6904 = vmatpush3.bf16.msra.mxu0 %v7545_v12  ;;  %v7584_v5 = vld [vmem:[%s9443_s1 + $0xdf0] sm:$0xff]   ;;  %v7588_v12 = vld [vmem:[%s9443_s1 + $0xde8] sm:$0xff]  }
 0x185   :  { %v6612_v8 = vpop.f32.mrf.mxu0  ;;  %6926 = vmatpush3.bf16.msra.mxu1 %v7546_v15  ;;  %6905 = vmatprep.subr.bf16.mxu0 %v7547_v18  ;;  %v7591_v15 = vld [vmem:[%s9443_s1 + $0xd60] sm:$0xff]  }
 0x186   :  { %v6613_v10 = vadd.f32 %v6612_v8, %v6611_v0  ;;  %v6634_v11 = vpop.f32.mrf.mxu1  ;;  %6927 = vmatprep.subr.bf16.mxu1 %v7548_v21  ;;  %5373 = vmatprep.mubr.bf16.mxu0 %v5839_v53  ;;  %v7585_v8 = vld [vmem:[%s9443_s1 + $0xd30] sm:$0xff]   ;;  %v7594_v18 = vld [vmem:[%s9443_s1 + $0xda0] sm:$0xff]   ;;  %v7597_v21 = vld [vmem:[%s9443_s1 + $0xd18] sm:$0xff]  }
 0x187   :  { %v6635_v13 = vadd.f32 %v6634_v11, %v6633_v4  ;;  %v6614_v14 = vpop.f32.mrf.mxu0  ;;  %5413 = vmatprep.mubr.bf16.mxu1 %v5841_v55  ;;  %v7583_v4 = vld [vmem:[%s9443_s1 + $0xd70] sm:$0xff]   ;;  %v7587_v11 = vld [vmem:[%s9443_s1 + $0xd68] sm:$0xff]  }
 0x188   :  { %v4816_v16 = vadd.f32 %v6613_v10, %v8905_v36  ;;  %v6636_v17 = vpop.f32.mrf.mxu1  ;;  %6906 = vmatpush3.bf16.msra.mxu0 %v7549_v23  ;;  %v7562_v36 = vld [vmem:[%s9443_s1 + $0xc98] sm:$0xff]   ;;  %v7586_v10 = vld [vmem:[%s9443_s1 + $0xdb0] sm:$0xff]   ;;  %v7590_v14 = vld [vmem:[%s9443_s1 + $0xda8] sm:$0xff]  }
 0x189   :  { %v6615_v19 = vpop.f32.mrf.mxu0  ;;  %6928 = vmatpush3.bf16.msra.mxu1 %v7550_v24  ;;  %6907 = vmatprep.subr.bf16.mxu0 %v7551_v25  ;;  %v7593_v17 = vld [vmem:[%s9443_s1 + $0xd20] sm:$0xff]   ;;  %v7599_v23 = vld [vmem:[%s9443_s1 + $0xd50] sm:$0xff]  }
 0x18a   :  { %v9007_v20 = vadd.f32 %v6635_v13, %v4816_v16  ;;  %v6637_v22 = vpop.f32.mrf.mxu1  ;;  %6929 = vmatprep.subr.bf16.mxu1 %v7552_v26  ;;  %v7589_v13 = vld [vmem:[%s9443_s1 + $0xd28] sm:$0xff]   ;;  %v7592_v16 = vld [vmem:[%s9443_s1 + $0xde0] sm:$0xff]   ;;  %v7595_v19 = vld [vmem:[%s9443_s1 + $0xd58] sm:$0xff]  }
 0x18b   :  { %v7598_v22 = vld [vmem:[%s9443_s1 + $0xd98] sm:$0xff]   ;;  %v7600_v24 = vld [vmem:[%s9443_s1 + $0xdd0] sm:$0xff]  }
 0x18c   :  { %6908 = vmatpush3.bf16.msra.mxu0 %v7553_v27  ;;  %v7601_v25 = vld [vmem:[%s9443_s1 + $0xd10] sm:$0xff]   ;;  %v7603_v27 = vld [vmem:[%s9443_s1 + $0xd48] sm:$0xff]  }
 0x18d   :  { %6930 = vmatpush3.bf16.msra.mxu1 %v7554_v28  ;;  %6909 = vmatprep.subr.bf16.mxu0 %v7555_v29  ;;  %v7602_v26 = vld [vmem:[%s9443_s1 + $0xd90] sm:$0xff]   ;;  %v7604_v28 = vld [vmem:[%s9443_s1 + $0xdc8] sm:$0xff]  }
 0x18e   :  { %6931 = vmatprep.subr.bf16.mxu1 %v7556_v30  ;;  %v7605_v29 = vld [vmem:[%s9443_s1 + $0xd08] sm:$0xff]   ;;  %v7620_v55 = vld [vmem:[%s9443_s1 + $0xef0] sm:$0xff]  }
 0x18f   :  { %v7606_v30 = vld [vmem:[%s9443_s1 + $0xd88] sm:$0xff]  }
 0x190   :  { %6910 = vmatpush3.bf16.msra.mxu0 %v7557_v31  ;;  %v7607_v31 = vld [vmem:[%s9443_s1 + $0xd40] sm:$0xff]  }
 0x191   :  { %6932 = vmatpush3.bf16.msra.mxu1 %v7558_v32  ;;  %6911 = vmatprep.subr.bf16.mxu0 %v7559_v33  ;;  %v7608_v32 = vld [vmem:[%s9443_s1 + $0xdc0] sm:$0xff]  }
 0x192   :  { %6933 = vmatprep.subr.bf16.mxu1 %v7560_v34  ;;  %v7609_v33 = vld [vmem:[%s9443_s1 + $0xd00] sm:$0xff]  }
 0x193   :  { %v7610_v34 = vld [vmem:[%s9443_s1 + $0xd80] sm:$0xff]  }
 0x194   :  { %6912 = vmatpush3.bf16.msra.mxu0 %v7561_v35  ;;  %v48_v35 = vld [vmem:[%s9442_s0 + $0xd0] sm:$0xff] }
 0x195   :  { %6934 = vmatpush3.bf16.msra.mxu1 %v7562_v36  ;;  %6913 = vmatprep.subr.bf16.mxu0 %v7563_v37  ;;  %v49_v36 = vld [vmem:[%s9442_s0 + $0xd8] sm:$0xff] }
 0x196   :  { %6935 = vmatprep.subr.bf16.mxu1 %v7564_v38  ;;  %v5842_v38 = vcombine.low %v48_v35, %v48_v35 }
 0x198   :  { %6914 = vmatpush3.bf16.msra.mxu0 %v7565_v39  ;;  %v5843_v39 = vcombine.high %v48_v35, %v48_v35 }
 0x199   :  { %6936 = vmatpush3.bf16.msra.mxu1 %v7566_v40  ;;  %6915 = vmatprep.subr.bf16.mxu0 %v7567_v41  ;;  %v5844_v40 = vcombine.low %v49_v36, %v49_v36 }
 0x19a   :  { %6937 = vmatprep.subr.bf16.mxu1 %v7568_v42  ;;  %v7615_v42 = vld [vmem:[%s9443_s1 + $0xe78] sm:$0xff]  }
 0x19c   :  { %6916 = vmatpush3.bf16.msra.mxu0 %v7569_v43  ;;  %v5845_v43 = vcombine.high %v49_v36, %v49_v36  ;;  %v7654_v36 = vld [vmem:[%s9443_s1 + $0xfb8] sm:$0xff]  }
 0x19d   :  { %6938 = vmatpush3.bf16.msra.mxu1 %v7570_v44  ;;  %6917 = vmatprep.subr.bf16.mxu0 %v7571_v45  ;;  %v7616_v44 = vld [vmem:[%s9443_s1 + $0xef8] sm:$0xff]  }
 0x19e   :  { %6939 = vmatprep.subr.bf16.mxu1 %v7572_v46  ;;  %v7617_v46 = vld [vmem:[%s9443_s1 + $0xe38] sm:$0xff]  }
 0x1a0   :  { %6918 = vmatpush3.bf16.msra.mxu0 %v7573_v47 }
 0x1a1   :  { %6940 = vmatpush3.bf16.msra.mxu1 %v7574_v48  ;;  %6947 = vmatprep.subr.bf16.mxu0 %v7579_v57 }
 0x1a2   :  { %6969 = vmatprep.subr.bf16.mxu1 %v7580_v58  ;;  %v7621_v58 = vld [vmem:[%s9443_s1 + $0xe30] sm:$0xff]  }
 0x1a3   :  { %v6655_v51 = vpop.f32.mrf.mxu0  ;;  %5374 = vmatmul.mubr.bf16.vlgmr.msra.gmra.mxu0 %v5838_v52 }
 0x1a4   :  { %v6677_v56 = vpop.f32.mrf.mxu1  ;;  %5414 = vmatmul.mubr.bf16.vlgmr.msra.gmra.mxu1 %v5840_v54  ;;  %6948 = vmatpush3.bf16.msra.mxu0 %v7581_v60  ;;  %v7619_v54 = vld [vmem:[%s9443_s1 + $0xe70] sm:$0xff]  }
 0x1a5   :  { %v6656_v59 = vpop.f32.mrf.mxu0  ;;  %6970 = vmatpush3.bf16.msra.mxu1 %v7582_v63  ;;  %6949 = vmatprep.subr.bf16.mxu0 %v7583_v4  ;;  %v7622_v60 = vld [vmem:[%s9443_s1 + $0xeb0] sm:$0xff]   ;;  %v7625_v63 = vld [vmem:[%s9443_s1 + $0xe28] sm:$0xff]   ;;  %v7630_v4 = vld [vmem:[%s9443_s1 + $0xea0] sm:$0xff]  }
 0x1a6   :  { %v6657_v61 = vadd.f32 %v6656_v59, %v6655_v51  ;;  %v6678_v62 = vpop.f32.mrf.mxu1  ;;  %6971 = vmatprep.subr.bf16.mxu1 %v7584_v5  ;;  %5453 = vmatprep.mubr.bf16.mxu0 %v5843_v39  ;;  %v7631_v5 = vld [vmem:[%s9443_s1 + $0xe58] sm:$0xff]  }
 0x1a7   :  { %v6679_v0 = vadd.f32 %v6678_v62, %v6677_v56  ;;  %v6658_v1 = vpop.f32.mrf.mxu0  ;;  %5493 = vmatprep.mubr.bf16.mxu1 %v5845_v43  ;;  %v7624_v62 = vld [vmem:[%s9443_s1 + $0xee8] sm:$0xff]  }
 0x1a8   :  { %v4896_v2 = vadd.f32 %v6657_v61, %v9007_v20  ;;  %v6680_v3 = vpop.f32.mrf.mxu1  ;;  %6950 = vmatpush3.bf16.msra.mxu0 %v7585_v8  ;;  %v7596_v20 = vld [vmem:[%s9443_s1 + $0xdd8] sm:$0xff]   ;;  %v7623_v61 = vld [vmem:[%s9443_s1 + $0xe68] sm:$0xff]   ;;  %v7627_v1 = vld [vmem:[%s9443_s1 + $0xe60] sm:$0xff]  }
 0x1a9   :  { %v6659_v6 = vpop.f32.mrf.mxu0  ;;  %6972 = vmatpush3.bf16.msra.mxu1 %v7586_v10  ;;  %6951 = vmatprep.subr.bf16.mxu0 %v7587_v11  ;;  %v7629_v3 = vld [vmem:[%s9443_s1 + $0xe20] sm:$0xff]   ;;  %v7634_v8 = vld [vmem:[%s9443_s1 + $0xe98] sm:$0xff]   ;;  %v7636_v10 = vld [vmem:[%s9443_s1 + $0xed0] sm:$0xff]  }
 0x1aa   :  { %v9115_v7 = vadd.f32 %v6679_v0, %v4896_v2  ;;  %v6681_v9 = vpop.f32.mrf.mxu1  ;;  %6973 = vmatprep.subr.bf16.mxu1 %v7588_v12  ;;  %v7626_v0 = vld [vmem:[%s9443_s1 + $0xea8] sm:$0xff]   ;;  %v7628_v2 = vld [vmem:[%s9443_s1 + $0xee0] sm:$0xff]   ;;  %v7632_v6 = vld [vmem:[%s9443_s1 + $0xed8] sm:$0xff]  }
 0x1ab   :  { %v7635_v9 = vld [vmem:[%s9443_s1 + $0xe50] sm:$0xff]  }
 0x1ac   :  { %6952 = vmatpush3.bf16.msra.mxu0 %v7589_v13  ;;  %v7637_v11 = vld [vmem:[%s9443_s1 + $0xe10] sm:$0xff]   ;;  %v7639_v13 = vld [vmem:[%s9443_s1 + $0xe48] sm:$0xff]  }
 0x1ad   :  { %6974 = vmatpush3.bf16.msra.mxu1 %v7590_v14  ;;  %6953 = vmatprep.subr.bf16.mxu0 %v7591_v15  ;;  %v7638_v12 = vld [vmem:[%s9443_s1 + $0xe90] sm:$0xff]   ;;  %v7640_v14 = vld [vmem:[%s9443_s1 + $0xec8] sm:$0xff]  }
 0x1ae   :  { %6975 = vmatprep.subr.bf16.mxu1 %v7592_v16  ;;  %v7641_v15 = vld [vmem:[%s9443_s1 + $0xe08] sm:$0xff]  }
 0x1af   :  { %v7642_v16 = vld [vmem:[%s9443_s1 + $0xe88] sm:$0xff]  }
 0x1b0   :  { %6954 = vmatpush3.bf16.msra.mxu0 %v7593_v17  ;;  %v7643_v17 = vld [vmem:[%s9443_s1 + $0xe40] sm:$0xff]  }
 0x1b1   :  { %6976 = vmatpush3.bf16.msra.mxu1 %v7594_v18  ;;  %6955 = vmatprep.subr.bf16.mxu0 %v7595_v19  ;;  %v7644_v18 = vld [vmem:[%s9443_s1 + $0xec0] sm:$0xff]  }
 0x1b2   :  { %6977 = vmatprep.subr.bf16.mxu1 %v7596_v20  ;;  %v7645_v19 = vld [vmem:[%s9443_s1 + $0xe00] sm:$0xff]  }
 0x1b3   :  { %v7646_v20 = vld [vmem:[%s9443_s1 + $0xe80] sm:$0xff]  }
 0x1b4   :  { %6956 = vmatpush3.bf16.msra.mxu0 %v7597_v21  ;;  %v50_v21 = vld [vmem:[%s9442_s0 + $0xe0] sm:$0xff] }
 0x1b5   :  { %6978 = vmatpush3.bf16.msra.mxu1 %v7598_v22  ;;  %6957 = vmatprep.subr.bf16.mxu0 %v7599_v23  ;;  %v5846_v22 = vcombine.low %v50_v21, %v50_v21  ;;  %v5847_v23 = vcombine.high %v50_v21, %v50_v21 }
 0x1b6   :  { %6979 = vmatprep.subr.bf16.mxu1 %v7600_v24  ;;  %v51_v24 = vld [vmem:[%s9442_s0 + $0xe8] sm:$0xff] }
 0x1b8   :  { %6958 = vmatpush3.bf16.msra.mxu0 %v7601_v25 }
 0x1b9   :  { %6980 = vmatpush3.bf16.msra.mxu1 %v7602_v26  ;;  %6959 = vmatprep.subr.bf16.mxu0 %v7603_v27  ;;  %v5848_v27 = vcombine.low %v51_v24, %v51_v24 }
 0x1ba   :  { %6981 = vmatprep.subr.bf16.mxu1 %v7604_v28  ;;  %v5849_v28 = vcombine.high %v51_v24, %v51_v24 }
 0x1bc   :  { %6960 = vmatpush3.bf16.msra.mxu0 %v7605_v29  ;;  %v7651_v29 = vld [vmem:[%s9443_s1 + $0xf78] sm:$0xff]  }
 0x1bd   :  { %6982 = vmatpush3.bf16.msra.mxu1 %v7606_v30  ;;  %6961 = vmatprep.subr.bf16.mxu0 %v7607_v31  ;;  %v7652_v30 = vld [vmem:[%s9443_s1 + $0xff8] sm:$0xff]  }
 0x1be   :  { %6983 = vmatprep.subr.bf16.mxu1 %v7608_v32 }
 0x1c0   :  { %6962 = vmatpush3.bf16.msra.mxu0 %v7609_v33  ;;  %v7653_v33 = vld [vmem:[%s9443_s1 + $0xf38] sm:$0xff]  }
 0x1c1   :  { %6984 = vmatpush3.bf16.msra.mxu1 %v7610_v34  ;;  %6991 = vmatprep.subr.bf16.mxu0 %v7615_v42 }
 0x1c2   :  { %7013 = vmatprep.subr.bf16.mxu1 %v7616_v44 }
 0x1c3   :  { %v6699_v37 = vpop.f32.mrf.mxu0  ;;  %5454 = vmatmul.mubr.bf16.vlgmr.msra.gmra.mxu0 %v5842_v38 }
 0x1c4   :  { %v6721_v41 = vpop.f32.mrf.mxu1  ;;  %5494 = vmatmul.mubr.bf16.vlgmr.msra.gmra.mxu1 %v5844_v40  ;;  %6992 = vmatpush3.bf16.msra.mxu0 %v7617_v46  ;;  %v7655_v40 = vld [vmem:[%s9443_s1 + $0xf70] sm:$0xff]  }
 0x1c5   :  { %v6700_v45 = vpop.f32.mrf.mxu0  ;;  %7014 = vmatpush3.bf16.msra.mxu1 %v7618_v49  ;;  %6993 = vmatprep.subr.bf16.mxu0 %v7619_v54  ;;  %v7658_v46 = vld [vmem:[%s9443_s1 + $0xfb0] sm:$0xff]   ;;  %v7661_v49 = vld [vmem:[%s9443_s1 + $0xf28] sm:$0xff]   ;;  %v7666_v54 = vld [vmem:[%s9443_s1 + $0xfa0] sm:$0xff]  }
 0x1c6   :  { %v6701_v47 = vadd.f32 %v6700_v45, %v6699_v37  ;;  %v6722_v48 = vpop.f32.mrf.mxu1  ;;  %7015 = vmatprep.subr.bf16.mxu1 %v7620_v55  ;;  %5533 = vmatprep.mubr.bf16.mxu0 %v5847_v23  ;;  %v7657_v45 = vld [vmem:[%s9443_s1 + $0xf30] sm:$0xff]   ;;  %v7667_v55 = vld [vmem:[%s9443_s1 + $0xf58] sm:$0xff]  }
 0x1c7   :  { %v6723_v50 = vadd.f32 %v6722_v48, %v6721_v41  ;;  %v6702_v51 = vpop.f32.mrf.mxu0  ;;  %5573 = vmatprep.mubr.bf16.mxu1 %v5849_v28  ;;  %v7656_v41 = vld [vmem:[%s9443_s1 + $0xff0] sm:$0xff]   ;;  %v7660_v48 = vld [vmem:[%s9443_s1 + $0xfe8] sm:$0xff]  }
 0x1c8   :  { %v4976_v52 = vadd.f32 %v6701_v47, %v9115_v7  ;;  %v6724_v53 = vpop.f32.mrf.mxu1  ;;  %6994 = vmatpush3.bf16.msra.mxu0 %v7621_v58  ;;  %v7633_v7 = vld [vmem:[%s9443_s1 + $0xe18] sm:$0xff]   ;;  %v7659_v47 = vld [vmem:[%s9443_s1 + $0xf68] sm:$0xff]   ;;  %v7663_v51 = vld [vmem:[%s9443_s1 + $0xf60] sm:$0xff]  }
 0x1c9   :  { %v6703_v56 = vpop.f32.mrf.mxu0  ;;  %7016 = vmatpush3.bf16.msra.mxu1 %v7622_v60  ;;  %6995 = vmatprep.subr.bf16.mxu0 %v7623_v61  ;;  %v7665_v53 = vld [vmem:[%s9443_s1 + $0xf20] sm:$0xff]   ;;  %v7670_v58 = vld [vmem:[%s9443_s1 + $0xf98] sm:$0xff]   ;;  %v7672_v60 = vld [vmem:[%s9443_s1 + $0xfd0] sm:$0xff]  }
 0x1ca   :  { %v9220_v57 = vadd.f32 %v6723_v50, %v4976_v52  ;;  %v6725_v59 = vpop.f32.mrf.mxu1  ;;  %7017 = vmatprep.subr.bf16.mxu1 %v7624_v62  ;;  %v7662_v50 = vld [vmem:[%s9443_s1 + $0xfa8] sm:$0xff]   ;;  %v7664_v52 = vld [vmem:[%s9443_s1 + $0xfe0] sm:$0xff]   ;;  %v7668_v56 = vld [vmem:[%s9443_s1 + $0xfd8] sm:$0xff]  }
 0x1cb   :  { %v7671_v59 = vld [vmem:[%s9443_s1 + $0xf50] sm:$0xff]  }
 0x1cc   :  { %6996 = vmatpush3.bf16.msra.mxu0 %v7625_v63  ;;  %v7673_v61 = vld [vmem:[%s9443_s1 + $0xf10] sm:$0xff]   ;;  %v7675_v63 = vld [vmem:[%s9443_s1 + $0xf48] sm:$0xff]  }
 0x1cd   :  { %7018 = vmatpush3.bf16.msra.mxu1 %v7626_v0  ;;  %6997 = vmatprep.subr.bf16.mxu0 %v7627_v1  ;;  %v7674_v62 = vld [vmem:[%s9443_s1 + $0xf90] sm:$0xff]   ;;  %v7676_v0 = vld [vmem:[%s9443_s1 + $0xfc8] sm:$0xff]  }
 0x1ce   :  { %7019 = vmatprep.subr.bf16.mxu1 %v7628_v2  ;;  %v7677_v1 = vld [vmem:[%s9443_s1 + $0xf08] sm:$0xff]  }
 0x1cf   :  { %v7678_v2 = vld [vmem:[%s9443_s1 + $0xf88] sm:$0xff]  }
 0x1d0   :  { %6998 = vmatpush3.bf16.msra.mxu0 %v7629_v3  ;;  %v7679_v3 = vld [vmem:[%s9443_s1 + $0xf40] sm:$0xff]  }
 0x1d1   :  { %7020 = vmatpush3.bf16.msra.mxu1 %v7630_v4  ;;  %6999 = vmatprep.subr.bf16.mxu0 %v7631_v5  ;;  %v7680_v4 = vld [vmem:[%s9443_s1 + $0xfc0] sm:$0xff]  }
 0x1d2   :  { %7021 = vmatprep.subr.bf16.mxu1 %v7632_v6  ;;  %v7681_v5 = vld [vmem:[%s9443_s1 + $0xf00] sm:$0xff]  }
 0x1d3   :  { %v7682_v6 = vld [vmem:[%s9443_s1 + $0xf80] sm:$0xff]  }
 0x1d4   :  { %7000 = vmatpush3.bf16.msra.mxu0 %v7633_v7  ;;  %v52_v7 = vld [vmem:[%s9442_s0 + $0xf0] sm:$0xff] }
 0x1d5   :  { %7022 = vmatpush3.bf16.msra.mxu1 %v7634_v8  ;;  %7001 = vmatprep.subr.bf16.mxu0 %v7635_v9  ;;  %v53_v8 = vld [vmem:[%s9442_s0 + $0xf8] sm:$0xff] }
 0x1d6   :  { %7023 = vmatprep.subr.bf16.mxu1 %v7636_v10  ;;  %v5850_v10 = vcombine.low %v52_v7, %v52_v7 }
 0x1d8   :  { %7002 = vmatpush3.bf16.msra.mxu0 %v7637_v11  ;;  %v5851_v11 = vcombine.high %v52_v7, %v52_v7 }
 0x1d9   :  { %7024 = vmatpush3.bf16.msra.mxu1 %v7638_v12  ;;  %7003 = vmatprep.subr.bf16.mxu0 %v7639_v13  ;;  %v5852_v12 = vcombine.low %v53_v8, %v53_v8  ;;  %v5853_v13 = vcombine.high %v53_v8, %v53_v8 }
 0x1da   :  { %7025 = vmatprep.subr.bf16.mxu1 %v7640_v14 }
 0x1dc   :  { %7004 = vmatpush3.bf16.msra.mxu0 %v7641_v15 }
 0x1dd   :  { %7026 = vmatpush3.bf16.msra.mxu1 %v7642_v16  ;;  %7005 = vmatprep.subr.bf16.mxu0 %v7643_v17 }
 0x1de   :  { %7027 = vmatprep.subr.bf16.mxu1 %v7644_v18 }
 0x1e0   :  { %7006 = vmatpush3.bf16.msra.mxu0 %v7645_v19 }
 0x1e1   :  { %7028 = vmatpush3.bf16.msra.mxu1 %v7646_v20  ;;  %7035 = vmatprep.subr.bf16.mxu0 %v7651_v29 }
 0x1e2   :  { %7057 = vmatprep.subr.bf16.mxu1 %v7652_v30 }
 0x1e3   :  { %v6743_v25 = vpop.f32.mrf.mxu0  ;;  %5534 = vmatmul.mubr.bf16.vlgmr.msra.gmra.mxu0 %v5846_v22 }
 0x1e4   :  { %v6765_v26 = vpop.f32.mrf.mxu1  ;;  %5574 = vmatmul.mubr.bf16.vlgmr.msra.gmra.mxu1 %v5848_v27  ;;  %7036 = vmatpush3.bf16.msra.mxu0 %v7653_v33 }
 0x1e5   :  { %v6744_v31 = vpop.f32.mrf.mxu0  ;;  %7058 = vmatpush3.bf16.msra.mxu1 %v7654_v36  ;;  %7037 = vmatprep.subr.bf16.mxu0 %v7655_v40 }
 0x1e6   :  { %v6766_v32 = vpop.f32.mrf.mxu1  ;;  %v6745_v34 = vadd.f32 %v6744_v31, %v6743_v25  ;;  %7059 = vmatprep.subr.bf16.mxu1 %v7656_v41  ;;  %5613 = vmatprep.mubr.bf16.mxu0 %v5851_v11 }
 0x1e7   :  { %v6767_v35 = vadd.f32 %v6766_v32, %v6765_v26  ;;  %v6746_v37 = vpop.f32.mrf.mxu0  ;;  %5653 = vmatprep.mubr.bf16.mxu1 %v5853_v13 }
 0x1e8   :  { %v6768_v38 = vpop.f32.mrf.mxu1  ;;  %v5056_v39 = vadd.f32 %v6745_v34, %v9220_v57  ;;  %7038 = vmatpush3.bf16.msra.mxu0 %v7657_v45  ;;  %v7669_v57 = vld [vmem:[%s9443_s1 + $0xf18] sm:$0xff]  }
 0x1e9   :  { %v6747_v42 = vpop.f32.mrf.mxu0  ;;  %7060 = vmatpush3.bf16.msra.mxu1 %v7658_v46  ;;  %7039 = vmatprep.subr.bf16.mxu0 %v7659_v47 }
 0x1ea   :  { %v6769_v43 = vpop.f32.mrf.mxu1  ;;  %v9325_v44 = vadd.f32 %v6767_v35, %v5056_v39  ;;  %7061 = vmatprep.subr.bf16.mxu1 %v7660_v48 }
 0x1ec   :  { %7040 = vmatpush3.bf16.msra.mxu0 %v7661_v49 }
 0x1ed   :  { %7062 = vmatpush3.bf16.msra.mxu1 %v7662_v50  ;;  %7041 = vmatprep.subr.bf16.mxu0 %v7663_v51 }
 0x1ee   :  { %7063 = vmatprep.subr.bf16.mxu1 %v7664_v52 }
 0x1f0   :  { %7042 = vmatpush3.bf16.msra.mxu0 %v7665_v53 }
 0x1f1   :  { %7064 = vmatpush3.bf16.msra.mxu1 %v7666_v54  ;;  %7043 = vmatprep.subr.bf16.mxu0 %v7667_v55 }
 0x1f2   :  { %7065 = vmatprep.subr.bf16.mxu1 %v7668_v56 }
 0x1f4   :  { %7044 = vmatpush3.bf16.msra.mxu0 %v7669_v57 }
 0x1f5   :  { %7066 = vmatpush3.bf16.msra.mxu1 %v7670_v58  ;;  %7045 = vmatprep.subr.bf16.mxu0 %v7671_v59 }
 0x1f6   :  { %7067 = vmatprep.subr.bf16.mxu1 %v7672_v60 }
 0x1f8   :  { %7046 = vmatpush3.bf16.msra.mxu0 %v7673_v61 }
 0x1f9   :  { %7068 = vmatpush3.bf16.msra.mxu1 %v7674_v62  ;;  %7047 = vmatprep.subr.bf16.mxu0 %v7675_v63 }
 0x1fa   :  { %7069 = vmatprep.subr.bf16.mxu1 %v7676_v0 }
 0x1fc   :  { %7048 = vmatpush3.bf16.msra.mxu0 %v7677_v1 }
 0x1fd   :  { %7070 = vmatpush3.bf16.msra.mxu1 %v7678_v2  ;;  %7049 = vmatprep.subr.bf16.mxu0 %v7679_v3 }
 0x1fe   :  { %7071 = vmatprep.subr.bf16.mxu1 %v7680_v4 }
 0x200   :  { %7050 = vmatpush3.bf16.msra.mxu0 %v7681_v5 }
 0x201   :  { %7072 = vmatpush3.bf16.msra.mxu1 %v7682_v6 }
 0x203   :  { %v6787_v9 = vpop.f32.mrf.mxu0  ;;  %5614 = vmatmul.mubr.bf16.vlgmr.msra.gmra.mxu0 %v5850_v10 }
 0x204   :  { %v6809_v14 = vpop.f32.mrf.mxu1  ;;  %5654 = vmatmul.mubr.bf16.vlgmr.msra.gmra.mxu1 %v5852_v12 }
 0x205   :  { %v6788_v15 = vpop.f32.mrf.mxu0 }
 0x206   :  { %v6789_v16 = vadd.f32 %v6788_v15, %v6787_v9  ;;  %v6810_v17 = vpop.f32.mrf.mxu1 }
 0x207   :  { %v6811_v18 = vadd.f32 %v6810_v17, %v6809_v14  ;;  %v6790_v19 = vpop.f32.mrf.mxu0 }
 0x208   :  { %v5136_v20 = vadd.f32 %v6789_v16, %v9325_v44  ;;  %v6812_v21 = vpop.f32.mrf.mxu1 }
 0x209   :  { %v6791_v22 = vpop.f32.mrf.mxu0 }
 0x20a   :  { %10 = vsyncpa [#allocation3], 0  ;;  %v5176_v23 = vadd.f32 %v6811_v18, %v5136_v20  ;;  %v6813_v24 = vpop.f32.mrf.mxu1  ;;  %v7687_v37 = vld [vmem:[%s9445_s3 + $0x38] sm:$0xff]   ;;  %v7717_v38 = vmov 0.0   ;;  %v7688_v39 = vld [vmem:[%s9445_s3 + $0x30] sm:$0xff]   ;;  %vm7718_vm0 = vmmov 0  }
 0x20b   :  { %7088 = vmatprep.subr.bf16.mxu0 %v7717_v38  ;;  %v7689_v40 = vld [vmem:[%s9445_s3 + $0x28] sm:$0xff]   ;;  %v7690_v41 = vld [vmem:[%s9445_s3 + $0x20] sm:$0xff]   ;;  %v7691_v42 = vld [vmem:[%s9445_s3 + $0x18] sm:$0xff]   ;;  %7104 = vmatprep.mubr.msk.bf16.mxu0 %vm7718_vm0, %v7717_v38  ;;  %s7719_s24 = smov [#allocation2]  }
 0x20c   :  { %7089 = vmatpush3.bf16.msra.mxu0 %v7687_v37  ;;  %v7692_v49 = vld [vmem:[%s9445_s3 + $0x10] sm:$0xff]   ;;  %v7693_v56 = vld [vmem:[%s9445_s3 + $0x8] sm:$0xff]   ;;  %v7694_v57 = vld [vmem:[%s9445_s3] sm:$0xff]   ;;  %s5781_s25 = sshll.u32 %s7719_s24, 4  ;;  %s5782_s25 = int_to_ptr.vmem [resolvable:$true] %s5781_s25 }
 0x20d   :  { %7090 = vmatprep.subr.bf16.mxu0 %v7717_v38  ;;  %s7695_s26 = scalar_lea.vmem %s5782_s25, 128  ;;  %p7700_p1 = scmp.lt.s32.totalorder %s5782_s25, %s5782_s25 }
 0x20e   :  { %p7696_p0 = scmp.ne.s32.totalorder %s5782_s25, %s7695_s26  ;;  %p7701_p2 = scmp.lt.s32.totalorder %s7695_s26, %s7695_s26 }
 0x210   :  { %7091 = vmatpush3.bf16.msra.mxu0 %v7688_v39  ;;  %p7702_p3 = por %p7701_p2, %p7700_p1 }
 0x211   :  { %7092 = vmatprep.subr.bf16.mxu0 %v7717_v38 }
 0x212   :  { %p7703_p4 = pnand %p7702_p3, %p7696_p0 }
 0x214   :  { %7093 = vmatpush3.bf16.msra.mxu0 %v7689_v40 }
 0x215   :  { %7094 = vmatprep.subr.bf16.mxu0 %v7717_v38 }
 0x218   :  { %7095 = vmatpush3.bf16.msra.mxu0 %v7690_v41 }
 0x219   :  { %7096 = vmatprep.subr.bf16.mxu0 %v7717_v38 }
 0x21c   :  { %7097 = vmatpush3.bf16.msra.mxu0 %v7691_v42 }
 0x21d   :  { %7098 = vmatprep.subr.bf16.mxu0 %v7717_v38 }
 0x220   :  { %7099 = vmatpush3.bf16.msra.mxu0 %v7692_v49 }
 0x221   :  { %7100 = vmatprep.subr.bf16.mxu0 %v7717_v38 }
 0x223   :  { %v6831_v25 = vpop.f32.mrf.mxu0 }
 0x224   :  { %v6853_v26 = vpop.f32.mrf.mxu1  ;;  %7101 = vmatpush3.bf16.msra.mxu0 %v7693_v56 }
 0x225   :  { %v6832_v27 = vpop.f32.mrf.mxu0  ;;  %7102 = vmatprep.subr.bf16.mxu0 %v7717_v38 }
 0x226   :  { %v6833_v28 = vadd.f32 %v6832_v27, %v6831_v25  ;;  %v6854_v29 = vpop.f32.mrf.mxu1 }
 0x227   :  { %v6855_v30 = vadd.f32 %v6854_v29, %v6853_v26  ;;  %v6834_v31 = vpop.f32.mrf.mxu0 }
 0x228   :  { %v5216_v32 = vadd.f32 %v6833_v28, %v5176_v23  ;;  %v6856_v33 = vpop.f32.mrf.mxu1  ;;  %7103 = vmatpush3.bf16.msra.mxu0 %v7694_v57 }
 0x229   :  { %v6835_v34 = vpop.f32.mrf.mxu0 }
 0x22a   :  { %v5256_v35 = vadd.f32 %v6855_v30, %v5216_v32  ;;  %v6857_v36 = vpop.f32.mrf.mxu1 }
 0x243   :  { %v6875_v43 = vpop.f32.mrf.mxu0 }
 0x244   :  { %v6897_v44 = vpop.f32.mrf.mxu1 }
 0x245   :  { %v6876_v45 = vpop.f32.mrf.mxu0 }
 0x246   :  { %v6898_v46 = vpop.f32.mrf.mxu1  ;;  %v6877_v47 = vadd.f32 %v6876_v45, %v6875_v43 }
 0x247   :  { %v6899_v48 = vadd.f32 %v6898_v46, %v6897_v44  ;;  %v6878_v50 = vpop.f32.mrf.mxu0  ;;  %v6366_v44 = vld [vmem:[%s9446_s4] ss:$0 sm:$0xff] }
 0x248   :  { %v6900_v51 = vpop.f32.mrf.mxu1  ;;  %v5296_v52 = vadd.f32 %v6877_v47, %v5256_v35 }
 0x249   :  { %v6879_v53 = vpop.f32.mrf.mxu0 }
 0x24a   :  { %v6901_v54 = vpop.f32.mrf.mxu1  ;;  %v5336_v55 = vadd.f32 %v6899_v48, %v5296_v52 }
 0x263   :  { %v6919_v58 = vpop.f32.mrf.mxu0 }
 0x264   :  { %v6941_v59 = vpop.f32.mrf.mxu1 }
 0x265   :  { %v6920_v60 = vpop.f32.mrf.mxu0 }
 0x266   :  { %v6921_v61 = vadd.f32 %v6920_v60, %v6919_v58  ;;  %v6942_v62 = vpop.f32.mrf.mxu1 }
 0x267   :  { %v6943_v63 = vadd.f32 %v6942_v62, %v6941_v59  ;;  %v6922_v0 = vpop.f32.mrf.mxu0 }
 0x268   :  { %v5376_v1 = vadd.f32 %v6921_v61, %v5336_v55  ;;  %v6944_v2 = vpop.f32.mrf.mxu1 }
 0x269   :  { %v6923_v3 = vpop.f32.mrf.mxu0 }
 0x26a   :  { %v5416_v4 = vadd.f32 %v6943_v63, %v5376_v1  ;;  %v6945_v5 = vpop.f32.mrf.mxu1 }
 0x283   :  { %v6963_v6 = vpop.f32.mrf.mxu0 }
 0x284   :  { %v6985_v7 = vpop.f32.mrf.mxu1 }
 0x285   :  { %v6964_v8 = vpop.f32.mrf.mxu0 }
 0x286   :  { %v6986_v9 = vpop.f32.mrf.mxu1  ;;  %v6965_v22 = vadd.f32 %v6964_v8, %v6963_v6 }
 0x287   :  { %v6966_v10 = vpop.f32.mrf.mxu0  ;;  %v6987_v24 = vadd.f32 %v6986_v9, %v6985_v7 }
 0x288   :  { %v6988_v11 = vpop.f32.mrf.mxu1  ;;  %v5456_v23 = vadd.f32 %v6965_v22, %v5416_v4 }
 0x289   :  { %v6967_v12 = vpop.f32.mrf.mxu0 }
 0x28a   :  { %v6989_v13 = vpop.f32.mrf.mxu1  ;;  %v5496_v26 = vadd.f32 %v6987_v24, %v5456_v23 }
 0x2a3   :  { %v7007_v14 = vpop.f32.mrf.mxu0 }
 0x2a4   :  { %v7029_v15 = vpop.f32.mrf.mxu1 }
 0x2a5   :  { %v7008_v16 = vpop.f32.mrf.mxu0 }
 0x2a6   :  { %v7030_v17 = vpop.f32.mrf.mxu1  ;;  %v7009_v25 = vadd.f32 %v7008_v16, %v7007_v14 }
 0x2a7   :  { %v7010_v18 = vpop.f32.mrf.mxu0  ;;  %v7031_v28 = vadd.f32 %v7030_v17, %v7029_v15 }
 0x2a8   :  { %v7032_v19 = vpop.f32.mrf.mxu1  ;;  %v5536_v27 = vadd.f32 %v7009_v25, %v5496_v26 }
 0x2a9   :  { %v7011_v20 = vpop.f32.mrf.mxu0 }
 0x2aa   :  { %v7033_v21 = vpop.f32.mrf.mxu1  ;;  %v5576_v32 = vadd.f32 %v7031_v28, %v5536_v27 }
 0x2c3   :  { %v7051_v29 = vpop.f32.mrf.mxu0 }
 0x2c4   :  { %v7073_v30 = vpop.f32.mrf.mxu1 }
 0x2c5   :  { %v7052_v31 = vpop.f32.mrf.mxu0 }
 0x2c6   :  { %v7053_v33 = vadd.f32 %v7052_v31, %v7051_v29  ;;  %v7074_v34 = vpop.f32.mrf.mxu1 }
 0x2c7   :  { %v7054_v35 = vpop.f32.mrf.mxu0  ;;  %v7075_v37 = vadd.f32 %v7074_v34, %v7073_v30 }
 0x2c8   :  { %v5616_v36 = vadd.f32 %v7053_v33, %v5576_v32  ;;  %v7076_v38 = vpop.f32.mrf.mxu1 }
 0x2c9   :  { %v7055_v39 = vpop.f32.mrf.mxu0 }
 0x2ca   :  { %v5656_v40 = vadd.f32 %v7075_v37, %v5616_v36  ;;  %v7077_v41 = vpop.f32.mrf.mxu1 }
 0x2cc   :  { %v5661_v42 = vmax.f32 %v5656_v40, 0.0 }
 0x2ce   :  { %v5662_v43 = vpack.c.bf16 %v5661_v42, %v5661_v42 }
 0x2d0   :  { %7105 = vmatmul.mubr.bf16.vlgmr.msra.gmra.mxu0 %v5662_v43 }
 0x390   :  { %v5768_v45 = vpop.f32.mrf.mxu0 }
 0x391   :  { %v5769_v46 = vadd.f32 %v6366_v44, %v5768_v45 }
 0x392   :  { %v7106_v47 = vpop.f32.mrf.mxu0 }
 0x393   :  { %5774 = vst [vmem:[#allocation2] sm:$0xff] %v5769_v46 }
 0x394   :  { %v5771_v48 = vpop.f32.mrf.mxu0 }
 0x395   :  { %7706 = shalt.err (!%p7703_p4)
}
 0x396   :  { %5784 = dma.vmem_to_hbm [thread:$0]  %s5782_s25, 128, %s9447_s5, [#allocation3]   ;;  %v7107_v49 = vpop.f32.mrf.mxu0 }
 0x397   :  { %7715 = dma.done.wait [#allocation3], 128  }
 0x398   :  { %7716 = vsyncadd [#allocation3], 4294967168 }
 0x399   :  { %5788 = vsyncpa [#allocation3], 1 }

</bundles_post_ra>
